<compile_context>
chip_gen: v7x
topology: tpu7x:2x2x1
jax: 0.10.0
libtpu: 0.0.40
codegen_flags: <defaults>
</compile_context>

<pallas_src>
import numpy as np
import jax
import jax.numpy as jnp
from jax.experimental import pallas as pl
from jax.experimental.pallas import tpu as pltpu

EPS = 1e-4
_N_SCALARS_PER_BLOCK = 9     # fusion weights per block (module order below)

# per-channel columns packed into one slab, in this order:
_VEC_ORDER = ('p3_in_b', 'p4_in_b', 'p5_in_b',
              'p4_mid_dw', 'p4_mid_db', 'p3_out_dw', 'p3_out_db',
              'p4_out_dw', 'p4_out_db', 'p5_out_dw', 'p5_out_db')
# columns 11..19 = normalized fusion weights
#   [p4_mid_w1, p4_mid_w2, p3_out_w1, p3_out_w2,
#    p4_out_w1, p4_out_w2, p4_out_w3, p5_out_w1, p5_out_w3]


# -------------------- bilinear interpolation (trace time) --------------------

def _interp_matrix(out_size, in_size):
    """Row-stochastic (out_size, in_size) matrix reproducing
    F.interpolate(mode='bilinear', align_corners=False) along one axis."""
    if out_size == in_size:
        return np.eye(out_size, dtype=np.float32)
    scale = in_size / out_size
    dst = np.arange(out_size)
    src = (dst + 0.5) * scale - 0.5
    src = np.maximum(src, 0.0)
    i0 = np.minimum(np.floor(src).astype(np.int64), in_size - 1)
    i1 = np.minimum(i0 + 1, in_size - 1)
    lam = (src - i0).astype(np.float32)
    R = np.zeros((out_size, in_size), dtype=np.float32)
    np.add.at(R, (dst, i0), 1.0 - lam)
    np.add.at(R, (dst, i1), lam)
    return R


def _interp_taps(out_size, in_size):
    """[(i0, i1, lam)] two-tap plan for the same interpolation along one axis."""
    if out_size == in_size:
        return [(i, i, 0.0) for i in range(out_size)]
    scale = in_size / out_size
    taps = []
    for d in range(out_size):
        src = max((d + 0.5) * scale - 0.5, 0.0)
        i0 = min(int(np.floor(src)), in_size - 1)
        i1 = min(i0 + 1, in_size - 1)
        taps.append((i0, i1, float(src - i0)))
    return taps


# ----------------------------- fused Pallas kernel ---------------------------

def _make_stack_kernel(n_blocks, out_c, cins, hw, taps):
    (h3, w3), (h4, w4), (h5, w5) = hw
    taps54, taps43, taps34, taps45 = taps
    BF, F32 = jnp.bfloat16, jnp.float32

    def kernel(p3_ref, p4_ref, p5_ref, cw_ref, vw_ref, rw_ref,
               o3_ref, o4_ref, o5_ref):

        def pconv(x, b, lvl, cin, h):
            # 1x1 conv: row-batched (out_c, cin) @ (cin, W) on the MXU (bf16 in,
            # f32 acc) + per-channel bias (VPU).
            w = cw_ref[b, lvl, :, :cin]                          # (out_c, cin)
            wb = jnp.broadcast_to(w, (h, out_c, cin))
            y = jnp.einsum('hoc,hcw->how', wb, x.astype(BF),
                           preferred_element_type=F32)           # (h, out_c, W)
            return y + vw_ref[b, :, lvl:lvl + 1]                 # bias (out_c,1)

        def resize(x, row_taps, r_idx, w_src, w_dst):
            # Separable bilinear resize of (H_src, C, w_src) -> (H_dst, C, w_dst).
            # H direction: 2-tap weighted row gather (trace-time taps, VPU).
            rows = []
            for (i0, i1, lam) in row_taps:
                r0 = x[i0:i0 + 1]
                if i0 == i1 or lam == 0.0:
                    rows.append(r0)
                else:
                    rows.append(r0 * (1.0 - lam) + x[i1:i1 + 1] * lam)
            y = jnp.concatenate(rows, axis=0) if len(rows) > 1 else rows[0]
            # W direction: one small matmul against the shared interp matrix.
            rwt = rw_ref[r_idx, :w_src, :w_dst]                  # (w_src, w_dst)
            rb = jnp.broadcast_to(rwt, (len(row_taps), w_src, w_dst))
            return jnp.einsum('hcw,hwd->hcd', y.astype(BF), rb,
                              preferred_element_type=F32)

        def fuse(b, xs, wcols, dw_col, db_col):
            # Normalized weighted fusion + depthwise 1x1 (= scale + bias), f32 VPU.
            acc = xs[0] * vw_ref[b, :, wcols[0]:wcols[0] + 1]
            for x, j in zip(xs[1:], wcols[1:]):
                acc = acc + x * vw_ref[b, :, j:j + 1]
            return (acc * vw_ref[b, :, dw_col:dw_col + 1]
                    + vw_ref[b, :, db_col:db_col + 1])

        p3 = p3_ref[0]                                           # (H3, C3, W3) bf16
        p4 = p4_ref[0]
        p5 = p5_ref[0]

        for b in range(n_blocks):
            c3, c4, c5 = cins[b]
            p3c = pconv(p3, b, 0, c3, h3)
            p4c = pconv(p4, b, 1, c4, h4)
            p5c = pconv(p5, b, 2, c5, h5)

            p4m = fuse(b, [p4c, resize(p5c, taps54, 0, w5, w4)], [11, 12], 3, 4)
            p3o = fuse(b, [p3c, resize(p4m, taps43, 1, w4, w3)], [13, 14], 5, 6)
            p4o = fuse(b, [p4c, p4m, resize(p3o, taps34, 2, w3, w4)],
                       [15, 16, 17], 7, 8)
            p5o = fuse(b, [p5c, resize(p4o, taps45, 3, w4, w5)], [18, 19], 9, 10)
            p3, p4, p5 = p3o, p4o, p5o

        o3_ref[0] = p3
        o4_ref[0] = p4
        o5_ref[0] = p5

    return kernel


# ------------------------------- BiFPN forward -------------------------------

def bifpn_forward(all_params, scalars, feats_nchw):
    n_blocks = len(all_params)
    N = feats_nchw[0].shape[0]
    hw = [(int(x.shape[2]), int(x.shape[3])) for x in feats_nchw]
    (h3, w3), (h4, w4), (h5, w5) = hw
    out_c = int(all_params[-1]['p3_in_w'].shape[0])
    cins = [[int(p['p3_in_w'].shape[1]), int(p['p4_in_w'].shape[1]),
             int(p['p5_in_w'].shape[1])] for p in all_params]
    max_cin = max(max(c) for c in cins)

    # Inputs: NCHW -> (N, H, C, W), bf16 for the MXU.  One extra HBM pass over
    # the (small) inputs/outputs only; intermediates never leave VMEM.
    feats = [jnp.transpose(x, (0, 2, 1, 3)).astype(jnp.bfloat16)
             for x in feats_nchw]

    # Packed 1x1-conv weights: (n_blocks, 3, out_c, max_cin), bf16, zero-padded.
    rows = []
    for p in all_params:
        for name in ('p3_in_w', 'p4_in_w', 'p5_in_w'):
            w = p[name]
            rows.append(jnp.pad(w, ((0, 0), (0, max_cin - w.shape[1]))))
    cw = (jnp.stack(rows).reshape(n_blocks, 3, out_c, max_cin)
          .astype(jnp.bfloat16))

    # Packed per-channel columns: biases, dw, db, normalized fusion weights.
    s2 = scalars.reshape(n_blocks, _N_SCALARS_PER_BLOCK).astype(jnp.float32)
    vw_blocks = []
    for b, p in enumerate(all_params):
        cols = [p[k].reshape(out_c, 1) for k in _VEC_ORDER]          # 11 cols
        w = s2[b]
        wn = jnp.concatenate([
            w[0:2] / (w[0] + w[1] + EPS),
            w[2:4] / (w[2] + w[3] + EPS),
            w[4:7] / (w[4] + w[5] + w[6] + EPS),
            w[7:9] / (w[7] + w[8] + EPS)])                           # 9 cols
        cols.append(jnp.broadcast_to(wn[None, :], (out_c, 9)))
        vw_blocks.append(jnp.concatenate(cols, axis=1))              # (out_c, 20)
    vw = jnp.stack(vw_blocks)                                        # f32

    # Packed W-direction interpolation matrices (bf16, shared by all blocks).
    maxw = max(w3, w4, w5)

    def wmat(win, wout):
        m = np.zeros((maxw, maxw), np.float32)
        m[:win, :wout] = _interp_matrix(wout, win).T
        return m

    rw = jnp.asarray(np.stack([wmat(w5, w4), wmat(w4, w3),
                               wmat(w3, w4), wmat(w4, w5)]), jnp.bfloat16)

    # Trace-time H-direction 2-tap plans (shared by all blocks).
    taps = (_interp_taps(h4, h5), _interp_taps(h3, h4),
            _interp_taps(h4, h3), _interp_taps(h5, h4))

    kernel = _make_stack_kernel(n_blocks, out_c, cins, hw, taps)

    feat_specs = [pl.BlockSpec((1, h, c, w), lambda n: (n, 0, 0, 0))
                  for (h, w), c in zip(hw, cins[0])]
    const_specs = [pl.BlockSpec(cw.shape, lambda n: (0, 0, 0, 0)),
                   pl.BlockSpec(vw.shape, lambda n: (0, 0, 0)),
                   pl.BlockSpec(rw.shape, lambda n: (0, 0, 0))]
    out_specs = tuple(pl.BlockSpec((1, h, out_c, w), lambda n: (n, 0, 0, 0))
                      for (h, w) in hw)
    out_shape = tuple(jax.ShapeDtypeStruct((N, h, out_c, w), jnp.float32)
                      for (h, w) in hw)

    outs = pl.pallas_call(
        kernel,
        out_shape=out_shape,
        grid=(N,),
        in_specs=feat_specs + const_specs,
        out_specs=out_specs,
        compiler_params=pltpu.CompilerParams(
            dimension_semantics=("parallel",),
            vmem_limit_bytes=32 * 1024 * 1024),
    )(*feats, cw, vw, rw)

    # (N, H, C, W) -> NCHW
    return [jnp.transpose(o, (0, 2, 1, 3)) for o in outs]


# ------------------------------ parameter init -------------------------------

def init_block_params(key, in_channels_list, out_ch):
    ks = jax.random.split(key, 14)

    def u(k, shape, bound):
        return jax.random.uniform(k, shape, jnp.float32, -bound, bound)

    params = {}
    for i, name in enumerate(['p3_in', 'p4_in', 'p5_in']):
        cin = in_channels_list[i]
        bound = 1.0 / np.sqrt(cin)
        params[name + '_w'] = u(ks[2 * i], (out_ch, cin), bound)     # (Cout, Cin)
        params[name + '_b'] = u(ks[2 * i + 1], (out_ch, 1), bound)
    for j, name in enumerate(['p4_mid', 'p3_out', 'p4_out', 'p5_out']):
        params[name + '_dw'] = u(ks[6 + 2 * j], (out_ch, 1), 1.0)    # dw scale
        params[name + '_db'] = u(ks[6 + 2 * j + 1], (out_ch, 1), 1.0)
    return params


# ---------------------------- numpy (f64) reference --------------------------

def _np_resize(x, out_hw):
    _, _, H, W = x.shape
    Rh = _interp_matrix(out_hw[0], H).astype(np.float64)
    Rw = _interp_matrix(out_hw[1], W).astype(np.float64)
    t = np.einsum('oh,nchw->ncow', Rh, x)
    return np.einsum('pw,ncow->ncop', Rw, t)


def _np_block(p, s_row, feats):
    def pconv(x, w, b):
        w = np.asarray(w, np.float64)
        b = np.asarray(b, np.float64).reshape(1, -1, 1, 1)
        return np.einsum('oc,nchw->nohw', w, x) + b

    def fdw(xs, ws, dw, db):
        denom = sum(ws) + EPS
        fused = sum(w * x for w, x in zip(ws, xs)) / denom
        return (fused * np.asarray(dw, np.float64).reshape(1, -1, 1, 1)
                + np.asarray(db, np.float64).reshape(1, -1, 1, 1))

    p3, p4, p5 = feats
    p3 = pconv(p3, p['p3_in_w'], p['p3_in_b'])
    p4 = pconv(p4, p['p4_in_w'], p['p4_in_b'])
    p5 = pconv(p5, p['p5_in_w'], p['p5_in_b'])
    s3, s4, s5 = p3.shape[2:], p4.shape[2:], p5.shape[2:]
    p4_mid = fdw([p4, _np_resize(p5, s4)], [s_row[0], s_row[1]],
                 p['p4_mid_dw'], p['p4_mid_db'])
    p3_out = fdw([p3, _np_resize(p4_mid, s3)], [s_row[2], s_row[3]],
                 p['p3_out_dw'], p['p3_out_db'])
    p4_out = fdw([p4, p4_mid, _np_resize(p3_out, s4)],
                 [s_row[4], s_row[5], s_row[6]],
                 p['p4_out_dw'], p['p4_out_db'])
    p5_out = fdw([p5, _np_resize(p4_out, s5)], [s_row[7], s_row[8]],
                 p['p5_out_dw'], p['p5_out_db'])
    return [p3_out, p4_out, p5_out]


def _np_bifpn(all_params, scalars, feats_nchw):
    feats = [np.asarray(x, np.float64) for x in feats_nchw]
    s = np.asarray(scalars, np.float64).reshape(len(all_params),
                                                _N_SCALARS_PER_BLOCK)
    for b, p in enumerate(all_params):
        feats = _np_block(p, s[b], feats)
    return feats


# ------------------------------------ main -----------------------------------

if __name__ == "__main__":
    key = jax.random.PRNGKey(0)
    in_channels_list = [4, 8, 16]
    out_channels = 8
    n_stack = 3

    k_in, k_p = jax.random.split(key)
    kp3, kp4, kp5 = jax.random.split(k_in, 3)
    p3 = jax.random.normal(kp3, (2, 4, 16, 16), jnp.float32)
    p4 = jax.random.normal(kp4, (2, 8, 8, 8), jnp.float32)
    p5 = jax.random.normal(kp5, (2, 16, 4, 4), jnp.float32)

    block_keys = jax.random.split(k_p, n_stack)
    all_params = []
    for i in range(n_stack):
        in_list = in_channels_list if i == 0 else [out_channels] * 3
        all_params.append(init_block_params(block_keys[i], in_list,
                                            out_channels))

    # Fusion scalar weights (the PyTorch module initializes these to 1).
    scalars = jnp.ones((n_stack * _N_SCALARS_PER_BLOCK,), jnp.float32)

    fwd = jax.jit(bifpn_forward)
    outs = fwd(all_params, scalars, [p3, p4, p5])
    outs = [jax.block_until_ready(o) for o in outs]

    refs = _np_bifpn(all_params, scalars, [p3, p4, p5])
    # bf16 MXU operands through 3 stacked blocks bound accuracy to ~1e-2 grade.
    for o, r in zip(outs, refs):
        assert o.shape == r.shape
        np.testing.assert_allclose(np.asarray(o, np.float64), r,
                                   rtol=3e-2, atol=3e-2)

    print("KERNEL_OK")
</pallas_src>

<mosaic_0001>
module attributes {stable_mosaic.version = 11 : i64} {
  func.func @kernel(%arg0: i32, %arg1: memref<1x16x4x16xbf16, #tpu.memory_space<vmem>>, %arg2: memref<1x8x8x8xbf16, #tpu.memory_space<vmem>>, %arg3: memref<1x4x16x4xbf16, #tpu.memory_space<vmem>>, %arg4: memref<3x3x8x16xbf16, #tpu.memory_space<vmem>>, %arg5: memref<3x8x20xf32, #tpu.memory_space<vmem>>, %arg6: memref<4x16x16xbf16, #tpu.memory_space<vmem>>, %arg7: memref<1x16x8x16xf32, #tpu.memory_space<vmem>>, %arg8: memref<1x8x8x8xf32, #tpu.memory_space<vmem>>, %arg9: memref<1x4x8x4xf32, #tpu.memory_space<vmem>>) attributes {dimension_semantics = [#tpu.dimension_semantics<parallel>], iteration_bounds = array<i64: 2>, scalar_prefetch = 0 : i64, scratch_operands = 0 : i64, tpu.core_type = #tpu.core_type<tc>, window_params = [{transform_indices = @transform_0, window_bounds = array<i64: 1, 16, 4, 16>}, {transform_indices = @transform_1, window_bounds = array<i64: 1, 8, 8, 8>}, {transform_indices = @transform_2, window_bounds = array<i64: 1, 4, 16, 4>}, {pipeline_mode = #tpu.pipeline_mode<synchronous>, transform_indices = @transform_3, window_bounds = array<i64: 3, 3, 8, 16>}, {pipeline_mode = #tpu.pipeline_mode<synchronous>, transform_indices = @transform_4, window_bounds = array<i64: 3, 8, 20>}, {pipeline_mode = #tpu.pipeline_mode<synchronous>, transform_indices = @transform_5, window_bounds = array<i64: 4, 16, 16>}, {transform_indices = @transform_6, window_bounds = array<i64: 1, 16, 8, 16>}, {transform_indices = @transform_7, window_bounds = array<i64: 1, 8, 8, 8>}, {transform_indices = @transform_8, window_bounds = array<i64: 1, 4, 8, 4>}]} {
    %c0 = arith.constant 0 : index
    %c0_0 = arith.constant 0 : index
    %c0_1 = arith.constant 0 : index
    %c0_2 = arith.constant 0 : index
    %0 = vector.load %arg1[%c0, %c0_0, %c0_1, %c0_2] : memref<1x16x4x16xbf16, #tpu.memory_space<vmem>>, vector<1x16x4x16xbf16>
    %1 = vector.shape_cast %0 : vector<1x16x4x16xbf16> to vector<16x4x16xbf16>
    %c0_3 = arith.constant 0 : index
    %c0_4 = arith.constant 0 : index
    %c0_5 = arith.constant 0 : index
    %c0_6 = arith.constant 0 : index
    %2 = vector.load %arg2[%c0_3, %c0_4, %c0_5, %c0_6] : memref<1x8x8x8xbf16, #tpu.memory_space<vmem>>, vector<1x8x8x8xbf16>
    %3 = vector.shape_cast %2 : vector<1x8x8x8xbf16> to vector<8x8x8xbf16>
    %c0_7 = arith.constant 0 : index
    %c0_8 = arith.constant 0 : index
    %c0_9 = arith.constant 0 : index
    %c0_10 = arith.constant 0 : index
    %4 = vector.load %arg3[%c0_7, %c0_8, %c0_9, %c0_10] : memref<1x4x16x4xbf16, #tpu.memory_space<vmem>>, vector<1x4x16x4xbf16>
    %5 = vector.shape_cast %4 : vector<1x4x16x4xbf16> to vector<4x16x4xbf16>
    %c0_11 = arith.constant 0 : index
    %c0_12 = arith.constant 0 : index
    %c0_13 = arith.constant 0 : index
    %c0_14 = arith.constant 0 : index
    %6 = vector.load %arg4[%c0_11, %c0_12, %c0_13, %c0_14] : memref<3x3x8x16xbf16, #tpu.memory_space<vmem>>, vector<1x1x8x4xbf16>
    %7 = vector.shape_cast %6 : vector<1x1x8x4xbf16> to vector<8x4xbf16>
    %8 = vector.shape_cast %7 : vector<8x4xbf16> to vector<1x8x4xbf16>
    %9 = vector.broadcast %8 : vector<1x8x4xbf16> to vector<16x8x4xbf16>
    "tpu.trace_start"() <{level = 10 : i32, message = "hoc,hcw->how"}> : () -> ()
    %cst = arith.constant dense<0.000000e+00> : vector<16x8x16xf32>
    %10 = tpu.matmul %9, %1, %cst {dimension_numbers = #tpu.dot_dimension_numbers<[2], [1], [1], [2], [0, 0, 0, 1, 1, 2], [0], [0]>} : vector<16x8x4xbf16>, vector<16x4x16xbf16>, vector<16x8x16xf32> -> vector<16x8x16xf32>
    "tpu.trace_stop"() : () -> ()
    %c0_15 = arith.constant 0 : index
    %c0_16 = arith.constant 0 : index
    %c0_17 = arith.constant 0 : index
    %11 = vector.load %arg5[%c0_15, %c0_16, %c0_17] : memref<3x8x20xf32, #tpu.memory_space<vmem>>, vector<1x8x1xf32>
    %12 = vector.shape_cast %11 : vector<1x8x1xf32> to vector<8x1xf32>
    %13 = vector.shape_cast %12 : vector<8x1xf32> to vector<1x8x1xf32>
    %14 = vector.broadcast %13 : vector<1x8x1xf32> to vector<16x8x16xf32>
    %15 = arith.addf %10, %14 : vector<16x8x16xf32>
    %c0_18 = arith.constant 0 : index
    %c1 = arith.constant 1 : index
    %c0_19 = arith.constant 0 : index
    %c0_20 = arith.constant 0 : index
    %16 = vector.load %arg4[%c0_18, %c1, %c0_19, %c0_20] : memref<3x3x8x16xbf16, #tpu.memory_space<vmem>>, vector<1x1x8x8xbf16>
    %17 = vector.shape_cast %16 : vector<1x1x8x8xbf16> to vector<8x8xbf16>
    %18 = vector.shape_cast %17 : vector<8x8xbf16> to vector<1x8x8xbf16>
    %19 = vector.broadcast %18 : vector<1x8x8xbf16> to vector<8x8x8xbf16>
    "tpu.trace_start"() <{level = 10 : i32, message = "hoc,hcw->how"}> : () -> ()
    %cst_21 = arith.constant dense<0.000000e+00> : vector<8x8x8xf32>
    %20 = tpu.matmul %19, %3, %cst_21 {dimension_numbers = #tpu.dot_dimension_numbers<[2], [1], [1], [2], [0, 0, 0, 1, 1, 2], [0], [0]>} : vector<8x8x8xbf16>, vector<8x8x8xbf16>, vector<8x8x8xf32> -> vector<8x8x8xf32>
    "tpu.trace_stop"() : () -> ()
    %c0_22 = arith.constant 0 : index
    %c0_23 = arith.constant 0 : index
    %c1_24 = arith.constant 1 : index
    %21 = vector.load %arg5[%c0_22, %c0_23, %c1_24] : memref<3x8x20xf32, #tpu.memory_space<vmem>>, vector<1x8x1xf32>
    %22 = vector.shape_cast %21 : vector<1x8x1xf32> to vector<8x1xf32>
    %23 = vector.shape_cast %22 : vector<8x1xf32> to vector<1x8x1xf32>
    %24 = vector.broadcast %23 : vector<1x8x1xf32> to vector<8x8x8xf32>
    %25 = arith.addf %20, %24 : vector<8x8x8xf32>
    %c0_25 = arith.constant 0 : index
    %c2 = arith.constant 2 : index
    %c0_26 = arith.constant 0 : index
    %c0_27 = arith.constant 0 : index
    %26 = vector.load %arg4[%c0_25, %c2, %c0_26, %c0_27] : memref<3x3x8x16xbf16, #tpu.memory_space<vmem>>, vector<1x1x8x16xbf16>
    %27 = vector.shape_cast %26 : vector<1x1x8x16xbf16> to vector<8x16xbf16>
    %28 = vector.shape_cast %27 : vector<8x16xbf16> to vector<1x8x16xbf16>
    %29 = vector.broadcast %28 : vector<1x8x16xbf16> to vector<4x8x16xbf16>
    "tpu.trace_start"() <{level = 10 : i32, message = "hoc,hcw->how"}> : () -> ()
    %cst_28 = arith.constant dense<0.000000e+00> : vector<4x8x4xf32>
    %30 = tpu.matmul %29, %5, %cst_28 {dimension_numbers = #tpu.dot_dimension_numbers<[2], [1], [1], [2], [0, 0, 0, 1, 1, 2], [0], [0]>} : vector<4x8x16xbf16>, vector<4x16x4xbf16>, vector<4x8x4xf32> -> vector<4x8x4xf32>
    "tpu.trace_stop"() : () -> ()
    %c0_29 = arith.constant 0 : index
    %c0_30 = arith.constant 0 : index
    %c2_31 = arith.constant 2 : index
    %31 = vector.load %arg5[%c0_29, %c0_30, %c2_31] : memref<3x8x20xf32, #tpu.memory_space<vmem>>, vector<1x8x1xf32>
    %32 = vector.shape_cast %31 : vector<1x8x1xf32> to vector<8x1xf32>
    %33 = vector.shape_cast %32 : vector<8x1xf32> to vector<1x8x1xf32>
    %34 = vector.broadcast %33 : vector<1x8x1xf32> to vector<4x8x4xf32>
    %35 = arith.addf %30, %34 : vector<4x8x4xf32>
    %36 = vector.extract_strided_slice %35 {offsets = [0, 0, 0], sizes = [1, 8, 4], strides = [1, 1, 1]} : vector<4x8x4xf32> to vector<1x8x4xf32>
    %37 = vector.extract_strided_slice %35 {offsets = [0, 0, 0], sizes = [1, 8, 4], strides = [1, 1, 1]} : vector<4x8x4xf32> to vector<1x8x4xf32>
    %cst_32 = arith.constant 7.500000e-01 : f32
    %38 = vector.broadcast %cst_32 : f32 to vector<1x8x4xf32>
    %39 = arith.mulf %37, %38 : vector<1x8x4xf32>
    %40 = vector.extract_strided_slice %35 {offsets = [1, 0, 0], sizes = [1, 8, 4], strides = [1, 1, 1]} : vector<4x8x4xf32> to vector<1x8x4xf32>
    %cst_33 = arith.constant 2.500000e-01 : f32
    %41 = vector.broadcast %cst_33 : f32 to vector<1x8x4xf32>
    %42 = arith.mulf %40, %41 : vector<1x8x4xf32>
    %43 = arith.addf %39, %42 : vector<1x8x4xf32>
    %44 = vector.extract_strided_slice %35 {offsets = [0, 0, 0], sizes = [1, 8, 4], strides = [1, 1, 1]} : vector<4x8x4xf32> to vector<1x8x4xf32>
    %cst_34 = arith.constant 2.500000e-01 : f32
    %45 = vector.broadcast %cst_34 : f32 to vector<1x8x4xf32>
    %46 = arith.mulf %44, %45 : vector<1x8x4xf32>
    %47 = vector.extract_strided_slice %35 {offsets = [1, 0, 0], sizes = [1, 8, 4], strides = [1, 1, 1]} : vector<4x8x4xf32> to vector<1x8x4xf32>
    %cst_35 = arith.constant 7.500000e-01 : f32
    %48 = vector.broadcast %cst_35 : f32 to vector<1x8x4xf32>
    %49 = arith.mulf %47, %48 : vector<1x8x4xf32>
    %50 = arith.addf %46, %49 : vector<1x8x4xf32>
    %51 = vector.extract_strided_slice %35 {offsets = [1, 0, 0], sizes = [1, 8, 4], strides = [1, 1, 1]} : vector<4x8x4xf32> to vector<1x8x4xf32>
    %cst_36 = arith.constant 7.500000e-01 : f32
    %52 = vector.broadcast %cst_36 : f32 to vector<1x8x4xf32>
    %53 = arith.mulf %51, %52 : vector<1x8x4xf32>
    %54 = vector.extract_strided_slice %35 {offsets = [2, 0, 0], sizes = [1, 8, 4], strides = [1, 1, 1]} : vector<4x8x4xf32> to vector<1x8x4xf32>
    %cst_37 = arith.constant 2.500000e-01 : f32
    %55 = vector.broadcast %cst_37 : f32 to vector<1x8x4xf32>
    %56 = arith.mulf %54, %55 : vector<1x8x4xf32>
    %57 = arith.addf %53, %56 : vector<1x8x4xf32>
    %58 = vector.extract_strided_slice %35 {offsets = [1, 0, 0], sizes = [1, 8, 4], strides = [1, 1, 1]} : vector<4x8x4xf32> to vector<1x8x4xf32>
    %cst_38 = arith.constant 2.500000e-01 : f32
    %59 = vector.broadcast %cst_38 : f32 to vector<1x8x4xf32>
    %60 = arith.mulf %58, %59 : vector<1x8x4xf32>
    %61 = vector.extract_strided_slice %35 {offsets = [2, 0, 0], sizes = [1, 8, 4], strides = [1, 1, 1]} : vector<4x8x4xf32> to vector<1x8x4xf32>
    %cst_39 = arith.constant 7.500000e-01 : f32
    %62 = vector.broadcast %cst_39 : f32 to vector<1x8x4xf32>
    %63 = arith.mulf %61, %62 : vector<1x8x4xf32>
    %64 = arith.addf %60, %63 : vector<1x8x4xf32>
    %65 = vector.extract_strided_slice %35 {offsets = [2, 0, 0], sizes = [1, 8, 4], strides = [1, 1, 1]} : vector<4x8x4xf32> to vector<1x8x4xf32>
    %cst_40 = arith.constant 7.500000e-01 : f32
    %66 = vector.broadcast %cst_40 : f32 to vector<1x8x4xf32>
    %67 = arith.mulf %65, %66 : vector<1x8x4xf32>
    %68 = vector.extract_strided_slice %35 {offsets = [3, 0, 0], sizes = [1, 8, 4], strides = [1, 1, 1]} : vector<4x8x4xf32> to vector<1x8x4xf32>
    %cst_41 = arith.constant 2.500000e-01 : f32
    %69 = vector.broadcast %cst_41 : f32 to vector<1x8x4xf32>
    %70 = arith.mulf %68, %69 : vector<1x8x4xf32>
    %71 = arith.addf %67, %70 : vector<1x8x4xf32>
    %72 = vector.extract_strided_slice %35 {offsets = [2, 0, 0], sizes = [1, 8, 4], strides = [1, 1, 1]} : vector<4x8x4xf32> to vector<1x8x4xf32>
    %cst_42 = arith.constant 2.500000e-01 : f32
    %73 = vector.broadcast %cst_42 : f32 to vector<1x8x4xf32>
    %74 = arith.mulf %72, %73 : vector<1x8x4xf32>
    %75 = vector.extract_strided_slice %35 {offsets = [3, 0, 0], sizes = [1, 8, 4], strides = [1, 1, 1]} : vector<4x8x4xf32> to vector<1x8x4xf32>
    %cst_43 = arith.constant 7.500000e-01 : f32
    %76 = vector.broadcast %cst_43 : f32 to vector<1x8x4xf32>
    %77 = arith.mulf %75, %76 : vector<1x8x4xf32>
    %78 = arith.addf %74, %77 : vector<1x8x4xf32>
    %79 = vector.extract_strided_slice %35 {offsets = [3, 0, 0], sizes = [1, 8, 4], strides = [1, 1, 1]} : vector<4x8x4xf32> to vector<1x8x4xf32>
    %80 = tpu.concatenate %36, %43, %50, %57, %64, %71, %78, %79 in 0 : vector<1x8x4xf32>, vector<1x8x4xf32>, vector<1x8x4xf32>, vector<1x8x4xf32>, vector<1x8x4xf32>, vector<1x8x4xf32>, vector<1x8x4xf32>, vector<1x8x4xf32> -> vector<8x8x4xf32>
    %c0_44 = arith.constant 0 : index
    %c0_45 = arith.constant 0 : index
    %c0_46 = arith.constant 0 : index
    %81 = vector.load %arg6[%c0_44, %c0_45, %c0_46] : memref<4x16x16xbf16, #tpu.memory_space<vmem>>, vector<1x4x8xbf16>
    %82 = vector.shape_cast %81 : vector<1x4x8xbf16> to vector<4x8xbf16>
    %83 = vector.shape_cast %82 : vector<4x8xbf16> to vector<1x4x8xbf16>
    %84 = vector.broadcast %83 : vector<1x4x8xbf16> to vector<8x4x8xbf16>
    %85 = arith.truncf %80 : vector<8x8x4xf32> to vector<8x8x4xbf16>
    "tpu.trace_start"() <{level = 10 : i32, message = "hcw,hwd->hcd"}> : () -> ()
    %cst_47 = arith.constant dense<0.000000e+00> : vector<8x8x8xf32>
    %86 = tpu.matmul %85, %84, %cst_47 {dimension_numbers = #tpu.dot_dimension_numbers<[2], [1], [1], [2], [0, 0, 0, 1, 1, 2], [0], [0]>} : vector<8x8x4xbf16>, vector<8x4x8xbf16>, vector<8x8x8xf32> -> vector<8x8x8xf32>
    "tpu.trace_stop"() : () -> ()
    %c0_48 = arith.constant 0 : index
    %c0_49 = arith.constant 0 : index
    %c11 = arith.constant 11 : index
    %87 = vector.load %arg5[%c0_48, %c0_49, %c11] : memref<3x8x20xf32, #tpu.memory_space<vmem>>, vector<1x8x1xf32>
    %88 = vector.shape_cast %87 : vector<1x8x1xf32> to vector<8x1xf32>
    %89 = vector.shape_cast %88 : vector<8x1xf32> to vector<1x8x1xf32>
    %90 = vector.broadcast %89 : vector<1x8x1xf32> to vector<8x8x8xf32>
    %91 = arith.mulf %25, %90 : vector<8x8x8xf32>
    %c0_50 = arith.constant 0 : index
    %c0_51 = arith.constant 0 : index
    %c12 = arith.constant 12 : index
    %92 = vector.load %arg5[%c0_50, %c0_51, %c12] : memref<3x8x20xf32, #tpu.memory_space<vmem>>, vector<1x8x1xf32>
    %93 = vector.shape_cast %92 : vector<1x8x1xf32> to vector<8x1xf32>
    %94 = vector.shape_cast %93 : vector<8x1xf32> to vector<1x8x1xf32>
    %95 = vector.broadcast %94 : vector<1x8x1xf32> to vector<8x8x8xf32>
    %96 = arith.mulf %86, %95 : vector<8x8x8xf32>
    %97 = arith.addf %91, %96 : vector<8x8x8xf32>
    %c0_52 = arith.constant 0 : index
    %c0_53 = arith.constant 0 : index
    %c3 = arith.constant 3 : index
    %98 = vector.load %arg5[%c0_52, %c0_53, %c3] : memref<3x8x20xf32, #tpu.memory_space<vmem>>, vector<1x8x1xf32>
    %99 = vector.shape_cast %98 : vector<1x8x1xf32> to vector<8x1xf32>
    %100 = vector.shape_cast %99 : vector<8x1xf32> to vector<1x8x1xf32>
    %101 = vector.broadcast %100 : vector<1x8x1xf32> to vector<8x8x8xf32>
    %102 = arith.mulf %97, %101 : vector<8x8x8xf32>
    %c0_54 = arith.constant 0 : index
    %c0_55 = arith.constant 0 : index
    %c4 = arith.constant 4 : index
    %103 = vector.load %arg5[%c0_54, %c0_55, %c4] : memref<3x8x20xf32, #tpu.memory_space<vmem>>, vector<1x8x1xf32>
    %104 = vector.shape_cast %103 : vector<1x8x1xf32> to vector<8x1xf32>
    %105 = vector.shape_cast %104 : vector<8x1xf32> to vector<1x8x1xf32>
    %106 = vector.broadcast %105 : vector<1x8x1xf32> to vector<8x8x8xf32>
    %107 = arith.addf %102, %106 : vector<8x8x8xf32>
    %108 = vector.extract_strided_slice %107 {offsets = [0, 0, 0], sizes = [1, 8, 8], strides = [1, 1, 1]} : vector<8x8x8xf32> to vector<1x8x8xf32>
    %109 = vector.extract_strided_slice %107 {offsets = [0, 0, 0], sizes = [1, 8, 8], strides = [1, 1, 1]} : vector<8x8x8xf32> to vector<1x8x8xf32>
    %cst_56 = arith.constant 7.500000e-01 : f32
    %110 = vector.broadcast %cst_56 : f32 to vector<1x8x8xf32>
    %111 = arith.mulf %109, %110 : vector<1x8x8xf32>
    %112 = vector.extract_strided_slice %107 {offsets = [1, 0, 0], sizes = [1, 8, 8], strides = [1, 1, 1]} : vector<8x8x8xf32> to vector<1x8x8xf32>
    %cst_57 = arith.constant 2.500000e-01 : f32
    %113 = vector.broadcast %cst_57 : f32 to vector<1x8x8xf32>
    %114 = arith.mulf %112, %113 : vector<1x8x8xf32>
    %115 = arith.addf %111, %114 : vector<1x8x8xf32>
    %116 = vector.extract_strided_slice %107 {offsets = [0, 0, 0], sizes = [1, 8, 8], strides = [1, 1, 1]} : vector<8x8x8xf32> to vector<1x8x8xf32>
    %cst_58 = arith.constant 2.500000e-01 : f32
    %117 = vector.broadcast %cst_58 : f32 to vector<1x8x8xf32>
    %118 = arith.mulf %116, %117 : vector<1x8x8xf32>
    %119 = vector.extract_strided_slice %107 {offsets = [1, 0, 0], sizes = [1, 8, 8], strides = [1, 1, 1]} : vector<8x8x8xf32> to vector<1x8x8xf32>
    %cst_59 = arith.constant 7.500000e-01 : f32
    %120 = vector.broadcast %cst_59 : f32 to vector<1x8x8xf32>
    %121 = arith.mulf %119, %120 : vector<1x8x8xf32>
    %122 = arith.addf %118, %121 : vector<1x8x8xf32>
    %123 = vector.extract_strided_slice %107 {offsets = [1, 0, 0], sizes = [1, 8, 8], strides = [1, 1, 1]} : vector<8x8x8xf32> to vector<1x8x8xf32>
    %cst_60 = arith.constant 7.500000e-01 : f32
    %124 = vector.broadcast %cst_60 : f32 to vector<1x8x8xf32>
    %125 = arith.mulf %123, %124 : vector<1x8x8xf32>
    %126 = vector.extract_strided_slice %107 {offsets = [2, 0, 0], sizes = [1, 8, 8], strides = [1, 1, 1]} : vector<8x8x8xf32> to vector<1x8x8xf32>
    %cst_61 = arith.constant 2.500000e-01 : f32
    %127 = vector.broadcast %cst_61 : f32 to vector<1x8x8xf32>
    %128 = arith.mulf %126, %127 : vector<1x8x8xf32>
    %129 = arith.addf %125, %128 : vector<1x8x8xf32>
    %130 = vector.extract_strided_slice %107 {offsets = [1, 0, 0], sizes = [1, 8, 8], strides = [1, 1, 1]} : vector<8x8x8xf32> to vector<1x8x8xf32>
    %cst_62 = arith.constant 2.500000e-01 : f32
    %131 = vector.broadcast %cst_62 : f32 to vector<1x8x8xf32>
    %132 = arith.mulf %130, %131 : vector<1x8x8xf32>
    %133 = vector.extract_strided_slice %107 {offsets = [2, 0, 0], sizes = [1, 8, 8], strides = [1, 1, 1]} : vector<8x8x8xf32> to vector<1x8x8xf32>
    %cst_63 = arith.constant 7.500000e-01 : f32
    %134 = vector.broadcast %cst_63 : f32 to vector<1x8x8xf32>
    %135 = arith.mulf %133, %134 : vector<1x8x8xf32>
    %136 = arith.addf %132, %135 : vector<1x8x8xf32>
    %137 = vector.extract_strided_slice %107 {offsets = [2, 0, 0], sizes = [1, 8, 8], strides = [1, 1, 1]} : vector<8x8x8xf32> to vector<1x8x8xf32>
    %cst_64 = arith.constant 7.500000e-01 : f32
    %138 = vector.broadcast %cst_64 : f32 to vector<1x8x8xf32>
    %139 = arith.mulf %137, %138 : vector<1x8x8xf32>
    %140 = vector.extract_strided_slice %107 {offsets = [3, 0, 0], sizes = [1, 8, 8], strides = [1, 1, 1]} : vector<8x8x8xf32> to vector<1x8x8xf32>
    %cst_65 = arith.constant 2.500000e-01 : f32
    %141 = vector.broadcast %cst_65 : f32 to vector<1x8x8xf32>
    %142 = arith.mulf %140, %141 : vector<1x8x8xf32>
    %143 = arith.addf %139, %142 : vector<1x8x8xf32>
    %144 = vector.extract_strided_slice %107 {offsets = [2, 0, 0], sizes = [1, 8, 8], strides = [1, 1, 1]} : vector<8x8x8xf32> to vector<1x8x8xf32>
    %cst_66 = arith.constant 2.500000e-01 : f32
    %145 = vector.broadcast %cst_66 : f32 to vector<1x8x8xf32>
    %146 = arith.mulf %144, %145 : vector<1x8x8xf32>
    %147 = vector.extract_strided_slice %107 {offsets = [3, 0, 0], sizes = [1, 8, 8], strides = [1, 1, 1]} : vector<8x8x8xf32> to vector<1x8x8xf32>
    %cst_67 = arith.constant 7.500000e-01 : f32
    %148 = vector.broadcast %cst_67 : f32 to vector<1x8x8xf32>
    %149 = arith.mulf %147, %148 : vector<1x8x8xf32>
    %150 = arith.addf %146, %149 : vector<1x8x8xf32>
    %151 = vector.extract_strided_slice %107 {offsets = [3, 0, 0], sizes = [1, 8, 8], strides = [1, 1, 1]} : vector<8x8x8xf32> to vector<1x8x8xf32>
    %cst_68 = arith.constant 7.500000e-01 : f32
    %152 = vector.broadcast %cst_68 : f32 to vector<1x8x8xf32>
    %153 = arith.mulf %151, %152 : vector<1x8x8xf32>
    %154 = vector.extract_strided_slice %107 {offsets = [4, 0, 0], sizes = [1, 8, 8], strides = [1, 1, 1]} : vector<8x8x8xf32> to vector<1x8x8xf32>
    %cst_69 = arith.constant 2.500000e-01 : f32
    %155 = vector.broadcast %cst_69 : f32 to vector<1x8x8xf32>
    %156 = arith.mulf %154, %155 : vector<1x8x8xf32>
    %157 = arith.addf %153, %156 : vector<1x8x8xf32>
    %158 = vector.extract_strided_slice %107 {offsets = [3, 0, 0], sizes = [1, 8, 8], strides = [1, 1, 1]} : vector<8x8x8xf32> to vector<1x8x8xf32>
    %cst_70 = arith.constant 2.500000e-01 : f32
    %159 = vector.broadcast %cst_70 : f32 to vector<1x8x8xf32>
    %160 = arith.mulf %158, %159 : vector<1x8x8xf32>
    %161 = vector.extract_strided_slice %107 {offsets = [4, 0, 0], sizes = [1, 8, 8], strides = [1, 1, 1]} : vector<8x8x8xf32> to vector<1x8x8xf32>
    %cst_71 = arith.constant 7.500000e-01 : f32
    %162 = vector.broadcast %cst_71 : f32 to vector<1x8x8xf32>
    %163 = arith.mulf %161, %162 : vector<1x8x8xf32>
    %164 = arith.addf %160, %163 : vector<1x8x8xf32>
    %165 = vector.extract_strided_slice %107 {offsets = [4, 0, 0], sizes = [1, 8, 8], strides = [1, 1, 1]} : vector<8x8x8xf32> to vector<1x8x8xf32>
    %cst_72 = arith.constant 7.500000e-01 : f32
    %166 = vector.broadcast %cst_72 : f32 to vector<1x8x8xf32>
    %167 = arith.mulf %165, %166 : vector<1x8x8xf32>
    %168 = vector.extract_strided_slice %107 {offsets = [5, 0, 0], sizes = [1, 8, 8], strides = [1, 1, 1]} : vector<8x8x8xf32> to vector<1x8x8xf32>
    %cst_73 = arith.constant 2.500000e-01 : f32
    %169 = vector.broadcast %cst_73 : f32 to vector<1x8x8xf32>
    %170 = arith.mulf %168, %169 : vector<1x8x8xf32>
    %171 = arith.addf %167, %170 : vector<1x8x8xf32>
    %172 = vector.extract_strided_slice %107 {offsets = [4, 0, 0], sizes = [1, 8, 8], strides = [1, 1, 1]} : vector<8x8x8xf32> to vector<1x8x8xf32>
    %cst_74 = arith.constant 2.500000e-01 : f32
    %173 = vector.broadcast %cst_74 : f32 to vector<1x8x8xf32>
    %174 = arith.mulf %172, %173 : vector<1x8x8xf32>
    %175 = vector.extract_strided_slice %107 {offsets = [5, 0, 0], sizes = [1, 8, 8], strides = [1, 1, 1]} : vector<8x8x8xf32> to vector<1x8x8xf32>
    %cst_75 = arith.constant 7.500000e-01 : f32
    %176 = vector.broadcast %cst_75 : f32 to vector<1x8x8xf32>
    %177 = arith.mulf %175, %176 : vector<1x8x8xf32>
    %178 = arith.addf %174, %177 : vector<1x8x8xf32>
    %179 = vector.extract_strided_slice %107 {offsets = [5, 0, 0], sizes = [1, 8, 8], strides = [1, 1, 1]} : vector<8x8x8xf32> to vector<1x8x8xf32>
    %cst_76 = arith.constant 7.500000e-01 : f32
    %180 = vector.broadcast %cst_76 : f32 to vector<1x8x8xf32>
    %181 = arith.mulf %179, %180 : vector<1x8x8xf32>
    %182 = vector.extract_strided_slice %107 {offsets = [6, 0, 0], sizes = [1, 8, 8], strides = [1, 1, 1]} : vector<8x8x8xf32> to vector<1x8x8xf32>
    %cst_77 = arith.constant 2.500000e-01 : f32
    %183 = vector.broadcast %cst_77 : f32 to vector<1x8x8xf32>
    %184 = arith.mulf %182, %183 : vector<1x8x8xf32>
    %185 = arith.addf %181, %184 : vector<1x8x8xf32>
    %186 = vector.extract_strided_slice %107 {offsets = [5, 0, 0], sizes = [1, 8, 8], strides = [1, 1, 1]} : vector<8x8x8xf32> to vector<1x8x8xf32>
    %cst_78 = arith.constant 2.500000e-01 : f32
    %187 = vector.broadcast %cst_78 : f32 to vector<1x8x8xf32>
    %188 = arith.mulf %186, %187 : vector<1x8x8xf32>
    %189 = vector.extract_strided_slice %107 {offsets = [6, 0, 0], sizes = [1, 8, 8], strides = [1, 1, 1]} : vector<8x8x8xf32> to vector<1x8x8xf32>
    %cst_79 = arith.constant 7.500000e-01 : f32
    %190 = vector.broadcast %cst_79 : f32 to vector<1x8x8xf32>
    %191 = arith.mulf %189, %190 : vector<1x8x8xf32>
    %192 = arith.addf %188, %191 : vector<1x8x8xf32>
    %193 = vector.extract_strided_slice %107 {offsets = [6, 0, 0], sizes = [1, 8, 8], strides = [1, 1, 1]} : vector<8x8x8xf32> to vector<1x8x8xf32>
    %cst_80 = arith.constant 7.500000e-01 : f32
    %194 = vector.broadcast %cst_80 : f32 to vector<1x8x8xf32>
    %195 = arith.mulf %193, %194 : vector<1x8x8xf32>
    %196 = vector.extract_strided_slice %107 {offsets = [7, 0, 0], sizes = [1, 8, 8], strides = [1, 1, 1]} : vector<8x8x8xf32> to vector<1x8x8xf32>
    %cst_81 = arith.constant 2.500000e-01 : f32
    %197 = vector.broadcast %cst_81 : f32 to vector<1x8x8xf32>
    %198 = arith.mulf %196, %197 : vector<1x8x8xf32>
    %199 = arith.addf %195, %198 : vector<1x8x8xf32>
    %200 = vector.extract_strided_slice %107 {offsets = [6, 0, 0], sizes = [1, 8, 8], strides = [1, 1, 1]} : vector<8x8x8xf32> to vector<1x8x8xf32>
    %cst_82 = arith.constant 2.500000e-01 : f32
    %201 = vector.broadcast %cst_82 : f32 to vector<1x8x8xf32>
    %202 = arith.mulf %200, %201 : vector<1x8x8xf32>
    %203 = vector.extract_strided_slice %107 {offsets = [7, 0, 0], sizes = [1, 8, 8], strides = [1, 1, 1]} : vector<8x8x8xf32> to vector<1x8x8xf32>
    %cst_83 = arith.constant 7.500000e-01 : f32
    %204 = vector.broadcast %cst_83 : f32 to vector<1x8x8xf32>
    %205 = arith.mulf %203, %204 : vector<1x8x8xf32>
    %206 = arith.addf %202, %205 : vector<1x8x8xf32>
    %207 = vector.extract_strided_slice %107 {offsets = [7, 0, 0], sizes = [1, 8, 8], strides = [1, 1, 1]} : vector<8x8x8xf32> to vector<1x8x8xf32>
    %208 = tpu.concatenate %108, %115, %122, %129, %136, %143, %150, %157, %164, %171, %178, %185, %192, %199, %206, %207 in 0 : vector<1x8x8xf32>, vector<1x8x8xf32>, vector<1x8x8xf32>, vector<1x8x8xf32>, vector<1x8x8xf32>, vector<1x8x8xf32>, vector<1x8x8xf32>, vector<1x8x8xf32>, vector<1x8x8xf32>, vector<1x8x8xf32>, vector<1x8x8xf32>, vector<1x8x8xf32>, vector<1x8x8xf32>, vector<1x8x8xf32>, vector<1x8x8xf32>, vector<1x8x8xf32> -> vector<16x8x8xf32>
    %c1_84 = arith.constant 1 : index
    %c0_85 = arith.constant 0 : index
    %c0_86 = arith.constant 0 : index
    %209 = vector.load %arg6[%c1_84, %c0_85, %c0_86] : memref<4x16x16xbf16, #tpu.memory_space<vmem>>, vector<1x8x16xbf16>
    %210 = vector.shape_cast %209 : vector<1x8x16xbf16> to vector<8x16xbf16>
    %211 = vector.shape_cast %210 : vector<8x16xbf16> to vector<1x8x16xbf16>
    %212 = vector.broadcast %211 : vector<1x8x16xbf16> to vector<16x8x16xbf16>
    %213 = arith.truncf %208 : vector<16x8x8xf32> to vector<16x8x8xbf16>
    "tpu.trace_start"() <{level = 10 : i32, message = "hcw,hwd->hcd"}> : () -> ()
    %cst_87 = arith.constant dense<0.000000e+00> : vector<16x8x16xf32>
    %214 = tpu.matmul %213, %212, %cst_87 {dimension_numbers = #tpu.dot_dimension_numbers<[2], [1], [1], [2], [0, 0, 0, 1, 1, 2], [0], [0]>} : vector<16x8x8xbf16>, vector<16x8x16xbf16>, vector<16x8x16xf32> -> vector<16x8x16xf32>
    "tpu.trace_stop"() : () -> ()
    %c0_88 = arith.constant 0 : index
    %c0_89 = arith.constant 0 : index
    %c13 = arith.constant 13 : index
    %215 = vector.load %arg5[%c0_88, %c0_89, %c13] : memref<3x8x20xf32, #tpu.memory_space<vmem>>, vector<1x8x1xf32>
    %216 = vector.shape_cast %215 : vector<1x8x1xf32> to vector<8x1xf32>
    %217 = vector.shape_cast %216 : vector<8x1xf32> to vector<1x8x1xf32>
    %218 = vector.broadcast %217 : vector<1x8x1xf32> to vector<16x8x16xf32>
    %219 = arith.mulf %15, %218 : vector<16x8x16xf32>
    %c0_90 = arith.constant 0 : index
    %c0_91 = arith.constant 0 : index
    %c14 = arith.constant 14 : index
    %220 = vector.load %arg5[%c0_90, %c0_91, %c14] : memref<3x8x20xf32, #tpu.memory_space<vmem>>, vector<1x8x1xf32>
    %221 = vector.shape_cast %220 : vector<1x8x1xf32> to vector<8x1xf32>
    %222 = vector.shape_cast %221 : vector<8x1xf32> to vector<1x8x1xf32>
    %223 = vector.broadcast %222 : vector<1x8x1xf32> to vector<16x8x16xf32>
    %224 = arith.mulf %214, %223 : vector<16x8x16xf32>
    %225 = arith.addf %219, %224 : vector<16x8x16xf32>
    %c0_92 = arith.constant 0 : index
    %c0_93 = arith.constant 0 : index
    %c5 = arith.constant 5 : index
    %226 = vector.load %arg5[%c0_92, %c0_93, %c5] : memref<3x8x20xf32, #tpu.memory_space<vmem>>, vector<1x8x1xf32>
    %227 = vector.shape_cast %226 : vector<1x8x1xf32> to vector<8x1xf32>
    %228 = vector.shape_cast %227 : vector<8x1xf32> to vector<1x8x1xf32>
    %229 = vector.broadcast %228 : vector<1x8x1xf32> to vector<16x8x16xf32>
    %230 = arith.mulf %225, %229 : vector<16x8x16xf32>
    %c0_94 = arith.constant 0 : index
    %c0_95 = arith.constant 0 : index
    %c6 = arith.constant 6 : index
    %231 = vector.load %arg5[%c0_94, %c0_95, %c6] : memref<3x8x20xf32, #tpu.memory_space<vmem>>, vector<1x8x1xf32>
    %232 = vector.shape_cast %231 : vector<1x8x1xf32> to vector<8x1xf32>
    %233 = vector.shape_cast %232 : vector<8x1xf32> to vector<1x8x1xf32>
    %234 = vector.broadcast %233 : vector<1x8x1xf32> to vector<16x8x16xf32>
    %235 = arith.addf %230, %234 : vector<16x8x16xf32>
    %236 = vector.extract_strided_slice %235 {offsets = [0, 0, 0], sizes = [1, 8, 16], strides = [1, 1, 1]} : vector<16x8x16xf32> to vector<1x8x16xf32>
    %cst_96 = arith.constant 5.000000e-01 : f32
    %237 = vector.broadcast %cst_96 : f32 to vector<1x8x16xf32>
    %238 = arith.mulf %236, %237 : vector<1x8x16xf32>
    %239 = vector.extract_strided_slice %235 {offsets = [1, 0, 0], sizes = [1, 8, 16], strides = [1, 1, 1]} : vector<16x8x16xf32> to vector<1x8x16xf32>
    %cst_97 = arith.constant 5.000000e-01 : f32
    %240 = vector.broadcast %cst_97 : f32 to vector<1x8x16xf32>
    %241 = arith.mulf %239, %240 : vector<1x8x16xf32>
    %242 = arith.addf %238, %241 : vector<1x8x16xf32>
    %243 = vector.extract_strided_slice %235 {offsets = [2, 0, 0], sizes = [1, 8, 16], strides = [1, 1, 1]} : vector<16x8x16xf32> to vector<1x8x16xf32>
    %cst_98 = arith.constant 5.000000e-01 : f32
    %244 = vector.broadcast %cst_98 : f32 to vector<1x8x16xf32>
    %245 = arith.mulf %243, %244 : vector<1x8x16xf32>
    %246 = vector.extract_strided_slice %235 {offsets = [3, 0, 0], sizes = [1, 8, 16], strides = [1, 1, 1]} : vector<16x8x16xf32> to vector<1x8x16xf32>
    %cst_99 = arith.constant 5.000000e-01 : f32
    %247 = vector.broadcast %cst_99 : f32 to vector<1x8x16xf32>
    %248 = arith.mulf %246, %247 : vector<1x8x16xf32>
    %249 = arith.addf %245, %248 : vector<1x8x16xf32>
    %250 = vector.extract_strided_slice %235 {offsets = [4, 0, 0], sizes = [1, 8, 16], strides = [1, 1, 1]} : vector<16x8x16xf32> to vector<1x8x16xf32>
    %cst_100 = arith.constant 5.000000e-01 : f32
    %251 = vector.broadcast %cst_100 : f32 to vector<1x8x16xf32>
    %252 = arith.mulf %250, %251 : vector<1x8x16xf32>
    %253 = vector.extract_strided_slice %235 {offsets = [5, 0, 0], sizes = [1, 8, 16], strides = [1, 1, 1]} : vector<16x8x16xf32> to vector<1x8x16xf32>
    %cst_101 = arith.constant 5.000000e-01 : f32
    %254 = vector.broadcast %cst_101 : f32 to vector<1x8x16xf32>
    %255 = arith.mulf %253, %254 : vector<1x8x16xf32>
    %256 = arith.addf %252, %255 : vector<1x8x16xf32>
    %257 = vector.extract_strided_slice %235 {offsets = [6, 0, 0], sizes = [1, 8, 16], strides = [1, 1, 1]} : vector<16x8x16xf32> to vector<1x8x16xf32>
    %cst_102 = arith.constant 5.000000e-01 : f32
    %258 = vector.broadcast %cst_102 : f32 to vector<1x8x16xf32>
    %259 = arith.mulf %257, %258 : vector<1x8x16xf32>
    %260 = vector.extract_strided_slice %235 {offsets = [7, 0, 0], sizes = [1, 8, 16], strides = [1, 1, 1]} : vector<16x8x16xf32> to vector<1x8x16xf32>
    %cst_103 = arith.constant 5.000000e-01 : f32
    %261 = vector.broadcast %cst_103 : f32 to vector<1x8x16xf32>
    %262 = arith.mulf %260, %261 : vector<1x8x16xf32>
    %263 = arith.addf %259, %262 : vector<1x8x16xf32>
    %264 = vector.extract_strided_slice %235 {offsets = [8, 0, 0], sizes = [1, 8, 16], strides = [1, 1, 1]} : vector<16x8x16xf32> to vector<1x8x16xf32>
    %cst_104 = arith.constant 5.000000e-01 : f32
    %265 = vector.broadcast %cst_104 : f32 to vector<1x8x16xf32>
    %266 = arith.mulf %264, %265 : vector<1x8x16xf32>
    %267 = vector.extract_strided_slice %235 {offsets = [9, 0, 0], sizes = [1, 8, 16], strides = [1, 1, 1]} : vector<16x8x16xf32> to vector<1x8x16xf32>
    %cst_105 = arith.constant 5.000000e-01 : f32
    %268 = vector.broadcast %cst_105 : f32 to vector<1x8x16xf32>
    %269 = arith.mulf %267, %268 : vector<1x8x16xf32>
    %270 = arith.addf %266, %269 : vector<1x8x16xf32>
    %271 = vector.extract_strided_slice %235 {offsets = [10, 0, 0], sizes = [1, 8, 16], strides = [1, 1, 1]} : vector<16x8x16xf32> to vector<1x8x16xf32>
    %cst_106 = arith.constant 5.000000e-01 : f32
    %272 = vector.broadcast %cst_106 : f32 to vector<1x8x16xf32>
    %273 = arith.mulf %271, %272 : vector<1x8x16xf32>
    %274 = vector.extract_strided_slice %235 {offsets = [11, 0, 0], sizes = [1, 8, 16], strides = [1, 1, 1]} : vector<16x8x16xf32> to vector<1x8x16xf32>
    %cst_107 = arith.constant 5.000000e-01 : f32
    %275 = vector.broadcast %cst_107 : f32 to vector<1x8x16xf32>
    %276 = arith.mulf %274, %275 : vector<1x8x16xf32>
    %277 = arith.addf %273, %276 : vector<1x8x16xf32>
    %278 = vector.extract_strided_slice %235 {offsets = [12, 0, 0], sizes = [1, 8, 16], strides = [1, 1, 1]} : vector<16x8x16xf32> to vector<1x8x16xf32>
    %cst_108 = arith.constant 5.000000e-01 : f32
    %279 = vector.broadcast %cst_108 : f32 to vector<1x8x16xf32>
    %280 = arith.mulf %278, %279 : vector<1x8x16xf32>
    %281 = vector.extract_strided_slice %235 {offsets = [13, 0, 0], sizes = [1, 8, 16], strides = [1, 1, 1]} : vector<16x8x16xf32> to vector<1x8x16xf32>
    %cst_109 = arith.constant 5.000000e-01 : f32
    %282 = vector.broadcast %cst_109 : f32 to vector<1x8x16xf32>
    %283 = arith.mulf %281, %282 : vector<1x8x16xf32>
    %284 = arith.addf %280, %283 : vector<1x8x16xf32>
    %285 = vector.extract_strided_slice %235 {offsets = [14, 0, 0], sizes = [1, 8, 16], strides = [1, 1, 1]} : vector<16x8x16xf32> to vector<1x8x16xf32>
    %cst_110 = arith.constant 5.000000e-01 : f32
    %286 = vector.broadcast %cst_110 : f32 to vector<1x8x16xf32>
    %287 = arith.mulf %285, %286 : vector<1x8x16xf32>
    %288 = vector.extract_strided_slice %235 {offsets = [15, 0, 0], sizes = [1, 8, 16], strides = [1, 1, 1]} : vector<16x8x16xf32> to vector<1x8x16xf32>
    %cst_111 = arith.constant 5.000000e-01 : f32
    %289 = vector.broadcast %cst_111 : f32 to vector<1x8x16xf32>
    %290 = arith.mulf %288, %289 : vector<1x8x16xf32>
    %291 = arith.addf %287, %290 : vector<1x8x16xf32>
    %292 = tpu.concatenate %242, %249, %256, %263, %270, %277, %284, %291 in 0 : vector<1x8x16xf32>, vector<1x8x16xf32>, vector<1x8x16xf32>, vector<1x8x16xf32>, vector<1x8x16xf32>, vector<1x8x16xf32>, vector<1x8x16xf32>, vector<1x8x16xf32> -> vector<8x8x16xf32>
    %c2_112 = arith.constant 2 : index
    %c0_113 = arith.constant 0 : index
    %c0_114 = arith.constant 0 : index
    %293 = vector.load %arg6[%c2_112, %c0_113, %c0_114] : memref<4x16x16xbf16, #tpu.memory_space<vmem>>, vector<1x16x8xbf16>
    %294 = vector.shape_cast %293 : vector<1x16x8xbf16> to vector<16x8xbf16>
    %295 = vector.shape_cast %294 : vector<16x8xbf16> to vector<1x16x8xbf16>
    %296 = vector.broadcast %295 : vector<1x16x8xbf16> to vector<8x16x8xbf16>
    %297 = arith.truncf %292 : vector<8x8x16xf32> to vector<8x8x16xbf16>
    "tpu.trace_start"() <{level = 10 : i32, message = "hcw,hwd->hcd"}> : () -> ()
    %cst_115 = arith.constant dense<0.000000e+00> : vector<8x8x8xf32>
    %298 = tpu.matmul %297, %296, %cst_115 {dimension_numbers = #tpu.dot_dimension_numbers<[2], [1], [1], [2], [0, 0, 0, 1, 1, 2], [0], [0]>} : vector<8x8x16xbf16>, vector<8x16x8xbf16>, vector<8x8x8xf32> -> vector<8x8x8xf32>
    "tpu.trace_stop"() : () -> ()
    %c0_116 = arith.constant 0 : index
    %c0_117 = arith.constant 0 : index
    %c15 = arith.constant 15 : index
    %299 = vector.load %arg5[%c0_116, %c0_117, %c15] : memref<3x8x20xf32, #tpu.memory_space<vmem>>, vector<1x8x1xf32>
    %300 = vector.shape_cast %299 : vector<1x8x1xf32> to vector<8x1xf32>
    %301 = vector.shape_cast %300 : vector<8x1xf32> to vector<1x8x1xf32>
    %302 = vector.broadcast %301 : vector<1x8x1xf32> to vector<8x8x8xf32>
    %303 = arith.mulf %25, %302 : vector<8x8x8xf32>
    %c0_118 = arith.constant 0 : index
    %c0_119 = arith.constant 0 : index
    %c16 = arith.constant 16 : index
    %304 = vector.load %arg5[%c0_118, %c0_119, %c16] : memref<3x8x20xf32, #tpu.memory_space<vmem>>, vector<1x8x1xf32>
    %305 = vector.shape_cast %304 : vector<1x8x1xf32> to vector<8x1xf32>
    %306 = vector.shape_cast %305 : vector<8x1xf32> to vector<1x8x1xf32>
    %307 = vector.broadcast %306 : vector<1x8x1xf32> to vector<8x8x8xf32>
    %308 = arith.mulf %107, %307 : vector<8x8x8xf32>
    %309 = arith.addf %303, %308 : vector<8x8x8xf32>
    %c0_120 = arith.constant 0 : index
    %c0_121 = arith.constant 0 : index
    %c17 = arith.constant 17 : index
    %310 = vector.load %arg5[%c0_120, %c0_121, %c17] : memref<3x8x20xf32, #tpu.memory_space<vmem>>, vector<1x8x1xf32>
    %311 = vector.shape_cast %310 : vector<1x8x1xf32> to vector<8x1xf32>
    %312 = vector.shape_cast %311 : vector<8x1xf32> to vector<1x8x1xf32>
    %313 = vector.broadcast %312 : vector<1x8x1xf32> to vector<8x8x8xf32>
    %314 = arith.mulf %298, %313 : vector<8x8x8xf32>
    %315 = arith.addf %309, %314 : vector<8x8x8xf32>
    %c0_122 = arith.constant 0 : index
    %c0_123 = arith.constant 0 : index
    %c7 = arith.constant 7 : index
    %316 = vector.load %arg5[%c0_122, %c0_123, %c7] : memref<3x8x20xf32, #tpu.memory_space<vmem>>, vector<1x8x1xf32>
    %317 = vector.shape_cast %316 : vector<1x8x1xf32> to vector<8x1xf32>
    %318 = vector.shape_cast %317 : vector<8x1xf32> to vector<1x8x1xf32>
    %319 = vector.broadcast %318 : vector<1x8x1xf32> to vector<8x8x8xf32>
    %320 = arith.mulf %315, %319 : vector<8x8x8xf32>
    %c0_124 = arith.constant 0 : index
    %c0_125 = arith.constant 0 : index
    %c8 = arith.constant 8 : index
    %321 = vector.load %arg5[%c0_124, %c0_125, %c8] : memref<3x8x20xf32, #tpu.memory_space<vmem>>, vector<1x8x1xf32>
    %322 = vector.shape_cast %321 : vector<1x8x1xf32> to vector<8x1xf32>
    %323 = vector.shape_cast %322 : vector<8x1xf32> to vector<1x8x1xf32>
    %324 = vector.broadcast %323 : vector<1x8x1xf32> to vector<8x8x8xf32>
    %325 = arith.addf %320, %324 : vector<8x8x8xf32>
    %326 = vector.extract_strided_slice %325 {offsets = [0, 0, 0], sizes = [1, 8, 8], strides = [1, 1, 1]} : vector<8x8x8xf32> to vector<1x8x8xf32>
    %cst_126 = arith.constant 5.000000e-01 : f32
    %327 = vector.broadcast %cst_126 : f32 to vector<1x8x8xf32>
    %328 = arith.mulf %326, %327 : vector<1x8x8xf32>
    %329 = vector.extract_strided_slice %325 {offsets = [1, 0, 0], sizes = [1, 8, 8], strides = [1, 1, 1]} : vector<8x8x8xf32> to vector<1x8x8xf32>
    %cst_127 = arith.constant 5.000000e-01 : f32
    %330 = vector.broadcast %cst_127 : f32 to vector<1x8x8xf32>
    %331 = arith.mulf %329, %330 : vector<1x8x8xf32>
    %332 = arith.addf %328, %331 : vector<1x8x8xf32>
    %333 = vector.extract_strided_slice %325 {offsets = [2, 0, 0], sizes = [1, 8, 8], strides = [1, 1, 1]} : vector<8x8x8xf32> to vector<1x8x8xf32>
    %cst_128 = arith.constant 5.000000e-01 : f32
    %334 = vector.broadcast %cst_128 : f32 to vector<1x8x8xf32>
    %335 = arith.mulf %333, %334 : vector<1x8x8xf32>
    %336 = vector.extract_strided_slice %325 {offsets = [3, 0, 0], sizes = [1, 8, 8], strides = [1, 1, 1]} : vector<8x8x8xf32> to vector<1x8x8xf32>
    %cst_129 = arith.constant 5.000000e-01 : f32
    %337 = vector.broadcast %cst_129 : f32 to vector<1x8x8xf32>
    %338 = arith.mulf %336, %337 : vector<1x8x8xf32>
    %339 = arith.addf %335, %338 : vector<1x8x8xf32>
    %340 = vector.extract_strided_slice %325 {offsets = [4, 0, 0], sizes = [1, 8, 8], strides = [1, 1, 1]} : vector<8x8x8xf32> to vector<1x8x8xf32>
    %cst_130 = arith.constant 5.000000e-01 : f32
    %341 = vector.broadcast %cst_130 : f32 to vector<1x8x8xf32>
    %342 = arith.mulf %340, %341 : vector<1x8x8xf32>
    %343 = vector.extract_strided_slice %325 {offsets = [5, 0, 0], sizes = [1, 8, 8], strides = [1, 1, 1]} : vector<8x8x8xf32> to vector<1x8x8xf32>
    %cst_131 = arith.constant 5.000000e-01 : f32
    %344 = vector.broadcast %cst_131 : f32 to vector<1x8x8xf32>
    %345 = arith.mulf %343, %344 : vector<1x8x8xf32>
    %346 = arith.addf %342, %345 : vector<1x8x8xf32>
    %347 = vector.extract_strided_slice %325 {offsets = [6, 0, 0], sizes = [1, 8, 8], strides = [1, 1, 1]} : vector<8x8x8xf32> to vector<1x8x8xf32>
    %cst_132 = arith.constant 5.000000e-01 : f32
    %348 = vector.broadcast %cst_132 : f32 to vector<1x8x8xf32>
    %349 = arith.mulf %347, %348 : vector<1x8x8xf32>
    %350 = vector.extract_strided_slice %325 {offsets = [7, 0, 0], sizes = [1, 8, 8], strides = [1, 1, 1]} : vector<8x8x8xf32> to vector<1x8x8xf32>
    %cst_133 = arith.constant 5.000000e-01 : f32
    %351 = vector.broadcast %cst_133 : f32 to vector<1x8x8xf32>
    %352 = arith.mulf %350, %351 : vector<1x8x8xf32>
    %353 = arith.addf %349, %352 : vector<1x8x8xf32>
    %354 = tpu.concatenate %332, %339, %346, %353 in 0 : vector<1x8x8xf32>, vector<1x8x8xf32>, vector<1x8x8xf32>, vector<1x8x8xf32> -> vector<4x8x8xf32>
    %c3_134 = arith.constant 3 : index
    %c0_135 = arith.constant 0 : index
    %c0_136 = arith.constant 0 : index
    %355 = vector.load %arg6[%c3_134, %c0_135, %c0_136] : memref<4x16x16xbf16, #tpu.memory_space<vmem>>, vector<1x8x4xbf16>
    %356 = vector.shape_cast %355 : vector<1x8x4xbf16> to vector<8x4xbf16>
    %357 = vector.shape_cast %356 : vector<8x4xbf16> to vector<1x8x4xbf16>
    %358 = vector.broadcast %357 : vector<1x8x4xbf16> to vector<4x8x4xbf16>
    %359 = arith.truncf %354 : vector<4x8x8xf32> to vector<4x8x8xbf16>
    "tpu.trace_start"() <{level = 10 : i32, message = "hcw,hwd->hcd"}> : () -> ()
    %cst_137 = arith.constant dense<0.000000e+00> : vector<4x8x4xf32>
    %360 = tpu.matmul %359, %358, %cst_137 {dimension_numbers = #tpu.dot_dimension_numbers<[2], [1], [1], [2], [0, 0, 0, 1, 1, 2], [0], [0]>} : vector<4x8x8xbf16>, vector<4x8x4xbf16>, vector<4x8x4xf32> -> vector<4x8x4xf32>
    "tpu.trace_stop"() : () -> ()
    %c0_138 = arith.constant 0 : index
    %c0_139 = arith.constant 0 : index
    %c18 = arith.constant 18 : index
    %361 = vector.load %arg5[%c0_138, %c0_139, %c18] : memref<3x8x20xf32, #tpu.memory_space<vmem>>, vector<1x8x1xf32>
    %362 = vector.shape_cast %361 : vector<1x8x1xf32> to vector<8x1xf32>
    %363 = vector.shape_cast %362 : vector<8x1xf32> to vector<1x8x1xf32>
    %364 = vector.broadcast %363 : vector<1x8x1xf32> to vector<4x8x4xf32>
    %365 = arith.mulf %35, %364 : vector<4x8x4xf32>
    %c0_140 = arith.constant 0 : index
    %c0_141 = arith.constant 0 : index
    %c19 = arith.constant 19 : index
    %366 = vector.load %arg5[%c0_140, %c0_141, %c19] : memref<3x8x20xf32, #tpu.memory_space<vmem>>, vector<1x8x1xf32>
    %367 = vector.shape_cast %366 : vector<1x8x1xf32> to vector<8x1xf32>
    %368 = vector.shape_cast %367 : vector<8x1xf32> to vector<1x8x1xf32>
    %369 = vector.broadcast %368 : vector<1x8x1xf32> to vector<4x8x4xf32>
    %370 = arith.mulf %360, %369 : vector<4x8x4xf32>
    %371 = arith.addf %365, %370 : vector<4x8x4xf32>
    %c0_142 = arith.constant 0 : index
    %c0_143 = arith.constant 0 : index
    %c9 = arith.constant 9 : index
    %372 = vector.load %arg5[%c0_142, %c0_143, %c9] : memref<3x8x20xf32, #tpu.memory_space<vmem>>, vector<1x8x1xf32>
    %373 = vector.shape_cast %372 : vector<1x8x1xf32> to vector<8x1xf32>
    %374 = vector.shape_cast %373 : vector<8x1xf32> to vector<1x8x1xf32>
    %375 = vector.broadcast %374 : vector<1x8x1xf32> to vector<4x8x4xf32>
    %376 = arith.mulf %371, %375 : vector<4x8x4xf32>
    %c0_144 = arith.constant 0 : index
    %c0_145 = arith.constant 0 : index
    %c10 = arith.constant 10 : index
    %377 = vector.load %arg5[%c0_144, %c0_145, %c10] : memref<3x8x20xf32, #tpu.memory_space<vmem>>, vector<1x8x1xf32>
    %378 = vector.shape_cast %377 : vector<1x8x1xf32> to vector<8x1xf32>
    %379 = vector.shape_cast %378 : vector<8x1xf32> to vector<1x8x1xf32>
    %380 = vector.broadcast %379 : vector<1x8x1xf32> to vector<4x8x4xf32>
    %381 = arith.addf %376, %380 : vector<4x8x4xf32>
    %c1_146 = arith.constant 1 : index
    %c0_147 = arith.constant 0 : index
    %c0_148 = arith.constant 0 : index
    %c0_149 = arith.constant 0 : index
    %382 = vector.load %arg4[%c1_146, %c0_147, %c0_148, %c0_149] : memref<3x3x8x16xbf16, #tpu.memory_space<vmem>>, vector<1x1x8x8xbf16>
    %383 = vector.shape_cast %382 : vector<1x1x8x8xbf16> to vector<8x8xbf16>
    %384 = vector.shape_cast %383 : vector<8x8xbf16> to vector<1x8x8xbf16>
    %385 = vector.broadcast %384 : vector<1x8x8xbf16> to vector<16x8x8xbf16>
    %386 = arith.truncf %235 : vector<16x8x16xf32> to vector<16x8x16xbf16>
    "tpu.trace_start"() <{level = 10 : i32, message = "hoc,hcw->how"}> : () -> ()
    %cst_150 = arith.constant dense<0.000000e+00> : vector<16x8x16xf32>
    %387 = tpu.matmul %385, %386, %cst_150 {dimension_numbers = #tpu.dot_dimension_numbers<[2], [1], [1], [2], [0, 0, 0, 1, 1, 2], [0], [0]>} : vector<16x8x8xbf16>, vector<16x8x16xbf16>, vector<16x8x16xf32> -> vector<16x8x16xf32>
    "tpu.trace_stop"() : () -> ()
    %c1_151 = arith.constant 1 : index
    %c0_152 = arith.constant 0 : index
    %c0_153 = arith.constant 0 : index
    %388 = vector.load %arg5[%c1_151, %c0_152, %c0_153] : memref<3x8x20xf32, #tpu.memory_space<vmem>>, vector<1x8x1xf32>
    %389 = vector.shape_cast %388 : vector<1x8x1xf32> to vector<8x1xf32>
    %390 = vector.shape_cast %389 : vector<8x1xf32> to vector<1x8x1xf32>
    %391 = vector.broadcast %390 : vector<1x8x1xf32> to vector<16x8x16xf32>
    %392 = arith.addf %387, %391 : vector<16x8x16xf32>
    %c1_154 = arith.constant 1 : index
    %c1_155 = arith.constant 1 : index
    %c0_156 = arith.constant 0 : index
    %c0_157 = arith.constant 0 : index
    %393 = vector.load %arg4[%c1_154, %c1_155, %c0_156, %c0_157] : memref<3x3x8x16xbf16, #tpu.memory_space<vmem>>, vector<1x1x8x8xbf16>
    %394 = vector.shape_cast %393 : vector<1x1x8x8xbf16> to vector<8x8xbf16>
    %395 = vector.shape_cast %394 : vector<8x8xbf16> to vector<1x8x8xbf16>
    %396 = vector.broadcast %395 : vector<1x8x8xbf16> to vector<8x8x8xbf16>
    %397 = arith.truncf %325 : vector<8x8x8xf32> to vector<8x8x8xbf16>
    "tpu.trace_start"() <{level = 10 : i32, message = "hoc,hcw->how"}> : () -> ()
    %cst_158 = arith.constant dense<0.000000e+00> : vector<8x8x8xf32>
    %398 = tpu.matmul %396, %397, %cst_158 {dimension_numbers = #tpu.dot_dimension_numbers<[2], [1], [1], [2], [0, 0, 0, 1, 1, 2], [0], [0]>} : vector<8x8x8xbf16>, vector<8x8x8xbf16>, vector<8x8x8xf32> -> vector<8x8x8xf32>
    "tpu.trace_stop"() : () -> ()
    %c1_159 = arith.constant 1 : index
    %c0_160 = arith.constant 0 : index
    %c1_161 = arith.constant 1 : index
    %399 = vector.load %arg5[%c1_159, %c0_160, %c1_161] : memref<3x8x20xf32, #tpu.memory_space<vmem>>, vector<1x8x1xf32>
    %400 = vector.shape_cast %399 : vector<1x8x1xf32> to vector<8x1xf32>
    %401 = vector.shape_cast %400 : vector<8x1xf32> to vector<1x8x1xf32>
    %402 = vector.broadcast %401 : vector<1x8x1xf32> to vector<8x8x8xf32>
    %403 = arith.addf %398, %402 : vector<8x8x8xf32>
    %c1_162 = arith.constant 1 : index
    %c2_163 = arith.constant 2 : index
    %c0_164 = arith.constant 0 : index
    %c0_165 = arith.constant 0 : index
    %404 = vector.load %arg4[%c1_162, %c2_163, %c0_164, %c0_165] : memref<3x3x8x16xbf16, #tpu.memory_space<vmem>>, vector<1x1x8x8xbf16>
    %405 = vector.shape_cast %404 : vector<1x1x8x8xbf16> to vector<8x8xbf16>
    %406 = vector.shape_cast %405 : vector<8x8xbf16> to vector<1x8x8xbf16>
    %407 = vector.broadcast %406 : vector<1x8x8xbf16> to vector<4x8x8xbf16>
    %408 = arith.truncf %381 : vector<4x8x4xf32> to vector<4x8x4xbf16>
    "tpu.trace_start"() <{level = 10 : i32, message = "hoc,hcw->how"}> : () -> ()
    %cst_166 = arith.constant dense<0.000000e+00> : vector<4x8x4xf32>
    %409 = tpu.matmul %407, %408, %cst_166 {dimension_numbers = #tpu.dot_dimension_numbers<[2], [1], [1], [2], [0, 0, 0, 1, 1, 2], [0], [0]>} : vector<4x8x8xbf16>, vector<4x8x4xbf16>, vector<4x8x4xf32> -> vector<4x8x4xf32>
    "tpu.trace_stop"() : () -> ()
    %c1_167 = arith.constant 1 : index
    %c0_168 = arith.constant 0 : index
    %c2_169 = arith.constant 2 : index
    %410 = vector.load %arg5[%c1_167, %c0_168, %c2_169] : memref<3x8x20xf32, #tpu.memory_space<vmem>>, vector<1x8x1xf32>
    %411 = vector.shape_cast %410 : vector<1x8x1xf32> to vector<8x1xf32>
    %412 = vector.shape_cast %411 : vector<8x1xf32> to vector<1x8x1xf32>
    %413 = vector.broadcast %412 : vector<1x8x1xf32> to vector<4x8x4xf32>
    %414 = arith.addf %409, %413 : vector<4x8x4xf32>
    %415 = vector.extract_strided_slice %414 {offsets = [0, 0, 0], sizes = [1, 8, 4], strides = [1, 1, 1]} : vector<4x8x4xf32> to vector<1x8x4xf32>
    %416 = vector.extract_strided_slice %414 {offsets = [0, 0, 0], sizes = [1, 8, 4], strides = [1, 1, 1]} : vector<4x8x4xf32> to vector<1x8x4xf32>
    %cst_170 = arith.constant 7.500000e-01 : f32
    %417 = vector.broadcast %cst_170 : f32 to vector<1x8x4xf32>
    %418 = arith.mulf %416, %417 : vector<1x8x4xf32>
    %419 = vector.extract_strided_slice %414 {offsets = [1, 0, 0], sizes = [1, 8, 4], strides = [1, 1, 1]} : vector<4x8x4xf32> to vector<1x8x4xf32>
    %cst_171 = arith.constant 2.500000e-01 : f32
    %420 = vector.broadcast %cst_171 : f32 to vector<1x8x4xf32>
    %421 = arith.mulf %419, %420 : vector<1x8x4xf32>
    %422 = arith.addf %418, %421 : vector<1x8x4xf32>
    %423 = vector.extract_strided_slice %414 {offsets = [0, 0, 0], sizes = [1, 8, 4], strides = [1, 1, 1]} : vector<4x8x4xf32> to vector<1x8x4xf32>
    %cst_172 = arith.constant 2.500000e-01 : f32
    %424 = vector.broadcast %cst_172 : f32 to vector<1x8x4xf32>
    %425 = arith.mulf %423, %424 : vector<1x8x4xf32>
    %426 = vector.extract_strided_slice %414 {offsets = [1, 0, 0], sizes = [1, 8, 4], strides = [1, 1, 1]} : vector<4x8x4xf32> to vector<1x8x4xf32>
    %cst_173 = arith.constant 7.500000e-01 : f32
    %427 = vector.broadcast %cst_173 : f32 to vector<1x8x4xf32>
    %428 = arith.mulf %426, %427 : vector<1x8x4xf32>
    %429 = arith.addf %425, %428 : vector<1x8x4xf32>
    %430 = vector.extract_strided_slice %414 {offsets = [1, 0, 0], sizes = [1, 8, 4], strides = [1, 1, 1]} : vector<4x8x4xf32> to vector<1x8x4xf32>
    %cst_174 = arith.constant 7.500000e-01 : f32
    %431 = vector.broadcast %cst_174 : f32 to vector<1x8x4xf32>
    %432 = arith.mulf %430, %431 : vector<1x8x4xf32>
    %433 = vector.extract_strided_slice %414 {offsets = [2, 0, 0], sizes = [1, 8, 4], strides = [1, 1, 1]} : vector<4x8x4xf32> to vector<1x8x4xf32>
    %cst_175 = arith.constant 2.500000e-01 : f32
    %434 = vector.broadcast %cst_175 : f32 to vector<1x8x4xf32>
    %435 = arith.mulf %433, %434 : vector<1x8x4xf32>
    %436 = arith.addf %432, %435 : vector<1x8x4xf32>
    %437 = vector.extract_strided_slice %414 {offsets = [1, 0, 0], sizes = [1, 8, 4], strides = [1, 1, 1]} : vector<4x8x4xf32> to vector<1x8x4xf32>
    %cst_176 = arith.constant 2.500000e-01 : f32
    %438 = vector.broadcast %cst_176 : f32 to vector<1x8x4xf32>
    %439 = arith.mulf %437, %438 : vector<1x8x4xf32>
    %440 = vector.extract_strided_slice %414 {offsets = [2, 0, 0], sizes = [1, 8, 4], strides = [1, 1, 1]} : vector<4x8x4xf32> to vector<1x8x4xf32>
    %cst_177 = arith.constant 7.500000e-01 : f32
    %441 = vector.broadcast %cst_177 : f32 to vector<1x8x4xf32>
    %442 = arith.mulf %440, %441 : vector<1x8x4xf32>
    %443 = arith.addf %439, %442 : vector<1x8x4xf32>
    %444 = vector.extract_strided_slice %414 {offsets = [2, 0, 0], sizes = [1, 8, 4], strides = [1, 1, 1]} : vector<4x8x4xf32> to vector<1x8x4xf32>
    %cst_178 = arith.constant 7.500000e-01 : f32
    %445 = vector.broadcast %cst_178 : f32 to vector<1x8x4xf32>
    %446 = arith.mulf %444, %445 : vector<1x8x4xf32>
    %447 = vector.extract_strided_slice %414 {offsets = [3, 0, 0], sizes = [1, 8, 4], strides = [1, 1, 1]} : vector<4x8x4xf32> to vector<1x8x4xf32>
    %cst_179 = arith.constant 2.500000e-01 : f32
    %448 = vector.broadcast %cst_179 : f32 to vector<1x8x4xf32>
    %449 = arith.mulf %447, %448 : vector<1x8x4xf32>
    %450 = arith.addf %446, %449 : vector<1x8x4xf32>
    %451 = vector.extract_strided_slice %414 {offsets = [2, 0, 0], sizes = [1, 8, 4], strides = [1, 1, 1]} : vector<4x8x4xf32> to vector<1x8x4xf32>
    %cst_180 = arith.constant 2.500000e-01 : f32
    %452 = vector.broadcast %cst_180 : f32 to vector<1x8x4xf32>
    %453 = arith.mulf %451, %452 : vector<1x8x4xf32>
    %454 = vector.extract_strided_slice %414 {offsets = [3, 0, 0], sizes = [1, 8, 4], strides = [1, 1, 1]} : vector<4x8x4xf32> to vector<1x8x4xf32>
    %cst_181 = arith.constant 7.500000e-01 : f32
    %455 = vector.broadcast %cst_181 : f32 to vector<1x8x4xf32>
    %456 = arith.mulf %454, %455 : vector<1x8x4xf32>
    %457 = arith.addf %453, %456 : vector<1x8x4xf32>
    %458 = vector.extract_strided_slice %414 {offsets = [3, 0, 0], sizes = [1, 8, 4], strides = [1, 1, 1]} : vector<4x8x4xf32> to vector<1x8x4xf32>
    %459 = tpu.concatenate %415, %422, %429, %436, %443, %450, %457, %458 in 0 : vector<1x8x4xf32>, vector<1x8x4xf32>, vector<1x8x4xf32>, vector<1x8x4xf32>, vector<1x8x4xf32>, vector<1x8x4xf32>, vector<1x8x4xf32>, vector<1x8x4xf32> -> vector<8x8x4xf32>
    %c0_182 = arith.constant 0 : index
    %c0_183 = arith.constant 0 : index
    %c0_184 = arith.constant 0 : index
    %460 = vector.load %arg6[%c0_182, %c0_183, %c0_184] : memref<4x16x16xbf16, #tpu.memory_space<vmem>>, vector<1x4x8xbf16>
    %461 = vector.shape_cast %460 : vector<1x4x8xbf16> to vector<4x8xbf16>
    %462 = vector.shape_cast %461 : vector<4x8xbf16> to vector<1x4x8xbf16>
    %463 = vector.broadcast %462 : vector<1x4x8xbf16> to vector<8x4x8xbf16>
    %464 = arith.truncf %459 : vector<8x8x4xf32> to vector<8x8x4xbf16>
    "tpu.trace_start"() <{level = 10 : i32, message = "hcw,hwd->hcd"}> : () -> ()
    %cst_185 = arith.constant dense<0.000000e+00> : vector<8x8x8xf32>
    %465 = tpu.matmul %464, %463, %cst_185 {dimension_numbers = #tpu.dot_dimension_numbers<[2], [1], [1], [2], [0, 0, 0, 1, 1, 2], [0], [0]>} : vector<8x8x4xbf16>, vector<8x4x8xbf16>, vector<8x8x8xf32> -> vector<8x8x8xf32>
    "tpu.trace_stop"() : () -> ()
    %c1_186 = arith.constant 1 : index
    %c0_187 = arith.constant 0 : index
    %c11_188 = arith.constant 11 : index
    %466 = vector.load %arg5[%c1_186, %c0_187, %c11_188] : memref<3x8x20xf32, #tpu.memory_space<vmem>>, vector<1x8x1xf32>
    %467 = vector.shape_cast %466 : vector<1x8x1xf32> to vector<8x1xf32>
    %468 = vector.shape_cast %467 : vector<8x1xf32> to vector<1x8x1xf32>
    %469 = vector.broadcast %468 : vector<1x8x1xf32> to vector<8x8x8xf32>
    %470 = arith.mulf %403, %469 : vector<8x8x8xf32>
    %c1_189 = arith.constant 1 : index
    %c0_190 = arith.constant 0 : index
    %c12_191 = arith.constant 12 : index
    %471 = vector.load %arg5[%c1_189, %c0_190, %c12_191] : memref<3x8x20xf32, #tpu.memory_space<vmem>>, vector<1x8x1xf32>
    %472 = vector.shape_cast %471 : vector<1x8x1xf32> to vector<8x1xf32>
    %473 = vector.shape_cast %472 : vector<8x1xf32> to vector<1x8x1xf32>
    %474 = vector.broadcast %473 : vector<1x8x1xf32> to vector<8x8x8xf32>
    %475 = arith.mulf %465, %474 : vector<8x8x8xf32>
    %476 = arith.addf %470, %475 : vector<8x8x8xf32>
    %c1_192 = arith.constant 1 : index
    %c0_193 = arith.constant 0 : index
    %c3_194 = arith.constant 3 : index
    %477 = vector.load %arg5[%c1_192, %c0_193, %c3_194] : memref<3x8x20xf32, #tpu.memory_space<vmem>>, vector<1x8x1xf32>
    %478 = vector.shape_cast %477 : vector<1x8x1xf32> to vector<8x1xf32>
    %479 = vector.shape_cast %478 : vector<8x1xf32> to vector<1x8x1xf32>
    %480 = vector.broadcast %479 : vector<1x8x1xf32> to vector<8x8x8xf32>
    %481 = arith.mulf %476, %480 : vector<8x8x8xf32>
    %c1_195 = arith.constant 1 : index
    %c0_196 = arith.constant 0 : index
    %c4_197 = arith.constant 4 : index
    %482 = vector.load %arg5[%c1_195, %c0_196, %c4_197] : memref<3x8x20xf32, #tpu.memory_space<vmem>>, vector<1x8x1xf32>
    %483 = vector.shape_cast %482 : vector<1x8x1xf32> to vector<8x1xf32>
    %484 = vector.shape_cast %483 : vector<8x1xf32> to vector<1x8x1xf32>
    %485 = vector.broadcast %484 : vector<1x8x1xf32> to vector<8x8x8xf32>
    %486 = arith.addf %481, %485 : vector<8x8x8xf32>
    %487 = vector.extract_strided_slice %486 {offsets = [0, 0, 0], sizes = [1, 8, 8], strides = [1, 1, 1]} : vector<8x8x8xf32> to vector<1x8x8xf32>
    %488 = vector.extract_strided_slice %486 {offsets = [0, 0, 0], sizes = [1, 8, 8], strides = [1, 1, 1]} : vector<8x8x8xf32> to vector<1x8x8xf32>
    %cst_198 = arith.constant 7.500000e-01 : f32
    %489 = vector.broadcast %cst_198 : f32 to vector<1x8x8xf32>
    %490 = arith.mulf %488, %489 : vector<1x8x8xf32>
    %491 = vector.extract_strided_slice %486 {offsets = [1, 0, 0], sizes = [1, 8, 8], strides = [1, 1, 1]} : vector<8x8x8xf32> to vector<1x8x8xf32>
    %cst_199 = arith.constant 2.500000e-01 : f32
    %492 = vector.broadcast %cst_199 : f32 to vector<1x8x8xf32>
    %493 = arith.mulf %491, %492 : vector<1x8x8xf32>
    %494 = arith.addf %490, %493 : vector<1x8x8xf32>
    %495 = vector.extract_strided_slice %486 {offsets = [0, 0, 0], sizes = [1, 8, 8], strides = [1, 1, 1]} : vector<8x8x8xf32> to vector<1x8x8xf32>
    %cst_200 = arith.constant 2.500000e-01 : f32
    %496 = vector.broadcast %cst_200 : f32 to vector<1x8x8xf32>
    %497 = arith.mulf %495, %496 : vector<1x8x8xf32>
    %498 = vector.extract_strided_slice %486 {offsets = [1, 0, 0], sizes = [1, 8, 8], strides = [1, 1, 1]} : vector<8x8x8xf32> to vector<1x8x8xf32>
    %cst_201 = arith.constant 7.500000e-01 : f32
    %499 = vector.broadcast %cst_201 : f32 to vector<1x8x8xf32>
    %500 = arith.mulf %498, %499 : vector<1x8x8xf32>
    %501 = arith.addf %497, %500 : vector<1x8x8xf32>
    %502 = vector.extract_strided_slice %486 {offsets = [1, 0, 0], sizes = [1, 8, 8], strides = [1, 1, 1]} : vector<8x8x8xf32> to vector<1x8x8xf32>
    %cst_202 = arith.constant 7.500000e-01 : f32
    %503 = vector.broadcast %cst_202 : f32 to vector<1x8x8xf32>
    %504 = arith.mulf %502, %503 : vector<1x8x8xf32>
    %505 = vector.extract_strided_slice %486 {offsets = [2, 0, 0], sizes = [1, 8, 8], strides = [1, 1, 1]} : vector<8x8x8xf32> to vector<1x8x8xf32>
    %cst_203 = arith.constant 2.500000e-01 : f32
    %506 = vector.broadcast %cst_203 : f32 to vector<1x8x8xf32>
    %507 = arith.mulf %505, %506 : vector<1x8x8xf32>
    %508 = arith.addf %504, %507 : vector<1x8x8xf32>
    %509 = vector.extract_strided_slice %486 {offsets = [1, 0, 0], sizes = [1, 8, 8], strides = [1, 1, 1]} : vector<8x8x8xf32> to vector<1x8x8xf32>
    %cst_204 = arith.constant 2.500000e-01 : f32
    %510 = vector.broadcast %cst_204 : f32 to vector<1x8x8xf32>
    %511 = arith.mulf %509, %510 : vector<1x8x8xf32>
    %512 = vector.extract_strided_slice %486 {offsets = [2, 0, 0], sizes = [1, 8, 8], strides = [1, 1, 1]} : vector<8x8x8xf32> to vector<1x8x8xf32>
    %cst_205 = arith.constant 7.500000e-01 : f32
    %513 = vector.broadcast %cst_205 : f32 to vector<1x8x8xf32>
    %514 = arith.mulf %512, %513 : vector<1x8x8xf32>
    %515 = arith.addf %511, %514 : vector<1x8x8xf32>
    %516 = vector.extract_strided_slice %486 {offsets = [2, 0, 0], sizes = [1, 8, 8], strides = [1, 1, 1]} : vector<8x8x8xf32> to vector<1x8x8xf32>
    %cst_206 = arith.constant 7.500000e-01 : f32
    %517 = vector.broadcast %cst_206 : f32 to vector<1x8x8xf32>
    %518 = arith.mulf %516, %517 : vector<1x8x8xf32>
    %519 = vector.extract_strided_slice %486 {offsets = [3, 0, 0], sizes = [1, 8, 8], strides = [1, 1, 1]} : vector<8x8x8xf32> to vector<1x8x8xf32>
    %cst_207 = arith.constant 2.500000e-01 : f32
    %520 = vector.broadcast %cst_207 : f32 to vector<1x8x8xf32>
    %521 = arith.mulf %519, %520 : vector<1x8x8xf32>
    %522 = arith.addf %518, %521 : vector<1x8x8xf32>
    %523 = vector.extract_strided_slice %486 {offsets = [2, 0, 0], sizes = [1, 8, 8], strides = [1, 1, 1]} : vector<8x8x8xf32> to vector<1x8x8xf32>
    %cst_208 = arith.constant 2.500000e-01 : f32
    %524 = vector.broadcast %cst_208 : f32 to vector<1x8x8xf32>
    %525 = arith.mulf %523, %524 : vector<1x8x8xf32>
    %526 = vector.extract_strided_slice %486 {offsets = [3, 0, 0], sizes = [1, 8, 8], strides = [1, 1, 1]} : vector<8x8x8xf32> to vector<1x8x8xf32>
    %cst_209 = arith.constant 7.500000e-01 : f32
    %527 = vector.broadcast %cst_209 : f32 to vector<1x8x8xf32>
    %528 = arith.mulf %526, %527 : vector<1x8x8xf32>
    %529 = arith.addf %525, %528 : vector<1x8x8xf32>
    %530 = vector.extract_strided_slice %486 {offsets = [3, 0, 0], sizes = [1, 8, 8], strides = [1, 1, 1]} : vector<8x8x8xf32> to vector<1x8x8xf32>
    %cst_210 = arith.constant 7.500000e-01 : f32
    %531 = vector.broadcast %cst_210 : f32 to vector<1x8x8xf32>
    %532 = arith.mulf %530, %531 : vector<1x8x8xf32>
    %533 = vector.extract_strided_slice %486 {offsets = [4, 0, 0], sizes = [1, 8, 8], strides = [1, 1, 1]} : vector<8x8x8xf32> to vector<1x8x8xf32>
    %cst_211 = arith.constant 2.500000e-01 : f32
    %534 = vector.broadcast %cst_211 : f32 to vector<1x8x8xf32>
    %535 = arith.mulf %533, %534 : vector<1x8x8xf32>
    %536 = arith.addf %532, %535 : vector<1x8x8xf32>
    %537 = vector.extract_strided_slice %486 {offsets = [3, 0, 0], sizes = [1, 8, 8], strides = [1, 1, 1]} : vector<8x8x8xf32> to vector<1x8x8xf32>
    %cst_212 = arith.constant 2.500000e-01 : f32
    %538 = vector.broadcast %cst_212 : f32 to vector<1x8x8xf32>
    %539 = arith.mulf %537, %538 : vector<1x8x8xf32>
    %540 = vector.extract_strided_slice %486 {offsets = [4, 0, 0], sizes = [1, 8, 8], strides = [1, 1, 1]} : vector<8x8x8xf32> to vector<1x8x8xf32>
    %cst_213 = arith.constant 7.500000e-01 : f32
    %541 = vector.broadcast %cst_213 : f32 to vector<1x8x8xf32>
    %542 = arith.mulf %540, %541 : vector<1x8x8xf32>
    %543 = arith.addf %539, %542 : vector<1x8x8xf32>
    %544 = vector.extract_strided_slice %486 {offsets = [4, 0, 0], sizes = [1, 8, 8], strides = [1, 1, 1]} : vector<8x8x8xf32> to vector<1x8x8xf32>
    %cst_214 = arith.constant 7.500000e-01 : f32
    %545 = vector.broadcast %cst_214 : f32 to vector<1x8x8xf32>
    %546 = arith.mulf %544, %545 : vector<1x8x8xf32>
    %547 = vector.extract_strided_slice %486 {offsets = [5, 0, 0], sizes = [1, 8, 8], strides = [1, 1, 1]} : vector<8x8x8xf32> to vector<1x8x8xf32>
    %cst_215 = arith.constant 2.500000e-01 : f32
    %548 = vector.broadcast %cst_215 : f32 to vector<1x8x8xf32>
    %549 = arith.mulf %547, %548 : vector<1x8x8xf32>
    %550 = arith.addf %546, %549 : vector<1x8x8xf32>
    %551 = vector.extract_strided_slice %486 {offsets = [4, 0, 0], sizes = [1, 8, 8], strides = [1, 1, 1]} : vector<8x8x8xf32> to vector<1x8x8xf32>
    %cst_216 = arith.constant 2.500000e-01 : f32
    %552 = vector.broadcast %cst_216 : f32 to vector<1x8x8xf32>
    %553 = arith.mulf %551, %552 : vector<1x8x8xf32>
    %554 = vector.extract_strided_slice %486 {offsets = [5, 0, 0], sizes = [1, 8, 8], strides = [1, 1, 1]} : vector<8x8x8xf32> to vector<1x8x8xf32>
    %cst_217 = arith.constant 7.500000e-01 : f32
    %555 = vector.broadcast %cst_217 : f32 to vector<1x8x8xf32>
    %556 = arith.mulf %554, %555 : vector<1x8x8xf32>
    %557 = arith.addf %553, %556 : vector<1x8x8xf32>
    %558 = vector.extract_strided_slice %486 {offsets = [5, 0, 0], sizes = [1, 8, 8], strides = [1, 1, 1]} : vector<8x8x8xf32> to vector<1x8x8xf32>
    %cst_218 = arith.constant 7.500000e-01 : f32
    %559 = vector.broadcast %cst_218 : f32 to vector<1x8x8xf32>
    %560 = arith.mulf %558, %559 : vector<1x8x8xf32>
    %561 = vector.extract_strided_slice %486 {offsets = [6, 0, 0], sizes = [1, 8, 8], strides = [1, 1, 1]} : vector<8x8x8xf32> to vector<1x8x8xf32>
    %cst_219 = arith.constant 2.500000e-01 : f32
    %562 = vector.broadcast %cst_219 : f32 to vector<1x8x8xf32>
    %563 = arith.mulf %561, %562 : vector<1x8x8xf32>
    %564 = arith.addf %560, %563 : vector<1x8x8xf32>
    %565 = vector.extract_strided_slice %486 {offsets = [5, 0, 0], sizes = [1, 8, 8], strides = [1, 1, 1]} : vector<8x8x8xf32> to vector<1x8x8xf32>
    %cst_220 = arith.constant 2.500000e-01 : f32
    %566 = vector.broadcast %cst_220 : f32 to vector<1x8x8xf32>
    %567 = arith.mulf %565, %566 : vector<1x8x8xf32>
    %568 = vector.extract_strided_slice %486 {offsets = [6, 0, 0], sizes = [1, 8, 8], strides = [1, 1, 1]} : vector<8x8x8xf32> to vector<1x8x8xf32>
    %cst_221 = arith.constant 7.500000e-01 : f32
    %569 = vector.broadcast %cst_221 : f32 to vector<1x8x8xf32>
    %570 = arith.mulf %568, %569 : vector<1x8x8xf32>
    %571 = arith.addf %567, %570 : vector<1x8x8xf32>
    %572 = vector.extract_strided_slice %486 {offsets = [6, 0, 0], sizes = [1, 8, 8], strides = [1, 1, 1]} : vector<8x8x8xf32> to vector<1x8x8xf32>
    %cst_222 = arith.constant 7.500000e-01 : f32
    %573 = vector.broadcast %cst_222 : f32 to vector<1x8x8xf32>
    %574 = arith.mulf %572, %573 : vector<1x8x8xf32>
    %575 = vector.extract_strided_slice %486 {offsets = [7, 0, 0], sizes = [1, 8, 8], strides = [1, 1, 1]} : vector<8x8x8xf32> to vector<1x8x8xf32>
    %cst_223 = arith.constant 2.500000e-01 : f32
    %576 = vector.broadcast %cst_223 : f32 to vector<1x8x8xf32>
    %577 = arith.mulf %575, %576 : vector<1x8x8xf32>
    %578 = arith.addf %574, %577 : vector<1x8x8xf32>
    %579 = vector.extract_strided_slice %486 {offsets = [6, 0, 0], sizes = [1, 8, 8], strides = [1, 1, 1]} : vector<8x8x8xf32> to vector<1x8x8xf32>
    %cst_224 = arith.constant 2.500000e-01 : f32
    %580 = vector.broadcast %cst_224 : f32 to vector<1x8x8xf32>
    %581 = arith.mulf %579, %580 : vector<1x8x8xf32>
    %582 = vector.extract_strided_slice %486 {offsets = [7, 0, 0], sizes = [1, 8, 8], strides = [1, 1, 1]} : vector<8x8x8xf32> to vector<1x8x8xf32>
    %cst_225 = arith.constant 7.500000e-01 : f32
    %583 = vector.broadcast %cst_225 : f32 to vector<1x8x8xf32>
    %584 = arith.mulf %582, %583 : vector<1x8x8xf32>
    %585 = arith.addf %581, %584 : vector<1x8x8xf32>
    %586 = vector.extract_strided_slice %486 {offsets = [7, 0, 0], sizes = [1, 8, 8], strides = [1, 1, 1]} : vector<8x8x8xf32> to vector<1x8x8xf32>
    %587 = tpu.concatenate %487, %494, %501, %508, %515, %522, %529, %536, %543, %550, %557, %564, %571, %578, %585, %586 in 0 : vector<1x8x8xf32>, vector<1x8x8xf32>, vector<1x8x8xf32>, vector<1x8x8xf32>, vector<1x8x8xf32>, vector<1x8x8xf32>, vector<1x8x8xf32>, vector<1x8x8xf32>, vector<1x8x8xf32>, vector<1x8x8xf32>, vector<1x8x8xf32>, vector<1x8x8xf32>, vector<1x8x8xf32>, vector<1x8x8xf32>, vector<1x8x8xf32>, vector<1x8x8xf32> -> vector<16x8x8xf32>
    %c1_226 = arith.constant 1 : index
    %c0_227 = arith.constant 0 : index
    %c0_228 = arith.constant 0 : index
    %588 = vector.load %arg6[%c1_226, %c0_227, %c0_228] : memref<4x16x16xbf16, #tpu.memory_space<vmem>>, vector<1x8x16xbf16>
    %589 = vector.shape_cast %588 : vector<1x8x16xbf16> to vector<8x16xbf16>
    %590 = vector.shape_cast %589 : vector<8x16xbf16> to vector<1x8x16xbf16>
    %591 = vector.broadcast %590 : vector<1x8x16xbf16> to vector<16x8x16xbf16>
    %592 = arith.truncf %587 : vector<16x8x8xf32> to vector<16x8x8xbf16>
    "tpu.trace_start"() <{level = 10 : i32, message = "hcw,hwd->hcd"}> : () -> ()
    %cst_229 = arith.constant dense<0.000000e+00> : vector<16x8x16xf32>
    %593 = tpu.matmul %592, %591, %cst_229 {dimension_numbers = #tpu.dot_dimension_numbers<[2], [1], [1], [2], [0, 0, 0, 1, 1, 2], [0], [0]>} : vector<16x8x8xbf16>, vector<16x8x16xbf16>, vector<16x8x16xf32> -> vector<16x8x16xf32>
    "tpu.trace_stop"() : () -> ()
    %c1_230 = arith.constant 1 : index
    %c0_231 = arith.constant 0 : index
    %c13_232 = arith.constant 13 : index
    %594 = vector.load %arg5[%c1_230, %c0_231, %c13_232] : memref<3x8x20xf32, #tpu.memory_space<vmem>>, vector<1x8x1xf32>
    %595 = vector.shape_cast %594 : vector<1x8x1xf32> to vector<8x1xf32>
    %596 = vector.shape_cast %595 : vector<8x1xf32> to vector<1x8x1xf32>
    %597 = vector.broadcast %596 : vector<1x8x1xf32> to vector<16x8x16xf32>
    %598 = arith.mulf %392, %597 : vector<16x8x16xf32>
    %c1_233 = arith.constant 1 : index
    %c0_234 = arith.constant 0 : index
    %c14_235 = arith.constant 14 : index
    %599 = vector.load %arg5[%c1_233, %c0_234, %c14_235] : memref<3x8x20xf32, #tpu.memory_space<vmem>>, vector<1x8x1xf32>
    %600 = vector.shape_cast %599 : vector<1x8x1xf32> to vector<8x1xf32>
    %601 = vector.shape_cast %600 : vector<8x1xf32> to vector<1x8x1xf32>
    %602 = vector.broadcast %601 : vector<1x8x1xf32> to vector<16x8x16xf32>
    %603 = arith.mulf %593, %602 : vector<16x8x16xf32>
    %604 = arith.addf %598, %603 : vector<16x8x16xf32>
    %c1_236 = arith.constant 1 : index
    %c0_237 = arith.constant 0 : index
    %c5_238 = arith.constant 5 : index
    %605 = vector.load %arg5[%c1_236, %c0_237, %c5_238] : memref<3x8x20xf32, #tpu.memory_space<vmem>>, vector<1x8x1xf32>
    %606 = vector.shape_cast %605 : vector<1x8x1xf32> to vector<8x1xf32>
    %607 = vector.shape_cast %606 : vector<8x1xf32> to vector<1x8x1xf32>
    %608 = vector.broadcast %607 : vector<1x8x1xf32> to vector<16x8x16xf32>
    %609 = arith.mulf %604, %608 : vector<16x8x16xf32>
    %c1_239 = arith.constant 1 : index
    %c0_240 = arith.constant 0 : index
    %c6_241 = arith.constant 6 : index
    %610 = vector.load %arg5[%c1_239, %c0_240, %c6_241] : memref<3x8x20xf32, #tpu.memory_space<vmem>>, vector<1x8x1xf32>
    %611 = vector.shape_cast %610 : vector<1x8x1xf32> to vector<8x1xf32>
    %612 = vector.shape_cast %611 : vector<8x1xf32> to vector<1x8x1xf32>
    %613 = vector.broadcast %612 : vector<1x8x1xf32> to vector<16x8x16xf32>
    %614 = arith.addf %609, %613 : vector<16x8x16xf32>
    %615 = vector.extract_strided_slice %614 {offsets = [0, 0, 0], sizes = [1, 8, 16], strides = [1, 1, 1]} : vector<16x8x16xf32> to vector<1x8x16xf32>
    %cst_242 = arith.constant 5.000000e-01 : f32
    %616 = vector.broadcast %cst_242 : f32 to vector<1x8x16xf32>
    %617 = arith.mulf %615, %616 : vector<1x8x16xf32>
    %618 = vector.extract_strided_slice %614 {offsets = [1, 0, 0], sizes = [1, 8, 16], strides = [1, 1, 1]} : vector<16x8x16xf32> to vector<1x8x16xf32>
    %cst_243 = arith.constant 5.000000e-01 : f32
    %619 = vector.broadcast %cst_243 : f32 to vector<1x8x16xf32>
    %620 = arith.mulf %618, %619 : vector<1x8x16xf32>
    %621 = arith.addf %617, %620 : vector<1x8x16xf32>
    %622 = vector.extract_strided_slice %614 {offsets = [2, 0, 0], sizes = [1, 8, 16], strides = [1, 1, 1]} : vector<16x8x16xf32> to vector<1x8x16xf32>
    %cst_244 = arith.constant 5.000000e-01 : f32
    %623 = vector.broadcast %cst_244 : f32 to vector<1x8x16xf32>
    %624 = arith.mulf %622, %623 : vector<1x8x16xf32>
    %625 = vector.extract_strided_slice %614 {offsets = [3, 0, 0], sizes = [1, 8, 16], strides = [1, 1, 1]} : vector<16x8x16xf32> to vector<1x8x16xf32>
    %cst_245 = arith.constant 5.000000e-01 : f32
    %626 = vector.broadcast %cst_245 : f32 to vector<1x8x16xf32>
    %627 = arith.mulf %625, %626 : vector<1x8x16xf32>
    %628 = arith.addf %624, %627 : vector<1x8x16xf32>
    %629 = vector.extract_strided_slice %614 {offsets = [4, 0, 0], sizes = [1, 8, 16], strides = [1, 1, 1]} : vector<16x8x16xf32> to vector<1x8x16xf32>
    %cst_246 = arith.constant 5.000000e-01 : f32
    %630 = vector.broadcast %cst_246 : f32 to vector<1x8x16xf32>
    %631 = arith.mulf %629, %630 : vector<1x8x16xf32>
    %632 = vector.extract_strided_slice %614 {offsets = [5, 0, 0], sizes = [1, 8, 16], strides = [1, 1, 1]} : vector<16x8x16xf32> to vector<1x8x16xf32>
    %cst_247 = arith.constant 5.000000e-01 : f32
    %633 = vector.broadcast %cst_247 : f32 to vector<1x8x16xf32>
    %634 = arith.mulf %632, %633 : vector<1x8x16xf32>
    %635 = arith.addf %631, %634 : vector<1x8x16xf32>
    %636 = vector.extract_strided_slice %614 {offsets = [6, 0, 0], sizes = [1, 8, 16], strides = [1, 1, 1]} : vector<16x8x16xf32> to vector<1x8x16xf32>
    %cst_248 = arith.constant 5.000000e-01 : f32
    %637 = vector.broadcast %cst_248 : f32 to vector<1x8x16xf32>
    %638 = arith.mulf %636, %637 : vector<1x8x16xf32>
    %639 = vector.extract_strided_slice %614 {offsets = [7, 0, 0], sizes = [1, 8, 16], strides = [1, 1, 1]} : vector<16x8x16xf32> to vector<1x8x16xf32>
    %cst_249 = arith.constant 5.000000e-01 : f32
    %640 = vector.broadcast %cst_249 : f32 to vector<1x8x16xf32>
    %641 = arith.mulf %639, %640 : vector<1x8x16xf32>
    %642 = arith.addf %638, %641 : vector<1x8x16xf32>
    %643 = vector.extract_strided_slice %614 {offsets = [8, 0, 0], sizes = [1, 8, 16], strides = [1, 1, 1]} : vector<16x8x16xf32> to vector<1x8x16xf32>
    %cst_250 = arith.constant 5.000000e-01 : f32
    %644 = vector.broadcast %cst_250 : f32 to vector<1x8x16xf32>
    %645 = arith.mulf %643, %644 : vector<1x8x16xf32>
    %646 = vector.extract_strided_slice %614 {offsets = [9, 0, 0], sizes = [1, 8, 16], strides = [1, 1, 1]} : vector<16x8x16xf32> to vector<1x8x16xf32>
    %cst_251 = arith.constant 5.000000e-01 : f32
    %647 = vector.broadcast %cst_251 : f32 to vector<1x8x16xf32>
    %648 = arith.mulf %646, %647 : vector<1x8x16xf32>
    %649 = arith.addf %645, %648 : vector<1x8x16xf32>
    %650 = vector.extract_strided_slice %614 {offsets = [10, 0, 0], sizes = [1, 8, 16], strides = [1, 1, 1]} : vector<16x8x16xf32> to vector<1x8x16xf32>
    %cst_252 = arith.constant 5.000000e-01 : f32
    %651 = vector.broadcast %cst_252 : f32 to vector<1x8x16xf32>
    %652 = arith.mulf %650, %651 : vector<1x8x16xf32>
    %653 = vector.extract_strided_slice %614 {offsets = [11, 0, 0], sizes = [1, 8, 16], strides = [1, 1, 1]} : vector<16x8x16xf32> to vector<1x8x16xf32>
    %cst_253 = arith.constant 5.000000e-01 : f32
    %654 = vector.broadcast %cst_253 : f32 to vector<1x8x16xf32>
    %655 = arith.mulf %653, %654 : vector<1x8x16xf32>
    %656 = arith.addf %652, %655 : vector<1x8x16xf32>
    %657 = vector.extract_strided_slice %614 {offsets = [12, 0, 0], sizes = [1, 8, 16], strides = [1, 1, 1]} : vector<16x8x16xf32> to vector<1x8x16xf32>
    %cst_254 = arith.constant 5.000000e-01 : f32
    %658 = vector.broadcast %cst_254 : f32 to vector<1x8x16xf32>
    %659 = arith.mulf %657, %658 : vector<1x8x16xf32>
    %660 = vector.extract_strided_slice %614 {offsets = [13, 0, 0], sizes = [1, 8, 16], strides = [1, 1, 1]} : vector<16x8x16xf32> to vector<1x8x16xf32>
    %cst_255 = arith.constant 5.000000e-01 : f32
    %661 = vector.broadcast %cst_255 : f32 to vector<1x8x16xf32>
    %662 = arith.mulf %660, %661 : vector<1x8x16xf32>
    %663 = arith.addf %659, %662 : vector<1x8x16xf32>
    %664 = vector.extract_strided_slice %614 {offsets = [14, 0, 0], sizes = [1, 8, 16], strides = [1, 1, 1]} : vector<16x8x16xf32> to vector<1x8x16xf32>
    %cst_256 = arith.constant 5.000000e-01 : f32
    %665 = vector.broadcast %cst_256 : f32 to vector<1x8x16xf32>
    %666 = arith.mulf %664, %665 : vector<1x8x16xf32>
    %667 = vector.extract_strided_slice %614 {offsets = [15, 0, 0], sizes = [1, 8, 16], strides = [1, 1, 1]} : vector<16x8x16xf32> to vector<1x8x16xf32>
    %cst_257 = arith.constant 5.000000e-01 : f32
    %668 = vector.broadcast %cst_257 : f32 to vector<1x8x16xf32>
    %669 = arith.mulf %667, %668 : vector<1x8x16xf32>
    %670 = arith.addf %666, %669 : vector<1x8x16xf32>
    %671 = tpu.concatenate %621, %628, %635, %642, %649, %656, %663, %670 in 0 : vector<1x8x16xf32>, vector<1x8x16xf32>, vector<1x8x16xf32>, vector<1x8x16xf32>, vector<1x8x16xf32>, vector<1x8x16xf32>, vector<1x8x16xf32>, vector<1x8x16xf32> -> vector<8x8x16xf32>
    %c2_258 = arith.constant 2 : index
    %c0_259 = arith.constant 0 : index
    %c0_260 = arith.constant 0 : index
    %672 = vector.load %arg6[%c2_258, %c0_259, %c0_260] : memref<4x16x16xbf16, #tpu.memory_space<vmem>>, vector<1x16x8xbf16>
    %673 = vector.shape_cast %672 : vector<1x16x8xbf16> to vector<16x8xbf16>
    %674 = vector.shape_cast %673 : vector<16x8xbf16> to vector<1x16x8xbf16>
    %675 = vector.broadcast %674 : vector<1x16x8xbf16> to vector<8x16x8xbf16>
    %676 = arith.truncf %671 : vector<8x8x16xf32> to vector<8x8x16xbf16>
    "tpu.trace_start"() <{level = 10 : i32, message = "hcw,hwd->hcd"}> : () -> ()
    %cst_261 = arith.constant dense<0.000000e+00> : vector<8x8x8xf32>
    %677 = tpu.matmul %676, %675, %cst_261 {dimension_numbers = #tpu.dot_dimension_numbers<[2], [1], [1], [2], [0, 0, 0, 1, 1, 2], [0], [0]>} : vector<8x8x16xbf16>, vector<8x16x8xbf16>, vector<8x8x8xf32> -> vector<8x8x8xf32>
    "tpu.trace_stop"() : () -> ()
    %c1_262 = arith.constant 1 : index
    %c0_263 = arith.constant 0 : index
    %c15_264 = arith.constant 15 : index
    %678 = vector.load %arg5[%c1_262, %c0_263, %c15_264] : memref<3x8x20xf32, #tpu.memory_space<vmem>>, vector<1x8x1xf32>
    %679 = vector.shape_cast %678 : vector<1x8x1xf32> to vector<8x1xf32>
    %680 = vector.shape_cast %679 : vector<8x1xf32> to vector<1x8x1xf32>
    %681 = vector.broadcast %680 : vector<1x8x1xf32> to vector<8x8x8xf32>
    %682 = arith.mulf %403, %681 : vector<8x8x8xf32>
    %c1_265 = arith.constant 1 : index
    %c0_266 = arith.constant 0 : index
    %c16_267 = arith.constant 16 : index
    %683 = vector.load %arg5[%c1_265, %c0_266, %c16_267] : memref<3x8x20xf32, #tpu.memory_space<vmem>>, vector<1x8x1xf32>
    %684 = vector.shape_cast %683 : vector<1x8x1xf32> to vector<8x1xf32>
    %685 = vector.shape_cast %684 : vector<8x1xf32> to vector<1x8x1xf32>
    %686 = vector.broadcast %685 : vector<1x8x1xf32> to vector<8x8x8xf32>
    %687 = arith.mulf %486, %686 : vector<8x8x8xf32>
    %688 = arith.addf %682, %687 : vector<8x8x8xf32>
    %c1_268 = arith.constant 1 : index
    %c0_269 = arith.constant 0 : index
    %c17_270 = arith.constant 17 : index
    %689 = vector.load %arg5[%c1_268, %c0_269, %c17_270] : memref<3x8x20xf32, #tpu.memory_space<vmem>>, vector<1x8x1xf32>
    %690 = vector.shape_cast %689 : vector<1x8x1xf32> to vector<8x1xf32>
    %691 = vector.shape_cast %690 : vector<8x1xf32> to vector<1x8x1xf32>
    %692 = vector.broadcast %691 : vector<1x8x1xf32> to vector<8x8x8xf32>
    %693 = arith.mulf %677, %692 : vector<8x8x8xf32>
    %694 = arith.addf %688, %693 : vector<8x8x8xf32>
    %c1_271 = arith.constant 1 : index
    %c0_272 = arith.constant 0 : index
    %c7_273 = arith.constant 7 : index
    %695 = vector.load %arg5[%c1_271, %c0_272, %c7_273] : memref<3x8x20xf32, #tpu.memory_space<vmem>>, vector<1x8x1xf32>
    %696 = vector.shape_cast %695 : vector<1x8x1xf32> to vector<8x1xf32>
    %697 = vector.shape_cast %696 : vector<8x1xf32> to vector<1x8x1xf32>
    %698 = vector.broadcast %697 : vector<1x8x1xf32> to vector<8x8x8xf32>
    %699 = arith.mulf %694, %698 : vector<8x8x8xf32>
    %c1_274 = arith.constant 1 : index
    %c0_275 = arith.constant 0 : index
    %c8_276 = arith.constant 8 : index
    %700 = vector.load %arg5[%c1_274, %c0_275, %c8_276] : memref<3x8x20xf32, #tpu.memory_space<vmem>>, vector<1x8x1xf32>
    %701 = vector.shape_cast %700 : vector<1x8x1xf32> to vector<8x1xf32>
    %702 = vector.shape_cast %701 : vector<8x1xf32> to vector<1x8x1xf32>
    %703 = vector.broadcast %702 : vector<1x8x1xf32> to vector<8x8x8xf32>
    %704 = arith.addf %699, %703 : vector<8x8x8xf32>
    %705 = vector.extract_strided_slice %704 {offsets = [0, 0, 0], sizes = [1, 8, 8], strides = [1, 1, 1]} : vector<8x8x8xf32> to vector<1x8x8xf32>
    %cst_277 = arith.constant 5.000000e-01 : f32
    %706 = vector.broadcast %cst_277 : f32 to vector<1x8x8xf32>
    %707 = arith.mulf %705, %706 : vector<1x8x8xf32>
    %708 = vector.extract_strided_slice %704 {offsets = [1, 0, 0], sizes = [1, 8, 8], strides = [1, 1, 1]} : vector<8x8x8xf32> to vector<1x8x8xf32>
    %cst_278 = arith.constant 5.000000e-01 : f32
    %709 = vector.broadcast %cst_278 : f32 to vector<1x8x8xf32>
    %710 = arith.mulf %708, %709 : vector<1x8x8xf32>
    %711 = arith.addf %707, %710 : vector<1x8x8xf32>
    %712 = vector.extract_strided_slice %704 {offsets = [2, 0, 0], sizes = [1, 8, 8], strides = [1, 1, 1]} : vector<8x8x8xf32> to vector<1x8x8xf32>
    %cst_279 = arith.constant 5.000000e-01 : f32
    %713 = vector.broadcast %cst_279 : f32 to vector<1x8x8xf32>
    %714 = arith.mulf %712, %713 : vector<1x8x8xf32>
    %715 = vector.extract_strided_slice %704 {offsets = [3, 0, 0], sizes = [1, 8, 8], strides = [1, 1, 1]} : vector<8x8x8xf32> to vector<1x8x8xf32>
    %cst_280 = arith.constant 5.000000e-01 : f32
    %716 = vector.broadcast %cst_280 : f32 to vector<1x8x8xf32>
    %717 = arith.mulf %715, %716 : vector<1x8x8xf32>
    %718 = arith.addf %714, %717 : vector<1x8x8xf32>
    %719 = vector.extract_strided_slice %704 {offsets = [4, 0, 0], sizes = [1, 8, 8], strides = [1, 1, 1]} : vector<8x8x8xf32> to vector<1x8x8xf32>
    %cst_281 = arith.constant 5.000000e-01 : f32
    %720 = vector.broadcast %cst_281 : f32 to vector<1x8x8xf32>
    %721 = arith.mulf %719, %720 : vector<1x8x8xf32>
    %722 = vector.extract_strided_slice %704 {offsets = [5, 0, 0], sizes = [1, 8, 8], strides = [1, 1, 1]} : vector<8x8x8xf32> to vector<1x8x8xf32>
    %cst_282 = arith.constant 5.000000e-01 : f32
    %723 = vector.broadcast %cst_282 : f32 to vector<1x8x8xf32>
    %724 = arith.mulf %722, %723 : vector<1x8x8xf32>
    %725 = arith.addf %721, %724 : vector<1x8x8xf32>
    %726 = vector.extract_strided_slice %704 {offsets = [6, 0, 0], sizes = [1, 8, 8], strides = [1, 1, 1]} : vector<8x8x8xf32> to vector<1x8x8xf32>
    %cst_283 = arith.constant 5.000000e-01 : f32
    %727 = vector.broadcast %cst_283 : f32 to vector<1x8x8xf32>
    %728 = arith.mulf %726, %727 : vector<1x8x8xf32>
    %729 = vector.extract_strided_slice %704 {offsets = [7, 0, 0], sizes = [1, 8, 8], strides = [1, 1, 1]} : vector<8x8x8xf32> to vector<1x8x8xf32>
    %cst_284 = arith.constant 5.000000e-01 : f32
    %730 = vector.broadcast %cst_284 : f32 to vector<1x8x8xf32>
    %731 = arith.mulf %729, %730 : vector<1x8x8xf32>
    %732 = arith.addf %728, %731 : vector<1x8x8xf32>
    %733 = tpu.concatenate %711, %718, %725, %732 in 0 : vector<1x8x8xf32>, vector<1x8x8xf32>, vector<1x8x8xf32>, vector<1x8x8xf32> -> vector<4x8x8xf32>
    %c3_285 = arith.constant 3 : index
    %c0_286 = arith.constant 0 : index
    %c0_287 = arith.constant 0 : index
    %734 = vector.load %arg6[%c3_285, %c0_286, %c0_287] : memref<4x16x16xbf16, #tpu.memory_space<vmem>>, vector<1x8x4xbf16>
    %735 = vector.shape_cast %734 : vector<1x8x4xbf16> to vector<8x4xbf16>
    %736 = vector.shape_cast %735 : vector<8x4xbf16> to vector<1x8x4xbf16>
    %737 = vector.broadcast %736 : vector<1x8x4xbf16> to vector<4x8x4xbf16>
    %738 = arith.truncf %733 : vector<4x8x8xf32> to vector<4x8x8xbf16>
    "tpu.trace_start"() <{level = 10 : i32, message = "hcw,hwd->hcd"}> : () -> ()
    %cst_288 = arith.constant dense<0.000000e+00> : vector<4x8x4xf32>
    %739 = tpu.matmul %738, %737, %cst_288 {dimension_numbers = #tpu.dot_dimension_numbers<[2], [1], [1], [2], [0, 0, 0, 1, 1, 2], [0], [0]>} : vector<4x8x8xbf16>, vector<4x8x4xbf16>, vector<4x8x4xf32> -> vector<4x8x4xf32>
    "tpu.trace_stop"() : () -> ()
    %c1_289 = arith.constant 1 : index
    %c0_290 = arith.constant 0 : index
    %c18_291 = arith.constant 18 : index
    %740 = vector.load %arg5[%c1_289, %c0_290, %c18_291] : memref<3x8x20xf32, #tpu.memory_space<vmem>>, vector<1x8x1xf32>
    %741 = vector.shape_cast %740 : vector<1x8x1xf32> to vector<8x1xf32>
    %742 = vector.shape_cast %741 : vector<8x1xf32> to vector<1x8x1xf32>
    %743 = vector.broadcast %742 : vector<1x8x1xf32> to vector<4x8x4xf32>
    %744 = arith.mulf %414, %743 : vector<4x8x4xf32>
    %c1_292 = arith.constant 1 : index
    %c0_293 = arith.constant 0 : index
    %c19_294 = arith.constant 19 : index
    %745 = vector.load %arg5[%c1_292, %c0_293, %c19_294] : memref<3x8x20xf32, #tpu.memory_space<vmem>>, vector<1x8x1xf32>
    %746 = vector.shape_cast %745 : vector<1x8x1xf32> to vector<8x1xf32>
    %747 = vector.shape_cast %746 : vector<8x1xf32> to vector<1x8x1xf32>
    %748 = vector.broadcast %747 : vector<1x8x1xf32> to vector<4x8x4xf32>
    %749 = arith.mulf %739, %748 : vector<4x8x4xf32>
    %750 = arith.addf %744, %749 : vector<4x8x4xf32>
    %c1_295 = arith.constant 1 : index
    %c0_296 = arith.constant 0 : index
    %c9_297 = arith.constant 9 : index
    %751 = vector.load %arg5[%c1_295, %c0_296, %c9_297] : memref<3x8x20xf32, #tpu.memory_space<vmem>>, vector<1x8x1xf32>
    %752 = vector.shape_cast %751 : vector<1x8x1xf32> to vector<8x1xf32>
    %753 = vector.shape_cast %752 : vector<8x1xf32> to vector<1x8x1xf32>
    %754 = vector.broadcast %753 : vector<1x8x1xf32> to vector<4x8x4xf32>
    %755 = arith.mulf %750, %754 : vector<4x8x4xf32>
    %c1_298 = arith.constant 1 : index
    %c0_299 = arith.constant 0 : index
    %c10_300 = arith.constant 10 : index
    %756 = vector.load %arg5[%c1_298, %c0_299, %c10_300] : memref<3x8x20xf32, #tpu.memory_space<vmem>>, vector<1x8x1xf32>
    %757 = vector.shape_cast %756 : vector<1x8x1xf32> to vector<8x1xf32>
    %758 = vector.shape_cast %757 : vector<8x1xf32> to vector<1x8x1xf32>
    %759 = vector.broadcast %758 : vector<1x8x1xf32> to vector<4x8x4xf32>
    %760 = arith.addf %755, %759 : vector<4x8x4xf32>
    %c2_301 = arith.constant 2 : index
    %c0_302 = arith.constant 0 : index
    %c0_303 = arith.constant 0 : index
    %c0_304 = arith.constant 0 : index
    %761 = vector.load %arg4[%c2_301, %c0_302, %c0_303, %c0_304] : memref<3x3x8x16xbf16, #tpu.memory_space<vmem>>, vector<1x1x8x8xbf16>
    %762 = vector.shape_cast %761 : vector<1x1x8x8xbf16> to vector<8x8xbf16>
    %763 = vector.shape_cast %762 : vector<8x8xbf16> to vector<1x8x8xbf16>
    %764 = vector.broadcast %763 : vector<1x8x8xbf16> to vector<16x8x8xbf16>
    %765 = arith.truncf %614 : vector<16x8x16xf32> to vector<16x8x16xbf16>
    "tpu.trace_start"() <{level = 10 : i32, message = "hoc,hcw->how"}> : () -> ()
    %cst_305 = arith.constant dense<0.000000e+00> : vector<16x8x16xf32>
    %766 = tpu.matmul %764, %765, %cst_305 {dimension_numbers = #tpu.dot_dimension_numbers<[2], [1], [1], [2], [0, 0, 0, 1, 1, 2], [0], [0]>} : vector<16x8x8xbf16>, vector<16x8x16xbf16>, vector<16x8x16xf32> -> vector<16x8x16xf32>
    "tpu.trace_stop"() : () -> ()
    %c2_306 = arith.constant 2 : index
    %c0_307 = arith.constant 0 : index
    %c0_308 = arith.constant 0 : index
    %767 = vector.load %arg5[%c2_306, %c0_307, %c0_308] : memref<3x8x20xf32, #tpu.memory_space<vmem>>, vector<1x8x1xf32>
    %768 = vector.shape_cast %767 : vector<1x8x1xf32> to vector<8x1xf32>
    %769 = vector.shape_cast %768 : vector<8x1xf32> to vector<1x8x1xf32>
    %770 = vector.broadcast %769 : vector<1x8x1xf32> to vector<16x8x16xf32>
    %771 = arith.addf %766, %770 : vector<16x8x16xf32>
    %c2_309 = arith.constant 2 : index
    %c1_310 = arith.constant 1 : index
    %c0_311 = arith.constant 0 : index
    %c0_312 = arith.constant 0 : index
    %772 = vector.load %arg4[%c2_309, %c1_310, %c0_311, %c0_312] : memref<3x3x8x16xbf16, #tpu.memory_space<vmem>>, vector<1x1x8x8xbf16>
    %773 = vector.shape_cast %772 : vector<1x1x8x8xbf16> to vector<8x8xbf16>
    %774 = vector.shape_cast %773 : vector<8x8xbf16> to vector<1x8x8xbf16>
    %775 = vector.broadcast %774 : vector<1x8x8xbf16> to vector<8x8x8xbf16>
    %776 = arith.truncf %704 : vector<8x8x8xf32> to vector<8x8x8xbf16>
    "tpu.trace_start"() <{level = 10 : i32, message = "hoc,hcw->how"}> : () -> ()
    %cst_313 = arith.constant dense<0.000000e+00> : vector<8x8x8xf32>
    %777 = tpu.matmul %775, %776, %cst_313 {dimension_numbers = #tpu.dot_dimension_numbers<[2], [1], [1], [2], [0, 0, 0, 1, 1, 2], [0], [0]>} : vector<8x8x8xbf16>, vector<8x8x8xbf16>, vector<8x8x8xf32> -> vector<8x8x8xf32>
    "tpu.trace_stop"() : () -> ()
    %c2_314 = arith.constant 2 : index
    %c0_315 = arith.constant 0 : index
    %c1_316 = arith.constant 1 : index
    %778 = vector.load %arg5[%c2_314, %c0_315, %c1_316] : memref<3x8x20xf32, #tpu.memory_space<vmem>>, vector<1x8x1xf32>
    %779 = vector.shape_cast %778 : vector<1x8x1xf32> to vector<8x1xf32>
    %780 = vector.shape_cast %779 : vector<8x1xf32> to vector<1x8x1xf32>
    %781 = vector.broadcast %780 : vector<1x8x1xf32> to vector<8x8x8xf32>
    %782 = arith.addf %777, %781 : vector<8x8x8xf32>
    %c2_317 = arith.constant 2 : index
    %c2_318 = arith.constant 2 : index
    %c0_319 = arith.constant 0 : index
    %c0_320 = arith.constant 0 : index
    %783 = vector.load %arg4[%c2_317, %c2_318, %c0_319, %c0_320] : memref<3x3x8x16xbf16, #tpu.memory_space<vmem>>, vector<1x1x8x8xbf16>
    %784 = vector.shape_cast %783 : vector<1x1x8x8xbf16> to vector<8x8xbf16>
    %785 = vector.shape_cast %784 : vector<8x8xbf16> to vector<1x8x8xbf16>
    %786 = vector.broadcast %785 : vector<1x8x8xbf16> to vector<4x8x8xbf16>
    %787 = arith.truncf %760 : vector<4x8x4xf32> to vector<4x8x4xbf16>
    "tpu.trace_start"() <{level = 10 : i32, message = "hoc,hcw->how"}> : () -> ()
    %cst_321 = arith.constant dense<0.000000e+00> : vector<4x8x4xf32>
    %788 = tpu.matmul %786, %787, %cst_321 {dimension_numbers = #tpu.dot_dimension_numbers<[2], [1], [1], [2], [0, 0, 0, 1, 1, 2], [0], [0]>} : vector<4x8x8xbf16>, vector<4x8x4xbf16>, vector<4x8x4xf32> -> vector<4x8x4xf32>
    "tpu.trace_stop"() : () -> ()
    %c2_322 = arith.constant 2 : index
    %c0_323 = arith.constant 0 : index
    %c2_324 = arith.constant 2 : index
    %789 = vector.load %arg5[%c2_322, %c0_323, %c2_324] : memref<3x8x20xf32, #tpu.memory_space<vmem>>, vector<1x8x1xf32>
    %790 = vector.shape_cast %789 : vector<1x8x1xf32> to vector<8x1xf32>
    %791 = vector.shape_cast %790 : vector<8x1xf32> to vector<1x8x1xf32>
    %792 = vector.broadcast %791 : vector<1x8x1xf32> to vector<4x8x4xf32>
    %793 = arith.addf %788, %792 : vector<4x8x4xf32>
    %794 = vector.extract_strided_slice %793 {offsets = [0, 0, 0], sizes = [1, 8, 4], strides = [1, 1, 1]} : vector<4x8x4xf32> to vector<1x8x4xf32>
    %795 = vector.extract_strided_slice %793 {offsets = [0, 0, 0], sizes = [1, 8, 4], strides = [1, 1, 1]} : vector<4x8x4xf32> to vector<1x8x4xf32>
    %cst_325 = arith.constant 7.500000e-01 : f32
    %796 = vector.broadcast %cst_325 : f32 to vector<1x8x4xf32>
    %797 = arith.mulf %795, %796 : vector<1x8x4xf32>
    %798 = vector.extract_strided_slice %793 {offsets = [1, 0, 0], sizes = [1, 8, 4], strides = [1, 1, 1]} : vector<4x8x4xf32> to vector<1x8x4xf32>
    %cst_326 = arith.constant 2.500000e-01 : f32
    %799 = vector.broadcast %cst_326 : f32 to vector<1x8x4xf32>
    %800 = arith.mulf %798, %799 : vector<1x8x4xf32>
    %801 = arith.addf %797, %800 : vector<1x8x4xf32>
    %802 = vector.extract_strided_slice %793 {offsets = [0, 0, 0], sizes = [1, 8, 4], strides = [1, 1, 1]} : vector<4x8x4xf32> to vector<1x8x4xf32>
    %cst_327 = arith.constant 2.500000e-01 : f32
    %803 = vector.broadcast %cst_327 : f32 to vector<1x8x4xf32>
    %804 = arith.mulf %802, %803 : vector<1x8x4xf32>
    %805 = vector.extract_strided_slice %793 {offsets = [1, 0, 0], sizes = [1, 8, 4], strides = [1, 1, 1]} : vector<4x8x4xf32> to vector<1x8x4xf32>
    %cst_328 = arith.constant 7.500000e-01 : f32
    %806 = vector.broadcast %cst_328 : f32 to vector<1x8x4xf32>
    %807 = arith.mulf %805, %806 : vector<1x8x4xf32>
    %808 = arith.addf %804, %807 : vector<1x8x4xf32>
    %809 = vector.extract_strided_slice %793 {offsets = [1, 0, 0], sizes = [1, 8, 4], strides = [1, 1, 1]} : vector<4x8x4xf32> to vector<1x8x4xf32>
    %cst_329 = arith.constant 7.500000e-01 : f32
    %810 = vector.broadcast %cst_329 : f32 to vector<1x8x4xf32>
    %811 = arith.mulf %809, %810 : vector<1x8x4xf32>
    %812 = vector.extract_strided_slice %793 {offsets = [2, 0, 0], sizes = [1, 8, 4], strides = [1, 1, 1]} : vector<4x8x4xf32> to vector<1x8x4xf32>
    %cst_330 = arith.constant 2.500000e-01 : f32
    %813 = vector.broadcast %cst_330 : f32 to vector<1x8x4xf32>
    %814 = arith.mulf %812, %813 : vector<1x8x4xf32>
    %815 = arith.addf %811, %814 : vector<1x8x4xf32>
    %816 = vector.extract_strided_slice %793 {offsets = [1, 0, 0], sizes = [1, 8, 4], strides = [1, 1, 1]} : vector<4x8x4xf32> to vector<1x8x4xf32>
    %cst_331 = arith.constant 2.500000e-01 : f32
    %817 = vector.broadcast %cst_331 : f32 to vector<1x8x4xf32>
    %818 = arith.mulf %816, %817 : vector<1x8x4xf32>
    %819 = vector.extract_strided_slice %793 {offsets = [2, 0, 0], sizes = [1, 8, 4], strides = [1, 1, 1]} : vector<4x8x4xf32> to vector<1x8x4xf32>
    %cst_332 = arith.constant 7.500000e-01 : f32
    %820 = vector.broadcast %cst_332 : f32 to vector<1x8x4xf32>
    %821 = arith.mulf %819, %820 : vector<1x8x4xf32>
    %822 = arith.addf %818, %821 : vector<1x8x4xf32>
    %823 = vector.extract_strided_slice %793 {offsets = [2, 0, 0], sizes = [1, 8, 4], strides = [1, 1, 1]} : vector<4x8x4xf32> to vector<1x8x4xf32>
    %cst_333 = arith.constant 7.500000e-01 : f32
    %824 = vector.broadcast %cst_333 : f32 to vector<1x8x4xf32>
    %825 = arith.mulf %823, %824 : vector<1x8x4xf32>
    %826 = vector.extract_strided_slice %793 {offsets = [3, 0, 0], sizes = [1, 8, 4], strides = [1, 1, 1]} : vector<4x8x4xf32> to vector<1x8x4xf32>
    %cst_334 = arith.constant 2.500000e-01 : f32
    %827 = vector.broadcast %cst_334 : f32 to vector<1x8x4xf32>
    %828 = arith.mulf %826, %827 : vector<1x8x4xf32>
    %829 = arith.addf %825, %828 : vector<1x8x4xf32>
    %830 = vector.extract_strided_slice %793 {offsets = [2, 0, 0], sizes = [1, 8, 4], strides = [1, 1, 1]} : vector<4x8x4xf32> to vector<1x8x4xf32>
    %cst_335 = arith.constant 2.500000e-01 : f32
    %831 = vector.broadcast %cst_335 : f32 to vector<1x8x4xf32>
    %832 = arith.mulf %830, %831 : vector<1x8x4xf32>
    %833 = vector.extract_strided_slice %793 {offsets = [3, 0, 0], sizes = [1, 8, 4], strides = [1, 1, 1]} : vector<4x8x4xf32> to vector<1x8x4xf32>
    %cst_336 = arith.constant 7.500000e-01 : f32
    %834 = vector.broadcast %cst_336 : f32 to vector<1x8x4xf32>
    %835 = arith.mulf %833, %834 : vector<1x8x4xf32>
    %836 = arith.addf %832, %835 : vector<1x8x4xf32>
    %837 = vector.extract_strided_slice %793 {offsets = [3, 0, 0], sizes = [1, 8, 4], strides = [1, 1, 1]} : vector<4x8x4xf32> to vector<1x8x4xf32>
    %838 = tpu.concatenate %794, %801, %808, %815, %822, %829, %836, %837 in 0 : vector<1x8x4xf32>, vector<1x8x4xf32>, vector<1x8x4xf32>, vector<1x8x4xf32>, vector<1x8x4xf32>, vector<1x8x4xf32>, vector<1x8x4xf32>, vector<1x8x4xf32> -> vector<8x8x4xf32>
    %c0_337 = arith.constant 0 : index
    %c0_338 = arith.constant 0 : index
    %c0_339 = arith.constant 0 : index
    %839 = vector.load %arg6[%c0_337, %c0_338, %c0_339] : memref<4x16x16xbf16, #tpu.memory_space<vmem>>, vector<1x4x8xbf16>
    %840 = vector.shape_cast %839 : vector<1x4x8xbf16> to vector<4x8xbf16>
    %841 = vector.shape_cast %840 : vector<4x8xbf16> to vector<1x4x8xbf16>
    %842 = vector.broadcast %841 : vector<1x4x8xbf16> to vector<8x4x8xbf16>
    %843 = arith.truncf %838 : vector<8x8x4xf32> to vector<8x8x4xbf16>
    "tpu.trace_start"() <{level = 10 : i32, message = "hcw,hwd->hcd"}> : () -> ()
    %cst_340 = arith.constant dense<0.000000e+00> : vector<8x8x8xf32>
    %844 = tpu.matmul %843, %842, %cst_340 {dimension_numbers = #tpu.dot_dimension_numbers<[2], [1], [1], [2], [0, 0, 0, 1, 1, 2], [0], [0]>} : vector<8x8x4xbf16>, vector<8x4x8xbf16>, vector<8x8x8xf32> -> vector<8x8x8xf32>
    "tpu.trace_stop"() : () -> ()
    %c2_341 = arith.constant 2 : index
    %c0_342 = arith.constant 0 : index
    %c11_343 = arith.constant 11 : index
    %845 = vector.load %arg5[%c2_341, %c0_342, %c11_343] : memref<3x8x20xf32, #tpu.memory_space<vmem>>, vector<1x8x1xf32>
    %846 = vector.shape_cast %845 : vector<1x8x1xf32> to vector<8x1xf32>
    %847 = vector.shape_cast %846 : vector<8x1xf32> to vector<1x8x1xf32>
    %848 = vector.broadcast %847 : vector<1x8x1xf32> to vector<8x8x8xf32>
    %849 = arith.mulf %782, %848 : vector<8x8x8xf32>
    %c2_344 = arith.constant 2 : index
    %c0_345 = arith.constant 0 : index
    %c12_346 = arith.constant 12 : index
    %850 = vector.load %arg5[%c2_344, %c0_345, %c12_346] : memref<3x8x20xf32, #tpu.memory_space<vmem>>, vector<1x8x1xf32>
    %851 = vector.shape_cast %850 : vector<1x8x1xf32> to vector<8x1xf32>
    %852 = vector.shape_cast %851 : vector<8x1xf32> to vector<1x8x1xf32>
    %853 = vector.broadcast %852 : vector<1x8x1xf32> to vector<8x8x8xf32>
    %854 = arith.mulf %844, %853 : vector<8x8x8xf32>
    %855 = arith.addf %849, %854 : vector<8x8x8xf32>
    %c2_347 = arith.constant 2 : index
    %c0_348 = arith.constant 0 : index
    %c3_349 = arith.constant 3 : index
    %856 = vector.load %arg5[%c2_347, %c0_348, %c3_349] : memref<3x8x20xf32, #tpu.memory_space<vmem>>, vector<1x8x1xf32>
    %857 = vector.shape_cast %856 : vector<1x8x1xf32> to vector<8x1xf32>
    %858 = vector.shape_cast %857 : vector<8x1xf32> to vector<1x8x1xf32>
    %859 = vector.broadcast %858 : vector<1x8x1xf32> to vector<8x8x8xf32>
    %860 = arith.mulf %855, %859 : vector<8x8x8xf32>
    %c2_350 = arith.constant 2 : index
    %c0_351 = arith.constant 0 : index
    %c4_352 = arith.constant 4 : index
    %861 = vector.load %arg5[%c2_350, %c0_351, %c4_352] : memref<3x8x20xf32, #tpu.memory_space<vmem>>, vector<1x8x1xf32>
    %862 = vector.shape_cast %861 : vector<1x8x1xf32> to vector<8x1xf32>
    %863 = vector.shape_cast %862 : vector<8x1xf32> to vector<1x8x1xf32>
    %864 = vector.broadcast %863 : vector<1x8x1xf32> to vector<8x8x8xf32>
    %865 = arith.addf %860, %864 : vector<8x8x8xf32>
    %866 = vector.extract_strided_slice %865 {offsets = [0, 0, 0], sizes = [1, 8, 8], strides = [1, 1, 1]} : vector<8x8x8xf32> to vector<1x8x8xf32>
    %867 = vector.extract_strided_slice %865 {offsets = [0, 0, 0], sizes = [1, 8, 8], strides = [1, 1, 1]} : vector<8x8x8xf32> to vector<1x8x8xf32>
    %cst_353 = arith.constant 7.500000e-01 : f32
    %868 = vector.broadcast %cst_353 : f32 to vector<1x8x8xf32>
    %869 = arith.mulf %867, %868 : vector<1x8x8xf32>
    %870 = vector.extract_strided_slice %865 {offsets = [1, 0, 0], sizes = [1, 8, 8], strides = [1, 1, 1]} : vector<8x8x8xf32> to vector<1x8x8xf32>
    %cst_354 = arith.constant 2.500000e-01 : f32
    %871 = vector.broadcast %cst_354 : f32 to vector<1x8x8xf32>
    %872 = arith.mulf %870, %871 : vector<1x8x8xf32>
    %873 = arith.addf %869, %872 : vector<1x8x8xf32>
    %874 = vector.extract_strided_slice %865 {offsets = [0, 0, 0], sizes = [1, 8, 8], strides = [1, 1, 1]} : vector<8x8x8xf32> to vector<1x8x8xf32>
    %cst_355 = arith.constant 2.500000e-01 : f32
    %875 = vector.broadcast %cst_355 : f32 to vector<1x8x8xf32>
    %876 = arith.mulf %874, %875 : vector<1x8x8xf32>
    %877 = vector.extract_strided_slice %865 {offsets = [1, 0, 0], sizes = [1, 8, 8], strides = [1, 1, 1]} : vector<8x8x8xf32> to vector<1x8x8xf32>
    %cst_356 = arith.constant 7.500000e-01 : f32
    %878 = vector.broadcast %cst_356 : f32 to vector<1x8x8xf32>
    %879 = arith.mulf %877, %878 : vector<1x8x8xf32>
    %880 = arith.addf %876, %879 : vector<1x8x8xf32>
    %881 = vector.extract_strided_slice %865 {offsets = [1, 0, 0], sizes = [1, 8, 8], strides = [1, 1, 1]} : vector<8x8x8xf32> to vector<1x8x8xf32>
    %cst_357 = arith.constant 7.500000e-01 : f32
    %882 = vector.broadcast %cst_357 : f32 to vector<1x8x8xf32>
    %883 = arith.mulf %881, %882 : vector<1x8x8xf32>
    %884 = vector.extract_strided_slice %865 {offsets = [2, 0, 0], sizes = [1, 8, 8], strides = [1, 1, 1]} : vector<8x8x8xf32> to vector<1x8x8xf32>
    %cst_358 = arith.constant 2.500000e-01 : f32
    %885 = vector.broadcast %cst_358 : f32 to vector<1x8x8xf32>
    %886 = arith.mulf %884, %885 : vector<1x8x8xf32>
    %887 = arith.addf %883, %886 : vector<1x8x8xf32>
    %888 = vector.extract_strided_slice %865 {offsets = [1, 0, 0], sizes = [1, 8, 8], strides = [1, 1, 1]} : vector<8x8x8xf32> to vector<1x8x8xf32>
    %cst_359 = arith.constant 2.500000e-01 : f32
    %889 = vector.broadcast %cst_359 : f32 to vector<1x8x8xf32>
    %890 = arith.mulf %888, %889 : vector<1x8x8xf32>
    %891 = vector.extract_strided_slice %865 {offsets = [2, 0, 0], sizes = [1, 8, 8], strides = [1, 1, 1]} : vector<8x8x8xf32> to vector<1x8x8xf32>
    %cst_360 = arith.constant 7.500000e-01 : f32
    %892 = vector.broadcast %cst_360 : f32 to vector<1x8x8xf32>
    %893 = arith.mulf %891, %892 : vector<1x8x8xf32>
    %894 = arith.addf %890, %893 : vector<1x8x8xf32>
    %895 = vector.extract_strided_slice %865 {offsets = [2, 0, 0], sizes = [1, 8, 8], strides = [1, 1, 1]} : vector<8x8x8xf32> to vector<1x8x8xf32>
    %cst_361 = arith.constant 7.500000e-01 : f32
    %896 = vector.broadcast %cst_361 : f32 to vector<1x8x8xf32>
    %897 = arith.mulf %895, %896 : vector<1x8x8xf32>
    %898 = vector.extract_strided_slice %865 {offsets = [3, 0, 0], sizes = [1, 8, 8], strides = [1, 1, 1]} : vector<8x8x8xf32> to vector<1x8x8xf32>
    %cst_362 = arith.constant 2.500000e-01 : f32
    %899 = vector.broadcast %cst_362 : f32 to vector<1x8x8xf32>
    %900 = arith.mulf %898, %899 : vector<1x8x8xf32>
    %901 = arith.addf %897, %900 : vector<1x8x8xf32>
    %902 = vector.extract_strided_slice %865 {offsets = [2, 0, 0], sizes = [1, 8, 8], strides = [1, 1, 1]} : vector<8x8x8xf32> to vector<1x8x8xf32>
    %cst_363 = arith.constant 2.500000e-01 : f32
    %903 = vector.broadcast %cst_363 : f32 to vector<1x8x8xf32>
    %904 = arith.mulf %902, %903 : vector<1x8x8xf32>
    %905 = vector.extract_strided_slice %865 {offsets = [3, 0, 0], sizes = [1, 8, 8], strides = [1, 1, 1]} : vector<8x8x8xf32> to vector<1x8x8xf32>
    %cst_364 = arith.constant 7.500000e-01 : f32
    %906 = vector.broadcast %cst_364 : f32 to vector<1x8x8xf32>
    %907 = arith.mulf %905, %906 : vector<1x8x8xf32>
    %908 = arith.addf %904, %907 : vector<1x8x8xf32>
    %909 = vector.extract_strided_slice %865 {offsets = [3, 0, 0], sizes = [1, 8, 8], strides = [1, 1, 1]} : vector<8x8x8xf32> to vector<1x8x8xf32>
    %cst_365 = arith.constant 7.500000e-01 : f32
    %910 = vector.broadcast %cst_365 : f32 to vector<1x8x8xf32>
    %911 = arith.mulf %909, %910 : vector<1x8x8xf32>
    %912 = vector.extract_strided_slice %865 {offsets = [4, 0, 0], sizes = [1, 8, 8], strides = [1, 1, 1]} : vector<8x8x8xf32> to vector<1x8x8xf32>
    %cst_366 = arith.constant 2.500000e-01 : f32
    %913 = vector.broadcast %cst_366 : f32 to vector<1x8x8xf32>
    %914 = arith.mulf %912, %913 : vector<1x8x8xf32>
    %915 = arith.addf %911, %914 : vector<1x8x8xf32>
    %916 = vector.extract_strided_slice %865 {offsets = [3, 0, 0], sizes = [1, 8, 8], strides = [1, 1, 1]} : vector<8x8x8xf32> to vector<1x8x8xf32>
    %cst_367 = arith.constant 2.500000e-01 : f32
    %917 = vector.broadcast %cst_367 : f32 to vector<1x8x8xf32>
    %918 = arith.mulf %916, %917 : vector<1x8x8xf32>
    %919 = vector.extract_strided_slice %865 {offsets = [4, 0, 0], sizes = [1, 8, 8], strides = [1, 1, 1]} : vector<8x8x8xf32> to vector<1x8x8xf32>
    %cst_368 = arith.constant 7.500000e-01 : f32
    %920 = vector.broadcast %cst_368 : f32 to vector<1x8x8xf32>
    %921 = arith.mulf %919, %920 : vector<1x8x8xf32>
    %922 = arith.addf %918, %921 : vector<1x8x8xf32>
    %923 = vector.extract_strided_slice %865 {offsets = [4, 0, 0], sizes = [1, 8, 8], strides = [1, 1, 1]} : vector<8x8x8xf32> to vector<1x8x8xf32>
    %cst_369 = arith.constant 7.500000e-01 : f32
    %924 = vector.broadcast %cst_369 : f32 to vector<1x8x8xf32>
    %925 = arith.mulf %923, %924 : vector<1x8x8xf32>
    %926 = vector.extract_strided_slice %865 {offsets = [5, 0, 0], sizes = [1, 8, 8], strides = [1, 1, 1]} : vector<8x8x8xf32> to vector<1x8x8xf32>
    %cst_370 = arith.constant 2.500000e-01 : f32
    %927 = vector.broadcast %cst_370 : f32 to vector<1x8x8xf32>
    %928 = arith.mulf %926, %927 : vector<1x8x8xf32>
    %929 = arith.addf %925, %928 : vector<1x8x8xf32>
    %930 = vector.extract_strided_slice %865 {offsets = [4, 0, 0], sizes = [1, 8, 8], strides = [1, 1, 1]} : vector<8x8x8xf32> to vector<1x8x8xf32>
    %cst_371 = arith.constant 2.500000e-01 : f32
    %931 = vector.broadcast %cst_371 : f32 to vector<1x8x8xf32>
    %932 = arith.mulf %930, %931 : vector<1x8x8xf32>
    %933 = vector.extract_strided_slice %865 {offsets = [5, 0, 0], sizes = [1, 8, 8], strides = [1, 1, 1]} : vector<8x8x8xf32> to vector<1x8x8xf32>
    %cst_372 = arith.constant 7.500000e-01 : f32
    %934 = vector.broadcast %cst_372 : f32 to vector<1x8x8xf32>
    %935 = arith.mulf %933, %934 : vector<1x8x8xf32>
    %936 = arith.addf %932, %935 : vector<1x8x8xf32>
    %937 = vector.extract_strided_slice %865 {offsets = [5, 0, 0], sizes = [1, 8, 8], strides = [1, 1, 1]} : vector<8x8x8xf32> to vector<1x8x8xf32>
    %cst_373 = arith.constant 7.500000e-01 : f32
    %938 = vector.broadcast %cst_373 : f32 to vector<1x8x8xf32>
    %939 = arith.mulf %937, %938 : vector<1x8x8xf32>
    %940 = vector.extract_strided_slice %865 {offsets = [6, 0, 0], sizes = [1, 8, 8], strides = [1, 1, 1]} : vector<8x8x8xf32> to vector<1x8x8xf32>
    %cst_374 = arith.constant 2.500000e-01 : f32
    %941 = vector.broadcast %cst_374 : f32 to vector<1x8x8xf32>
    %942 = arith.mulf %940, %941 : vector<1x8x8xf32>
    %943 = arith.addf %939, %942 : vector<1x8x8xf32>
    %944 = vector.extract_strided_slice %865 {offsets = [5, 0, 0], sizes = [1, 8, 8], strides = [1, 1, 1]} : vector<8x8x8xf32> to vector<1x8x8xf32>
    %cst_375 = arith.constant 2.500000e-01 : f32
    %945 = vector.broadcast %cst_375 : f32 to vector<1x8x8xf32>
    %946 = arith.mulf %944, %945 : vector<1x8x8xf32>
    %947 = vector.extract_strided_slice %865 {offsets = [6, 0, 0], sizes = [1, 8, 8], strides = [1, 1, 1]} : vector<8x8x8xf32> to vector<1x8x8xf32>
    %cst_376 = arith.constant 7.500000e-01 : f32
    %948 = vector.broadcast %cst_376 : f32 to vector<1x8x8xf32>
    %949 = arith.mulf %947, %948 : vector<1x8x8xf32>
    %950 = arith.addf %946, %949 : vector<1x8x8xf32>
    %951 = vector.extract_strided_slice %865 {offsets = [6, 0, 0], sizes = [1, 8, 8], strides = [1, 1, 1]} : vector<8x8x8xf32> to vector<1x8x8xf32>
    %cst_377 = arith.constant 7.500000e-01 : f32
    %952 = vector.broadcast %cst_377 : f32 to vector<1x8x8xf32>
    %953 = arith.mulf %951, %952 : vector<1x8x8xf32>
    %954 = vector.extract_strided_slice %865 {offsets = [7, 0, 0], sizes = [1, 8, 8], strides = [1, 1, 1]} : vector<8x8x8xf32> to vector<1x8x8xf32>
    %cst_378 = arith.constant 2.500000e-01 : f32
    %955 = vector.broadcast %cst_378 : f32 to vector<1x8x8xf32>
    %956 = arith.mulf %954, %955 : vector<1x8x8xf32>
    %957 = arith.addf %953, %956 : vector<1x8x8xf32>
    %958 = vector.extract_strided_slice %865 {offsets = [6, 0, 0], sizes = [1, 8, 8], strides = [1, 1, 1]} : vector<8x8x8xf32> to vector<1x8x8xf32>
    %cst_379 = arith.constant 2.500000e-01 : f32
    %959 = vector.broadcast %cst_379 : f32 to vector<1x8x8xf32>
    %960 = arith.mulf %958, %959 : vector<1x8x8xf32>
    %961 = vector.extract_strided_slice %865 {offsets = [7, 0, 0], sizes = [1, 8, 8], strides = [1, 1, 1]} : vector<8x8x8xf32> to vector<1x8x8xf32>
    %cst_380 = arith.constant 7.500000e-01 : f32
    %962 = vector.broadcast %cst_380 : f32 to vector<1x8x8xf32>
    %963 = arith.mulf %961, %962 : vector<1x8x8xf32>
    %964 = arith.addf %960, %963 : vector<1x8x8xf32>
    %965 = vector.extract_strided_slice %865 {offsets = [7, 0, 0], sizes = [1, 8, 8], strides = [1, 1, 1]} : vector<8x8x8xf32> to vector<1x8x8xf32>
    %966 = tpu.concatenate %866, %873, %880, %887, %894, %901, %908, %915, %922, %929, %936, %943, %950, %957, %964, %965 in 0 : vector<1x8x8xf32>, vector<1x8x8xf32>, vector<1x8x8xf32>, vector<1x8x8xf32>, vector<1x8x8xf32>, vector<1x8x8xf32>, vector<1x8x8xf32>, vector<1x8x8xf32>, vector<1x8x8xf32>, vector<1x8x8xf32>, vector<1x8x8xf32>, vector<1x8x8xf32>, vector<1x8x8xf32>, vector<1x8x8xf32>, vector<1x8x8xf32>, vector<1x8x8xf32> -> vector<16x8x8xf32>
    %c1_381 = arith.constant 1 : index
    %c0_382 = arith.constant 0 : index
    %c0_383 = arith.constant 0 : index
    %967 = vector.load %arg6[%c1_381, %c0_382, %c0_383] : memref<4x16x16xbf16, #tpu.memory_space<vmem>>, vector<1x8x16xbf16>
    %968 = vector.shape_cast %967 : vector<1x8x16xbf16> to vector<8x16xbf16>
    %969 = vector.shape_cast %968 : vector<8x16xbf16> to vector<1x8x16xbf16>
    %970 = vector.broadcast %969 : vector<1x8x16xbf16> to vector<16x8x16xbf16>
    %971 = arith.truncf %966 : vector<16x8x8xf32> to vector<16x8x8xbf16>
    "tpu.trace_start"() <{level = 10 : i32, message = "hcw,hwd->hcd"}> : () -> ()
    %cst_384 = arith.constant dense<0.000000e+00> : vector<16x8x16xf32>
    %972 = tpu.matmul %971, %970, %cst_384 {dimension_numbers = #tpu.dot_dimension_numbers<[2], [1], [1], [2], [0, 0, 0, 1, 1, 2], [0], [0]>} : vector<16x8x8xbf16>, vector<16x8x16xbf16>, vector<16x8x16xf32> -> vector<16x8x16xf32>
    "tpu.trace_stop"() : () -> ()
    %c2_385 = arith.constant 2 : index
    %c0_386 = arith.constant 0 : index
    %c13_387 = arith.constant 13 : index
    %973 = vector.load %arg5[%c2_385, %c0_386, %c13_387] : memref<3x8x20xf32, #tpu.memory_space<vmem>>, vector<1x8x1xf32>
    %974 = vector.shape_cast %973 : vector<1x8x1xf32> to vector<8x1xf32>
    %975 = vector.shape_cast %974 : vector<8x1xf32> to vector<1x8x1xf32>
    %976 = vector.broadcast %975 : vector<1x8x1xf32> to vector<16x8x16xf32>
    %977 = arith.mulf %771, %976 : vector<16x8x16xf32>
    %c2_388 = arith.constant 2 : index
    %c0_389 = arith.constant 0 : index
    %c14_390 = arith.constant 14 : index
    %978 = vector.load %arg5[%c2_388, %c0_389, %c14_390] : memref<3x8x20xf32, #tpu.memory_space<vmem>>, vector<1x8x1xf32>
    %979 = vector.shape_cast %978 : vector<1x8x1xf32> to vector<8x1xf32>
    %980 = vector.shape_cast %979 : vector<8x1xf32> to vector<1x8x1xf32>
    %981 = vector.broadcast %980 : vector<1x8x1xf32> to vector<16x8x16xf32>
    %982 = arith.mulf %972, %981 : vector<16x8x16xf32>
    %983 = arith.addf %977, %982 : vector<16x8x16xf32>
    %c2_391 = arith.constant 2 : index
    %c0_392 = arith.constant 0 : index
    %c5_393 = arith.constant 5 : index
    %984 = vector.load %arg5[%c2_391, %c0_392, %c5_393] : memref<3x8x20xf32, #tpu.memory_space<vmem>>, vector<1x8x1xf32>
    %985 = vector.shape_cast %984 : vector<1x8x1xf32> to vector<8x1xf32>
    %986 = vector.shape_cast %985 : vector<8x1xf32> to vector<1x8x1xf32>
    %987 = vector.broadcast %986 : vector<1x8x1xf32> to vector<16x8x16xf32>
    %988 = arith.mulf %983, %987 : vector<16x8x16xf32>
    %c2_394 = arith.constant 2 : index
    %c0_395 = arith.constant 0 : index
    %c6_396 = arith.constant 6 : index
    %989 = vector.load %arg5[%c2_394, %c0_395, %c6_396] : memref<3x8x20xf32, #tpu.memory_space<vmem>>, vector<1x8x1xf32>
    %990 = vector.shape_cast %989 : vector<1x8x1xf32> to vector<8x1xf32>
    %991 = vector.shape_cast %990 : vector<8x1xf32> to vector<1x8x1xf32>
    %992 = vector.broadcast %991 : vector<1x8x1xf32> to vector<16x8x16xf32>
    %993 = arith.addf %988, %992 : vector<16x8x16xf32>
    %994 = vector.extract_strided_slice %993 {offsets = [0, 0, 0], sizes = [1, 8, 16], strides = [1, 1, 1]} : vector<16x8x16xf32> to vector<1x8x16xf32>
    %cst_397 = arith.constant 5.000000e-01 : f32
    %995 = vector.broadcast %cst_397 : f32 to vector<1x8x16xf32>
    %996 = arith.mulf %994, %995 : vector<1x8x16xf32>
    %997 = vector.extract_strided_slice %993 {offsets = [1, 0, 0], sizes = [1, 8, 16], strides = [1, 1, 1]} : vector<16x8x16xf32> to vector<1x8x16xf32>
    %cst_398 = arith.constant 5.000000e-01 : f32
    %998 = vector.broadcast %cst_398 : f32 to vector<1x8x16xf32>
    %999 = arith.mulf %997, %998 : vector<1x8x16xf32>
    %1000 = arith.addf %996, %999 : vector<1x8x16xf32>
    %1001 = vector.extract_strided_slice %993 {offsets = [2, 0, 0], sizes = [1, 8, 16], strides = [1, 1, 1]} : vector<16x8x16xf32> to vector<1x8x16xf32>
    %cst_399 = arith.constant 5.000000e-01 : f32
    %1002 = vector.broadcast %cst_399 : f32 to vector<1x8x16xf32>
    %1003 = arith.mulf %1001, %1002 : vector<1x8x16xf32>
    %1004 = vector.extract_strided_slice %993 {offsets = [3, 0, 0], sizes = [1, 8, 16], strides = [1, 1, 1]} : vector<16x8x16xf32> to vector<1x8x16xf32>
    %cst_400 = arith.constant 5.000000e-01 : f32
    %1005 = vector.broadcast %cst_400 : f32 to vector<1x8x16xf32>
    %1006 = arith.mulf %1004, %1005 : vector<1x8x16xf32>
    %1007 = arith.addf %1003, %1006 : vector<1x8x16xf32>
    %1008 = vector.extract_strided_slice %993 {offsets = [4, 0, 0], sizes = [1, 8, 16], strides = [1, 1, 1]} : vector<16x8x16xf32> to vector<1x8x16xf32>
    %cst_401 = arith.constant 5.000000e-01 : f32
    %1009 = vector.broadcast %cst_401 : f32 to vector<1x8x16xf32>
    %1010 = arith.mulf %1008, %1009 : vector<1x8x16xf32>
    %1011 = vector.extract_strided_slice %993 {offsets = [5, 0, 0], sizes = [1, 8, 16], strides = [1, 1, 1]} : vector<16x8x16xf32> to vector<1x8x16xf32>
    %cst_402 = arith.constant 5.000000e-01 : f32
    %1012 = vector.broadcast %cst_402 : f32 to vector<1x8x16xf32>
    %1013 = arith.mulf %1011, %1012 : vector<1x8x16xf32>
    %1014 = arith.addf %1010, %1013 : vector<1x8x16xf32>
    %1015 = vector.extract_strided_slice %993 {offsets = [6, 0, 0], sizes = [1, 8, 16], strides = [1, 1, 1]} : vector<16x8x16xf32> to vector<1x8x16xf32>
    %cst_403 = arith.constant 5.000000e-01 : f32
    %1016 = vector.broadcast %cst_403 : f32 to vector<1x8x16xf32>
    %1017 = arith.mulf %1015, %1016 : vector<1x8x16xf32>
    %1018 = vector.extract_strided_slice %993 {offsets = [7, 0, 0], sizes = [1, 8, 16], strides = [1, 1, 1]} : vector<16x8x16xf32> to vector<1x8x16xf32>
    %cst_404 = arith.constant 5.000000e-01 : f32
    %1019 = vector.broadcast %cst_404 : f32 to vector<1x8x16xf32>
    %1020 = arith.mulf %1018, %1019 : vector<1x8x16xf32>
    %1021 = arith.addf %1017, %1020 : vector<1x8x16xf32>
    %1022 = vector.extract_strided_slice %993 {offsets = [8, 0, 0], sizes = [1, 8, 16], strides = [1, 1, 1]} : vector<16x8x16xf32> to vector<1x8x16xf32>
    %cst_405 = arith.constant 5.000000e-01 : f32
    %1023 = vector.broadcast %cst_405 : f32 to vector<1x8x16xf32>
    %1024 = arith.mulf %1022, %1023 : vector<1x8x16xf32>
    %1025 = vector.extract_strided_slice %993 {offsets = [9, 0, 0], sizes = [1, 8, 16], strides = [1, 1, 1]} : vector<16x8x16xf32> to vector<1x8x16xf32>
    %cst_406 = arith.constant 5.000000e-01 : f32
    %1026 = vector.broadcast %cst_406 : f32 to vector<1x8x16xf32>
    %1027 = arith.mulf %1025, %1026 : vector<1x8x16xf32>
    %1028 = arith.addf %1024, %1027 : vector<1x8x16xf32>
    %1029 = vector.extract_strided_slice %993 {offsets = [10, 0, 0], sizes = [1, 8, 16], strides = [1, 1, 1]} : vector<16x8x16xf32> to vector<1x8x16xf32>
    %cst_407 = arith.constant 5.000000e-01 : f32
    %1030 = vector.broadcast %cst_407 : f32 to vector<1x8x16xf32>
    %1031 = arith.mulf %1029, %1030 : vector<1x8x16xf32>
    %1032 = vector.extract_strided_slice %993 {offsets = [11, 0, 0], sizes = [1, 8, 16], strides = [1, 1, 1]} : vector<16x8x16xf32> to vector<1x8x16xf32>
    %cst_408 = arith.constant 5.000000e-01 : f32
    %1033 = vector.broadcast %cst_408 : f32 to vector<1x8x16xf32>
    %1034 = arith.mulf %1032, %1033 : vector<1x8x16xf32>
    %1035 = arith.addf %1031, %1034 : vector<1x8x16xf32>
    %1036 = vector.extract_strided_slice %993 {offsets = [12, 0, 0], sizes = [1, 8, 16], strides = [1, 1, 1]} : vector<16x8x16xf32> to vector<1x8x16xf32>
    %cst_409 = arith.constant 5.000000e-01 : f32
    %1037 = vector.broadcast %cst_409 : f32 to vector<1x8x16xf32>
    %1038 = arith.mulf %1036, %1037 : vector<1x8x16xf32>
    %1039 = vector.extract_strided_slice %993 {offsets = [13, 0, 0], sizes = [1, 8, 16], strides = [1, 1, 1]} : vector<16x8x16xf32> to vector<1x8x16xf32>
    %cst_410 = arith.constant 5.000000e-01 : f32
    %1040 = vector.broadcast %cst_410 : f32 to vector<1x8x16xf32>
    %1041 = arith.mulf %1039, %1040 : vector<1x8x16xf32>
    %1042 = arith.addf %1038, %1041 : vector<1x8x16xf32>
    %1043 = vector.extract_strided_slice %993 {offsets = [14, 0, 0], sizes = [1, 8, 16], strides = [1, 1, 1]} : vector<16x8x16xf32> to vector<1x8x16xf32>
    %cst_411 = arith.constant 5.000000e-01 : f32
    %1044 = vector.broadcast %cst_411 : f32 to vector<1x8x16xf32>
    %1045 = arith.mulf %1043, %1044 : vector<1x8x16xf32>
    %1046 = vector.extract_strided_slice %993 {offsets = [15, 0, 0], sizes = [1, 8, 16], strides = [1, 1, 1]} : vector<16x8x16xf32> to vector<1x8x16xf32>
    %cst_412 = arith.constant 5.000000e-01 : f32
    %1047 = vector.broadcast %cst_412 : f32 to vector<1x8x16xf32>
    %1048 = arith.mulf %1046, %1047 : vector<1x8x16xf32>
    %1049 = arith.addf %1045, %1048 : vector<1x8x16xf32>
    %1050 = tpu.concatenate %1000, %1007, %1014, %1021, %1028, %1035, %1042, %1049 in 0 : vector<1x8x16xf32>, vector<1x8x16xf32>, vector<1x8x16xf32>, vector<1x8x16xf32>, vector<1x8x16xf32>, vector<1x8x16xf32>, vector<1x8x16xf32>, vector<1x8x16xf32> -> vector<8x8x16xf32>
    %c2_413 = arith.constant 2 : index
    %c0_414 = arith.constant 0 : index
    %c0_415 = arith.constant 0 : index
    %1051 = vector.load %arg6[%c2_413, %c0_414, %c0_415] : memref<4x16x16xbf16, #tpu.memory_space<vmem>>, vector<1x16x8xbf16>
    %1052 = vector.shape_cast %1051 : vector<1x16x8xbf16> to vector<16x8xbf16>
    %1053 = vector.shape_cast %1052 : vector<16x8xbf16> to vector<1x16x8xbf16>
    %1054 = vector.broadcast %1053 : vector<1x16x8xbf16> to vector<8x16x8xbf16>
    %1055 = arith.truncf %1050 : vector<8x8x16xf32> to vector<8x8x16xbf16>
    "tpu.trace_start"() <{level = 10 : i32, message = "hcw,hwd->hcd"}> : () -> ()
    %cst_416 = arith.constant dense<0.000000e+00> : vector<8x8x8xf32>
    %1056 = tpu.matmul %1055, %1054, %cst_416 {dimension_numbers = #tpu.dot_dimension_numbers<[2], [1], [1], [2], [0, 0, 0, 1, 1, 2], [0], [0]>} : vector<8x8x16xbf16>, vector<8x16x8xbf16>, vector<8x8x8xf32> -> vector<8x8x8xf32>
    "tpu.trace_stop"() : () -> ()
    %c2_417 = arith.constant 2 : index
    %c0_418 = arith.constant 0 : index
    %c15_419 = arith.constant 15 : index
    %1057 = vector.load %arg5[%c2_417, %c0_418, %c15_419] : memref<3x8x20xf32, #tpu.memory_space<vmem>>, vector<1x8x1xf32>
    %1058 = vector.shape_cast %1057 : vector<1x8x1xf32> to vector<8x1xf32>
    %1059 = vector.shape_cast %1058 : vector<8x1xf32> to vector<1x8x1xf32>
    %1060 = vector.broadcast %1059 : vector<1x8x1xf32> to vector<8x8x8xf32>
    %1061 = arith.mulf %782, %1060 : vector<8x8x8xf32>
    %c2_420 = arith.constant 2 : index
    %c0_421 = arith.constant 0 : index
    %c16_422 = arith.constant 16 : index
    %1062 = vector.load %arg5[%c2_420, %c0_421, %c16_422] : memref<3x8x20xf32, #tpu.memory_space<vmem>>, vector<1x8x1xf32>
    %1063 = vector.shape_cast %1062 : vector<1x8x1xf32> to vector<8x1xf32>
    %1064 = vector.shape_cast %1063 : vector<8x1xf32> to vector<1x8x1xf32>
    %1065 = vector.broadcast %1064 : vector<1x8x1xf32> to vector<8x8x8xf32>
    %1066 = arith.mulf %865, %1065 : vector<8x8x8xf32>
    %1067 = arith.addf %1061, %1066 : vector<8x8x8xf32>
    %c2_423 = arith.constant 2 : index
    %c0_424 = arith.constant 0 : index
    %c17_425 = arith.constant 17 : index
    %1068 = vector.load %arg5[%c2_423, %c0_424, %c17_425] : memref<3x8x20xf32, #tpu.memory_space<vmem>>, vector<1x8x1xf32>
    %1069 = vector.shape_cast %1068 : vector<1x8x1xf32> to vector<8x1xf32>
    %1070 = vector.shape_cast %1069 : vector<8x1xf32> to vector<1x8x1xf32>
    %1071 = vector.broadcast %1070 : vector<1x8x1xf32> to vector<8x8x8xf32>
    %1072 = arith.mulf %1056, %1071 : vector<8x8x8xf32>
    %1073 = arith.addf %1067, %1072 : vector<8x8x8xf32>
    %c2_426 = arith.constant 2 : index
    %c0_427 = arith.constant 0 : index
    %c7_428 = arith.constant 7 : index
    %1074 = vector.load %arg5[%c2_426, %c0_427, %c7_428] : memref<3x8x20xf32, #tpu.memory_space<vmem>>, vector<1x8x1xf32>
    %1075 = vector.shape_cast %1074 : vector<1x8x1xf32> to vector<8x1xf32>
    %1076 = vector.shape_cast %1075 : vector<8x1xf32> to vector<1x8x1xf32>
    %1077 = vector.broadcast %1076 : vector<1x8x1xf32> to vector<8x8x8xf32>
    %1078 = arith.mulf %1073, %1077 : vector<8x8x8xf32>
    %c2_429 = arith.constant 2 : index
    %c0_430 = arith.constant 0 : index
    %c8_431 = arith.constant 8 : index
    %1079 = vector.load %arg5[%c2_429, %c0_430, %c8_431] : memref<3x8x20xf32, #tpu.memory_space<vmem>>, vector<1x8x1xf32>
    %1080 = vector.shape_cast %1079 : vector<1x8x1xf32> to vector<8x1xf32>
    %1081 = vector.shape_cast %1080 : vector<8x1xf32> to vector<1x8x1xf32>
    %1082 = vector.broadcast %1081 : vector<1x8x1xf32> to vector<8x8x8xf32>
    %1083 = arith.addf %1078, %1082 : vector<8x8x8xf32>
    %1084 = vector.extract_strided_slice %1083 {offsets = [0, 0, 0], sizes = [1, 8, 8], strides = [1, 1, 1]} : vector<8x8x8xf32> to vector<1x8x8xf32>
    %cst_432 = arith.constant 5.000000e-01 : f32
    %1085 = vector.broadcast %cst_432 : f32 to vector<1x8x8xf32>
    %1086 = arith.mulf %1084, %1085 : vector<1x8x8xf32>
    %1087 = vector.extract_strided_slice %1083 {offsets = [1, 0, 0], sizes = [1, 8, 8], strides = [1, 1, 1]} : vector<8x8x8xf32> to vector<1x8x8xf32>
    %cst_433 = arith.constant 5.000000e-01 : f32
    %1088 = vector.broadcast %cst_433 : f32 to vector<1x8x8xf32>
    %1089 = arith.mulf %1087, %1088 : vector<1x8x8xf32>
    %1090 = arith.addf %1086, %1089 : vector<1x8x8xf32>
    %1091 = vector.extract_strided_slice %1083 {offsets = [2, 0, 0], sizes = [1, 8, 8], strides = [1, 1, 1]} : vector<8x8x8xf32> to vector<1x8x8xf32>
    %cst_434 = arith.constant 5.000000e-01 : f32
    %1092 = vector.broadcast %cst_434 : f32 to vector<1x8x8xf32>
    %1093 = arith.mulf %1091, %1092 : vector<1x8x8xf32>
    %1094 = vector.extract_strided_slice %1083 {offsets = [3, 0, 0], sizes = [1, 8, 8], strides = [1, 1, 1]} : vector<8x8x8xf32> to vector<1x8x8xf32>
    %cst_435 = arith.constant 5.000000e-01 : f32
    %1095 = vector.broadcast %cst_435 : f32 to vector<1x8x8xf32>
    %1096 = arith.mulf %1094, %1095 : vector<1x8x8xf32>
    %1097 = arith.addf %1093, %1096 : vector<1x8x8xf32>
    %1098 = vector.extract_strided_slice %1083 {offsets = [4, 0, 0], sizes = [1, 8, 8], strides = [1, 1, 1]} : vector<8x8x8xf32> to vector<1x8x8xf32>
    %cst_436 = arith.constant 5.000000e-01 : f32
    %1099 = vector.broadcast %cst_436 : f32 to vector<1x8x8xf32>
    %1100 = arith.mulf %1098, %1099 : vector<1x8x8xf32>
    %1101 = vector.extract_strided_slice %1083 {offsets = [5, 0, 0], sizes = [1, 8, 8], strides = [1, 1, 1]} : vector<8x8x8xf32> to vector<1x8x8xf32>
    %cst_437 = arith.constant 5.000000e-01 : f32
    %1102 = vector.broadcast %cst_437 : f32 to vector<1x8x8xf32>
    %1103 = arith.mulf %1101, %1102 : vector<1x8x8xf32>
    %1104 = arith.addf %1100, %1103 : vector<1x8x8xf32>
    %1105 = vector.extract_strided_slice %1083 {offsets = [6, 0, 0], sizes = [1, 8, 8], strides = [1, 1, 1]} : vector<8x8x8xf32> to vector<1x8x8xf32>
    %cst_438 = arith.constant 5.000000e-01 : f32
    %1106 = vector.broadcast %cst_438 : f32 to vector<1x8x8xf32>
    %1107 = arith.mulf %1105, %1106 : vector<1x8x8xf32>
    %1108 = vector.extract_strided_slice %1083 {offsets = [7, 0, 0], sizes = [1, 8, 8], strides = [1, 1, 1]} : vector<8x8x8xf32> to vector<1x8x8xf32>
    %cst_439 = arith.constant 5.000000e-01 : f32
    %1109 = vector.broadcast %cst_439 : f32 to vector<1x8x8xf32>
    %1110 = arith.mulf %1108, %1109 : vector<1x8x8xf32>
    %1111 = arith.addf %1107, %1110 : vector<1x8x8xf32>
    %1112 = tpu.concatenate %1090, %1097, %1104, %1111 in 0 : vector<1x8x8xf32>, vector<1x8x8xf32>, vector<1x8x8xf32>, vector<1x8x8xf32> -> vector<4x8x8xf32>
    %c3_440 = arith.constant 3 : index
    %c0_441 = arith.constant 0 : index
    %c0_442 = arith.constant 0 : index
    %1113 = vector.load %arg6[%c3_440, %c0_441, %c0_442] : memref<4x16x16xbf16, #tpu.memory_space<vmem>>, vector<1x8x4xbf16>
    %1114 = vector.shape_cast %1113 : vector<1x8x4xbf16> to vector<8x4xbf16>
    %1115 = vector.shape_cast %1114 : vector<8x4xbf16> to vector<1x8x4xbf16>
    %1116 = vector.broadcast %1115 : vector<1x8x4xbf16> to vector<4x8x4xbf16>
    %1117 = arith.truncf %1112 : vector<4x8x8xf32> to vector<4x8x8xbf16>
    "tpu.trace_start"() <{level = 10 : i32, message = "hcw,hwd->hcd"}> : () -> ()
    %cst_443 = arith.constant dense<0.000000e+00> : vector<4x8x4xf32>
    %1118 = tpu.matmul %1117, %1116, %cst_443 {dimension_numbers = #tpu.dot_dimension_numbers<[2], [1], [1], [2], [0, 0, 0, 1, 1, 2], [0], [0]>} : vector<4x8x8xbf16>, vector<4x8x4xbf16>, vector<4x8x4xf32> -> vector<4x8x4xf32>
    "tpu.trace_stop"() : () -> ()
    %c2_444 = arith.constant 2 : index
    %c0_445 = arith.constant 0 : index
    %c18_446 = arith.constant 18 : index
    %1119 = vector.load %arg5[%c2_444, %c0_445, %c18_446] : memref<3x8x20xf32, #tpu.memory_space<vmem>>, vector<1x8x1xf32>
    %1120 = vector.shape_cast %1119 : vector<1x8x1xf32> to vector<8x1xf32>
    %1121 = vector.shape_cast %1120 : vector<8x1xf32> to vector<1x8x1xf32>
    %1122 = vector.broadcast %1121 : vector<1x8x1xf32> to vector<4x8x4xf32>
    %1123 = arith.mulf %793, %1122 : vector<4x8x4xf32>
    %c2_447 = arith.constant 2 : index
    %c0_448 = arith.constant 0 : index
    %c19_449 = arith.constant 19 : index
    %1124 = vector.load %arg5[%c2_447, %c0_448, %c19_449] : memref<3x8x20xf32, #tpu.memory_space<vmem>>, vector<1x8x1xf32>
    %1125 = vector.shape_cast %1124 : vector<1x8x1xf32> to vector<8x1xf32>
    %1126 = vector.shape_cast %1125 : vector<8x1xf32> to vector<1x8x1xf32>
    %1127 = vector.broadcast %1126 : vector<1x8x1xf32> to vector<4x8x4xf32>
    %1128 = arith.mulf %1118, %1127 : vector<4x8x4xf32>
    %1129 = arith.addf %1123, %1128 : vector<4x8x4xf32>
    %c2_450 = arith.constant 2 : index
    %c0_451 = arith.constant 0 : index
    %c9_452 = arith.constant 9 : index
    %1130 = vector.load %arg5[%c2_450, %c0_451, %c9_452] : memref<3x8x20xf32, #tpu.memory_space<vmem>>, vector<1x8x1xf32>
    %1131 = vector.shape_cast %1130 : vector<1x8x1xf32> to vector<8x1xf32>
    %1132 = vector.shape_cast %1131 : vector<8x1xf32> to vector<1x8x1xf32>
    %1133 = vector.broadcast %1132 : vector<1x8x1xf32> to vector<4x8x4xf32>
    %1134 = arith.mulf %1129, %1133 : vector<4x8x4xf32>
    %c2_453 = arith.constant 2 : index
    %c0_454 = arith.constant 0 : index
    %c10_455 = arith.constant 10 : index
    %1135 = vector.load %arg5[%c2_453, %c0_454, %c10_455] : memref<3x8x20xf32, #tpu.memory_space<vmem>>, vector<1x8x1xf32>
    %1136 = vector.shape_cast %1135 : vector<1x8x1xf32> to vector<8x1xf32>
    %1137 = vector.shape_cast %1136 : vector<8x1xf32> to vector<1x8x1xf32>
    %1138 = vector.broadcast %1137 : vector<1x8x1xf32> to vector<4x8x4xf32>
    %1139 = arith.addf %1134, %1138 : vector<4x8x4xf32>
    %c0_456 = arith.constant 0 : index
    %c0_457 = arith.constant 0 : index
    %c0_458 = arith.constant 0 : index
    %c0_459 = arith.constant 0 : index
    %1140 = vector.load %arg7[%c0_456, %c0_457, %c0_458, %c0_459] : memref<1x16x8x16xf32, #tpu.memory_space<vmem>>, vector<1x16x8x16xf32>
    %1141 = vector.shape_cast %1140 : vector<1x16x8x16xf32> to vector<16x8x16xf32>
    %1142 = vector.shape_cast %993 : vector<16x8x16xf32> to vector<1x16x8x16xf32>
    tpu.vector_store %arg7[%c0_456, %c0_457, %c0_458, %c0_459], %1142 {strides = array<i32>} : memref<1x16x8x16xf32, #tpu.memory_space<vmem>>, vector<1x16x8x16xf32>,
    %c0_460 = arith.constant 0 : index
    %c0_461 = arith.constant 0 : index
    %c0_462 = arith.constant 0 : index
    %c0_463 = arith.constant 0 : index
    %1143 = vector.load %arg8[%c0_460, %c0_461, %c0_462, %c0_463] : memref<1x8x8x8xf32, #tpu.memory_space<vmem>>, vector<1x8x8x8xf32>
    %1144 = vector.shape_cast %1143 : vector<1x8x8x8xf32> to vector<8x8x8xf32>
    %1145 = vector.shape_cast %1083 : vector<8x8x8xf32> to vector<1x8x8x8xf32>
    tpu.vector_store %arg8[%c0_460, %c0_461, %c0_462, %c0_463], %1145 {strides = array<i32>} : memref<1x8x8x8xf32, #tpu.memory_space<vmem>>, vector<1x8x8x8xf32>,
    %c0_464 = arith.constant 0 : index
    %c0_465 = arith.constant 0 : index
    %c0_466 = arith.constant 0 : index
    %c0_467 = arith.constant 0 : index
    %1146 = vector.load %arg9[%c0_464, %c0_465, %c0_466, %c0_467] : memref<1x4x8x4xf32, #tpu.memory_space<vmem>>, vector<1x4x8x4xf32>
    %1147 = vector.shape_cast %1146 : vector<1x4x8x4xf32> to vector<4x8x4xf32>
    %1148 = vector.shape_cast %1139 : vector<4x8x4xf32> to vector<1x4x8x4xf32>
    tpu.vector_store %arg9[%c0_464, %c0_465, %c0_466, %c0_467], %1148 {strides = array<i32>} : memref<1x4x8x4xf32, #tpu.memory_space<vmem>>, vector<1x4x8x4xf32>,
    return
  }
  func.func @transform_0(%arg0: i32) -> (i32, i32, i32, i32) {
    %c0_i32 = arith.constant 0 : i32
    %c0_i32_0 = arith.constant 0 : i32
    %c0_i32_1 = arith.constant 0 : i32
    %c0_i32_2 = arith.constant 0 : i32
    return %arg0, %c0_i32, %c0_i32_0, %c0_i32_1 : i32, i32, i32, i32
  }
  func.func @transform_1(%arg0: i32) -> (i32, i32, i32, i32) {
    %c0_i32 = arith.constant 0 : i32
    %c0_i32_0 = arith.constant 0 : i32
    %c0_i32_1 = arith.constant 0 : i32
    %c0_i32_2 = arith.constant 0 : i32
    return %arg0, %c0_i32, %c0_i32_0, %c0_i32_1 : i32, i32, i32, i32
  }
  func.func @transform_2(%arg0: i32) -> (i32, i32, i32, i32) {
    %c0_i32 = arith.constant 0 : i32
    %c0_i32_0 = arith.constant 0 : i32
    %c0_i32_1 = arith.constant 0 : i32
    %c0_i32_2 = arith.constant 0 : i32
    return %arg0, %c0_i32, %c0_i32_0, %c0_i32_1 : i32, i32, i32, i32
  }
  func.func @transform_3(%arg0: i32) -> (i32, i32, i32, i32) {
    %c0_i32 = arith.constant 0 : i32
    %c0_i32_0 = arith.constant 0 : i32
    %c0_i32_1 = arith.constant 0 : i32
    %c0_i32_2 = arith.constant 0 : i32
    %c0_i32_3 = arith.constant 0 : i32
    return %c0_i32, %c0_i32_0, %c0_i32_1, %c0_i32_2 : i32, i32, i32, i32
  }
  func.func @transform_4(%arg0: i32) -> (i32, i32, i32) {
    %c0_i32 = arith.constant 0 : i32
    %c0_i32_0 = arith.constant 0 : i32
    %c0_i32_1 = arith.constant 0 : i32
    %c0_i32_2 = arith.constant 0 : i32
    return %c0_i32, %c0_i32_0, %c0_i32_1 : i32, i32, i32
  }
  func.func @transform_5(%arg0: i32) -> (i32, i32, i32) {
    %c0_i32 = arith.constant 0 : i32
    %c0_i32_0 = arith.constant 0 : i32
    %c0_i32_1 = arith.constant 0 : i32
    %c0_i32_2 = arith.constant 0 : i32
    return %c0_i32, %c0_i32_0, %c0_i32_1 : i32, i32, i32
  }
  func.func @transform_6(%arg0: i32) -> (i32, i32, i32, i32) {
    %c0_i32 = arith.constant 0 : i32
    %c0_i32_0 = arith.constant 0 : i32
    %c0_i32_1 = arith.constant 0 : i32
    %c0_i32_2 = arith.constant 0 : i32
    return %arg0, %c0_i32, %c0_i32_0, %c0_i32_1 : i32, i32, i32, i32
  }
  func.func @transform_7(%arg0: i32) -> (i32, i32, i32, i32) {
    %c0_i32 = arith.constant 0 : i32
    %c0_i32_0 = arith.constant 0 : i32
    %c0_i32_1 = arith.constant 0 : i32
    %c0_i32_2 = arith.constant 0 : i32
    return %arg0, %c0_i32, %c0_i32_0, %c0_i32_1 : i32, i32, i32, i32
  }
  func.func @transform_8(%arg0: i32) -> (i32, i32, i32, i32) {
    %c0_i32 = arith.constant 0 : i32
    %c0_i32_0 = arith.constant 0 : i32
    %c0_i32_1 = arith.constant 0 : i32
    %c0_i32_2 = arith.constant 0 : i32
    return %arg0, %c0_i32, %c0_i32_0, %c0_i32_1 : i32, i32, i32, i32
  }
}

</mosaic_0001>

<bundles_post_ra>
// kernel: bifpn_forward.1
= control target key start
LH: loop header
LB: loop body
LE: loop exit
PB: predicated region body
PF: predicated region fallthrough
CT: control target
= control target key end

     0   :  { %s12200_s27 = smov 0   ;;  %s14816_s0 = inlined_call_operand.vmem [shape: bf16[2,16,4,16], index: 0, kind: input, shape index: {}]   ;;  %s14817_s1 = inlined_call_operand.vmem [shape: bf16[2,8,8,8], index: 1, kind: input, shape index: {}]   ;;  %s14818_s2 = inlined_call_operand.vmem [shape: bf16[2,4,16,4], index: 2, kind: input, shape index: {}]   ;;  %s14819_s3 = inlined_call_operand.vmem [shape: bf16[3,3,8,16], index: 3, kind: input, shape index: {}]   ;;  %s14820_s4 = inlined_call_operand.vmem [shape: f32[3,8,20], index: 4, kind: input, shape index: {}]   ;;  %s14821_s5 = inlined_call_operand.vmem [shape: bf16[4,16,16], index: 5, kind: input, shape index: {}]   ;;  %s14822_s6 = inlined_call_operand.vmem [shape: f32[2,16,8,16], index: 6, kind: output, shape index: {0}]   ;;  %s14823_s7 = inlined_call_operand.vmem [shape: f32[2,8,8,8], index: 7, kind: output, shape index: {1}]   ;;  %s14824_s8 = inlined_call_operand.vmem [shape: f32[2,4,8,4], index: 8, kind: output, shape index: {2}]  }
   0x1 LB: > { %s10233_s28 = sadd.s32 4294967295, %s12131_s27   ;;  %p10237_p0 = scmp.ge.s32.totalorder %s12131_s27, 1  ;;  %s12131_s27 = sphi %s12200_s27, %s19_s27  }
   0x2   : > { %p287_p1 = scmp.lt.s32.totalorder %s12131_s27, 3 }
   0x4   : > { %p288_p2 = pnand %p10237_p0, %p287_p1 }
   0x6   : > { %291 = sbr.rel (%p288_p2) target bundleno = 3591 (0xe07), region = 44 }
   0xd   : > { %p341_p3 = scmp.lt.s32.totalorder %s10233_s28, 1  ;;  %v14857_v0 = vmov 0.0   ;;  %vm12134_vm0 = vmmov 0   ;;  %v12219_v1 = vld [vmem:[%s14820_s4] sm:$0xff]  ;;  %v14851_v2 = vmov 11   ;;  %vm415_vm1 = vcmask 1041408  }
   0xe   : > { %10875 = vmatprep.subr.bf16.mxu0 %v14857_v0  ;;  %10881 = vmatprep.subr.bf16.mxu1 %v14857_v0  ;;  %v14855_v3 = vmov 2   ;;  %v12243_v10 = vld [vmem:[%s14819_s3] sm:$0xf]  ;;  %vm411_vm2 = vcmask 31744   ;;  %v14849_v13 = vmov 12   ;;  %v14853_v14 = vmov 1  }
   0xf   : > { %s14915_s28 = smov (!%p341_p3, %s10233_s28), 1  ;;  %10877 = vmatprep.mubr.msk.bf16.mxu0 %vm12134_vm0, %v14857_v0  ;;  %10883 = vmatprep.mubr.msk.bf16.mxu1 %vm12134_vm0, %v14857_v0  ;;  %v14847_v21 = vmov 3   ;;  %v14843_v22 = vmov 4   ;;  %v14845_v27 = vmov 0   ;;  %v14835_v28 = vmov 14  }
  0x10   : > { %12059 = vset.pattern.permute.xlu1 %v14851_v2  ;;  %s12223_s9 = sshll.u32 %s14915_s28, 5  ;;  %12057 = vset.pattern.permute.xlu0 %v14855_v3  ;;  %v14839_v33 = vmov 13   ;;  %v14829_v34 = vmov 15   ;;  %v14841_v39 = vmov 5   ;;  %v14831_v44 = vmov 6   ;;  %s10488_s29 = sshll.u32 %s14915_s28, 7 }
  0x11   : > { %2030 = vperm.xlu1 %12059, %v12219_v1   ;;  %s12231_s12 = scalar_lea.vmem %s14816_s0, %s12223_s9  ;;  %1466 = vperm.xlu0 %12057, %v12219_v1   ;;  %s12271_s17 = scalar_lea.vmem %s14818_s2, %s12223_s9  ;;  %vm1116_vm3 = vcmask 1043456   ;;  %v14837_v49 = vmov 16   ;;  %v14827_v54 = vmov 17   ;;  %v10266_v55 = vld [vmem:[%s14819_s3 + $0x4] sm:$0xf]  ;;  %vm1112_vm4 = vcmask 64512  }
  0x12   : > { %v372_v4 = vld [vmem:[%s12231_s12] sm:$0x3]  ;;  %v373_v5 = vld [vmem:[%s12231_s12 + $0x2] sm:$0x3]  ;;  %v374_v6 = vld [vmem:[%s12231_s12 + $0x4] sm:$0x3]  ;;  %s12367_s20 = scalar_lea.vmem %s14817_s1, %s12223_s9  ;;  %s14554_s11 = scalar_lea.vmem %s14822_s6, %s10488_s29 }
  0x13   : > { %v417_v7 = vsel %vm415_vm1, %v372_v4, 0  ;;  %v460_v8 = vsel %vm415_vm1, %v373_v5, 0  ;;  %v375_v9 = vld [vmem:[%s12231_s12 + $0x6] sm:$0x3]  ;;  %v503_v11 = vsel %vm415_vm1, %v374_v6, 0  ;;  %v14833_v60 = vmov 8   ;;  %s14800_s19 = scalar_lea.vmem %s14824_s8, %s12223_s9 }
  0x14   : > { %10876 = vmatpush3.bf16.msra.mxu0 %v417_v7  ;;  %10882 = vmatpush3.bf16.msra.mxu1 %v460_v8  ;;  %v546_v12 = vsel %vm415_vm1, %v375_v9, 0  ;;  %v376_v15 = vld [vmem:[%s12231_s12 + $0x8] sm:$0x3]  ;;  %v377_v16 = vld [vmem:[%s12231_s12 + $0xa] sm:$0x3]  ;;  %v14825_v5 = vmov 18  }
  0x15   : > { %10887 = vmatprep.subr.bf16.mxu0 %v14857_v0  ;;  %10893 = vmatprep.subr.bf16.mxu1 %v14857_v0  ;;  %v589_v17 = vsel %vm415_vm1, %v376_v15, 0  ;;  %v632_v18 = vsel %vm415_vm1, %v377_v16, 0  ;;  %v378_v19 = vld [vmem:[%s12231_s12 + $0xc] sm:$0x3]  ;;  %v379_v20 = vld [vmem:[%s12231_s12 + $0xe] sm:$0x3] }
  0x16   : > { %12060 = vset.pattern.permute.xlu1 %v14849_v13  ;;  %12058 = vset.pattern.permute.xlu0 %v14853_v14  ;;  %v675_v23 = vsel %vm415_vm1, %v378_v19, 0  ;;  %v718_v24 = vsel %vm415_vm1, %v379_v20, 0  ;;  %v380_v25 = vld [vmem:[%s12231_s12 + $0x10] sm:$0x3]  ;;  %v381_v26 = vld [vmem:[%s12231_s12 + $0x12] sm:$0x3] }
  0x17   : > { %10878 = vmatmul.mubr.msk.bf16.vlgmr.msra.gmra.mrb[0].mxu0 %vm411_vm2, %v12243_v10  ;;  %10884 = vmatmul.mubr.msk.bf16.vlgmr.msra.gmra.mrb[0].mxu1 %vm411_vm2, %v12243_v10  ;;  %v761_v29 = vsel %vm415_vm1, %v380_v25, 0  ;;  %v804_v30 = vsel %vm415_vm1, %v381_v26, 0  ;;  %v382_v31 = vld [vmem:[%s12231_s12 + $0x14] sm:$0x3]  ;;  %v383_v32 = vld [vmem:[%s12231_s12 + $0x16] sm:$0x3] }
  0x18   : > { %10888 = vmatpush3.bf16.msra.mxu0 %v503_v11  ;;  %10894 = vmatpush3.bf16.msra.mxu1 %v546_v12  ;;  %v847_v35 = vsel %vm415_vm1, %v382_v31, 0  ;;  %v890_v36 = vsel %vm415_vm1, %v383_v32, 0  ;;  %v384_v37 = vld [vmem:[%s12231_s12 + $0x18] sm:$0x3]  ;;  %v385_v38 = vld [vmem:[%s12231_s12 + $0x1a] sm:$0x3] }
  0x19   : > { %10889 = vmatprep.mubr.msk.bf16.mxu0 %vm12134_vm0, %v14857_v0  ;;  %10895 = vmatprep.mubr.msk.bf16.mxu1 %vm12134_vm0, %v14857_v0  ;;  %v933_v40 = vsel %vm415_vm1, %v384_v37, 0  ;;  %v976_v41 = vsel %vm415_vm1, %v385_v38, 0  ;;  %v386_v42 = vld [vmem:[%s12231_s12 + $0x1c] sm:$0x3]  ;;  %v387_v43 = vld [vmem:[%s12231_s12 + $0x1e] sm:$0x3] }
  0x1a   : > { %10899 = vmatprep.subr.bf16.mxu0 %v14857_v0  ;;  %10905 = vmatprep.subr.bf16.mxu1 %v14857_v0  ;;  %v1019_v45 = vsel %vm415_vm1, %v386_v42, 0  ;;  %v1062_v46 = vsel %vm415_vm1, %v387_v43, 0  ;;  %v388_v47 = vld [vmem:[%s12367_s20] sm:$0xf]  ;;  %v389_v48 = vld [vmem:[%s12367_s20 + $0x4] sm:$0xf] }
  0x1b   : > { %2042 = vperm.xlu1 %12060, %v12219_v1   ;;  %1109 = vperm.xlu0 %12058, %v12219_v1   ;;  %v1118_v50 = vsel %vm1116_vm3, %v388_v47, 0  ;;  %v1161_v51 = vsel %vm1116_vm3, %v389_v48, 0  ;;  %v390_v52 = vld [vmem:[%s12367_s20 + $0x8] sm:$0xf]  ;;  %v391_v53 = vld [vmem:[%s12367_s20 + $0xc] sm:$0xf] }
  0x1c   : > { %v1204_v56 = vsel %vm1116_vm3, %v390_v52, 0  ;;  %v1247_v57 = vsel %vm1116_vm3, %v391_v53, 0  ;;  %v392_v58 = vld [vmem:[%s12367_s20 + $0x10] sm:$0xf]  ;;  %v393_v59 = vld [vmem:[%s12367_s20 + $0x14] sm:$0xf] }
  0x1d   : > { %v1290_v61 = vsel %vm1116_vm3, %v392_v58, 0  ;;  %v1333_v62 = vsel %vm1116_vm3, %v393_v59, 0  ;;  %v394_v63 = vld [vmem:[%s12367_s20 + $0x18] sm:$0xf]  ;;  %v395_v4 = vld [vmem:[%s12367_s20 + $0x1c] sm:$0xf] }
  0x1e   : > { %v1376_v6 = vsel %vm1116_vm3, %v394_v63, 0  ;;  %v1419_v7 = vsel %vm1116_vm3, %v395_v4, 0  ;;  %v12118_v8 = vld [vmem:[%s12271_s17 + $0x8] sm:$0xff]   ;;  %vm1475_vm5 = vcmask 130048   ;;  %v12120_v11 = vld [vmem:[%s12271_s17 + $0x18] sm:$0xff]   ;;  %s10489_s14 = sshll.u32 %s14915_s28, 6 }
  0x1f   : > { %10890 = vmatmul.mubr.msk.bf16.vlgmr.msra.gmra.mrb[4].mxu0 %vm411_vm2, %v12243_v10  ;;  %10896 = vmatmul.mubr.msk.bf16.vlgmr.msra.gmra.mrb[4].mxu1 %vm411_vm2, %v12243_v10  ;;  %v10275_v9 = vld [vmem:[%s14819_s3 + $0x8] sm:$0xf]  ;;  %v1671_v12 = vld [vmem:[%s14821_s5] sm:$0x3] }
  0x20   : > { %10900 = vmatpush3.bf16.msra.mxu0 %v589_v17  ;;  %10906 = vmatpush3.bf16.msra.mxu1 %v632_v18  ;;  %v12469_v15 = vsel %vm415_vm1, %v1671_v12, 0 }
  0x21   : > { %10901 = vmatprep.mubr.msk.bf16.mxu0 %vm12134_vm0, %v14857_v0  ;;  %10907 = vmatprep.mubr.msk.bf16.mxu1 %vm12134_vm0, %v14857_v0 }
  0x22   : > { %10911 = vmatprep.subr.bf16.mxu0 %v14857_v0  ;;  %10917 = vmatprep.subr.bf16.mxu1 %v14857_v0 }
  0x23   : > { %12061 = vset.pattern.permute.xlu1 %v14847_v21  ;;  %12062 = vset.pattern.permute.xlu0 %v14843_v22 }
  0x24   : > { %2062 = vperm.xlu1 %12061, %v12219_v1   ;;  %2074 = vperm.xlu0 %12062, %v12219_v1  }
  0x27   : > { %10902 = vmatmul.mubr.msk.bf16.vlgmr.msra.gmra.mrb[8].mxu0 %vm411_vm2, %v12243_v10  ;;  %10908 = vmatmul.mubr.msk.bf16.vlgmr.msra.gmra.mrb[8].mxu1 %vm411_vm2, %v12243_v10 }
  0x28   : > { %10912 = vmatpush3.bf16.msra.mxu0 %v675_v23  ;;  %10918 = vmatpush3.bf16.msra.mxu1 %v718_v24 }
  0x29   : > { %10913 = vmatprep.mubr.msk.bf16.mxu0 %vm12134_vm0, %v14857_v0  ;;  %10919 = vmatprep.mubr.msk.bf16.mxu1 %vm12134_vm0, %v14857_v0 }
  0x2a   : > { %10923 = vmatprep.subr.bf16.mxu0 %v14857_v0  ;;  %10929 = vmatprep.subr.bf16.mxu1 %v14857_v0 }
  0x2b   : > { %12063 = vset.pattern.permute.xlu1 %v14845_v27  ;;  %12065 = vset.pattern.permute.xlu0 %v14835_v28 }
  0x2c   : > { %408 = vperm.xlu1 %12063, %v12219_v1   ;;  %2847 = vperm.xlu0 %12065, %v12219_v1  }
  0x2f   : > { %10914 = vmatmul.mubr.msk.bf16.vlgmr.msra.gmra.mrb[12].mxu0 %vm411_vm2, %v12243_v10  ;;  %10920 = vmatmul.mubr.msk.bf16.vlgmr.msra.gmra.mrb[12].mxu1 %vm411_vm2, %v12243_v10 }
  0x30   : > { %10924 = vmatpush3.bf16.msra.mxu0 %v761_v29  ;;  %10930 = vmatpush3.bf16.msra.mxu1 %v804_v30 }
  0x31   : > { %10925 = vmatprep.mubr.msk.bf16.mxu0 %vm12134_vm0, %v14857_v0  ;;  %10931 = vmatprep.mubr.msk.bf16.mxu1 %vm12134_vm0, %v14857_v0 }
  0x32   : > { %10935 = vmatprep.subr.bf16.mxu0 %v14857_v0  ;;  %10941 = vmatprep.subr.bf16.mxu1 %v14857_v0 }
  0x33   : > { %12064 = vset.pattern.permute.xlu1 %v14839_v33  ;;  %12068 = vset.pattern.permute.xlu0 %v14829_v34 }
  0x34   : > { %2827 = vperm.xlu1 %12064, %v12219_v1   ;;  %3310 = vperm.xlu0 %12068, %v12219_v1  }
  0x37   : > { %10926 = vmatmul.mubr.msk.bf16.vlgmr.msra.gmra.mrb[16].mxu0 %vm411_vm2, %v12243_v10  ;;  %10932 = vmatmul.mubr.msk.bf16.vlgmr.msra.gmra.mrb[16].mxu1 %vm411_vm2, %v12243_v10 }
  0x38   : > { %10936 = vmatpush3.bf16.msra.mxu0 %v847_v35  ;;  %10942 = vmatpush3.bf16.msra.mxu1 %v890_v36 }
  0x39   : > { %10937 = vmatprep.mubr.msk.bf16.mxu0 %vm12134_vm0, %v14857_v0  ;;  %10943 = vmatprep.mubr.msk.bf16.mxu1 %vm12134_vm0, %v14857_v0 }
  0x3a   : > { %10947 = vmatprep.subr.bf16.mxu0 %v14857_v0  ;;  %10953 = vmatprep.subr.bf16.mxu1 %v14857_v0 }
  0x3b   : > { %12066 = vset.pattern.permute.xlu1 %v14841_v39 }
  0x3c   : > { %2883 = vperm.xlu1 %12066, %v12219_v1  }
  0x3f   : > { %10938 = vmatmul.mubr.msk.bf16.vlgmr.msra.gmra.mrb[20].mxu0 %vm411_vm2, %v12243_v10  ;;  %10944 = vmatmul.mubr.msk.bf16.vlgmr.msra.gmra.mrb[20].mxu1 %vm411_vm2, %v12243_v10 }
  0x40   : > { %10948 = vmatpush3.bf16.msra.mxu0 %v933_v40  ;;  %10954 = vmatpush3.bf16.msra.mxu1 %v976_v41 }
  0x41   : > { %10949 = vmatprep.mubr.msk.bf16.mxu0 %vm12134_vm0, %v14857_v0  ;;  %10955 = vmatprep.mubr.msk.bf16.mxu1 %vm12134_vm0, %v14857_v0 }
  0x42   : > { %10959 = vmatprep.subr.bf16.mxu0 %v14857_v0  ;;  %10965 = vmatprep.subr.bf16.mxu1 %v14857_v0 }
  0x43   : > { %12067 = vset.pattern.permute.xlu1 %v14831_v44 }
  0x44   : > { %2903 = vperm.xlu1 %12067, %v12219_v1  }
  0x47   : > { %10950 = vmatmul.mubr.msk.bf16.vlgmr.msra.gmra.mrb[24].mxu0 %vm411_vm2, %v12243_v10  ;;  %10956 = vmatmul.mubr.msk.bf16.vlgmr.msra.gmra.mrb[24].mxu1 %vm411_vm2, %v12243_v10 }
  0x48   : > { %10960 = vmatpush3.bf16.msra.mxu0 %v1019_v45  ;;  %10966 = vmatpush3.bf16.msra.mxu1 %v1062_v46 }
  0x49   : > { %10961 = vmatprep.mubr.msk.bf16.mxu0 %vm12134_vm0, %v14857_v0  ;;  %10967 = vmatprep.mubr.msk.bf16.mxu1 %vm12134_vm0, %v14857_v0 }
  0x4a   : > { %10971 = vmatprep.subr.bf16.mxu0 %v14857_v0  ;;  %10977 = vmatprep.subr.bf16.mxu1 %v14857_v0 }
  0x4b   : > { %12069 = vset.pattern.permute.xlu1 %v14837_v49 }
  0x4c   : > { %3322 = vperm.xlu1 %12069, %v12219_v1  }
  0x4f   : > { %10962 = vmatmul.mubr.msk.bf16.vlgmr.msra.gmra.mrb[28].mxu0 %vm411_vm2, %v12243_v10  ;;  %10968 = vmatmul.mubr.msk.bf16.vlgmr.msra.gmra.mrb[28].mxu1 %vm411_vm2, %v12243_v10  ;;  %v12119_v10 = vld [vmem:[%s12271_s17 + $0x10] sm:$0xff]  }
  0x50   : > { %10972 = vmatpush3.bf16.msra.mxu0 %v1118_v50  ;;  %10978 = vmatpush3.bf16.msra.mxu1 %v1161_v51 }
  0x51   : > { %10973 = vmatprep.mubr.msk.bf16.mxu0 %vm12134_vm0, %v14857_v0  ;;  %10979 = vmatprep.mubr.msk.bf16.mxu1 %vm12134_vm0, %v14857_v0 }
  0x52   : > { %10983 = vmatprep.subr.bf16.mxu0 %v14857_v0  ;;  %10989 = vmatprep.subr.bf16.mxu1 %v14857_v0 }
  0x53   : > { %12070 = vset.pattern.permute.xlu1 %v14827_v54 }
  0x54   : > { %3342 = vperm.xlu1 %12070, %v12219_v1  }
  0x57   : > { %10974 = vmatmul.mubr.msk.bf16.vlgmr.msra.gmra.mrb[32].mxu0 %vm1112_vm4, %v10266_v55  ;;  %10980 = vmatmul.mubr.msk.bf16.vlgmr.msra.gmra.mrb[32].mxu1 %vm1112_vm4, %v10266_v55 }
  0x58   : > { %10984 = vmatpush3.bf16.msra.mxu0 %v1204_v56  ;;  %10990 = vmatpush3.bf16.msra.mxu1 %v1247_v57 }
  0x59   : > { %10985 = vmatprep.mubr.msk.bf16.mxu0 %vm12134_vm0, %v14857_v0  ;;  %10991 = vmatprep.mubr.msk.bf16.mxu1 %vm12134_vm0, %v14857_v0 }
  0x5a   : > { %10995 = vmatprep.subr.bf16.mxu0 %v14857_v0  ;;  %11001 = vmatprep.subr.bf16.mxu1 %v14857_v0 }
  0x5b   : > { %12072 = vset.pattern.permute.xlu1 %v14833_v60 }
  0x5c   : > { %3374 = vperm.xlu1 %12072, %v12219_v1  }
  0x5f   : > { %10986 = vmatmul.mubr.msk.bf16.vlgmr.msra.gmra.mrb[36].mxu0 %vm1112_vm4, %v10266_v55  ;;  %10992 = vmatmul.mubr.msk.bf16.vlgmr.msra.gmra.mrb[36].mxu1 %vm1112_vm4, %v10266_v55 }
  0x60   : > { %10996 = vmatpush3.bf16.msra.mxu0 %v1290_v61  ;;  %11002 = vmatpush3.bf16.msra.mxu1 %v1333_v62 }
  0x61   : > { %10997 = vmatprep.mubr.msk.bf16.mxu0 %vm12134_vm0, %v14857_v0  ;;  %11003 = vmatprep.mubr.msk.bf16.mxu1 %vm12134_vm0, %v14857_v0 }
  0x62   : > { %11007 = vmatprep.subr.bf16.mxu0 %v14857_v0  ;;  %11013 = vmatprep.subr.bf16.mxu1 %v14857_v0 }
  0x63   : > { %12073 = vset.pattern.permute.xlu1 %v14825_v5 }
  0x64   : > { %3581 = vperm.xlu1 %12073, %v12219_v1   ;;  %v12117_v1 = vld [vmem:[%s12271_s17] sm:$0xff]   ;;  %s14738_s17 = scalar_lea.vmem %s14823_s7, %s10489_s14 }
  0x67   : > { %10998 = vmatmul.mubr.msk.bf16.vlgmr.msra.gmra.mrb[40].mxu0 %vm1112_vm4, %v10266_v55  ;;  %11004 = vmatmul.mubr.msk.bf16.vlgmr.msra.gmra.mrb[40].mxu1 %vm1112_vm4, %v10266_v55 }
  0x68   : > { %11008 = vmatpush3.bf16.msra.mxu0 %v1376_v6  ;;  %11014 = vmatpush3.bf16.msra.mxu1 %v1419_v7 }
  0x69   : > { %11009 = vmatprep.mubr.msk.bf16.mxu0 %vm12134_vm0, %v14857_v0  ;;  %11015 = vmatprep.mubr.msk.bf16.mxu1 %vm12134_vm0, %v14857_v0 }
  0x6a   : > { %11019 = vmatprep.subr.bf16.mxu0 %v14857_v0  ;;  %11025 = vmatprep.subr.bf16.mxu1 %v14857_v0 }
  0x6f   : > { %11010 = vmatmul.mubr.msk.bf16.vlgmr.msra.gmra.mrb[44].mxu0 %vm1112_vm4, %v10266_v55  ;;  %11016 = vmatmul.mubr.msk.bf16.vlgmr.msra.gmra.mrb[44].mxu1 %vm1112_vm4, %v10266_v55 }
  0x70   : > { %11020 = vmatpush3.bf16.msra.mxu0 %v12117_v1  ;;  %11026 = vmatpush3.bf16.msra.mxu1 %v12118_v8 }
  0x71   : > { %11021 = vmatprep.mubr.msk.bf16.mxu0 %vm12134_vm0, %v14857_v0  ;;  %11027 = vmatprep.mubr.msk.bf16.mxu1 %vm12134_vm0, %v14857_v0 }
  0x72   : > { %11031 = vmatprep.subr.bf16.mxu0 %v14857_v0  ;;  %11037 = vmatprep.subr.bf16.mxu1 %v14857_v0 }
  0x77   : > { %11022 = vmatmul.mubr.msk.bf16.vlgmr.msra.gmra.mrb[48].mxu0 %vm1475_vm5, %v10275_v9  ;;  %11028 = vmatmul.mubr.msk.bf16.vlgmr.msra.gmra.mrb[48].mxu1 %vm1475_vm5, %v10275_v9 }
  0x78   : > { %11032 = vmatpush3.bf16.msra.mxu0 %v12119_v10  ;;  %11038 = vmatpush3.bf16.msra.mxu1 %v12120_v11 }
  0x79   : > { %11033 = vmatprep.mubr.msk.bf16.mxu0 %vm12134_vm0, %v14857_v0  ;;  %11039 = vmatprep.mubr.msk.bf16.mxu1 %vm12134_vm0, %v14857_v0 }
  0x7a   : > { %11043 = vmatprep.subr.bf16.mxu0 %v14857_v0  ;;  %11049 = vmatprep.subr.bf16.mxu1 %v14857_v0 }
  0x7f   : > { %11034 = vmatmul.mubr.msk.bf16.vlgmr.msra.gmra.mrb[52].mxu0 %vm1475_vm5, %v10275_v9  ;;  %11040 = vmatmul.mubr.msk.bf16.vlgmr.msra.gmra.mrb[52].mxu1 %vm1475_vm5, %v10275_v9 }
  0x80   : > { %11045 = vmatprep.mubr.msk.bf16.mxu0 %vm12134_vm0, %v14857_v0  ;;  %11051 = vmatprep.mubr.msk.bf16.mxu1 %vm12134_vm0, %v14857_v0 }
  0x81   : > { %11044 = vmatpush3.bf16.msra.mxu0 %v12469_v15  ;;  %11050 = vmatpush3.bf16.msra.mxu1 %v12469_v15 }
  0x82   : > { %11055 = vmatprep.subr.bf16.mxu0 %v14857_v0  ;;  %11061 = vmatprep.subr.bf16.mxu1 %v14857_v0 }
  0xea   : > { %v12475_v16 = vpop.f32.mrb[0].mxu0  ;;  %v12477_v17 = vpop.f32.mrb[0].mxu1 }
  0xeb   : > { %v10879_v18 = vpop.f32.mrb[1].mxu0  ;;  %v10885_v19 = vpop.f32.mrb[1].mxu1 }
  0xec   : > { %v456_v20 = vpop.f32.mrb[2].mxu0  ;;  %v499_v23 = vpop.f32.mrb[2].mxu1 }
  0xed   : > { %v10880_v24 = vpop.f32.mrb[3].mxu0  ;;  %v10886_v25 = vpop.f32.mrb[3].mxu1 }
  0xf2   : > { %v12479_v26 = vpop.f32.mrb[4].mxu0  ;;  %v12481_v29 = vpop.f32.mrb[4].mxu1 }
  0xf3   : > { %v10891_v30 = vpop.f32.mrb[5].mxu0  ;;  %v10897_v31 = vpop.f32.mrb[5].mxu1 }
  0xf4   : > { %v542_v32 = vpop.f32.mrb[6].mxu0  ;;  %v585_v35 = vpop.f32.mrb[6].mxu1 }
  0xf5   : > { %v10892_v36 = vpop.f32.mrb[7].mxu0  ;;  %v10898_v37 = vpop.f32.mrb[7].mxu1 }
  0xfa   : > { %v12483_v38 = vpop.f32.mrb[8].mxu0  ;;  %v12485_v40 = vpop.f32.mrb[8].mxu1 }
  0xfb   : > { %v10903_v41 = vpop.f32.mrb[9].mxu0  ;;  %v10909_v42 = vpop.f32.mrb[9].mxu1 }
  0xfc   : > { %v628_v43 = vpop.f32.mrb[10].mxu0  ;;  %v671_v45 = vpop.f32.mrb[10].mxu1 }
  0xfd   : > { %v10904_v46 = vpop.f32.mrb[11].mxu0  ;;  %v10910_v47 = vpop.f32.mrb[11].mxu1 }
 0x102   : > { %v12487_v48 = vpop.f32.mrb[12].mxu0  ;;  %v12489_v50 = vpop.f32.mrb[12].mxu1 }
 0x103   : > { %v10915_v51 = vpop.f32.mrb[13].mxu0  ;;  %v10921_v52 = vpop.f32.mrb[13].mxu1 }
 0x104   : > { %v714_v53 = vpop.f32.mrb[14].mxu0  ;;  %v757_v55 = vpop.f32.mrb[14].mxu1 }
 0x105   : > { %v10916_v56 = vpop.f32.mrb[15].mxu0  ;;  %v10922_v57 = vpop.f32.mrb[15].mxu1 }
 0x10a   : > { %v12491_v58 = vpop.f32.mrb[16].mxu0  ;;  %v12493_v59 = vpop.f32.mrb[16].mxu1 }
 0x10b   : > { %v10927_v61 = vpop.f32.mrb[17].mxu0  ;;  %v10933_v62 = vpop.f32.mrb[17].mxu1 }
 0x10c   : > { %v800_v63 = vpop.f32.mrb[18].mxu0  ;;  %v843_v4 = vpop.f32.mrb[18].mxu1 }
 0x10d   : > { %v10928_v6 = vpop.f32.mrb[19].mxu0  ;;  %v10934_v7 = vpop.f32.mrb[19].mxu1 }
 0x112   : > { %v12495_v1 = vpop.f32.mrb[20].mxu0  ;;  %v12497_v8 = vpop.f32.mrb[20].mxu1 }
 0x113   : > { %v10939_v9 = vpop.f32.mrb[21].mxu0  ;;  %v10945_v10 = vpop.f32.mrb[21].mxu1 }
 0x114   : > { %v886_v11 = vpop.f32.mrb[22].mxu0  ;;  %v929_v12 = vpop.f32.mrb[22].mxu1 }
 0x115   : > { %v10940_v18 = vpop.f32.mrb[23].mxu0  ;;  %v10946_v19 = vpop.f32.mrb[23].mxu1 }
 0x11a   : > { %v12499_v20 = vpop.f32.mrb[24].mxu0  ;;  %v12501_v23 = vpop.f32.mrb[24].mxu1 }
 0x11b   : > { %v10951_v24 = vpop.f32.mrb[25].mxu0  ;;  %v10957_v25 = vpop.f32.mrb[25].mxu1 }
 0x11c   : > { %v972_v30 = vpop.f32.mrb[26].mxu0  ;;  %v1015_v31 = vpop.f32.mrb[26].mxu1 }
 0x11d   : > { %v10952_v32 = vpop.f32.mrb[27].mxu0  ;;  %v10958_v35 = vpop.f32.mrb[27].mxu1 }
 0x122   : > { %v12503_v36 = vpop.f32.mrb[28].mxu0  ;;  %v12505_v37 = vpop.f32.mrb[28].mxu1 }
 0x123   : > { %v10963_v41 = vpop.f32.mrb[29].mxu0  ;;  %v10969_v42 = vpop.f32.mrb[29].mxu1 }
 0x124   : > { %v1058_v43 = vpop.f32.mrb[30].mxu0  ;;  %v1101_v45 = vpop.f32.mrb[30].mxu1 }
 0x125   : > { %v10964_v46 = vpop.f32.mrb[31].mxu0  ;;  %v10970_v47 = vpop.f32.mrb[31].mxu1 }
 0x12a   : > { %v12507_v51 = vpop.f32.mrb[32].mxu0  ;;  %v12509_v52 = vpop.f32.mrb[32].mxu1 }
 0x12b   : > { %v10975_v53 = vpop.f32.mrb[33].mxu0  ;;  %v10981_v55 = vpop.f32.mrb[33].mxu1 }
 0x12c   : > { %v1157_v56 = vpop.f32.mrb[34].mxu0  ;;  %v1200_v57 = vpop.f32.mrb[34].mxu1 }
 0x12d   : > { %v10976_v61 = vpop.f32.mrb[35].mxu0  ;;  %v10982_v62 = vpop.f32.mrb[35].mxu1 }
 0x12e   : > { %v1467_v56 = vpop.permute.xlu0 %1466 }
 0x132   : > { %v12511_v63 = vpop.f32.mrb[36].mxu0  ;;  %v12513_v4 = vpop.f32.mrb[36].mxu1 }
 0x133   : > { %v10987_v6 = vpop.f32.mrb[37].mxu0  ;;  %v10993_v7 = vpop.f32.mrb[37].mxu1 }
 0x134   : > { %v1243_v9 = vpop.f32.mrb[38].mxu0  ;;  %v1286_v10 = vpop.f32.mrb[38].mxu1 }
 0x135   : > { %v10988_v11 = vpop.f32.mrb[39].mxu0  ;;  %v10994_v12 = vpop.f32.mrb[39].mxu1 }
 0x13a   : > { %v12515_v18 = vpop.f32.mrb[40].mxu0  ;;  %v12517_v19 = vpop.f32.mrb[40].mxu1 }
 0x13b   : > { %v10999_v24 = vpop.f32.mrb[41].mxu0  ;;  %v11005_v25 = vpop.f32.mrb[41].mxu1 }
 0x13c   : > { %v1329_v30 = vpop.f32.mrb[42].mxu0  ;;  %v1372_v31 = vpop.f32.mrb[42].mxu1 }
 0x13d   : > { %v11000_v32 = vpop.f32.mrb[43].mxu0  ;;  %v11006_v35 = vpop.f32.mrb[43].mxu1 }
 0x142   : > { %v12519_v41 = vpop.f32.mrb[44].mxu0  ;;  %v12521_v42 = vpop.f32.mrb[44].mxu1 }
 0x143   : > { %v11011_v43 = vpop.f32.mrb[45].mxu0  ;;  %v11017_v45 = vpop.f32.mrb[45].mxu1 }
 0x144   : > { %v1415_v46 = vpop.f32.mrb[46].mxu0  ;;  %v1458_v47 = vpop.f32.mrb[46].mxu1 }
 0x145   : > { %v11012_v53 = vpop.f32.mrb[47].mxu0  ;;  %v11018_v55 = vpop.f32.mrb[47].mxu1 }
 0x14a   : > { %v1513_v57 = vpop.f32.mrb[48].mxu0  ;;  %v1559_v61 = vpop.f32.mrb[48].mxu1 }
 0x14b   : > { %v12523_v62 = vadd.f32 %v1513_v57, %v1467_v56  ;;  %v12525_v6 = vadd.f32 %v1559_v61, %v1467_v56  ;;  %v11023_v7 = vpop.f32.mrb[49].mxu0  ;;  %v11029_v9 = vpop.f32.mrb[49].mxu1 }
 0x14c   : > { %v1516_v10 = vpop.f32.mrb[50].mxu0  ;;  %v1562_v11 = vpop.f32.mrb[50].mxu1 }
 0x14d   : > { %14870 = vst [vmem:[#allocation2_spill] sm:$0xff] %v12525_v6  ;;  %v1657_v12 = vmul.f32 0.75, %v12523_v62  ;;  %v1660_v24 = vmul.f32 0.25, %v12523_v62  ;;  %v1672_v25 = vpack.c.bf16 %v12523_v62, %v12523_v62  ;;  %v1658_v30 = vmul.f32 0.25, %v12525_v6  ;;  %v11024_v31 = vpop.f32.mrb[51].mxu0  ;;  %v11030_v32 = vpop.f32.mrb[51].mxu1 }
 0x14e   : > { %v1661_v35 = vmul.f32 0.75, %v12525_v6 }
 0x14f   : > { %v1659_v43 = vadd.f32 %v1658_v30, %v1657_v12  ;;  %11046 = vmatmul.mubr.msk.bf16.vlgmr.msra.gmra.mrb[56].mxu0 %vm411_vm2, %v1672_v25 }
 0x150   : > { %v1662_v45 = vadd.f32 %v1661_v35, %v1660_v24  ;;  %11056 = vmatpush3.bf16.msra.mxu0 %v12469_v15  ;;  %11057 = vmatprep.mubr.msk.bf16.mxu0 %vm12134_vm0, %v14857_v0 }
 0x151   : > { %v1673_v46 = vpack.c.bf16 %v1659_v43, %v1659_v43  ;;  %11067 = vmatprep.subr.bf16.mxu0 %v14857_v0 }
 0x152   : > { %v1605_v47 = vpop.f32.mrb[52].mxu0  ;;  %v1651_v53 = vpop.f32.mrb[52].mxu1  ;;  %v1674_v9 = vpack.c.bf16 %v1662_v45, %v1662_v45 }
 0x153   : > { %v12538_v55 = vadd.f32 %v1605_v47, %v1467_v56  ;;  %v12540_v57 = vadd.f32 %v1651_v53, %v1467_v56  ;;  %11052 = vmatmul.mubr.msk.bf16.vlgmr.msra.gmra.mrb[56].mxu1 %vm411_vm2, %v1673_v46  ;;  %v11035_v61 = vpop.f32.mrb[53].mxu0  ;;  %v11041_v7 = vpop.f32.mrb[53].mxu1 }
 0x154   : > { %11062 = vmatpush3.bf16.msra.mxu1 %v12469_v15  ;;  %v1608_v10 = vpop.f32.mrb[54].mxu0  ;;  %11063 = vmatprep.mubr.msk.bf16.mxu1 %vm12134_vm0, %v14857_v0  ;;  %v1654_v11 = vpop.f32.mrb[54].mxu1 }
 0x155   : > { %14871 = vst [vmem:[#allocation3_spill] sm:$0xff] %v12538_v55  ;;  %14872 = vst [vmem:[#allocation4_spill] sm:$0xff] %v12540_v57  ;;  %v1663_v12 = vmul.f32 0.25, %v12538_v55  ;;  %v1665_v24 = vmul.f32 0.75, %v12538_v55  ;;  %v1667_v25 = vmul.f32 0.25, %v12540_v57  ;;  %v1669_v56 = vmul.f32 0.75, %v12540_v57  ;;  %11073 = vmatprep.subr.bf16.mxu1 %v14857_v0  ;;  %v12589_v10 = vpop.permute.xlu1 %2030 }
 0x156   : > { %v11036_v31 = vpop.f32.mrb[55].mxu0  ;;  %v11042_v32 = vpop.f32.mrb[55].mxu1  ;;  %v1679_v7 = vpack.c.bf16 %v12540_v57, %v12540_v57 }
 0x157   : > { %v1664_v43 = vadd.f32 %v1663_v12, %v1661_v35  ;;  %v1666_v45 = vadd.f32 %v1665_v24, %v1658_v30  ;;  %11058 = vmatmul.mubr.msk.bf16.vlgmr.msra.gmra.mrb[60].mxu0 %vm411_vm2, %v1674_v9  ;;  %v1668_v46 = vadd.f32 %v1667_v25, %v1665_v24  ;;  %v1670_v47 = vadd.f32 %v1669_v56, %v1663_v12  ;;  %v12597_v25 = vpop.permute.xlu0 %1109 }
 0x158   : > { %11068 = vmatpush3.bf16.msra.mxu0 %v12469_v15  ;;  %11069 = vmatprep.mubr.msk.bf16.mxu0 %vm12134_vm0, %v14857_v0  ;;  %v1155_v32 = vadd.f32 %v12507_v51, %v12597_v25  ;;  %v1241_v34 = vadd.f32 %v12511_v63, %v12597_v25 }
 0x159   : > { %v1675_v53 = vpack.c.bf16 %v1664_v43, %v1664_v43  ;;  %11079 = vmatprep.subr.bf16.mxu0 %v14857_v0  ;;  %v1676_v30 = vpack.c.bf16 %v1666_v45, %v1666_v45  ;;  %v1677_v35 = vpack.c.bf16 %v1668_v46, %v1668_v46  ;;  %v1678_v61 = vpack.c.bf16 %v1670_v47, %v1670_v47  ;;  %v12591_v11 = vpop.permute.xlu1 %2042 }
 0x15a   : > { %v2033_v47 = vmul.f32 %v12589_v10, %v1155_v32 }
 0x15b   : > { %11064 = vmatmul.mubr.msk.bf16.vlgmr.msra.gmra.mrb[60].mxu1 %vm411_vm2, %v1675_v53  ;;  %v12601_v31 = vpop.permute.xlu0 %2074  ;;  %v1198_v53 = vadd.f32 %v12509_v52, %v12597_v25 }
 0x15c   : > { %11074 = vmatpush3.bf16.msra.mxu1 %v12469_v15  ;;  %11075 = vmatprep.mubr.msk.bf16.mxu1 %vm12134_vm0, %v14857_v0 }
 0x15d   : > { %11085 = vmatprep.subr.bf16.mxu1 %v14857_v0  ;;  %v12593_v12 = vpop.permute.xlu1 %2062  ;;  %v2034_v51 = vmul.f32 %v12589_v10, %v1198_v53 }
 0x15f   : > { %11070 = vmatmul.mubr.msk.bf16.vlgmr.msra.gmra.mrb[64].mxu0 %vm411_vm2, %v1676_v30  ;;  %v12607_v46 = vpop.permute.xlu0 %2847 }
 0x160   : > { %11080 = vmatpush3.bf16.msra.mxu0 %v12469_v15  ;;  %11081 = vmatprep.mubr.msk.bf16.mxu0 %vm12134_vm0, %v14857_v0 }
 0x161   : > { %11091 = vmatprep.subr.bf16.mxu0 %v14857_v0  ;;  %v12595_v24 = vpop.permute.xlu1 %408 }
 0x163   : > { %11076 = vmatmul.mubr.msk.bf16.vlgmr.msra.gmra.mrb[64].mxu1 %vm411_vm2, %v1677_v35  ;;  %v12620_v49 = vpop.permute.xlu0 %3310 }
 0x164   : > { %11086 = vmatpush3.bf16.msra.mxu1 %v12469_v15  ;;  %11087 = vmatprep.mubr.msk.bf16.mxu1 %vm12134_vm0, %v14857_v0  ;;  %v10292_v15 = vld [vmem:[%s14821_s5 + $0x8] sm:$0xf]  ;;  %v3313_v39 = vmul.f32 %v12620_v49, %v1155_v32 }
 0x165   : > { %11097 = vmatprep.subr.bf16.mxu1 %v14857_v0  ;;  %v12583_v9 = vsel %vm1116_vm3, %v10292_v15, 0  ;;  %v12599_v56 = vpop.permute.xlu1 %2827 }
 0x167   : > { %11082 = vmatmul.mubr.msk.bf16.vlgmr.msra.gmra.mrb[68].mxu0 %vm411_vm2, %v1678_v61 }
 0x168   : > { %11093 = vmatprep.mubr.msk.bf16.mxu0 %vm12134_vm0, %v14857_v0  ;;  %11092 = vmatpush3.bf16.msra.mxu0 %v12583_v9 }
 0x169   : > { %11103 = vmatprep.subr.bf16.mxu0 %v14857_v0  ;;  %v12605_v43 = vpop.permute.xlu1 %2883 }
 0x16b   : > { %11088 = vmatmul.mubr.msk.bf16.vlgmr.msra.gmra.mrb[68].mxu1 %vm411_vm2, %v1679_v7 }
 0x16c   : > { %11099 = vmatprep.mubr.msk.bf16.mxu1 %vm12134_vm0, %v14857_v0  ;;  %11098 = vmatpush3.bf16.msra.mxu1 %v12583_v9 }
 0x16d   : > { %11109 = vmatprep.subr.bf16.mxu1 %v14857_v0  ;;  %v12613_v7 = vpop.permute.xlu1 %2903 }
 0x171   : > { %v12628_v63 = vpop.permute.xlu1 %3322 }
 0x222   : > { %v1720_v45 = vpop.f32.mrb[56].mxu0 }
 0x223   : > { %v2045_v30 = vmul.f32 %v12591_v11, %v1720_v45  ;;  %v11047_v35 = vpop.f32.mrb[57].mxu0  ;;  %v12624_v45 = vadd.f32 %v12513_v4, %v12597_v25 }
 0x224   : > { %v1723_v61 = vpop.f32.mrb[58].mxu0 }
 0x225   : > { %v2053_v15 = vadd.f32 %v2045_v30, %v2033_v47  ;;  %v11048_v5 = vpop.f32.mrb[59].mxu0  ;;  %v2035_v61 = vmul.f32 %v12589_v10, %v1241_v34 }
 0x226   : > { %v1763_v54 = vpop.f32.mrb[56].mxu1 }
 0x227   : > { %v2065_v44 = vmul.f32 %v12593_v12, %v2053_v15  ;;  %v2046_v60 = vmul.f32 %v12591_v11, %v1763_v54  ;;  %v11053_v28 = vpop.f32.mrb[57].mxu1 }
 0x228   : > { %v1766_v52 = vpop.f32.mrb[58].mxu1 }
 0x229   : > { %v2077_v5 = vadd.f32 %v12601_v31, %v2065_v44  ;;  %v2054_v47 = vadd.f32 %v2046_v60, %v2034_v51  ;;  %v11054_v30 = vpop.f32.mrb[59].mxu1  ;;  %v2036_v44 = vmul.f32 %v12589_v10, %v12624_v45 }
 0x22a   : > { %v1806_v35 = vpop.f32.mrb[60].mxu0 }
 0x22b   : > { %v2066_v15 = vmul.f32 %v12593_v12, %v2054_v47  ;;  %v2047_v28 = vmul.f32 %v12591_v11, %v1806_v35  ;;  %v11059_v54 = vpop.f32.mrb[61].mxu0  ;;  %v2117_v52 = vpack.c.bf16 %v2077_v5, %v2077_v5  ;;  %v3325_v4 = vmul.f32 %v12628_v63, %v2077_v5 }
 0x22c   : > { %v1809_v33 = vpop.f32.mrb[62].mxu0  ;;  %v12640_v47 = vadd.f32 %v12515_v18, %v12597_v25  ;;  %v2088_v32 = vmul.f32 0.25, %v2077_v5 }
 0x22d   : > { %v2078_v60 = vadd.f32 %v12601_v31, %v2066_v15  ;;  %v2055_v51 = vadd.f32 %v2047_v28, %v2035_v61  ;;  %v11060_v30 = vpop.f32.mrb[63].mxu0  ;;  %11094 = vmatmul.mubr.msk.bf16.vlgmr.msra.gmra.mrb[72].mxu0 %vm1112_vm4, %v2117_v52  ;;  %v2085_v33 = vmul.f32 0.75, %v2077_v5  ;;  %v12645_v54 = vadd.f32 %v3325_v4, %v3313_v39 }
 0x22e   : > { %v1849_v35 = vpop.f32.mrb[60].mxu1  ;;  %11104 = vmatpush3.bf16.msra.mxu0 %v12583_v9  ;;  %11105 = vmatprep.mubr.msk.bf16.mxu0 %vm12134_vm0, %v14857_v0  ;;  %v3314_v30 = vmul.f32 %v12620_v49, %v1198_v53  ;;  %v2037_v2 = vmul.f32 %v12589_v10, %v12640_v47 }
 0x22f   : > { %v2086_v22 = vmul.f32 0.25, %v2078_v60  ;;  %v2089_v15 = vmul.f32 0.75, %v2078_v60  ;;  %v2067_v61 = vmul.f32 %v12593_v12, %v2055_v51  ;;  %v2048_v28 = vmul.f32 %v12591_v11, %v1849_v35  ;;  %v11065_v52 = vpop.f32.mrb[61].mxu1  ;;  %11115 = vmatprep.subr.bf16.mxu0 %v14857_v0 }
 0x230   : > { %v1852_v18 = vpop.f32.mrb[62].mxu1  ;;  %v3326_v27 = vmul.f32 %v12628_v63, %v2078_v60  ;;  %v12657_v51 = vadd.f32 %v12517_v19, %v12597_v25 }
 0x231   : > { %v2079_v21 = vadd.f32 %v12601_v31, %v2067_v61  ;;  %v2056_v13 = vadd.f32 %v2048_v28, %v2036_v44  ;;  %v11066_v5 = vpop.f32.mrb[63].mxu1  ;;  %v2087_v39 = vadd.f32 %v2086_v22, %v2085_v33  ;;  %v2090_v4 = vadd.f32 %v2089_v15, %v2088_v32 }
 0x232   : > { %v1892_v35 = vpop.f32.mrb[64].mxu0  ;;  %v12659_v52 = vadd.f32 %v3326_v27, %v3314_v30  ;;  %v3315_v33 = vmul.f32 %v12620_v49, %v1241_v34  ;;  %v2038_v57 = vmul.f32 %v12589_v10, %v12657_v51 }
 0x233   : > { %v2091_v18 = vmul.f32 0.25, %v2079_v21  ;;  %v2093_v53 = vmul.f32 0.75, %v2079_v21  ;;  %v2068_v60 = vmul.f32 %v12593_v12, %v2056_v13  ;;  %v2049_v61 = vmul.f32 %v12591_v11, %v1892_v35  ;;  %v11071_v44 = vpop.f32.mrb[65].mxu0 }
 0x234   : > { %v1895_v32 = vpop.f32.mrb[66].mxu0  ;;  %v2118_v28 = vpack.c.bf16 %v2087_v39, %v2087_v39  ;;  %v2119_v5 = vpack.c.bf16 %v2090_v4, %v2090_v4  ;;  %v3327_v14 = vmul.f32 %v12628_v63, %v2079_v21  ;;  %v12670_v13 = vadd.f32 %v12519_v41, %v12597_v25 }
 0x235   : > { %v2080_v19 = vadd.f32 %v12601_v31, %v2068_v60  ;;  %v2057_v3 = vadd.f32 %v2049_v61, %v2037_v2  ;;  %v11072_v0 = vpop.f32.mrb[67].mxu0  ;;  %v2092_v27 = vadd.f32 %v2091_v18, %v2089_v15  ;;  %v2094_v30 = vadd.f32 %v2093_v53, %v2086_v22 }
 0x236   : > { %11100 = vmatmul.mubr.msk.bf16.vlgmr.msra.gmra.mrb[72].mxu1 %vm1112_vm4, %v2118_v28  ;;  %11106 = vmatmul.mubr.msk.bf16.vlgmr.msra.gmra.mrb[76].mxu0 %vm1112_vm4, %v2119_v5  ;;  %v1935_v34 = vpop.f32.mrb[64].mxu1  ;;  %v12674_v39 = vadd.f32 %v3327_v14, %v3315_v33  ;;  %v3316_v41 = vmul.f32 %v12620_v49, %v12624_v45  ;;  %v14873_v35 = vmov 0.0   ;;  %v2039_v45 = vmul.f32 %v12589_v10, %v12670_v13 }
 0x237   : > { %v2095_v21 = vmul.f32 0.25, %v2080_v19  ;;  %v2097_v4 = vmul.f32 0.75, %v2080_v19  ;;  %v2069_v0 = vmul.f32 %v12593_v12, %v2057_v3  ;;  %v2050_v2 = vmul.f32 %v12591_v11, %v1935_v34  ;;  %v11077_v22 = vpop.f32.mrb[65].mxu1  ;;  %11110 = vmatpush3.bf16.msra.mxu1 %v12583_v9  ;;  %11116 = vmatpush3.bf16.msra.mxu0 %v12583_v9 }
 0x238   : > { %v1938_v15 = vpop.f32.mrb[66].mxu1  ;;  %11111 = vmatprep.mubr.msk.bf16.mxu1 %vm12134_vm0, %v14873_v35  ;;  %11117 = vmatprep.mubr.msk.bf16.mxu0 %vm12134_vm0, %v14873_v35  ;;  %v3328_v14 = vmul.f32 %v12628_v63, %v2080_v19  ;;  %v1456_v33 = vadd.f32 %v12521_v42, %v12597_v25 }
 0x239   : > { %v2081_v3 = vadd.f32 %v12601_v31, %v2069_v0  ;;  %v2058_v60 = vadd.f32 %v2050_v2, %v2038_v57  ;;  %v11078_v61 = vpop.f32.mrb[67].mxu1  ;;  %11121 = vmatprep.subr.bf16.mxu1 %v14873_v35  ;;  %11127 = vmatprep.subr.bf16.mxu0 %v14873_v35  ;;  %v2096_v44 = vadd.f32 %v2095_v21, %v2093_v53 }
 0x23a   : > { %v1978_v32 = vpop.f32.mrb[68].mxu0  ;;  %v2098_v28 = vadd.f32 %v2097_v4, %v2091_v18  ;;  %v12694_v5 = vadd.f32 %v3328_v14, %v3316_v41  ;;  %v3317_v53 = vmul.f32 %v12620_v49, %v12640_v47  ;;  %v2120_v15 = vpack.c.bf16 %v2092_v27, %v2092_v27 }
 0x23b   : > { %v2099_v19 = vmul.f32 0.25, %v2081_v3  ;;  %v2101_v34 = vmul.f32 0.75, %v2081_v3  ;;  %v2070_v57 = vmul.f32 %v12593_v12, %v2058_v60  ;;  %v2051_v0 = vmul.f32 %v12591_v11, %v1978_v32  ;;  %v11083_v2 = vpop.f32.mrb[69].mxu0 }
 0x23c   : > { %v1981_v22 = vpop.f32.mrb[70].mxu0  ;;  %v2121_v61 = vpack.c.bf16 %v2094_v30, %v2094_v30  ;;  %v3329_v55 = vmul.f32 %v12628_v63, %v2081_v3  ;;  %v2040_v6 = vmul.f32 %v12589_v10, %v1456_v33  ;;  %v3318_v10 = vmul.f32 %v12620_v49, %v12657_v51 }
 0x23d   : > { %v2082_v42 = vadd.f32 %v12601_v31, %v2070_v57  ;;  %v2059_v25 = vadd.f32 %v2051_v0, %v2039_v45  ;;  %v11084_v18 = vpop.f32.mrb[71].mxu0  ;;  %v2100_v41 = vadd.f32 %v2099_v19, %v2097_v4  ;;  %v2102_v14 = vadd.f32 %v2101_v34, %v2095_v21 }
 0x23e   : > { %11112 = vmatmul.mubr.msk.bf16.vlgmr.msra.gmra.mrb[76].mxu1 %vm1112_vm4, %v2120_v15  ;;  %11118 = vmatmul.mubr.msk.bf16.vlgmr.msra.gmra.mrb[80].mxu0 %vm1112_vm4, %v2121_v61  ;;  %v2021_v60 = vpop.f32.mrb[68].mxu1  ;;  %v12705_v32 = vadd.f32 %v3329_v55, %v3317_v53  ;;  %v3319_v61 = vmul.f32 %v12620_v49, %v12670_v13 }
 0x23f   : > { %v2103_v47 = vmul.f32 0.25, %v2082_v42  ;;  %v2105_v27 = vmul.f32 0.75, %v2082_v42  ;;  %v2071_v30 = vmul.f32 %v12593_v12, %v2059_v25  ;;  %v2052_v3 = vmul.f32 %v12591_v11, %v2021_v60  ;;  %v11089_v57 = vpop.f32.mrb[69].mxu1  ;;  %11122 = vmatpush3.bf16.msra.mxu1 %v12583_v9  ;;  %11128 = vmatpush3.bf16.msra.mxu0 %v12583_v9 }
 0x240   : > { %v2024_v21 = vpop.f32.mrb[70].mxu1  ;;  %11123 = vmatprep.mubr.msk.bf16.mxu1 %vm12134_vm0, %v14873_v35  ;;  %11129 = vmatprep.mubr.msk.bf16.mxu0 %vm12134_vm0, %v14873_v35  ;;  %v3330_v55 = vmul.f32 %v12628_v63, %v2082_v42  ;;  %v2122_v42 = vpack.c.bf16 %v2096_v44, %v2096_v44  ;;  %v2123_v25 = vpack.c.bf16 %v2098_v28, %v2098_v28 }
 0x241   : > { %v2083_v4 = vadd.f32 %v12601_v31, %v2071_v30  ;;  %v2060_v11 = vadd.f32 %v2052_v3, %v2040_v6  ;;  %v11090_v45 = vpop.f32.mrb[71].mxu1  ;;  %11133 = vmatprep.subr.bf16.mxu1 %v14873_v35  ;;  %11139 = vmatprep.subr.bf16.mxu0 %v14873_v35  ;;  %v2104_v0 = vadd.f32 %v2103_v47, %v2101_v34  ;;  %v12788_v21 = vld [vmem:[%s14821_s5 + $0x10] sm:$0xff]  }
 0x242   : > { %v2106_v2 = vadd.f32 %v2105_v27, %v2099_v19  ;;  %v12721_v51 = vadd.f32 %v3330_v55, %v3318_v10  ;;  %v3320_v44 = vmul.f32 %v12620_v49, %v1456_v33  ;;  %v2125_v3 = vpack.c.bf16 %v2102_v14, %v2102_v14  ;;  %v12798_v55 = vld [vmem:[%s14820_s4] sm:$0xff] }
 0x243   : > { %v2107_v53 = vmul.f32 0.25, %v2083_v4  ;;  %v2109_v22 = vmul.f32 0.75, %v2083_v4  ;;  %v2072_v15 = vmul.f32 %v12593_v12, %v2060_v11  ;;  %v3331_v6 = vmul.f32 %v12628_v63, %v2083_v4 }
 0x244   : > { %v2126_v49 = vpack.c.bf16 %v2104_v0, %v2104_v0  ;;  %v454_v4 = vadd.f32 %v12475_v16, %v12595_v24 }
 0x245   : > { %v2084_v18 = vadd.f32 %v12601_v31, %v2072_v15  ;;  %v2108_v60 = vadd.f32 %v2107_v53, %v2105_v27  ;;  %v2110_v30 = vadd.f32 %v2109_v22, %v2103_v47  ;;  %v12730_v19 = vadd.f32 %v3331_v6, %v3319_v61 }
 0x246   : > { %11124 = vmatmul.mubr.msk.bf16.vlgmr.msra.gmra.mrb[80].mxu1 %vm1112_vm4, %v2122_v42  ;;  %11130 = vmatmul.mubr.msk.bf16.vlgmr.msra.gmra.mrb[84].mxu0 %vm1112_vm4, %v2123_v25  ;;  %v2124_v27 = vpack.c.bf16 %v2100_v41, %v2100_v41  ;;  %v2830_v45 = vmul.f32 %v12599_v56, %v454_v4  ;;  %v497_v61 = vadd.f32 %v12477_v17, %v12595_v24 }
 0x247   : > { %11134 = vmatpush3.bf16.msra.mxu1 %v12583_v9  ;;  %11140 = vmatpush3.bf16.msra.mxu0 %v12583_v9  ;;  %v2111_v12 = vmul.f32 0.25, %v2084_v18  ;;  %v2113_v13 = vmul.f32 0.75, %v2084_v18  ;;  %v3332_v31 = vmul.f32 %v12628_v63, %v2084_v18  ;;  %v2127_v63 = vpack.c.bf16 %v2106_v2, %v2106_v2 }
 0x248   : > { %11135 = vmatprep.mubr.msk.bf16.mxu1 %vm12134_vm0, %v14873_v35  ;;  %11141 = vmatprep.mubr.msk.bf16.mxu0 %vm12134_vm0, %v14873_v35  ;;  %v2128_v33 = vpack.c.bf16 %v2108_v60, %v2108_v60  ;;  %v2129_v41 = vpack.c.bf16 %v2110_v30, %v2110_v30  ;;  %v2132_v10 = vpack.c.bf16 %v2084_v18, %v2084_v18 }
 0x249   : > { %11145 = vmatprep.subr.bf16.mxu1 %v14873_v35  ;;  %11151 = vmatprep.subr.bf16.mxu0 %v14873_v35  ;;  %v2112_v28 = vadd.f32 %v2111_v12, %v2109_v22  ;;  %v2114_v34 = vadd.f32 %v2113_v13, %v2107_v53  ;;  %v12742_v47 = vadd.f32 %v3332_v31, %v3320_v44 }
 0x24a   : > { %v540_v42 = vadd.f32 %v12479_v26, %v12595_v24  ;;  %v2831_v6 = vmul.f32 %v12599_v56, %v497_v61 }
 0x24b   : > { %v2130_v14 = vpack.c.bf16 %v2112_v28, %v2112_v28  ;;  %v2131_v57 = vpack.c.bf16 %v2114_v34, %v2114_v34 }
 0x24c   : > { %v2832_v16 = vmul.f32 %v12599_v56, %v540_v42 }
 0x24e   : > { %11136 = vmatmul.mubr.msk.bf16.vlgmr.msra.gmra.mrb[84].mxu1 %vm1112_vm4, %v2124_v27  ;;  %11142 = vmatmul.mubr.msk.bf16.vlgmr.msra.gmra.mrb[88].mxu0 %vm1112_vm4, %v2125_v3  ;;  %v583_v3 = vadd.f32 %v12481_v29, %v12595_v24 }
 0x24f   : > { %11146 = vmatpush3.bf16.msra.mxu1 %v12583_v9  ;;  %11152 = vmatpush3.bf16.msra.mxu0 %v12583_v9 }
 0x250   : > { %11147 = vmatprep.mubr.msk.bf16.mxu1 %vm12134_vm0, %v14873_v35  ;;  %11153 = vmatprep.mubr.msk.bf16.mxu0 %vm12134_vm0, %v14873_v35 }
 0x251   : > { %11157 = vmatprep.subr.bf16.mxu1 %v14873_v35  ;;  %11163 = vmatprep.subr.bf16.mxu0 %v14873_v35 }
 0x256   : > { %11148 = vmatmul.mubr.msk.bf16.vlgmr.msra.gmra.mrb[88].mxu1 %vm1112_vm4, %v2126_v49  ;;  %11154 = vmatmul.mubr.msk.bf16.vlgmr.msra.gmra.mrb[92].mxu0 %vm1112_vm4, %v2127_v63  ;;  %v626_v49 = vadd.f32 %v12483_v38, %v12595_v24 }
 0x257   : > { %11158 = vmatpush3.bf16.msra.mxu1 %v12583_v9  ;;  %11164 = vmatpush3.bf16.msra.mxu0 %v12583_v9 }
 0x258   : > { %11159 = vmatprep.mubr.msk.bf16.mxu1 %vm12134_vm0, %v14873_v35  ;;  %11165 = vmatprep.mubr.msk.bf16.mxu0 %vm12134_vm0, %v14873_v35 }
 0x259   : > { %11169 = vmatprep.subr.bf16.mxu1 %v14873_v35  ;;  %11175 = vmatprep.subr.bf16.mxu0 %v14873_v35 }
 0x25e   : > { %11160 = vmatmul.mubr.msk.bf16.vlgmr.msra.gmra.mrb[92].mxu1 %vm1112_vm4, %v2128_v33  ;;  %11166 = vmatmul.mubr.msk.bf16.vlgmr.msra.gmra.mrb[96].mxu0 %vm1112_vm4, %v2129_v41 }
 0x25f   : > { %11170 = vmatpush3.bf16.msra.mxu1 %v12583_v9  ;;  %11176 = vmatpush3.bf16.msra.mxu0 %v12583_v9 }
 0x260   : > { %11171 = vmatprep.mubr.msk.bf16.mxu1 %vm12134_vm0, %v14873_v35  ;;  %11177 = vmatprep.mubr.msk.bf16.mxu0 %vm12134_vm0, %v14873_v35 }
 0x261   : > { %11181 = vmatprep.subr.bf16.mxu1 %v14873_v35  ;;  %11187 = vmatprep.subr.bf16.mxu0 %v14873_v35 }
 0x266   : > { %11172 = vmatmul.mubr.msk.bf16.vlgmr.msra.gmra.mrb[96].mxu1 %vm1112_vm4, %v2130_v14  ;;  %11178 = vmatmul.mubr.msk.bf16.vlgmr.msra.gmra.mrb[100].mxu0 %vm1112_vm4, %v2131_v57  ;;  %v2833_v14 = vmul.f32 %v12599_v56, %v583_v3  ;;  %v2834_v57 = vmul.f32 %v12599_v56, %v626_v49 }
 0x267   : > { %11182 = vmatpush3.bf16.msra.mxu1 %v12583_v9  ;;  %11183 = vmatprep.mubr.msk.bf16.mxu1 %vm12134_vm0, %v14873_v35  ;;  %v14864_v9 = vmov 7  }
 0x268   : > { %11189 = vmatprep.mubr.msk.bf16.mxu0 %vm12134_vm0, %v14873_v35  ;;  %11193 = vmatprep.subr.bf16.mxu1 %v14873_v35 }
 0x269   : > { %11188 = vmatpush3.bf16.msra.mxu0 %v12788_v21  ;;  %12071 = vset.pattern.permute.xlu0 %v14864_v9 }
 0x26a   : > { %11199 = vmatprep.subr.bf16.mxu0 %v14873_v35  ;;  %3362 = vperm.xlu0 %12071, %v12798_v55  }
 0x26e   : > { %11184 = vmatmul.mubr.msk.bf16.vlgmr.msra.gmra.mrb[100].mxu1 %vm1112_vm4, %v2132_v10 }
 0x26f   : > { %11195 = vmatprep.mubr.msk.bf16.mxu1 %vm12134_vm0, %v14873_v35  ;;  %11194 = vmatpush3.bf16.msra.mxu1 %v12788_v21 }
 0x270   : > { %11205 = vmatprep.subr.bf16.mxu1 %v14873_v35 }
 0x300   : > { %v2173_v11 = vpop.f32.mrb[72].mxu0 }
 0x301   : > { %v2850_v0 = vmul.f32 %v12607_v46, %v2173_v11  ;;  %v11095_v2 = vpop.f32.mrb[73].mxu0 }
 0x302   : > { %v2176_v53 = vpop.f32.mrb[74].mxu0 }
 0x303   : > { %v2866_v22 = vadd.f32 %v2850_v0, %v2830_v45  ;;  %v11096_v15 = vpop.f32.mrb[75].mxu0 }
 0x305   : > { %v2886_v60 = vmul.f32 %v12605_v43, %v2866_v22 }
 0x307   : > { %v12819_v63 = vadd.f32 %v12613_v7, %v2886_v60  ;;  %v712_v60 = vadd.f32 %v12487_v48, %v12595_v24 }
 0x309   : > { %v2216_v25 = vpop.f32.mrb[72].mxu1  ;;  %v2259_v18 = vpop.f32.mrb[76].mxu0  ;;  %v2922_v29 = vmul.f32 0.5, %v12819_v63 }
 0x30a   : > { %v2851_v30 = vmul.f32 %v12607_v46, %v2216_v25  ;;  %v2852_v12 = vmul.f32 %v12607_v46, %v2259_v18  ;;  %v11101_v13 = vpop.f32.mrb[73].mxu1  ;;  %v11107_v44 = vpop.f32.mrb[77].mxu0 }
 0x30b   : > { %v2219_v31 = vpop.f32.mrb[74].mxu1  ;;  %v2262_v28 = vpop.f32.mrb[78].mxu0 }
 0x30c   : > { %v2867_v17 = vadd.f32 %v2851_v30, %v2831_v6  ;;  %v2868_v34 = vadd.f32 %v2852_v12, %v2832_v16  ;;  %v11102_v27 = vpop.f32.mrb[75].mxu1  ;;  %v11108_v26 = vpop.f32.mrb[79].mxu0  ;;  %v669_v16 = vadd.f32 %v12485_v40, %v12595_v24  ;;  %v2836_v28 = vmul.f32 %v12599_v56, %v712_v60 }
 0x30e   : > { %v2887_v33 = vmul.f32 %v12605_v43, %v2867_v17  ;;  %v2888_v10 = vmul.f32 %v12605_v43, %v2868_v34  ;;  %v2835_v31 = vmul.f32 %v12599_v56, %v669_v16 }
 0x310   : > { %v12823_v41 = vadd.f32 %v12613_v7, %v2887_v33  ;;  %v12837_v30 = vadd.f32 %v12613_v7, %v2888_v10 }
 0x311   : > { %v2302_v4 = vpop.f32.mrb[76].mxu1  ;;  %v2345_v11 = vpop.f32.mrb[80].mxu0 }
 0x312   : > { %v2923_v38 = vmul.f32 0.5, %v12823_v41  ;;  %v2853_v45 = vmul.f32 %v12607_v46, %v2302_v4  ;;  %v2854_v0 = vmul.f32 %v12607_v46, %v2345_v11  ;;  %v11113_v2 = vpop.f32.mrb[77].mxu1  ;;  %v11119_v53 = vpop.f32.mrb[81].mxu0  ;;  %v2925_v40 = vmul.f32 0.5, %v12837_v30 }
 0x313   : > { %v2305_v22 = vpop.f32.mrb[78].mxu1  ;;  %v2348_v15 = vpop.f32.mrb[82].mxu0 }
 0x314   : > { %v2869_v61 = vadd.f32 %v2853_v45, %v2833_v14  ;;  %v2870_v42 = vadd.f32 %v2854_v0, %v2834_v57  ;;  %v11114_v25 = vpop.f32.mrb[79].mxu1  ;;  %v11120_v6 = vpop.f32.mrb[83].mxu0  ;;  %v2924_v18 = vadd.f32 %v2923_v38, %v2922_v29  ;;  %v755_v45 = vadd.f32 %v12489_v50, %v12595_v24 }
 0x315   : > { %v798_v0 = vadd.f32 %v12491_v58, %v12595_v24 }
 0x316   : > { %v2889_v12 = vmul.f32 %v12605_v43, %v2869_v61  ;;  %v2949_v13 = vpack.c.bf16 %v2924_v18, %v2924_v18  ;;  %v2890_v27 = vmul.f32 %v12605_v43, %v2870_v42  ;;  %v2837_v61 = vmul.f32 %v12599_v56, %v755_v45 }
 0x317   : > { %v2838_v42 = vmul.f32 %v12599_v56, %v798_v0 }
 0x318   : > { %v12841_v44 = vadd.f32 %v12613_v7, %v2889_v12  ;;  %11190 = vmatmul.mubr.msk.bf16.vlgmr.msra.gmra.mrb[104].mxu0 %vm1475_vm5, %v2949_v13  ;;  %v12860_v2 = vadd.f32 %v12613_v7, %v2890_v27 }
 0x319   : > { %v2388_v17 = vpop.f32.mrb[80].mxu1  ;;  %v2431_v34 = vpop.f32.mrb[84].mxu0  ;;  %11200 = vmatpush3.bf16.msra.mxu0 %v12788_v21  ;;  %11201 = vmatprep.mubr.msk.bf16.mxu0 %vm12134_vm0, %v14873_v35 }
 0x31a   : > { %v2926_v48 = vmul.f32 0.5, %v12841_v44  ;;  %v2855_v26 = vmul.f32 %v12607_v46, %v2388_v17  ;;  %v2856_v3 = vmul.f32 %v12607_v46, %v2431_v34  ;;  %v11125_v49 = vpop.f32.mrb[81].mxu1  ;;  %v11131_v33 = vpop.f32.mrb[85].mxu0  ;;  %11211 = vmatprep.subr.bf16.mxu0 %v14873_v35  ;;  %v2928_v58 = vmul.f32 0.5, %v12860_v2 }
 0x31b   : > { %v2391_v14 = vpop.f32.mrb[82].mxu1  ;;  %v2434_v57 = vpop.f32.mrb[86].mxu0 }
 0x31c   : > { %v2871_v10 = vadd.f32 %v2855_v26, %v2835_v31  ;;  %v2872_v4 = vadd.f32 %v2856_v3, %v2836_v28  ;;  %v11126_v11 = vpop.f32.mrb[83].mxu1  ;;  %v11132_v29 = vpop.f32.mrb[87].mxu0  ;;  %v2927_v38 = vadd.f32 %v2926_v48, %v2925_v40  ;;  %v841_v26 = vadd.f32 %v12493_v59, %v12595_v24 }
 0x31d   : > { %v884_v3 = vadd.f32 %v12495_v1, %v12595_v24 }
 0x31e   : > { %v2891_v53 = vmul.f32 %v12605_v43, %v2871_v10  ;;  %v2950_v22 = vpack.c.bf16 %v2927_v38, %v2927_v38  ;;  %v2892_v50 = vmul.f32 %v12605_v43, %v2872_v4  ;;  %v2839_v10 = vmul.f32 %v12599_v56, %v841_v26 }
 0x31f   : > { %v2840_v4 = vmul.f32 %v12599_v56, %v884_v3 }
 0x320   : > { %v12864_v15 = vadd.f32 %v12613_v7, %v2891_v53  ;;  %11196 = vmatmul.mubr.msk.bf16.vlgmr.msra.gmra.mrb[104].mxu1 %vm1475_vm5, %v2950_v22  ;;  %v12883_v49 = vadd.f32 %v12613_v7, %v2892_v50 }
 0x321   : > { %v2474_v25 = vpop.f32.mrb[84].mxu1  ;;  %v2517_v6 = vpop.f32.mrb[88].mxu0  ;;  %11206 = vmatpush3.bf16.msra.mxu1 %v12788_v21  ;;  %11207 = vmatprep.mubr.msk.bf16.mxu1 %vm12134_vm0, %v14873_v35 }
 0x322   : > { %v2929_v18 = vmul.f32 0.5, %v12864_v15  ;;  %v2857_v16 = vmul.f32 %v12607_v46, %v2474_v25  ;;  %v2858_v60 = vmul.f32 %v12607_v46, %v2517_v6  ;;  %v11137_v12 = vpop.f32.mrb[85].mxu1  ;;  %v11143_v13 = vpop.f32.mrb[89].mxu0  ;;  %11217 = vmatprep.subr.bf16.mxu1 %v14873_v35  ;;  %v2931_v59 = vmul.f32 0.5, %v12883_v49 }
 0x323   : > { %v2477_v31 = vpop.f32.mrb[86].mxu1  ;;  %v2520_v28 = vpop.f32.mrb[90].mxu0 }
 0x324   : > { %v2873_v40 = vadd.f32 %v2857_v16, %v2837_v61  ;;  %v2874_v17 = vadd.f32 %v2858_v60, %v2838_v42  ;;  %v11138_v34 = vpop.f32.mrb[87].mxu1  ;;  %v11144_v48 = vpop.f32.mrb[91].mxu0  ;;  %v2930_v27 = vadd.f32 %v2929_v18, %v2928_v58  ;;  %v927_v16 = vadd.f32 %v12497_v8, %v12595_v24 }
 0x325   : > { %v970_v60 = vadd.f32 %v12499_v20, %v12595_v24 }
 0x326   : > { %v2893_v33 = vmul.f32 %v12605_v43, %v2873_v40  ;;  %v2951_v14 = vpack.c.bf16 %v2930_v27, %v2930_v27  ;;  %v2894_v38 = vmul.f32 %v12605_v43, %v2874_v17  ;;  %v2841_v40 = vmul.f32 %v12599_v56, %v927_v16 }
 0x327   : > { %v2842_v17 = vmul.f32 %v12599_v56, %v970_v60 }
 0x328   : > { %v12887_v57 = vadd.f32 %v12613_v7, %v2893_v33  ;;  %11202 = vmatmul.mubr.msk.bf16.vlgmr.msra.gmra.mrb[108].mxu0 %vm1475_vm5, %v2951_v14  ;;  %v12906_v12 = vadd.f32 %v12613_v7, %v2894_v38 }
 0x329   : > { %v2560_v11 = vpop.f32.mrb[88].mxu1  ;;  %v2603_v29 = vpop.f32.mrb[92].mxu0  ;;  %11212 = vmatpush3.bf16.msra.mxu0 %v12788_v21  ;;  %11213 = vmatprep.mubr.msk.bf16.mxu0 %vm12134_vm0, %v14873_v35 }
 0x32a   : > { %v2932_v1 = vmul.f32 0.5, %v12887_v57  ;;  %v2859_v45 = vmul.f32 %v12607_v46, %v2560_v11  ;;  %v2860_v0 = vmul.f32 %v12607_v46, %v2603_v29  ;;  %v11149_v53 = vpop.f32.mrb[89].mxu1  ;;  %v11155_v22 = vpop.f32.mrb[93].mxu0  ;;  %11223 = vmatprep.subr.bf16.mxu0 %v14873_v35  ;;  %v2934_v20 = vmul.f32 0.5, %v12906_v12 }
 0x32b   : > { %v2563_v61 = vpop.f32.mrb[90].mxu1  ;;  %v2606_v42 = vpop.f32.mrb[94].mxu0 }
 0x32c   : > { %v2875_v50 = vadd.f32 %v2859_v45, %v2839_v10  ;;  %v2876_v25 = vadd.f32 %v2860_v0, %v2840_v4  ;;  %v11150_v6 = vpop.f32.mrb[91].mxu1  ;;  %v11156_v58 = vpop.f32.mrb[95].mxu0  ;;  %v2933_v18 = vadd.f32 %v2932_v1, %v2931_v59  ;;  %v1013_v45 = vadd.f32 %v12501_v23, %v12595_v24 }
 0x32d   : > { %v1056_v0 = vadd.f32 %v12503_v36, %v12595_v24 }
 0x32e   : > { %v2895_v13 = vmul.f32 %v12605_v43, %v2875_v50  ;;  %v2952_v31 = vpack.c.bf16 %v2933_v18, %v2933_v18  ;;  %v2896_v8 = vmul.f32 %v12605_v43, %v2876_v25  ;;  %v2843_v50 = vmul.f32 %v12599_v56, %v1013_v45 }
 0x32f   : > { %v2844_v25 = vmul.f32 %v12599_v56, %v1056_v0 }
 0x330   : > { %v12910_v28 = vadd.f32 %v12613_v7, %v2895_v13  ;;  %11208 = vmatmul.mubr.msk.bf16.vlgmr.msra.gmra.mrb[108].mxu1 %vm1475_vm5, %v2952_v31  ;;  %v12929_v53 = vadd.f32 %v12613_v7, %v2896_v8 }
 0x331   : > { %v2646_v34 = vpop.f32.mrb[92].mxu1  ;;  %v2689_v48 = vpop.f32.mrb[96].mxu0  ;;  %11218 = vmatpush3.bf16.msra.mxu1 %v12788_v21  ;;  %11219 = vmatprep.mubr.msk.bf16.mxu1 %vm12134_vm0, %v14873_v35 }
 0x332   : > { %v2935_v27 = vmul.f32 0.5, %v12910_v28  ;;  %v2861_v26 = vmul.f32 %v12607_v46, %v2646_v34  ;;  %v2862_v3 = vmul.f32 %v12607_v46, %v2689_v48  ;;  %v11161_v33 = vpop.f32.mrb[93].mxu1  ;;  %v11167_v14 = vpop.f32.mrb[97].mxu0  ;;  %11229 = vmatprep.subr.bf16.mxu1 %v14873_v35  ;;  %v2937_v23 = vmul.f32 0.5, %v12929_v53 }
 0x333   : > { %v2649_v10 = vpop.f32.mrb[94].mxu1  ;;  %v2692_v4 = vpop.f32.mrb[98].mxu0 }
 0x334   : > { %v2877_v59 = vadd.f32 %v2861_v26, %v2841_v40  ;;  %v2878_v11 = vadd.f32 %v2862_v3, %v2842_v17  ;;  %v11162_v29 = vpop.f32.mrb[95].mxu1  ;;  %v11168_v1 = vpop.f32.mrb[99].mxu0  ;;  %v2936_v38 = vadd.f32 %v2935_v27, %v2934_v20  ;;  %v1099_v26 = vadd.f32 %v12505_v37, %v12595_v24 }
 0x336   : > { %v2897_v22 = vmul.f32 %v12605_v43, %v2877_v59  ;;  %v2953_v61 = vpack.c.bf16 %v2936_v38, %v2936_v38  ;;  %v2898_v18 = vmul.f32 %v12605_v43, %v2878_v11  ;;  %v2845_v4 = vmul.f32 %v12599_v56, %v1099_v26 }
 0x338   : > { %v12933_v42 = vadd.f32 %v12613_v7, %v2897_v22  ;;  %11214 = vmatmul.mubr.msk.bf16.vlgmr.msra.gmra.mrb[112].mxu0 %vm1475_vm5, %v2953_v61  ;;  %v12950_v3 = vadd.f32 %v12613_v7, %v2898_v18  ;;  %v14874_v18 = vmov 2  }
 0x339   : > { %v2732_v6 = vpop.f32.mrb[96].mxu1  ;;  %v2775_v58 = vpop.f32.mrb[100].mxu0  ;;  %11224 = vmatpush3.bf16.msra.mxu0 %v12788_v21  ;;  %11225 = vmatprep.mubr.msk.bf16.mxu0 %vm12134_vm0, %v14873_v35 }
 0x33a   : > { %v2938_v36 = vmul.f32 0.5, %v12933_v42  ;;  %v2863_v16 = vmul.f32 %v12607_v46, %v2732_v6  ;;  %v2864_v60 = vmul.f32 %v12607_v46, %v2775_v58  ;;  %v11173_v13 = vpop.f32.mrb[97].mxu1  ;;  %v11179_v31 = vpop.f32.mrb[101].mxu0  ;;  %11235 = vmatprep.subr.bf16.mxu0 %v14873_v35  ;;  %v2940_v37 = vmul.f32 0.5, %v12950_v3 }
 0x33b   : > { %v2735_v40 = vpop.f32.mrb[98].mxu1  ;;  %v2778_v17 = vpop.f32.mrb[102].mxu0  ;;  %v14863_v58 = vmov 19  }
 0x33c   : > { %v2879_v8 = vadd.f32 %v2863_v16, %v2843_v50  ;;  %v2880_v34 = vadd.f32 %v2864_v60, %v2844_v25  ;;  %v11174_v48 = vpop.f32.mrb[99].mxu1  ;;  %v11180_v20 = vpop.f32.mrb[103].mxu0  ;;  %v2939_v27 = vadd.f32 %v2938_v36, %v2937_v23  ;;  %12074 = vset.pattern.permute.xlu0 %v14863_v58  ;;  %v14862_v36 = vmov 9  }
 0x33d   : > { %12075 = vset.pattern.permute.xlu1 %v14862_v36  ;;  %3589 = vperm.xlu0 %12074, %v12798_v55   ;;  %v14865_v16 = vmov 10   ;;  %v14875_v60 = vmov 1   ;;  %v12999_v13 = vpop.permute.xlu1 %3342  ;;  %v13003_v20 = vpop.permute.xlu0 %3362 }
 0x33e   : > { %v2899_v33 = vmul.f32 %v12605_v43, %v2879_v8  ;;  %v2954_v14 = vpack.c.bf16 %v2939_v27, %v2939_v27  ;;  %v2900_v11 = vmul.f32 %v12605_v43, %v2880_v34  ;;  %3601 = vperm.xlu1 %12075, %v12798_v55  }
 0x340   : > { %v12954_v10 = vadd.f32 %v12613_v7, %v2899_v33  ;;  %11220 = vmatmul.mubr.msk.bf16.vlgmr.msra.gmra.mrb[112].mxu1 %vm1475_vm5, %v2954_v14 }
 0x341   : > { %v2818_v59 = vpop.f32.mrb[100].mxu1  ;;  %11230 = vmatpush3.bf16.msra.mxu1 %v12788_v21  ;;  %11231 = vmatprep.mubr.msk.bf16.mxu1 %vm12134_vm0, %v14873_v35  ;;  %v12967_v21 = vadd.f32 %v12613_v7, %v2900_v11 }
 0x342   : > { %v2941_v24 = vmul.f32 0.5, %v12954_v10  ;;  %v2865_v29 = vmul.f32 %v12607_v46, %v2818_v59  ;;  %v11185_v1 = vpop.f32.mrb[101].mxu1  ;;  %11241 = vmatprep.subr.bf16.mxu1 %v14873_v35  ;;  %12077 = vset.pattern.permute.xlu0 %v14874_v18 }
 0x343   : > { %v2821_v38 = vpop.f32.mrb[102].mxu1  ;;  %v2943_v46 = vmul.f32 0.5, %v12967_v21  ;;  %12076 = vset.pattern.permute.xlu1 %v14865_v16 }
 0x344   : > { %v2881_v45 = vadd.f32 %v2865_v29, %v2845_v4  ;;  %v11186_v56 = vpop.f32.mrb[103].mxu1  ;;  %v2942_v0 = vadd.f32 %v2941_v24, %v2940_v37  ;;  %3609 = vperm.xlu1 %12076, %v12798_v55   ;;  %v13008_v37 = vpop.permute.xlu1 %3374 }
 0x346   : > { %v2901_v22 = vmul.f32 %v12605_v43, %v2881_v45  ;;  %v2955_v61 = vpack.c.bf16 %v2942_v0, %v2942_v0  ;;  %v10320_v43 = vld [vmem:[%s14821_s5 + $0x18] sm:$0xf] }
 0x348   : > { %v12971_v50 = vadd.f32 %v12613_v7, %v2901_v22  ;;  %11226 = vmatmul.mubr.msk.bf16.vlgmr.msra.gmra.mrb[116].mxu0 %vm1475_vm5, %v2955_v61  ;;  %v12985_v7 = vsel %vm1116_vm3, %v10320_v43, 0  ;;  %12078 = vset.pattern.permute.xlu1 %v14875_v60 }
 0x349   : > { %11237 = vmatprep.mubr.msk.bf16.mxu0 %vm12134_vm0, %v14873_v35  ;;  %11236 = vmatpush3.bf16.msra.mxu0 %v12985_v7 }
 0x34a   : > { %v2944_v25 = vmul.f32 0.5, %v12971_v50  ;;  %11247 = vmatprep.subr.bf16.mxu0 %v14873_v35 }
 0x34c   : > { %v2945_v23 = vadd.f32 %v2944_v25, %v2943_v46 }
 0x34e   : > { %v2956_v6 = vpack.c.bf16 %v2945_v23, %v2945_v23 }
 0x350   : > { %11232 = vmatmul.mubr.msk.bf16.vlgmr.msra.gmra.mrb[116].mxu1 %vm1475_vm5, %v2956_v6 }
 0x351   : > { %11243 = vmatprep.mubr.msk.bf16.mxu1 %vm12134_vm0, %v14873_v35  ;;  %11242 = vmatpush3.bf16.msra.mxu1 %v12985_v7 }
 0x352   : > { %11253 = vmatprep.subr.bf16.mxu1 %v14873_v35 }
 0x3eb   : > { %v3000_v31 = vpop.f32.mrb[104].mxu0 }
 0x3ec   : > { %v3345_v40 = vmul.f32 %v12999_v13, %v3000_v31  ;;  %v11191_v17 = vpop.f32.mrb[105].mxu0 }
 0x3ed   : > { %v3003_v8 = vpop.f32.mrb[106].mxu0 }
 0x3ee   : > { %v3353_v34 = vadd.f32 %v3345_v40, %v12645_v54  ;;  %v11192_v48 = vpop.f32.mrb[107].mxu0 }
 0x3f0   : > { %v3365_v55 = vmul.f32 %v13003_v20, %v3353_v34 }
 0x3f2   : > { %v13012_v11 = vadd.f32 %v13008_v37, %v3365_v55 }
 0x3f3   : > { %v3043_v27 = vpop.f32.mrb[104].mxu1 }
 0x3f4   : > { %v3346_v26 = vmul.f32 %v12999_v13, %v3043_v27  ;;  %v11197_v33 = vpop.f32.mrb[105].mxu1  ;;  %v3385_v56 = vmul.f32 0.5, %v13012_v11 }
 0x3f5   : > { %v3046_v14 = vpop.f32.mrb[106].mxu1 }
 0x3f6   : > { %v3354_v4 = vadd.f32 %v3346_v26, %v12659_v52  ;;  %v11198_v59 = vpop.f32.mrb[107].mxu1 }
 0x3f8   : > { %v3366_v24 = vmul.f32 %v13003_v20, %v3354_v4 }
 0x3fa   : > { %v13015_v54 = vadd.f32 %v13008_v37, %v3366_v24 }
 0x3fb   : > { %v3086_v29 = vpop.f32.mrb[108].mxu0 }
 0x3fc   : > { %v3386_v1 = vmul.f32 0.5, %v13015_v54  ;;  %v3347_v38 = vmul.f32 %v12999_v13, %v3086_v29  ;;  %v11203_v45 = vpop.f32.mrb[109].mxu0 }
 0x3fd   : > { %v3089_v52 = vpop.f32.mrb[110].mxu0 }
 0x3fe   : > { %v3355_v0 = vadd.f32 %v3347_v38, %v12674_v39  ;;  %v11204_v22 = vpop.f32.mrb[111].mxu0  ;;  %v3387_v61 = vadd.f32 %v3386_v1, %v3385_v56 }
 0x400   : > { %v3399_v46 = vpack.c.bf16 %v3387_v61, %v3387_v61  ;;  %v3367_v23 = vmul.f32 %v13003_v20, %v3355_v0 }
 0x402   : > { %11238 = vmatmul.mubr.msk.bf16.vlgmr.msra.gmra.mrb[120].mxu0 %vm1112_vm4, %v3399_v46  ;;  %v13030_v17 = vadd.f32 %v13008_v37, %v3367_v23 }
 0x403   : > { %v3129_v25 = vpop.f32.mrb[108].mxu1  ;;  %11248 = vmatpush3.bf16.msra.mxu0 %v12985_v7  ;;  %11249 = vmatprep.mubr.msk.bf16.mxu0 %vm12134_vm0, %v14873_v35 }
 0x404   : > { %v3348_v6 = vmul.f32 %v12999_v13, %v3129_v25  ;;  %v11209_v43 = vpop.f32.mrb[109].mxu1  ;;  %11259 = vmatprep.subr.bf16.mxu0 %v14873_v35  ;;  %v3388_v27 = vmul.f32 0.5, %v13030_v17 }
 0x405   : > { %v3132_v31 = vpop.f32.mrb[110].mxu1 }
 0x406   : > { %v3356_v39 = vadd.f32 %v3348_v6, %v12694_v5  ;;  %v11210_v40 = vpop.f32.mrb[111].mxu1 }
 0x407   : > { %v3618_v40 = vpack.c.bf16 %v12819_v63, %v12819_v63 }
 0x408   : > { %v3368_v8 = vmul.f32 %v13003_v20, %v3356_v39 }
 0x40a   : > { %v13034_v34 = vadd.f32 %v13008_v37, %v3368_v8 }
 0x40b   : > { %v3172_v48 = vpop.f32.mrb[112].mxu0 }
 0x40c   : > { %v3389_v26 = vmul.f32 0.5, %v13034_v34  ;;  %v3349_v33 = vmul.f32 %v12999_v13, %v3172_v48  ;;  %v11215_v55 = vpop.f32.mrb[113].mxu0  ;;  %v3645_v48 = vsel %vm1116_vm3, %v3618_v40, 0  ;;  %v14877_v40 = vmov 12  }
 0x40d   : > { %v3175_v14 = vpop.f32.mrb[114].mxu0 }
 0x40e   : > { %v3357_v5 = vadd.f32 %v3349_v33, %v12705_v32  ;;  %v11216_v4 = vpop.f32.mrb[115].mxu0  ;;  %v3390_v59 = vadd.f32 %v3389_v26, %v3388_v27 }
 0x40f   : > { %v13074_v4 = vld [vmem:[%s14819_s3 + $0xc] sm:$0xf] }
 0x410   : > { %v3400_v24 = vpack.c.bf16 %v3390_v59, %v3390_v59  ;;  %v3369_v1 = vmul.f32 %v13003_v20, %v3357_v5  ;;  %v3620_v5 = vpack.c.bf16 %v12837_v30, %v12837_v30 }
 0x412   : > { %11244 = vmatmul.mubr.msk.bf16.vlgmr.msra.gmra.mrb[120].mxu1 %vm1112_vm4, %v3400_v24  ;;  %v13049_v0 = vadd.f32 %v13008_v37, %v3369_v1 }
 0x413   : > { %v3215_v29 = vpop.f32.mrb[112].mxu1  ;;  %11254 = vmatpush3.bf16.msra.mxu1 %v12985_v7  ;;  %11255 = vmatprep.mubr.msk.bf16.mxu1 %vm12134_vm0, %v14873_v35 }
 0x414   : > { %v3350_v38 = vmul.f32 %v12999_v13, %v3215_v29  ;;  %v11221_v45 = vpop.f32.mrb[113].mxu1  ;;  %11265 = vmatprep.subr.bf16.mxu1 %v14873_v35  ;;  %v3391_v46 = vmul.f32 0.5, %v13049_v0 }
 0x415   : > { %v3218_v56 = vpop.f32.mrb[114].mxu1 }
 0x416   : > { %v3358_v32 = vadd.f32 %v3350_v38, %v12721_v51  ;;  %v11222_v52 = vpop.f32.mrb[115].mxu1 }
 0x418   : > { %v3370_v22 = vmul.f32 %v13003_v20, %v3358_v32 }
 0x41a   : > { %v13053_v7 = vadd.f32 %v13008_v37, %v3370_v22 }
 0x41b   : > { %v3258_v61 = vpop.f32.mrb[116].mxu0 }
 0x41c   : > { %v3392_v25 = vmul.f32 0.5, %v13053_v7  ;;  %v3351_v23 = vmul.f32 %v12999_v13, %v3258_v61  ;;  %v11227_v6 = vpop.f32.mrb[117].mxu0 }
 0x41d   : > { %v3261_v43 = vpop.f32.mrb[118].mxu0 }
 0x41e   : > { %v3359_v51 = vadd.f32 %v3351_v23, %v12730_v19  ;;  %v11228_v31 = vpop.f32.mrb[119].mxu0  ;;  %v3393_v39 = vadd.f32 %v3392_v25, %v3391_v46  ;;  %v13177_v43 = vld [vmem:[%s14820_s4 + $0x8] sm:$0xff] }
 0x41f   : > { %4345 = vperm.xlu1 %12078, %v13177_v43   ;;  %4704 = vperm.xlu0 %12077, %v13177_v43   ;;  %v4334_v31 = vpack.c.bf16 %v13012_v11, %v13012_v11  ;;  %v3633_v11 = vpack.c.bf16 %v12971_v50, %v12971_v50 }
 0x420   : > { %v3401_v8 = vpack.c.bf16 %v3393_v39, %v3393_v39  ;;  %v3371_v26 = vmul.f32 %v13003_v20, %v3359_v51  ;;  %v14876_v39 = vmov 11  }
 0x421   : > { %v4290_v50 = vsel %vm1116_vm3, %v3633_v11, 0 }
 0x422   : > { %11250 = vmatmul.mubr.msk.bf16.vlgmr.msra.gmra.mrb[124].mxu0 %vm1112_vm4, %v3401_v8  ;;  %v13077_v59 = vadd.f32 %v13008_v37, %v3371_v26  ;;  %v14879_v26 = vmov 0  }
 0x423   : > { %11260 = vmatpush3.bf16.msra.mxu0 %v3645_v48  ;;  %v3301_v27 = vpop.f32.mrb[116].mxu1  ;;  %11261 = vmatprep.mubr.msk.bf16.mxu0 %vm12134_vm0, %v14873_v35  ;;  %v4336_v48 = vpack.c.bf16 %v13030_v17, %v13030_v17 }
 0x424   : > { %v3352_v33 = vmul.f32 %v12999_v13, %v3301_v27  ;;  %v11233_v19 = vpop.f32.mrb[117].mxu1  ;;  %11271 = vmatprep.subr.bf16.mxu0 %v14873_v35  ;;  %v3394_v30 = vmul.f32 0.5, %v13077_v59  ;;  %12079 = vset.pattern.permute.xlu1 %v14876_v39  ;;  %v14878_v27 = vmov 3  }
 0x425   : > { %v3304_v55 = vpop.f32.mrb[118].mxu1  ;;  %12080 = vset.pattern.permute.xlu0 %v14877_v40  ;;  %5255 = vperm.xlu1 %12079, %v13177_v43   ;;  %v4438_v17 = vsel %vm1116_vm3, %v4336_v48, 0  ;;  %v4335_v19 = vpack.c.bf16 %v13015_v54, %v13015_v54  ;;  %v14891_v48 = vld [vmem:[#allocation3_spill] sm:$0xff] }
 0x426   : > { %v3360_v63 = vadd.f32 %v3352_v33, %v12742_v47  ;;  %v11234_v14 = vpop.f32.mrb[119].mxu1  ;;  %v3731_v47 = vsel %vm1116_vm3, %v3620_v5, 0  ;;  %5267 = vperm.xlu0 %12080, %v13177_v43   ;;  %v13222_v33 = vld [vmem:[%s14819_s3 + $0x10] sm:$0xf]  ;;  %v4338_v55 = vpack.c.bf16 %v13049_v0, %v13049_v0  ;;  %v4337_v0 = vpack.c.bf16 %v13034_v34, %v13034_v34 }
 0x427   : > { %v14881_v14 = vmov 5   ;;  %v4395_v5 = vsel %vm1116_vm3, %v4335_v19, 0 }
 0x428   : > { %v3372_v13 = vmul.f32 %v13003_v20, %v3360_v63  ;;  %v3619_v20 = vpack.c.bf16 %v12823_v41, %v12823_v41  ;;  %v3621_v41 = vpack.c.bf16 %v12841_v44, %v12841_v44  ;;  %v3623_v44 = vpack.c.bf16 %v12864_v15, %v12864_v15 }
 0x429   : > { %v3625_v15 = vpack.c.bf16 %v12887_v57, %v12887_v57  ;;  %v3627_v57 = vpack.c.bf16 %v12910_v28, %v12910_v28  ;;  %v3629_v28 = vpack.c.bf16 %v12933_v42, %v12933_v42  ;;  %12081 = vset.pattern.permute.xlu1 %v14878_v27  ;;  %v14880_v63 = vmov 4  }
 0x42a   : > { %v13081_v24 = vadd.f32 %v13008_v37, %v3372_v13  ;;  %11262 = vmatmul.mubr.msk.bf16.vlgmr.msra.gmra.mrb[128].mxu0 %vm1112_vm4, %v13074_v4  ;;  %v3622_v37 = vpack.c.bf16 %v12860_v2, %v12860_v2  ;;  %v3688_v45 = vsel %vm1116_vm3, %v3619_v20, 0  ;;  %v3624_v2 = vpack.c.bf16 %v12883_v49, %v12883_v49  ;;  %12083 = vset.pattern.permute.xlu0 %v14879_v26 }
 0x42b   : > { %11272 = vmatpush3.bf16.msra.mxu0 %v3731_v47  ;;  %11273 = vmatprep.mubr.msk.bf16.mxu0 %vm12134_vm0, %v14873_v35  ;;  %v3774_v32 = vsel %vm1116_vm3, %v3621_v41, 0  ;;  %v3626_v49 = vpack.c.bf16 %v12906_v12, %v12906_v12  ;;  %v3860_v22 = vsel %vm1116_vm3, %v3623_v44, 0  ;;  %v3628_v12 = vpack.c.bf16 %v12929_v53, %v12929_v53  ;;  %v3590_v41 = vpop.permute.xlu0 %3589 }
 0x42c   : > { %v3395_v29 = vmul.f32 0.5, %v13081_v24  ;;  %11283 = vmatprep.subr.bf16.mxu0 %v14873_v35  ;;  %v3817_v56 = vsel %vm1116_vm3, %v3622_v37, 0  ;;  %v3903_v52 = vsel %vm1116_vm3, %v3624_v2, 0  ;;  %v3946_v46 = vsel %vm1116_vm3, %v3625_v15, 0  ;;  %5287 = vperm.xlu1 %12081, %v13177_v43  }
 0x42d   : > { %v3989_v61 = vsel %vm1116_vm3, %v3626_v49, 0  ;;  %v4075_v25 = vsel %vm1116_vm3, %v3628_v12, 0  ;;  %v3630_v53 = vpack.c.bf16 %v12950_v3, %v12950_v3  ;;  %v4032_v23 = vsel %vm1116_vm3, %v3627_v57, 0  ;;  %3638 = vperm.xlu0 %12083, %v13177_v43  }
 0x42e   : > { %v3396_v1 = vadd.f32 %v3395_v29, %v3394_v30  ;;  %v3632_v3 = vpack.c.bf16 %v12967_v21, %v12967_v21  ;;  %v4118_v51 = vsel %vm1116_vm3, %v3629_v28, 0  ;;  %v3631_v21 = vpack.c.bf16 %v12954_v10, %v12954_v10 }
 0x42f   : > { %v4161_v6 = vsel %vm1116_vm3, %v3630_v53, 0  ;;  %v4352_v10 = vsel %vm1116_vm3, %v4334_v31, 0  ;;  %v4524_v54 = vsel %vm1116_vm3, %v4338_v55, 0  ;;  %v14882_v13 = vmov 13  }
 0x430   : > { %v3402_v38 = vpack.c.bf16 %v3396_v1, %v3396_v1  ;;  %v4247_v42 = vsel %vm1116_vm3, %v3632_v3, 0  ;;  %v4204_v8 = vsel %vm1116_vm3, %v3631_v21, 0  ;;  %12082 = vset.pattern.permute.xlu1 %v14880_v63  ;;  %v14883_v47 = vmov 16  }
 0x431   : > { %12086 = vset.pattern.permute.xlu0 %v14881_v14  ;;  %5299 = vperm.xlu1 %12082, %v13177_v43   ;;  %v4481_v30 = vsel %vm1116_vm3, %v4337_v0, 0  ;;  %v14884_v29 = vmov 14   ;;  %v14885_v1 = vmov 8   ;;  %v4341_v37 = vpack.c.bf16 %v13081_v24, %v13081_v24 }
 0x432   : > { %11256 = vmatmul.mubr.msk.bf16.vlgmr.msra.gmra.mrb[124].mxu1 %vm1112_vm4, %v3402_v38  ;;  %11274 = vmatmul.mubr.msk.bf16.vlgmr.msra.gmra.mrb[132].mxu0 %vm1112_vm4, %v13074_v4  ;;  %v14888_v24 = vmov 17  }
 0x433   : > { %11266 = vmatpush3.bf16.msra.mxu1 %v3688_v45  ;;  %11284 = vmatpush3.bf16.msra.mxu0 %v3817_v56  ;;  %v4653_v38 = vsel %vm1116_vm3, %v4341_v37, 0  ;;  %v14887_v45 = vmov 15   ;;  %v14889_v56 = vmov 18  }
 0x434   : > { %11267 = vmatprep.mubr.msk.bf16.mxu1 %vm12134_vm0, %v14873_v35  ;;  %11277 = vmatprep.subr.bf16.mxu1 %v14873_v35 }
 0x435   : > { %11285 = vmatprep.mubr.msk.bf16.mxu0 %vm12134_vm0, %v14873_v35  ;;  %11295 = vmatprep.subr.bf16.mxu0 %v14873_v35 }
 0x436   : > { %6107 = vperm.xlu0 %12086, %v13177_v43   ;;  %12084 = vset.pattern.permute.xlu1 %v14882_v13 }
 0x437   : > { %6051 = vperm.xlu1 %12084, %v13177_v43  }
 0x43a   : > { %11268 = vmatmul.mubr.msk.bf16.vlgmr.msra.gmra.mrb[128].mxu1 %vm1112_vm4, %v13074_v4  ;;  %11286 = vmatmul.mubr.msk.bf16.vlgmr.msra.gmra.mrb[136].mxu0 %vm1112_vm4, %v13074_v4 }
 0x43b   : > { %11278 = vmatpush3.bf16.msra.mxu1 %v3774_v32  ;;  %11296 = vmatpush3.bf16.msra.mxu0 %v3903_v52 }
 0x43c   : > { %11279 = vmatprep.mubr.msk.bf16.mxu1 %vm12134_vm0, %v14873_v35  ;;  %11289 = vmatprep.subr.bf16.mxu1 %v14873_v35 }
 0x43d   : > { %11297 = vmatprep.mubr.msk.bf16.mxu0 %vm12134_vm0, %v14873_v35  ;;  %11307 = vmatprep.subr.bf16.mxu0 %v14873_v35 }
 0x43e   : > { %12089 = vset.pattern.permute.xlu0 %v14883_v47  ;;  %12085 = vset.pattern.permute.xlu1 %v14884_v29 }
 0x43f   : > { %6545 = vperm.xlu0 %12089, %v13177_v43   ;;  %6071 = vperm.xlu1 %12085, %v13177_v43  }
 0x442   : > { %11280 = vmatmul.mubr.msk.bf16.vlgmr.msra.gmra.mrb[132].mxu1 %vm1112_vm4, %v13074_v4  ;;  %11298 = vmatmul.mubr.msk.bf16.vlgmr.msra.gmra.mrb[140].mxu0 %vm1112_vm4, %v13074_v4 }
 0x443   : > { %11290 = vmatpush3.bf16.msra.mxu1 %v3860_v22  ;;  %11308 = vmatpush3.bf16.msra.mxu0 %v3989_v61 }
 0x444   : > { %11291 = vmatprep.mubr.msk.bf16.mxu1 %vm12134_vm0, %v14873_v35  ;;  %11301 = vmatprep.subr.bf16.mxu1 %v14873_v35 }
 0x445   : > { %11309 = vmatprep.mubr.msk.bf16.mxu0 %vm12134_vm0, %v14873_v35  ;;  %11319 = vmatprep.subr.bf16.mxu0 %v14873_v35 }
 0x446   : > { %12092 = vset.pattern.permute.xlu0 %v14885_v1 }
 0x447   : > { %6597 = vperm.xlu0 %12092, %v13177_v43  }
 0x44a   : > { %11292 = vmatmul.mubr.msk.bf16.vlgmr.msra.gmra.mrb[136].mxu1 %vm1112_vm4, %v13074_v4  ;;  %11310 = vmatmul.mubr.msk.bf16.vlgmr.msra.gmra.mrb[144].mxu0 %vm1112_vm4, %v13074_v4 }
 0x44b   : > { %11302 = vmatpush3.bf16.msra.mxu1 %v3946_v46  ;;  %11320 = vmatpush3.bf16.msra.mxu0 %v4075_v25 }
 0x44c   : > { %11303 = vmatprep.mubr.msk.bf16.mxu1 %vm12134_vm0, %v14873_v35  ;;  %11313 = vmatprep.subr.bf16.mxu1 %v14873_v35 }
 0x44d   : > { %11321 = vmatprep.mubr.msk.bf16.mxu0 %vm12134_vm0, %v14873_v35  ;;  %11331 = vmatprep.subr.bf16.mxu0 %v14873_v35 }
 0x44e   : > { %12095 = vset.pattern.permute.xlu0 %v14862_v36 }
 0x44f   : > { %6823 = vperm.xlu0 %12095, %v13177_v43  }
 0x452   : > { %11304 = vmatmul.mubr.msk.bf16.vlgmr.msra.gmra.mrb[140].mxu1 %vm1112_vm4, %v13074_v4  ;;  %11322 = vmatmul.mubr.msk.bf16.vlgmr.msra.gmra.mrb[148].mxu0 %vm1112_vm4, %v13074_v4 }
 0x453   : > { %11314 = vmatpush3.bf16.msra.mxu1 %v4032_v23  ;;  %11332 = vmatpush3.bf16.msra.mxu0 %v4161_v6  ;;  %v14890_v23 = vld [vmem:[#allocation2_spill] sm:$0xff] }
 0x454   : > { %11315 = vmatprep.mubr.msk.bf16.mxu1 %vm12134_vm0, %v14873_v35  ;;  %11325 = vmatprep.subr.bf16.mxu1 %v14873_v35 }
 0x455   : > { %11333 = vmatprep.mubr.msk.bf16.mxu0 %vm12134_vm0, %v14873_v35  ;;  %11343 = vmatprep.subr.bf16.mxu0 %v14873_v35 }
 0x456   : > { %12098 = vset.pattern.permute.xlu0 %v14875_v60  ;;  %v3582_v60 = vpop.permute.xlu1 %3581 }
 0x457   : > { %v3584_v52 = vmul.f32 %v3582_v60, %v12523_v62  ;;  %v3585_v6 = vmul.f32 %v3582_v60, %v14890_v23 }
 0x45a   : > { %11316 = vmatmul.mubr.msk.bf16.vlgmr.msra.gmra.mrb[144].mxu1 %vm1112_vm4, %v13074_v4  ;;  %11334 = vmatmul.mubr.msk.bf16.vlgmr.msra.gmra.mrb[152].mxu0 %vm1112_vm4, %v13074_v4  ;;  %v13324_v2 = vpop.permute.xlu1 %3601 }
 0x45b   : > { %11326 = vmatpush3.bf16.msra.mxu1 %v4118_v51  ;;  %11344 = vmatpush3.bf16.msra.mxu0 %v4247_v42 }
 0x45c   : > { %11327 = vmatprep.mubr.msk.bf16.mxu1 %vm12134_vm0, %v14873_v35  ;;  %11337 = vmatprep.subr.bf16.mxu1 %v14873_v35 }
 0x45d   : > { %11345 = vmatprep.mubr.msk.bf16.mxu0 %vm12134_vm0, %v14873_v35  ;;  %11355 = vmatprep.subr.bf16.mxu0 %v14873_v35 }
 0x45e   : > { %v3610_v12 = vpop.permute.xlu1 %3609 }
 0x462   : > { %11328 = vmatmul.mubr.msk.bf16.vlgmr.msra.gmra.mrb[148].mxu1 %vm1112_vm4, %v13074_v4  ;;  %11346 = vmatmul.mubr.msk.bf16.vlgmr.msra.gmra.mrb[156].mxu0 %vm1112_vm4, %v13074_v4 }
 0x463   : > { %11338 = vmatpush3.bf16.msra.mxu1 %v4204_v8  ;;  %11356 = vmatpush3.bf16.msra.mxu0 %v4352_v10 }
 0x464   : > { %11339 = vmatprep.mubr.msk.bf16.mxu1 %vm12134_vm0, %v14873_v35  ;;  %11349 = vmatprep.subr.bf16.mxu1 %v14873_v35 }
 0x465   : > { %11357 = vmatprep.mubr.msk.bf16.mxu0 %vm12134_vm0, %v14873_v35  ;;  %11367 = vmatprep.subr.bf16.mxu0 %v14873_v35 }
 0x46a   : > { %11340 = vmatmul.mubr.msk.bf16.vlgmr.msra.gmra.mrb[152].mxu1 %vm1112_vm4, %v13074_v4  ;;  %11358 = vmatmul.mubr.msk.bf16.vlgmr.msra.gmra.mrb[160].mxu0 %vm1112_vm4, %v13222_v33 }
 0x46b   : > { %11350 = vmatpush3.bf16.msra.mxu1 %v4290_v50  ;;  %11368 = vmatpush3.bf16.msra.mxu0 %v4438_v17 }
 0x46c   : > { %11351 = vmatprep.mubr.msk.bf16.mxu1 %vm12134_vm0, %v14873_v35  ;;  %11361 = vmatprep.subr.bf16.mxu1 %v14873_v35 }
 0x46d   : > { %11369 = vmatprep.mubr.msk.bf16.mxu0 %vm12134_vm0, %v14873_v35  ;;  %11379 = vmatprep.subr.bf16.mxu0 %v14873_v35 }
 0x472   : > { %11352 = vmatmul.mubr.msk.bf16.vlgmr.msra.gmra.mrb[156].mxu1 %vm1112_vm4, %v13074_v4  ;;  %11370 = vmatmul.mubr.msk.bf16.vlgmr.msra.gmra.mrb[164].mxu0 %vm1112_vm4, %v13222_v33  ;;  %v4340_v4 = vpack.c.bf16 %v13077_v59, %v13077_v59  ;;  %v4339_v59 = vpack.c.bf16 %v13053_v7, %v13053_v7  ;;  %v14886_v7 = vmov 6  }
 0x473   : > { %11362 = vmatpush3.bf16.msra.mxu1 %v4395_v5  ;;  %11380 = vmatpush3.bf16.msra.mxu0 %v4524_v54 }
 0x474   : > { %11363 = vmatprep.mubr.msk.bf16.mxu1 %vm12134_vm0, %v14873_v35  ;;  %11373 = vmatprep.subr.bf16.mxu1 %v14873_v35  ;;  %v4610_v34 = vsel %vm1116_vm3, %v4340_v4, 0  ;;  %v4567_v20 = vsel %vm1116_vm3, %v4339_v59, 0 }
 0x475   : > { %11381 = vmatprep.mubr.msk.bf16.mxu0 %vm12134_vm0, %v14873_v35  ;;  %11391 = vmatprep.subr.bf16.mxu0 %v14873_v35 }
 0x476   : > { %12087 = vset.pattern.permute.xlu1 %v14886_v7 }
 0x477   : > { %6127 = vperm.xlu1 %12087, %v13177_v43  }
 0x47a   : > { %11364 = vmatmul.mubr.msk.bf16.vlgmr.msra.gmra.mrb[160].mxu1 %vm1112_vm4, %v13222_v33  ;;  %11382 = vmatmul.mubr.msk.bf16.vlgmr.msra.gmra.mrb[168].mxu0 %vm1112_vm4, %v13222_v33 }
 0x47b   : > { %11374 = vmatpush3.bf16.msra.mxu1 %v4481_v30  ;;  %11392 = vmatpush3.bf16.msra.mxu0 %v4610_v34 }
 0x47c   : > { %11375 = vmatprep.mubr.msk.bf16.mxu1 %vm12134_vm0, %v14873_v35  ;;  %11385 = vmatprep.subr.bf16.mxu1 %v14873_v35 }
 0x47d   : > { %11393 = vmatprep.mubr.msk.bf16.mxu0 %vm12134_vm0, %v14873_v35  ;;  %11403 = vmatprep.subr.bf16.mxu0 %v14873_v35 }
 0x47e   : > { %12088 = vset.pattern.permute.xlu1 %v14887_v45 }
 0x47f   : > { %6533 = vperm.xlu1 %12088, %v13177_v43  }
 0x482   : > { %11376 = vmatmul.mubr.msk.bf16.vlgmr.msra.gmra.mrb[164].mxu1 %vm1112_vm4, %v13222_v33  ;;  %11394 = vmatmul.mubr.msk.bf16.vlgmr.msra.gmra.mrb[172].mxu0 %vm1112_vm4, %v13222_v33 }
 0x483   : > { %11386 = vmatpush3.bf16.msra.mxu1 %v4567_v20  ;;  %11387 = vmatprep.mubr.msk.bf16.mxu1 %vm12134_vm0, %v14873_v35 }
 0x484   : > { %11397 = vmatprep.subr.bf16.mxu1 %v14873_v35  ;;  %11405 = vmatprep.mubr.msk.bf16.mxu0 %vm12134_vm0, %v14873_v35 }
 0x485   : > { %12090 = vset.pattern.permute.xlu1 %v14888_v24 }
 0x486   : > { %6565 = vperm.xlu1 %12090, %v13177_v43  }
 0x48a   : > { %11388 = vmatmul.mubr.msk.bf16.vlgmr.msra.gmra.mrb[168].mxu1 %vm1112_vm4, %v13222_v33  ;;  %12091 = vset.pattern.permute.xlu1 %v14864_v9 }
 0x48b   : > { %11398 = vmatpush3.bf16.msra.mxu1 %v4653_v38  ;;  %11399 = vmatprep.mubr.msk.bf16.mxu1 %vm12134_vm0, %v14873_v35 }
 0x48c   : > { %11409 = vmatprep.subr.bf16.mxu1 %v14873_v35  ;;  %6585 = vperm.xlu1 %12091, %v13177_v43  }
 0x490   : > { %12093 = vset.pattern.permute.xlu1 %v14889_v56 }
 0x491   : > { %6803 = vperm.xlu1 %12093, %v13177_v43  }
 0x492   : > { %11400 = vmatmul.mubr.msk.bf16.vlgmr.msra.gmra.mrb[172].mxu1 %vm1112_vm4, %v13222_v33  ;;  %v3586_v33 = vmul.f32 %v3582_v60, %v14891_v48 }
 0x493   : > { %11411 = vmatprep.mubr.msk.bf16.mxu1 %vm12134_vm0, %v14873_v35 }
 0x495   : > { %12094 = vset.pattern.permute.xlu1 %v14863_v58 }
 0x496   : > { %6811 = vperm.xlu1 %12094, %v13177_v43  }
 0x49a   : > { %12096 = vset.pattern.permute.xlu1 %v14865_v16 }
 0x49b   : > { %6831 = vperm.xlu1 %12096, %v13177_v43  }
 0x49f   : > { %12097 = vset.pattern.permute.xlu1 %v14874_v18  ;;  %v13332_v18 = vld [vmem:[%s14819_s3 + $0x14] sm:$0xf] }
 0x4d5   : > { %v3443_v32 = vpop.f32.mrb[120].mxu0 }
 0x4d6   : > { %v3592_v44 = vmul.f32 %v3590_v41, %v3443_v32  ;;  %v11239_v49 = vpop.f32.mrb[121].mxu0 }
 0x4d7   : > { %v3446_v22 = vpop.f32.mrb[122].mxu0 }
 0x4d8   : > { %v3596_v61 = vadd.f32 %v3592_v44, %v3584_v52  ;;  %v11240_v15 = vpop.f32.mrb[123].mxu0  ;;  %v14892_v52 = vld [vmem:[#allocation4_spill] sm:$0xff] }
 0x4d9   : > { %v3587_v44 = vmul.f32 %v3582_v60, %v14892_v52 }
 0x4da   : > { %v3604_v46 = vmul.f32 %v13324_v2, %v3596_v61 }
 0x4dc   : > { %v3612_v25 = vadd.f32 %v3610_v12, %v3604_v46 }
 0x4de   : > { %v4697_v57 = vpack.c.bf16 %v3612_v25, %v3612_v25 }
 0x4e0   : > { %v4711_v53 = vsel %vm1116_vm3, %v4697_v57, 0 }
 0x4e1   : > { %11404 = vmatpush3.bf16.msra.mxu0 %v4711_v53 }
 0x4e2   : > { %11415 = vmatprep.subr.bf16.mxu0 %v14873_v35 }
 0x4e4   : > { %11406 = vmatmul.mubr.msk.bf16.vlgmr.msra.gmra.mrb[176].mxu0 %vm1112_vm4, %v13332_v18 }
 0x4e5   : > { %v3486_v62 = vpop.f32.mrb[120].mxu1  ;;  %11417 = vmatprep.mubr.msk.bf16.mxu0 %vm12134_vm0, %v14873_v35 }
 0x4e6   : > { %v3593_v28 = vmul.f32 %v3590_v41, %v3486_v62  ;;  %v11245_v3 = vpop.f32.mrb[121].mxu1 }
 0x4e7   : > { %v3489_v43 = vpop.f32.mrb[122].mxu1 }
 0x4e8   : > { %v3597_v51 = vadd.f32 %v3593_v28, %v3585_v6  ;;  %v11246_v42 = vpop.f32.mrb[123].mxu1 }
 0x4ea   : > { %v3605_v21 = vmul.f32 %v13324_v2, %v3597_v51 }
 0x4ec   : > { %v3613_v31 = vadd.f32 %v3610_v12, %v3605_v21 }
 0x4ee   : > { %v4698_v8 = vpack.c.bf16 %v3613_v31, %v3613_v31 }
 0x4f0   : > { %v4754_v10 = vsel %vm1116_vm3, %v4698_v8, 0 }
 0x4f1   : > { %11410 = vmatpush3.bf16.msra.mxu1 %v4754_v10 }
 0x4f2   : > { %11421 = vmatprep.subr.bf16.mxu1 %v14873_v35 }
 0x4f4   : > { %11412 = vmatmul.mubr.msk.bf16.vlgmr.msra.gmra.mrb[176].mxu1 %vm1112_vm4, %v13332_v18 }
 0x4f5   : > { %v3529_v11 = vpop.f32.mrb[124].mxu0  ;;  %11423 = vmatprep.mubr.msk.bf16.mxu1 %vm12134_vm0, %v14873_v35 }
 0x4f6   : > { %v3594_v50 = vmul.f32 %v3590_v41, %v3529_v11  ;;  %v11251_v17 = vpop.f32.mrb[125].mxu0 }
 0x4f7   : > { %v3532_v19 = vpop.f32.mrb[126].mxu0 }
 0x4f8   : > { %v3598_v55 = vadd.f32 %v3594_v50, %v3586_v33  ;;  %v11252_v5 = vpop.f32.mrb[127].mxu0 }
 0x4fa   : > { %v3606_v54 = vmul.f32 %v13324_v2, %v3598_v55 }
 0x4fc   : > { %v3614_v0 = vadd.f32 %v3610_v12, %v3606_v54 }
 0x4fd   : > { %v13349_v4 = vpop.f32.mrb[128].mxu0 }
 0x4fe   : > { %v4699_v30 = vpack.c.bf16 %v3614_v0, %v3614_v0  ;;  %v11263_v34 = vpop.f32.mrb[129].mxu0 }
 0x4ff   : > { %v3684_v59 = vpop.f32.mrb[130].mxu0 }
 0x500   : > { %v4797_v20 = vsel %vm1116_vm3, %v4699_v30, 0  ;;  %v11264_v37 = vpop.f32.mrb[131].mxu0 }
 0x501   : > { %11416 = vmatpush3.bf16.msra.mxu0 %v4797_v20 }
 0x502   : > { %11427 = vmatprep.subr.bf16.mxu0 %v14873_v35 }
 0x504   : > { %11418 = vmatmul.mubr.msk.bf16.vlgmr.msra.gmra.mrb[180].mxu0 %vm1112_vm4, %v13332_v18 }
 0x505   : > { %v3572_v38 = vpop.f32.mrb[124].mxu1  ;;  %v13355_v32 = vpop.f32.mrb[132].mxu0  ;;  %11429 = vmatprep.mubr.msk.bf16.mxu0 %vm12134_vm0, %v14873_v35 }
 0x506   : > { %v3595_v49 = vmul.f32 %v3590_v41, %v3572_v38  ;;  %v11257_v22 = vpop.f32.mrb[125].mxu1  ;;  %v11275_v61 = vpop.f32.mrb[133].mxu0 }
 0x507   : > { %v3575_v15 = vpop.f32.mrb[126].mxu1  ;;  %v3770_v46 = vpop.f32.mrb[134].mxu0 }
 0x508   : > { %v3599_v25 = vadd.f32 %v3595_v49, %v3587_v44  ;;  %v11258_v57 = vpop.f32.mrb[127].mxu1  ;;  %v11276_v53 = vpop.f32.mrb[135].mxu0 }
 0x50a   : > { %v3607_v62 = vmul.f32 %v13324_v2, %v3599_v25 }
 0x50c   : > { %v3615_v23 = vadd.f32 %v3610_v12, %v3607_v62 }
 0x50d   : > { %v13361_v6 = vpop.f32.mrb[128].mxu1  ;;  %v13363_v28 = vpop.f32.mrb[136].mxu0 }
 0x50e   : > { %v4700_v3 = vpack.c.bf16 %v3615_v23, %v3615_v23  ;;  %v11269_v43 = vpop.f32.mrb[129].mxu1  ;;  %v11287_v51 = vpop.f32.mrb[137].mxu0 }
 0x50f   : > { %v3727_v42 = vpop.f32.mrb[130].mxu1  ;;  %v3856_v60 = vpop.f32.mrb[138].mxu0 }
 0x510   : > { %v4840_v41 = vsel %vm1116_vm3, %v4700_v3, 0  ;;  %v11270_v21 = vpop.f32.mrb[131].mxu1  ;;  %v11288_v31 = vpop.f32.mrb[139].mxu0 }
 0x511   : > { %11422 = vmatpush3.bf16.msra.mxu1 %v4840_v41  ;;  %v4896_v31 = vld [vmem:[%s14821_s5] sm:$0x3] }
 0x512   : > { %11433 = vmatprep.subr.bf16.mxu1 %v14873_v35 }
 0x514   : > { %11424 = vmatmul.mubr.msk.bf16.vlgmr.msra.gmra.mrb[180].mxu1 %vm1112_vm4, %v13332_v18 }
 0x515   : > { %v13369_v2 = vpop.f32.mrb[132].mxu1  ;;  %v13371_v12 = vpop.f32.mrb[140].mxu0  ;;  %11435 = vmatprep.mubr.msk.bf16.mxu1 %vm12134_vm0, %v14873_v35 }
 0x516   : > { %v11281_v8 = vpop.f32.mrb[133].mxu1  ;;  %v11299_v10 = vpop.f32.mrb[141].mxu0 }
 0x517   : > { %v3813_v11 = vpop.f32.mrb[134].mxu1  ;;  %v3942_v48 = vpop.f32.mrb[142].mxu0  ;;  %v13395_v8 = vsel %vm415_vm1, %v4896_v31, 0 }
 0x518   : > { %v11282_v33 = vpop.f32.mrb[135].mxu1  ;;  %v11300_v50 = vpop.f32.mrb[143].mxu0  ;;  %11428 = vmatpush3.bf16.msra.mxu0 %v13395_v8  ;;  %11434 = vmatpush3.bf16.msra.mxu1 %v13395_v8 }
 0x519   : > { %11439 = vmatprep.subr.bf16.mxu0 %v14873_v35  ;;  %11445 = vmatprep.subr.bf16.mxu1 %v14873_v35 }
 0x51d   : > { %v13375_v17 = vpop.f32.mrb[136].mxu1  ;;  %v13377_v19 = vpop.f32.mrb[144].mxu0 }
 0x51e   : > { %v11293_v55 = vpop.f32.mrb[137].mxu1  ;;  %v11311_v5 = vpop.f32.mrb[145].mxu0 }
 0x51f   : > { %v3899_v18 = vpop.f32.mrb[138].mxu1  ;;  %v4028_v54 = vpop.f32.mrb[146].mxu0 }
 0x520   : > { %v11294_v0 = vpop.f32.mrb[139].mxu1  ;;  %v11312_v30 = vpop.f32.mrb[147].mxu0 }
 0x525   : > { %v13379_v34 = vpop.f32.mrb[140].mxu1  ;;  %v13381_v59 = vpop.f32.mrb[148].mxu0 }
 0x526   : > { %v11305_v20 = vpop.f32.mrb[141].mxu1  ;;  %v11323_v37 = vpop.f32.mrb[149].mxu0 }
 0x527   : > { %v3985_v38 = vpop.f32.mrb[142].mxu1  ;;  %v4114_v52 = vpop.f32.mrb[150].mxu0 }
 0x528   : > { %v11306_v44 = vpop.f32.mrb[143].mxu1  ;;  %v11324_v49 = vpop.f32.mrb[151].mxu0 }
 0x52d   : > { %v13383_v22 = vpop.f32.mrb[144].mxu1  ;;  %v13385_v61 = vpop.f32.mrb[152].mxu0 }
 0x52e   : > { %v11317_v15 = vpop.f32.mrb[145].mxu1  ;;  %v11335_v46 = vpop.f32.mrb[153].mxu0 }
 0x52f   : > { %v4071_v25 = vpop.f32.mrb[146].mxu1  ;;  %v4200_v57 = vpop.f32.mrb[154].mxu0 }
 0x530   : > { %v11318_v53 = vpop.f32.mrb[147].mxu1  ;;  %v11336_v62 = vpop.f32.mrb[155].mxu0 }
 0x535   : > { %v13387_v23 = vpop.f32.mrb[148].mxu1  ;;  %v13389_v3 = vpop.f32.mrb[156].mxu0 }
 0x536   : > { %v11329_v43 = vpop.f32.mrb[149].mxu1  ;;  %v11347_v51 = vpop.f32.mrb[157].mxu0 }
 0x537   : > { %v4157_v42 = vpop.f32.mrb[150].mxu1  ;;  %v4286_v60 = vpop.f32.mrb[158].mxu0 }
 0x538   : > { %v11330_v41 = vpop.f32.mrb[151].mxu1  ;;  %v11348_v21 = vpop.f32.mrb[159].mxu0 }
 0x53d   : > { %v13401_v10 = vpop.f32.mrb[152].mxu1  ;;  %v13403_v11 = vpop.f32.mrb[160].mxu0 }
 0x53e   : > { %v11341_v48 = vpop.f32.mrb[153].mxu1  ;;  %v11359_v33 = vpop.f32.mrb[161].mxu0 }
 0x53f   : > { %v4243_v50 = vpop.f32.mrb[154].mxu1  ;;  %v4391_v55 = vpop.f32.mrb[162].mxu0 }
 0x540   : > { %v11342_v5 = vpop.f32.mrb[155].mxu1  ;;  %v11360_v18 = vpop.f32.mrb[163].mxu0 }
 0x545   : > { %v13405_v54 = vpop.f32.mrb[156].mxu1  ;;  %v13407_v0 = vpop.f32.mrb[164].mxu0 }
 0x546   : > { %v11353_v30 = vpop.f32.mrb[157].mxu1  ;;  %v11371_v20 = vpop.f32.mrb[165].mxu0 }
 0x547   : > { %v4329_v37 = vpop.f32.mrb[158].mxu1  ;;  %v4477_v38 = vpop.f32.mrb[166].mxu0 }
 0x548   : > { %v11354_v52 = vpop.f32.mrb[159].mxu1  ;;  %v11372_v44 = vpop.f32.mrb[167].mxu0 }
 0x549   : > { %v4705_v52 = vpop.permute.xlu0 %4704 }
 0x54d   : > { %v13409_v49 = vpop.f32.mrb[160].mxu1  ;;  %v13411_v15 = vpop.f32.mrb[168].mxu0 }
 0x54e   : > { %v11365_v46 = vpop.f32.mrb[161].mxu1  ;;  %v11383_v25 = vpop.f32.mrb[169].mxu0 }
 0x54f   : > { %v4434_v57 = vpop.f32.mrb[162].mxu1  ;;  %v4563_v53 = vpop.f32.mrb[170].mxu0 }
 0x550   : > { %v11366_v62 = vpop.f32.mrb[163].mxu1  ;;  %v11384_v43 = vpop.f32.mrb[171].mxu0 }
 0x555   : > { %v13413_v51 = vpop.f32.mrb[164].mxu1  ;;  %v13415_v42 = vpop.f32.mrb[172].mxu0 }
 0x556   : > { %v11377_v60 = vpop.f32.mrb[165].mxu1  ;;  %v11395_v41 = vpop.f32.mrb[173].mxu0 }
 0x557   : > { %v4520_v21 = vpop.f32.mrb[166].mxu1  ;;  %v4649_v31 = vpop.f32.mrb[174].mxu0 }
 0x558   : > { %v11378_v48 = vpop.f32.mrb[167].mxu1  ;;  %v11396_v33 = vpop.f32.mrb[175].mxu0 }
 0x55d   : > { %v13417_v50 = vpop.f32.mrb[168].mxu1 }
 0x55e   : > { %v11389_v55 = vpop.f32.mrb[169].mxu1 }
 0x55f   : > { %v4606_v5 = vpop.f32.mrb[170].mxu1 }
 0x560   : > { %v11390_v18 = vpop.f32.mrb[171].mxu1 }
 0x565   : > { %v13419_v30 = vpop.f32.mrb[172].mxu1 }
 0x566   : > { %v11401_v20 = vpop.f32.mrb[173].mxu1 }
 0x567   : > { %v4692_v37 = vpop.f32.mrb[174].mxu1 }
 0x568   : > { %v11402_v38 = vpop.f32.mrb[175].mxu1 }
 0x5b7   : > { %v4747_v44 = vpop.f32.mrb[176].mxu0 }
 0x5b8   : > { %v13421_v46 = vadd.f32 %v4747_v44, %v4705_v52  ;;  %v11407_v25 = vpop.f32.mrb[177].mxu0 }
 0x5b9   : > { %v4750_v57 = vpop.f32.mrb[178].mxu0 }
 0x5ba   : > { %14893 = vst [vmem:[#allocation2_spill] sm:$0xff] %v13421_v46  ;;  %v4897_v53 = vpack.c.bf16 %v13421_v46, %v13421_v46  ;;  %v11408_v62 = vpop.f32.mrb[179].mxu0  ;;  %v4882_v60 = vmul.f32 0.75, %v13421_v46  ;;  %v4885_v41 = vmul.f32 0.25, %v13421_v46 }
 0x5bc   : > { %11430 = vmatmul.mubr.msk.bf16.vlgmr.msra.gmra.mrb[184].mxu0 %vm411_vm2, %v4897_v53 }
 0x5bd   : > { %11440 = vmatpush3.bf16.msra.mxu0 %v13395_v8  ;;  %11441 = vmatprep.mubr.msk.bf16.mxu0 %vm12134_vm0, %v14873_v35 }
 0x5be   : > { %11451 = vmatprep.subr.bf16.mxu0 %v14873_v35 }
 0x5c7   : > { %v4790_v43 = vpop.f32.mrb[176].mxu1 }
 0x5c8   : > { %v13432_v21 = vadd.f32 %v4790_v43, %v4705_v52  ;;  %v11413_v31 = vpop.f32.mrb[177].mxu1 }
 0x5c9   : > { %v4793_v48 = vpop.f32.mrb[178].mxu1 }
 0x5ca   : > { %14894 = vst [vmem:[#allocation3_spill] sm:$0xff] %v13432_v21  ;;  %v4883_v33 = vmul.f32 0.25, %v13432_v21  ;;  %v4886_v55 = vmul.f32 0.75, %v13432_v21  ;;  %v11414_v5 = vpop.f32.mrb[179].mxu1 }
 0x5cc   : > { %v4884_v18 = vadd.f32 %v4883_v33, %v4882_v60  ;;  %v4887_v20 = vadd.f32 %v4886_v55, %v4885_v41 }
 0x5ce   : > { %v4898_v37 = vpack.c.bf16 %v4884_v18, %v4884_v18  ;;  %v4899_v38 = vpack.c.bf16 %v4887_v20, %v4887_v20 }
 0x5d0   : > { %11436 = vmatmul.mubr.msk.bf16.vlgmr.msra.gmra.mrb[184].mxu1 %vm411_vm2, %v4898_v37  ;;  %11442 = vmatmul.mubr.msk.bf16.vlgmr.msra.gmra.mrb[188].mxu0 %vm411_vm2, %v4899_v38 }
 0x5d1   : > { %11446 = vmatpush3.bf16.msra.mxu1 %v13395_v8  ;;  %11452 = vmatpush3.bf16.msra.mxu0 %v13395_v8 }
 0x5d2   : > { %11447 = vmatprep.mubr.msk.bf16.mxu1 %vm12134_vm0, %v14873_v35  ;;  %11453 = vmatprep.mubr.msk.bf16.mxu0 %vm12134_vm0, %v14873_v35 }
 0x5d3   : > { %11457 = vmatprep.subr.bf16.mxu1 %v14873_v35  ;;  %11463 = vmatprep.subr.bf16.mxu0 %v14873_v35 }
 0x5d7   : > { %v4833_v44 = vpop.f32.mrb[180].mxu0 }
 0x5d8   : > { %v13446_v25 = vadd.f32 %v4833_v44, %v4705_v52  ;;  %v11419_v57 = vpop.f32.mrb[181].mxu0 }
 0x5d9   : > { %v4836_v53 = vpop.f32.mrb[182].mxu0 }
 0x5da   : > { %14895 = vst [vmem:[#allocation4_spill] sm:$0xff] %v13446_v25  ;;  %v4888_v62 = vmul.f32 0.25, %v13446_v25  ;;  %v4890_v43 = vmul.f32 0.75, %v13446_v25  ;;  %v11420_v60 = vpop.f32.mrb[183].mxu0 }
 0x5dc   : > { %v4889_v41 = vadd.f32 %v4888_v62, %v4886_v55  ;;  %v4891_v31 = vadd.f32 %v4890_v43, %v4883_v33 }
 0x5de   : > { %v4900_v48 = vpack.c.bf16 %v4889_v41, %v4889_v41  ;;  %v4901_v5 = vpack.c.bf16 %v4891_v31, %v4891_v31 }
 0x5e0   : > { %11448 = vmatmul.mubr.msk.bf16.vlgmr.msra.gmra.mrb[188].mxu1 %vm411_vm2, %v4900_v48  ;;  %11454 = vmatmul.mubr.msk.bf16.vlgmr.msra.gmra.mrb[192].mxu0 %vm411_vm2, %v4901_v5 }
 0x5e1   : > { %11458 = vmatpush3.bf16.msra.mxu1 %v13395_v8  ;;  %11464 = vmatpush3.bf16.msra.mxu0 %v13395_v8 }
 0x5e2   : > { %11459 = vmatprep.mubr.msk.bf16.mxu1 %vm12134_vm0, %v14873_v35  ;;  %11465 = vmatprep.mubr.msk.bf16.mxu0 %vm12134_vm0, %v14873_v35 }
 0x5e3   : > { %11469 = vmatprep.subr.bf16.mxu1 %v14873_v35  ;;  %11475 = vmatprep.subr.bf16.mxu0 %v14873_v35 }
 0x5e7   : > { %v4876_v33 = vpop.f32.mrb[180].mxu1 }
 0x5e8   : > { %v13460_v55 = vadd.f32 %v4876_v33, %v4705_v52  ;;  %v11425_v18 = vpop.f32.mrb[181].mxu1 }
 0x5e9   : > { %v4879_v20 = vpop.f32.mrb[182].mxu1  ;;  %v13497_v18 = vpop.permute.xlu0 %5267 }
 0x5ea   : > { %14896 = vst [vmem:[#allocation5_spill] sm:$0xff] %v13460_v55  ;;  %v4892_v37 = vmul.f32 0.25, %v13460_v55  ;;  %v4894_v38 = vmul.f32 0.75, %v13460_v55  ;;  %v11426_v44 = vpop.f32.mrb[183].mxu1  ;;  %v4904_v52 = vpack.c.bf16 %v13460_v55, %v13460_v55 }
 0x5ec   : > { %v4893_v57 = vadd.f32 %v4892_v37, %v4890_v43  ;;  %v4895_v53 = vadd.f32 %v4894_v38, %v4888_v62  ;;  %v13487_v43 = vpop.permute.xlu1 %4345 }
 0x5ed   : > { %v13501_v37 = vpop.permute.xlu0 %3638  ;;  %v4389_v38 = vadd.f32 %v13403_v11, %v13487_v43 }
 0x5ee   : > { %v4902_v60 = vpack.c.bf16 %v4893_v57, %v4893_v57  ;;  %v4903_v41 = vpack.c.bf16 %v4895_v53, %v4895_v53 }
 0x5f0   : > { %11460 = vmatmul.mubr.msk.bf16.vlgmr.msra.gmra.mrb[192].mxu1 %vm411_vm2, %v4902_v60  ;;  %11466 = vmatmul.mubr.msk.bf16.vlgmr.msra.gmra.mrb[196].mxu0 %vm411_vm2, %v4903_v41  ;;  %v13489_v31 = vpop.permute.xlu1 %5255 }
 0x5f1   : > { %11470 = vmatpush3.bf16.msra.mxu1 %v13395_v8  ;;  %11471 = vmatprep.mubr.msk.bf16.mxu1 %vm12134_vm0, %v14873_v35  ;;  %v10368_v8 = vld [vmem:[%s14821_s5 + $0x8] sm:$0xf]  ;;  %v13507_v53 = vpop.permute.xlu0 %6107  ;;  %v5258_v60 = vmul.f32 %v13489_v31, %v4389_v38 }
 0x5f2   : > { %11477 = vmatprep.mubr.msk.bf16.mxu0 %vm12134_vm0, %v14873_v35  ;;  %11481 = vmatprep.subr.bf16.mxu1 %v14873_v35  ;;  %v13481_v62 = vsel %vm1116_vm3, %v10368_v8, 0 }
 0x5f3   : > { %11476 = vmatpush3.bf16.msra.mxu0 %v13481_v62 }
 0x5f4   : > { %11487 = vmatprep.subr.bf16.mxu0 %v14873_v35  ;;  %v13491_v48 = vpop.permute.xlu1 %5287 }
 0x5f5   : > { %v13514_v55 = vpop.permute.xlu0 %6545 }
 0x5f8   : > { %11472 = vmatmul.mubr.msk.bf16.vlgmr.msra.gmra.mrb[196].mxu1 %vm411_vm2, %v4904_v52  ;;  %v13493_v5 = vpop.permute.xlu1 %5299 }
 0x5f9   : > { %11483 = vmatprep.mubr.msk.bf16.mxu1 %vm12134_vm0, %v14873_v35  ;;  %11482 = vmatpush3.bf16.msra.mxu1 %v13481_v62 }
 0x5fa   : > { %11493 = vmatprep.subr.bf16.mxu1 %v14873_v35 }
 0x5fc   : > { %v13495_v33 = vpop.permute.xlu1 %6051 }
 0x600   : > { %v13499_v20 = vpop.permute.xlu1 %6071 }
 0x604   : > { %v13505_v44 = vpop.permute.xlu1 %6127 }
 0x608   : > { %v13512_v16 = vpop.permute.xlu1 %6533 }
 0x609   : > { %v6536_v21 = vmul.f32 %v13512_v16, %v4389_v38 }
 0x68f   : > { %v4945_v57 = vpop.f32.mrb[184].mxu0 }
 0x690   : > { %v5270_v41 = vmul.f32 %v13497_v18, %v4945_v57  ;;  %v11431_v52 = vpop.f32.mrb[185].mxu0 }
 0x691   : > { %v4948_v8 = vpop.f32.mrb[186].mxu0 }
 0x692   : > { %v5278_v36 = vadd.f32 %v5270_v41, %v5258_v60  ;;  %v11432_v58 = vpop.f32.mrb[187].mxu0 }
 0x693   : > { %v4432_v58 = vadd.f32 %v13409_v49, %v13487_v43 }
 0x694   : > { %v5290_v9 = vmul.f32 %v13491_v48, %v5278_v36 }
 0x695   : > { %v5259_v60 = vmul.f32 %v13489_v31, %v4432_v58 }
 0x696   : > { %v5302_v11 = vadd.f32 %v13493_v5, %v5290_v9  ;;  %v4475_v9 = vadd.f32 %v13407_v0, %v13487_v43 }
 0x698   : > { %v5341_v25 = vpack.c.bf16 %v5302_v11, %v5302_v11  ;;  %v6548_v46 = vmul.f32 %v13514_v55, %v5302_v11  ;;  %v5310_v26 = vmul.f32 0.75, %v5302_v11 }
 0x69a   : > { %11478 = vmatmul.mubr.msk.bf16.vlgmr.msra.gmra.mrb[200].mxu0 %vm1112_vm4, %v5341_v25  ;;  %v13520_v57 = vadd.f32 %v6548_v46, %v6536_v21  ;;  %v5260_v46 = vmul.f32 %v13489_v31, %v4475_v9 }
 0x69b   : > { %11488 = vmatpush3.bf16.msra.mxu0 %v13481_v62  ;;  %11489 = vmatprep.mubr.msk.bf16.mxu0 %vm12134_vm0, %v14873_v35 }
 0x69c   : > { %11499 = vmatprep.subr.bf16.mxu0 %v14873_v35 }
 0x6a3   : > { %v4988_v36 = vpop.f32.mrb[184].mxu1  ;;  %v5031_v38 = vpop.f32.mrb[188].mxu0 }
 0x6a4   : > { %v5271_v21 = vmul.f32 %v13497_v18, %v4988_v36  ;;  %v5272_v25 = vmul.f32 %v13497_v18, %v5031_v38  ;;  %v11437_v41 = vpop.f32.mrb[185].mxu1  ;;  %v11443_v52 = vpop.f32.mrb[189].mxu0  ;;  %v5313_v36 = vmul.f32 0.25, %v5302_v11 }
 0x6a5   : > { %v4991_v8 = vpop.f32.mrb[186].mxu1  ;;  %v5034_v1 = vpop.f32.mrb[190].mxu0 }
 0x6a6   : > { %v5279_v47 = vadd.f32 %v5271_v21, %v5259_v60  ;;  %v5280_v45 = vadd.f32 %v5272_v25, %v5260_v46  ;;  %v11438_v49 = vpop.f32.mrb[187].mxu1  ;;  %v11444_v14 = vpop.f32.mrb[191].mxu0  ;;  %v6538_v1 = vmul.f32 %v13512_v16, %v4475_v9  ;;  %v6537_v60 = vmul.f32 %v13512_v16, %v4432_v58 }
 0x6a7   : > { %v4518_v9 = vadd.f32 %v13413_v51, %v13487_v43 }
 0x6a8   : > { %v5291_v0 = vmul.f32 %v13491_v48, %v5279_v47  ;;  %v5292_v56 = vmul.f32 %v13491_v48, %v5280_v45 }
 0x6aa   : > { %v5303_v29 = vadd.f32 %v13493_v5, %v5291_v0  ;;  %v5304_v24 = vadd.f32 %v13493_v5, %v5292_v56  ;;  %v4561_v56 = vadd.f32 %v13411_v15, %v13487_v43 }
 0x6ac   : > { %v5311_v7 = vmul.f32 0.25, %v5303_v29  ;;  %v5314_v38 = vmul.f32 0.75, %v5303_v29  ;;  %v5316_v41 = vmul.f32 0.25, %v5304_v24  ;;  %v5318_v52 = vmul.f32 0.75, %v5304_v24 }
 0x6ad   : > { %v6549_v14 = vmul.f32 %v13514_v55, %v5303_v29  ;;  %v6550_v47 = vmul.f32 %v13514_v55, %v5304_v24  ;;  %v5261_v24 = vmul.f32 %v13489_v31, %v4518_v9 }
 0x6ae   : > { %v5312_v46 = vadd.f32 %v5311_v7, %v5310_v26  ;;  %v5315_v45 = vadd.f32 %v5314_v38, %v5313_v36  ;;  %v5317_v21 = vadd.f32 %v5316_v41, %v5314_v38  ;;  %v5319_v25 = vadd.f32 %v5318_v52, %v5311_v7 }
 0x6af   : > { %v13544_v11 = vadd.f32 %v6549_v14, %v6537_v60  ;;  %v13546_v8 = vadd.f32 %v6550_v47, %v6538_v1  ;;  %v5262_v26 = vmul.f32 %v13489_v31, %v4561_v56 }
 0x6b0   : > { %v5342_v49 = vpack.c.bf16 %v5312_v46, %v5312_v46  ;;  %v5343_v58 = vpack.c.bf16 %v5315_v45, %v5315_v45 }
 0x6b2   : > { %11484 = vmatmul.mubr.msk.bf16.vlgmr.msra.gmra.mrb[200].mxu1 %vm1112_vm4, %v5342_v49  ;;  %11490 = vmatmul.mubr.msk.bf16.vlgmr.msra.gmra.mrb[204].mxu0 %vm1112_vm4, %v5343_v58  ;;  %v5344_v58 = vpack.c.bf16 %v5317_v21, %v5317_v21 }
 0x6b3   : > { %v5074_v29 = vpop.f32.mrb[188].mxu1  ;;  %v5117_v7 = vpop.f32.mrb[192].mxu0  ;;  %11494 = vmatpush3.bf16.msra.mxu1 %v13481_v62  ;;  %11500 = vmatpush3.bf16.msra.mxu0 %v13481_v62 }
 0x6b4   : > { %v5273_v15 = vmul.f32 %v13497_v18, %v5074_v29  ;;  %v5274_v51 = vmul.f32 %v13497_v18, %v5117_v7  ;;  %v11449_v0 = vpop.f32.mrb[189].mxu1  ;;  %v11455_v36 = vpop.f32.mrb[193].mxu0  ;;  %11495 = vmatprep.mubr.msk.bf16.mxu1 %vm12134_vm0, %v14873_v35  ;;  %11501 = vmatprep.mubr.msk.bf16.mxu0 %vm12134_vm0, %v14873_v35  ;;  %v5345_v29 = vpack.c.bf16 %v5319_v25, %v5319_v25 }
 0x6b5   : > { %v5077_v38 = vpop.f32.mrb[190].mxu1  ;;  %v5120_v1 = vpop.f32.mrb[194].mxu0  ;;  %11505 = vmatprep.subr.bf16.mxu1 %v14873_v35  ;;  %11511 = vmatprep.subr.bf16.mxu0 %v14873_v35  ;;  %v6540_v36 = vmul.f32 %v13512_v16, %v4561_v56  ;;  %v6539_v25 = vmul.f32 %v13512_v16, %v4518_v9 }
 0x6b6   : > { %v5281_v60 = vadd.f32 %v5273_v15, %v5261_v24  ;;  %v5282_v14 = vadd.f32 %v5274_v51, %v5262_v26  ;;  %v11450_v47 = vpop.f32.mrb[191].mxu1  ;;  %v11456_v46 = vpop.f32.mrb[195].mxu0 }
 0x6b7   : > { %v4647_v47 = vadd.f32 %v13415_v42, %v13487_v43 }
 0x6b8   : > { %v5293_v45 = vmul.f32 %v13491_v48, %v5281_v60  ;;  %v5294_v49 = vmul.f32 %v13491_v48, %v5282_v14 }
 0x6ba   : > { %v5305_v7 = vadd.f32 %v13493_v5, %v5293_v45  ;;  %v5306_v0 = vadd.f32 %v13493_v5, %v5294_v49  ;;  %11496 = vmatmul.mubr.msk.bf16.vlgmr.msra.gmra.mrb[204].mxu1 %vm1112_vm4, %v5344_v58  ;;  %11502 = vmatmul.mubr.msk.bf16.vlgmr.msra.gmra.mrb[208].mxu0 %vm1112_vm4, %v5345_v29  ;;  %v4604_v45 = vadd.f32 %v13417_v50, %v13487_v43 }
 0x6bb   : > { %11506 = vmatpush3.bf16.msra.mxu1 %v13481_v62  ;;  %11512 = vmatpush3.bf16.msra.mxu0 %v13481_v62 }
 0x6bc   : > { %v5320_v26 = vmul.f32 0.25, %v5305_v7  ;;  %v5322_v24 = vmul.f32 0.75, %v5305_v7  ;;  %v13573_v15 = vmul.f32 0.25, %v5306_v0  ;;  %v13575_v21 = vmul.f32 0.75, %v5306_v0  ;;  %11507 = vmatprep.mubr.msk.bf16.mxu1 %vm12134_vm0, %v14873_v35  ;;  %11513 = vmatprep.mubr.msk.bf16.mxu0 %vm12134_vm0, %v14873_v35 }
 0x6bd   : > { %11517 = vmatprep.subr.bf16.mxu1 %v14873_v35  ;;  %11523 = vmatprep.subr.bf16.mxu0 %v14873_v35  ;;  %v6551_v56 = vmul.f32 %v13514_v55, %v5305_v7  ;;  %v6552_v51 = vmul.f32 %v13514_v55, %v5306_v0  ;;  %v5263_v42 = vmul.f32 %v13489_v31, %v4604_v45 }
 0x6be   : > { %v5321_v38 = vadd.f32 %v5320_v26, %v5318_v52  ;;  %v5323_v1 = vadd.f32 %v5322_v24, %v5316_v41  ;;  %v5325_v60 = vadd.f32 %v13573_v15, %v5322_v24  ;;  %v5327_v14 = vadd.f32 %v13575_v21, %v5320_v26 }
 0x6bf   : > { %v13590_v46 = vadd.f32 %v6551_v56, %v6539_v25  ;;  %v13592_v9 = vadd.f32 %v6552_v51, %v6540_v36  ;;  %v5264_v41 = vmul.f32 %v13489_v31, %v4647_v47 }
 0x6c0   : > { %v5346_v49 = vpack.c.bf16 %v5321_v38, %v5321_v38  ;;  %v5347_v58 = vpack.c.bf16 %v5323_v1, %v5323_v1  ;;  %v4690_v1 = vadd.f32 %v13419_v30, %v13487_v43 }
 0x6c2   : > { %11508 = vmatmul.mubr.msk.bf16.vlgmr.msra.gmra.mrb[208].mxu1 %vm1112_vm4, %v5346_v49  ;;  %11514 = vmatmul.mubr.msk.bf16.vlgmr.msra.gmra.mrb[212].mxu0 %vm1112_vm4, %v5347_v58  ;;  %v5265_v30 = vmul.f32 %v13489_v31, %v4690_v1 }
 0x6c3   : > { %v5160_v52 = vpop.f32.mrb[192].mxu1  ;;  %v5203_v29 = vpop.f32.mrb[196].mxu0  ;;  %11518 = vmatpush3.bf16.msra.mxu1 %v13481_v62  ;;  %11524 = vmatpush3.bf16.msra.mxu0 %v13481_v62 }
 0x6c4   : > { %v5275_v7 = vmul.f32 %v13497_v18, %v5160_v52  ;;  %v5276_v50 = vmul.f32 %v13497_v18, %v5203_v29  ;;  %v11461_v0 = vpop.f32.mrb[193].mxu1  ;;  %v11467_v36 = vpop.f32.mrb[197].mxu0  ;;  %11519 = vmatprep.mubr.msk.bf16.mxu1 %vm12134_vm0, %v14873_v35  ;;  %11525 = vmatprep.mubr.msk.bf16.mxu0 %vm12134_vm0, %v14873_v35  ;;  %v5348_v52 = vpack.c.bf16 %v5325_v60, %v5325_v60 }
 0x6c5   : > { %v5163_v26 = vpop.f32.mrb[194].mxu1  ;;  %v5206_v24 = vpop.f32.mrb[198].mxu0  ;;  %11529 = vmatprep.subr.bf16.mxu1 %v14873_v35  ;;  %11535 = vmatprep.subr.bf16.mxu0 %v14873_v35  ;;  %v5349_v29 = vpack.c.bf16 %v5327_v14, %v5327_v14 }
 0x6c6   : > { %v5283_v25 = vadd.f32 %v5275_v7, %v5263_v42  ;;  %v5284_v56 = vadd.f32 %v5276_v50, %v5264_v41  ;;  %v11462_v51 = vpop.f32.mrb[195].mxu1  ;;  %v11468_v38 = vpop.f32.mrb[199].mxu0  ;;  %v6542_v41 = vmul.f32 %v13512_v16, %v4647_v47  ;;  %v6541_v42 = vmul.f32 %v13512_v16, %v4604_v45 }
 0x6c8   : > { %v5295_v49 = vmul.f32 %v13491_v48, %v5283_v25  ;;  %v5296_v58 = vmul.f32 %v13491_v48, %v5284_v56 }
 0x6ca   : > { %v5307_v0 = vadd.f32 %v13493_v5, %v5295_v49  ;;  %v5308_v36 = vadd.f32 %v13493_v5, %v5296_v58  ;;  %11520 = vmatmul.mubr.msk.bf16.vlgmr.msra.gmra.mrb[212].mxu1 %vm1112_vm4, %v5348_v52  ;;  %11526 = vmatmul.mubr.msk.bf16.vlgmr.msra.gmra.mrb[216].mxu0 %vm1112_vm4, %v5349_v29 }
 0x6cb   : > { %v5246_v43 = vpop.f32.mrb[196].mxu1  ;;  %11530 = vmatpush3.bf16.msra.mxu1 %v13481_v62  ;;  %11536 = vmatpush3.bf16.msra.mxu0 %v13481_v62 }
 0x6cc   : > { %v5328_v60 = vmul.f32 0.25, %v5307_v0  ;;  %v5330_v14 = vmul.f32 0.75, %v5307_v0  ;;  %v5332_v7 = vmul.f32 0.25, %v5308_v36  ;;  %v5334_v50 = vmul.f32 0.75, %v5308_v36  ;;  %v11473_v26 = vpop.f32.mrb[197].mxu1  ;;  %11531 = vmatprep.mubr.msk.bf16.mxu1 %vm12134_vm0, %v14873_v35  ;;  %11537 = vmatprep.mubr.msk.bf16.mxu0 %vm12134_vm0, %v14873_v35 }
 0x6cd   : > { %v5277_v47 = vmul.f32 %v13497_v18, %v5246_v43  ;;  %v5249_v45 = vpop.f32.mrb[198].mxu1  ;;  %11541 = vmatprep.subr.bf16.mxu1 %v14873_v35  ;;  %11547 = vmatprep.subr.bf16.mxu0 %v14873_v35  ;;  %v6553_v31 = vmul.f32 %v13514_v55, %v5307_v0  ;;  %v6554_v24 = vmul.f32 %v13514_v55, %v5308_v36 }
 0x6ce   : > { %v11474_v25 = vpop.f32.mrb[199].mxu1  ;;  %v5329_v56 = vadd.f32 %v5328_v60, %v13575_v21  ;;  %v5331_v51 = vadd.f32 %v5330_v14, %v13573_v15  ;;  %v5333_v38 = vadd.f32 %v5332_v7, %v5330_v14  ;;  %v5335_v49 = vadd.f32 %v5334_v50, %v5328_v60  ;;  %v13678_v14 = vld [vmem:[%s14821_s5 + $0x10] sm:$0xff]  }
 0x6cf   : > { %v5285_v58 = vadd.f32 %v5277_v47, %v5265_v30  ;;  %v13634_v52 = vadd.f32 %v6553_v31, %v6541_v42  ;;  %v13636_v18 = vadd.f32 %v6554_v24, %v6542_v41  ;;  %v6543_v15 = vmul.f32 %v13512_v16, %v4690_v1 }
 0x6d0   : > { %v5350_v29 = vpack.c.bf16 %v5329_v56, %v5329_v56  ;;  %v5351_v43 = vpack.c.bf16 %v5331_v51, %v5331_v51  ;;  %v5352_v30 = vpack.c.bf16 %v5333_v38, %v5333_v38  ;;  %v5353_v60 = vpack.c.bf16 %v5335_v49, %v5335_v49 }
 0x6d1   : > { %v5297_v26 = vmul.f32 %v13491_v48, %v5285_v58  ;;  %v3768_v56 = vadd.f32 %v13355_v32, %v13501_v37  ;;  %v3725_v51 = vadd.f32 %v13361_v6, %v13501_v37 }
 0x6d2   : > { %11532 = vmatmul.mubr.msk.bf16.vlgmr.msra.gmra.mrb[216].mxu1 %vm1112_vm4, %v5350_v29  ;;  %11538 = vmatmul.mubr.msk.bf16.vlgmr.msra.gmra.mrb[220].mxu0 %vm1112_vm4, %v5351_v43 }
 0x6d3   : > { %v5309_v0 = vadd.f32 %v13493_v5, %v5297_v26  ;;  %11542 = vmatpush3.bf16.msra.mxu1 %v13481_v62  ;;  %11548 = vmatpush3.bf16.msra.mxu0 %v13481_v62  ;;  %v6056_v38 = vmul.f32 %v13495_v33, %v3768_v56  ;;  %v6055_v29 = vmul.f32 %v13495_v33, %v3725_v51 }
 0x6d4   : > { %11543 = vmatprep.mubr.msk.bf16.mxu1 %vm12134_vm0, %v14873_v35  ;;  %11549 = vmatprep.mubr.msk.bf16.mxu0 %vm12134_vm0, %v14873_v35 }
 0x6d5   : > { %11553 = vmatprep.subr.bf16.mxu1 %v14873_v35  ;;  %11559 = vmatprep.subr.bf16.mxu0 %v14873_v35  ;;  %v5336_v48 = vmul.f32 0.25, %v5309_v0  ;;  %v5338_v21 = vmul.f32 0.75, %v5309_v0  ;;  %v6555_v5 = vmul.f32 %v13514_v55, %v5309_v0  ;;  %v5356_v1 = vpack.c.bf16 %v5309_v0, %v5309_v0 }
 0x6d7   : > { %v5337_v36 = vadd.f32 %v5336_v48, %v5334_v50  ;;  %v5339_v41 = vadd.f32 %v5338_v21, %v5332_v7  ;;  %v13652_v42 = vadd.f32 %v6555_v5, %v6543_v15 }
 0x6d9   : > { %v5354_v16 = vpack.c.bf16 %v5337_v36, %v5337_v36  ;;  %v5355_v55 = vpack.c.bf16 %v5339_v41, %v5339_v41  ;;  %v3811_v41 = vadd.f32 %v13369_v2, %v13501_v37 }
 0x6da   : > { %11544 = vmatmul.mubr.msk.bf16.vlgmr.msra.gmra.mrb[220].mxu1 %vm1112_vm4, %v5352_v30  ;;  %11550 = vmatmul.mubr.msk.bf16.vlgmr.msra.gmra.mrb[224].mxu0 %vm1112_vm4, %v5353_v60  ;;  %v3854_v30 = vadd.f32 %v13363_v28, %v13501_v37 }
 0x6db   : > { %11554 = vmatpush3.bf16.msra.mxu1 %v13481_v62  ;;  %11560 = vmatpush3.bf16.msra.mxu0 %v13481_v62 }
 0x6dc   : > { %11555 = vmatprep.mubr.msk.bf16.mxu1 %vm12134_vm0, %v14873_v35  ;;  %11561 = vmatprep.mubr.msk.bf16.mxu0 %vm12134_vm0, %v14873_v35 }
 0x6dd   : > { %11565 = vmatprep.subr.bf16.mxu1 %v14873_v35  ;;  %11571 = vmatprep.subr.bf16.mxu0 %v14873_v35 }
 0x6e2   : > { %11556 = vmatmul.mubr.msk.bf16.vlgmr.msra.gmra.mrb[224].mxu1 %vm1112_vm4, %v5354_v16  ;;  %11562 = vmatmul.mubr.msk.bf16.vlgmr.msra.gmra.mrb[228].mxu0 %vm1112_vm4, %v5355_v55 }
 0x6e3   : > { %11566 = vmatpush3.bf16.msra.mxu1 %v13481_v62  ;;  %11567 = vmatprep.mubr.msk.bf16.mxu1 %vm12134_vm0, %v14873_v35  ;;  %v3682_v62 = vadd.f32 %v13349_v4, %v13501_v37 }
 0x6e4   : > { %11573 = vmatprep.mubr.msk.bf16.mxu0 %vm12134_vm0, %v14873_v35  ;;  %11577 = vmatprep.subr.bf16.mxu1 %v14873_v35 }
 0x6e5   : > { %11572 = vmatpush3.bf16.msra.mxu0 %v13678_v14  ;;  %v6054_v50 = vmul.f32 %v13495_v33, %v3682_v62  ;;  %v6058_v62 = vmul.f32 %v13495_v33, %v3854_v30 }
 0x6e6   : > { %11583 = vmatprep.subr.bf16.mxu0 %v14873_v35 }
 0x6ea   : > { %11568 = vmatmul.mubr.msk.bf16.vlgmr.msra.gmra.mrb[228].mxu1 %vm1112_vm4, %v5356_v1  ;;  %v6057_v1 = vmul.f32 %v13495_v33, %v3811_v41 }
 0x6eb   : > { %11579 = vmatprep.mubr.msk.bf16.mxu1 %vm12134_vm0, %v14873_v35  ;;  %11578 = vmatpush3.bf16.msra.mxu1 %v13678_v14 }
 0x6ec   : > { %11589 = vmatprep.subr.bf16.mxu1 %v14873_v35 }
 0x76d   : > { %v5397_v7 = vpop.f32.mrb[200].mxu0 }
 0x76e   : > { %v6074_v47 = vmul.f32 %v13499_v20, %v5397_v7  ;;  %v11479_v45 = vpop.f32.mrb[201].mxu0 }
 0x76f   : > { %v5400_v31 = vpop.f32.mrb[202].mxu0 }
 0x770   : > { %v6090_v24 = vadd.f32 %v6074_v47, %v6054_v50  ;;  %v11480_v25 = vpop.f32.mrb[203].mxu0 }
 0x772   : > { %v6110_v4 = vmul.f32 %v13507_v53, %v6090_v24 }
 0x774   : > { %v13702_v60 = vadd.f32 %v13505_v44, %v6110_v4 }
 0x776   : > { %v6146_v2 = vmul.f32 0.5, %v13702_v60 }
 0x785   : > { %v5440_v49 = vpop.f32.mrb[200].mxu1  ;;  %v5483_v58 = vpop.f32.mrb[204].mxu0 }
 0x786   : > { %v6075_v43 = vmul.f32 %v13499_v20, %v5440_v49  ;;  %v6076_v26 = vmul.f32 %v13499_v20, %v5483_v58  ;;  %v11485_v0 = vpop.f32.mrb[201].mxu1  ;;  %v11491_v15 = vpop.f32.mrb[205].mxu0 }
 0x787   : > { %v5443_v48 = vpop.f32.mrb[202].mxu1  ;;  %v5486_v21 = vpop.f32.mrb[206].mxu0 }
 0x788   : > { %v6091_v32 = vadd.f32 %v6075_v43, %v6055_v29  ;;  %v6092_v5 = vadd.f32 %v6076_v26, %v6056_v38  ;;  %v11486_v36 = vpop.f32.mrb[203].mxu1  ;;  %v11492_v6 = vpop.f32.mrb[207].mxu0  ;;  %v3897_v43 = vadd.f32 %v13375_v17, %v13501_v37  ;;  %v3940_v26 = vadd.f32 %v13371_v12, %v13501_v37 }
 0x78a   : > { %v6111_v16 = vmul.f32 %v13507_v53, %v6091_v32  ;;  %v6112_v7 = vmul.f32 %v13507_v53, %v6092_v5  ;;  %v6059_v32 = vmul.f32 %v13495_v33, %v3897_v43  ;;  %v6060_v5 = vmul.f32 %v13495_v33, %v3940_v26 }
 0x78c   : > { %v13706_v55 = vadd.f32 %v13505_v44, %v6111_v16  ;;  %v13720_v0 = vadd.f32 %v13505_v44, %v6112_v7 }
 0x78d   : > { %v5526_v50 = vpop.f32.mrb[204].mxu1  ;;  %v5569_v47 = vpop.f32.mrb[208].mxu0 }
 0x78e   : > { %v6147_v28 = vmul.f32 0.5, %v13706_v55  ;;  %v6077_v45 = vmul.f32 %v13499_v20, %v5526_v50  ;;  %v6078_v31 = vmul.f32 %v13499_v20, %v5569_v47  ;;  %v11497_v24 = vpop.f32.mrb[205].mxu1  ;;  %v11503_v25 = vpop.f32.mrb[209].mxu0  ;;  %v6149_v17 = vmul.f32 0.5, %v13720_v0 }
 0x78f   : > { %v5529_v56 = vpop.f32.mrb[206].mxu1  ;;  %v5572_v51 = vpop.f32.mrb[210].mxu0  ;;  %v3983_v24 = vadd.f32 %v13379_v34, %v13501_v37  ;;  %v4026_v25 = vadd.f32 %v13377_v19, %v13501_v37 }
 0x790   : > { %v6148_v38 = vadd.f32 %v6147_v28, %v6146_v2  ;;  %v6093_v49 = vadd.f32 %v6077_v45, %v6057_v1  ;;  %v6094_v58 = vadd.f32 %v6078_v31, %v6058_v62  ;;  %v11498_v4 = vpop.f32.mrb[207].mxu1  ;;  %v11504_v29 = vpop.f32.mrb[211].mxu0 }
 0x791   : > { %v6062_v4 = vmul.f32 %v13495_v33, %v4026_v25 }
 0x792   : > { %v6172_v15 = vpack.c.bf16 %v6148_v38, %v6148_v38  ;;  %v6113_v48 = vmul.f32 %v13507_v53, %v6093_v49  ;;  %v6114_v41 = vmul.f32 %v13507_v53, %v6094_v58  ;;  %v6061_v58 = vmul.f32 %v13495_v33, %v3983_v24 }
 0x794   : > { %v13724_v21 = vadd.f32 %v13505_v44, %v6113_v48  ;;  %11574 = vmatmul.mubr.msk.bf16.vlgmr.msra.gmra.mrb[232].mxu0 %vm1475_vm5, %v6172_v15  ;;  %v13743_v51 = vadd.f32 %v13505_v44, %v6114_v41 }
 0x795   : > { %v5612_v36 = vpop.f32.mrb[208].mxu1  ;;  %v5655_v6 = vpop.f32.mrb[212].mxu0  ;;  %11584 = vmatpush3.bf16.msra.mxu0 %v13678_v14  ;;  %11585 = vmatprep.mubr.msk.bf16.mxu0 %vm12134_vm0, %v14873_v35 }
 0x796   : > { %v6150_v12 = vmul.f32 0.5, %v13724_v21  ;;  %v6079_v30 = vmul.f32 %v13499_v20, %v5612_v36  ;;  %v6080_v16 = vmul.f32 %v13499_v20, %v5655_v6  ;;  %v11509_v1 = vpop.f32.mrb[209].mxu1  ;;  %v11515_v62 = vpop.f32.mrb[213].mxu0  ;;  %11595 = vmatprep.subr.bf16.mxu0 %v14873_v35  ;;  %v6152_v19 = vmul.f32 0.5, %v13743_v51 }
 0x797   : > { %v5615_v7 = vpop.f32.mrb[210].mxu1  ;;  %v5658_v50 = vpop.f32.mrb[214].mxu0  ;;  %v4069_v1 = vadd.f32 %v13383_v22, %v13501_v37  ;;  %v4112_v62 = vadd.f32 %v13381_v59, %v13501_v37 }
 0x798   : > { %v6151_v47 = vadd.f32 %v6150_v12, %v6149_v17  ;;  %v6095_v2 = vadd.f32 %v6079_v30, %v6059_v32  ;;  %v6096_v28 = vadd.f32 %v6080_v16, %v6060_v5  ;;  %v11510_v45 = vpop.f32.mrb[211].mxu1  ;;  %v11516_v31 = vpop.f32.mrb[215].mxu0 }
 0x799   : > { %v6064_v45 = vmul.f32 %v13495_v33, %v4112_v62 }
 0x79a   : > { %v6173_v56 = vpack.c.bf16 %v6151_v47, %v6151_v47  ;;  %v6115_v38 = vmul.f32 %v13507_v53, %v6095_v2  ;;  %v6116_v34 = vmul.f32 %v13507_v53, %v6096_v28  ;;  %v6063_v28 = vmul.f32 %v13495_v33, %v4069_v1 }
 0x79c   : > { %v13747_v49 = vadd.f32 %v13505_v44, %v6115_v38  ;;  %11580 = vmatmul.mubr.msk.bf16.vlgmr.msra.gmra.mrb[232].mxu1 %vm1475_vm5, %v6173_v56  ;;  %v13766_v7 = vadd.f32 %v13505_v44, %v6116_v34 }
 0x79d   : > { %v5698_v29 = vpop.f32.mrb[212].mxu1  ;;  %v5741_v43 = vpop.f32.mrb[216].mxu0  ;;  %11590 = vmatpush3.bf16.msra.mxu1 %v13678_v14  ;;  %11591 = vmatprep.mubr.msk.bf16.mxu1 %vm12134_vm0, %v14873_v35 }
 0x79e   : > { %v6153_v26 = vmul.f32 0.5, %v13747_v49  ;;  %v6081_v15 = vmul.f32 %v13499_v20, %v5698_v29  ;;  %v6082_v48 = vmul.f32 %v13499_v20, %v5741_v43  ;;  %v11521_v32 = vpop.f32.mrb[213].mxu1  ;;  %v11527_v5 = vpop.f32.mrb[217].mxu0  ;;  %11601 = vmatprep.subr.bf16.mxu1 %v14873_v35  ;;  %v6155_v22 = vmul.f32 0.5, %v13766_v7 }
 0x79f   : > { %v5701_v17 = vpop.f32.mrb[214].mxu1  ;;  %v5744_v36 = vpop.f32.mrb[218].mxu0  ;;  %v4155_v32 = vadd.f32 %v13387_v23, %v13501_v37  ;;  %v4198_v5 = vadd.f32 %v13385_v61, %v13501_v37 }
 0x7a0   : > { %v6154_v6 = vadd.f32 %v6153_v26, %v6152_v19  ;;  %v6097_v12 = vadd.f32 %v6081_v15, %v6061_v58  ;;  %v6098_v41 = vadd.f32 %v6082_v48, %v6062_v4  ;;  %v11522_v30 = vpop.f32.mrb[215].mxu1  ;;  %v11528_v16 = vpop.f32.mrb[219].mxu0 }
 0x7a1   : > { %v6066_v30 = vmul.f32 %v13495_v33, %v4198_v5 }
 0x7a2   : > { %v6174_v50 = vpack.c.bf16 %v6154_v6, %v6154_v6  ;;  %v6117_v47 = vmul.f32 %v13507_v53, %v6097_v12  ;;  %v6118_v25 = vmul.f32 %v13507_v53, %v6098_v41  ;;  %v6065_v41 = vmul.f32 %v13495_v33, %v4155_v32 }
 0x7a4   : > { %v13770_v2 = vadd.f32 %v13505_v44, %v6117_v47  ;;  %11586 = vmatmul.mubr.msk.bf16.vlgmr.msra.gmra.mrb[236].mxu0 %vm1475_vm5, %v6174_v50  ;;  %v13789_v36 = vadd.f32 %v13505_v44, %v6118_v25 }
 0x7a5   : > { %v5784_v31 = vpop.f32.mrb[216].mxu1  ;;  %v5827_v24 = vpop.f32.mrb[220].mxu0  ;;  %11596 = vmatpush3.bf16.msra.mxu0 %v13678_v14  ;;  %11597 = vmatprep.mubr.msk.bf16.mxu0 %vm12134_vm0, %v14873_v35 }
 0x7a6   : > { %v6156_v59 = vmul.f32 0.5, %v13770_v2  ;;  %v6083_v56 = vmul.f32 %v13499_v20, %v5784_v31  ;;  %v6084_v38 = vmul.f32 %v13499_v20, %v5827_v24  ;;  %v11533_v58 = vpop.f32.mrb[217].mxu1  ;;  %v11539_v4 = vpop.f32.mrb[221].mxu0  ;;  %11607 = vmatprep.subr.bf16.mxu0 %v14873_v35  ;;  %v6158_v61 = vmul.f32 0.5, %v13789_v36 }
 0x7a7   : > { %v5787_v34 = vpop.f32.mrb[218].mxu1  ;;  %v5830_v29 = vpop.f32.mrb[222].mxu0  ;;  %v4241_v58 = vadd.f32 %v13401_v10, %v13501_v37  ;;  %v4284_v4 = vadd.f32 %v13389_v3, %v13501_v37 }
 0x7a8   : > { %v6157_v43 = vadd.f32 %v6156_v59, %v6155_v22  ;;  %v6099_v19 = vadd.f32 %v6083_v56, %v6063_v28  ;;  %v6100_v26 = vadd.f32 %v6084_v38, %v6064_v45  ;;  %v11534_v15 = vpop.f32.mrb[219].mxu1  ;;  %v11540_v48 = vpop.f32.mrb[223].mxu0 }
 0x7a9   : > { %v6068_v15 = vmul.f32 %v13495_v33, %v4284_v4 }
 0x7aa   : > { %v6175_v17 = vpack.c.bf16 %v6157_v43, %v6157_v43  ;;  %v6119_v6 = vmul.f32 %v13507_v53, %v6099_v19  ;;  %v6120_v23 = vmul.f32 %v13507_v53, %v6100_v26  ;;  %v6067_v26 = vmul.f32 %v13495_v33, %v4241_v58 }
 0x7ac   : > { %v13793_v12 = vadd.f32 %v13505_v44, %v6119_v6  ;;  %11592 = vmatmul.mubr.msk.bf16.vlgmr.msra.gmra.mrb[236].mxu1 %vm1475_vm5, %v6175_v17  ;;  %v13812_v34 = vadd.f32 %v13505_v44, %v6120_v23 }
 0x7ad   : > { %v5870_v16 = vpop.f32.mrb[220].mxu1  ;;  %v5913_v1 = vpop.f32.mrb[224].mxu0  ;;  %11602 = vmatpush3.bf16.msra.mxu1 %v13678_v14  ;;  %11603 = vmatprep.mubr.msk.bf16.mxu1 %vm12134_vm0, %v14873_v35 }
 0x7ae   : > { %v6159_v62 = vmul.f32 0.5, %v13793_v12  ;;  %v6085_v50 = vmul.f32 %v13499_v20, %v5870_v16  ;;  %v6086_v47 = vmul.f32 %v13499_v20, %v5913_v1  ;;  %v11545_v28 = vpop.f32.mrb[221].mxu1  ;;  %v11551_v45 = vpop.f32.mrb[225].mxu0  ;;  %11613 = vmatprep.subr.bf16.mxu1 %v14873_v35  ;;  %v6161_v10 = vmul.f32 0.5, %v13812_v34 }
 0x7af   : > { %v5873_v22 = vpop.f32.mrb[222].mxu1  ;;  %v5916_v31 = vpop.f32.mrb[226].mxu0  ;;  %v4327_v28 = vadd.f32 %v13405_v54, %v13501_v37 }
 0x7b0   : > { %v6160_v24 = vadd.f32 %v6159_v62, %v6158_v61  ;;  %v6101_v59 = vadd.f32 %v6085_v50, %v6065_v41  ;;  %v6102_v25 = vadd.f32 %v6086_v47, %v6066_v30  ;;  %v11546_v56 = vpop.f32.mrb[223].mxu1  ;;  %v11552_v38 = vpop.f32.mrb[227].mxu0 }
 0x7b2   : > { %v6176_v29 = vpack.c.bf16 %v6160_v24, %v6160_v24  ;;  %v6121_v43 = vmul.f32 %v13507_v53, %v6101_v59  ;;  %v6122_v5 = vmul.f32 %v13507_v53, %v6102_v25  ;;  %v6069_v59 = vmul.f32 %v13495_v33, %v4327_v28  ;;  %v13878_v28 = vpop.permute.xlu0 %6597 }
 0x7b4   : > { %v13816_v19 = vadd.f32 %v13505_v44, %v6121_v43  ;;  %11598 = vmatmul.mubr.msk.bf16.vlgmr.msra.gmra.mrb[240].mxu0 %vm1475_vm5, %v6176_v29  ;;  %v13833_v22 = vadd.f32 %v13505_v44, %v6122_v5  ;;  %v13870_v5 = vpop.permute.xlu1 %6565 }
 0x7b5   : > { %v5956_v48 = vpop.f32.mrb[224].mxu1  ;;  %v5999_v32 = vpop.f32.mrb[228].mxu0  ;;  %11608 = vmatpush3.bf16.msra.mxu0 %v13678_v14  ;;  %11609 = vmatprep.mubr.msk.bf16.mxu0 %vm12134_vm0, %v14873_v35 }
 0x7b6   : > { %v6162_v3 = vmul.f32 0.5, %v13816_v19  ;;  %v6087_v17 = vmul.f32 %v13499_v20, %v5956_v48  ;;  %v6088_v6 = vmul.f32 %v13499_v20, %v5999_v32  ;;  %v11557_v41 = vpop.f32.mrb[225].mxu1  ;;  %v11563_v30 = vpop.f32.mrb[229].mxu0  ;;  %11619 = vmatprep.subr.bf16.mxu0 %v14873_v35  ;;  %v6164_v54 = vmul.f32 0.5, %v13833_v22 }
 0x7b7   : > { %v5959_v23 = vpop.f32.mrb[226].mxu1  ;;  %v6002_v16 = vpop.f32.mrb[230].mxu0 }
 0x7b8   : > { %v6163_v1 = vadd.f32 %v6162_v3, %v6161_v10  ;;  %v6103_v61 = vadd.f32 %v6087_v17, %v6067_v26  ;;  %v6104_v62 = vadd.f32 %v6088_v6, %v6068_v15  ;;  %v11558_v50 = vpop.f32.mrb[227].mxu1  ;;  %v11564_v47 = vpop.f32.mrb[231].mxu0 }
 0x7ba   : > { %v6177_v45 = vpack.c.bf16 %v6163_v1, %v6163_v1  ;;  %v6123_v31 = vmul.f32 %v13507_v53, %v6103_v61  ;;  %v6124_v56 = vmul.f32 %v13507_v53, %v6104_v62  ;;  %v13874_v1 = vpop.permute.xlu1 %6585 }
 0x7bc   : > { %v13837_v24 = vadd.f32 %v13505_v44, %v6123_v31  ;;  %11604 = vmatmul.mubr.msk.bf16.vlgmr.msra.gmra.mrb[240].mxu1 %vm1475_vm5, %v6177_v45 }
 0x7bd   : > { %v6042_v25 = vpop.f32.mrb[228].mxu1  ;;  %11614 = vmatpush3.bf16.msra.mxu1 %v13678_v14  ;;  %11615 = vmatprep.mubr.msk.bf16.mxu1 %vm12134_vm0, %v14873_v35  ;;  %v13850_v14 = vadd.f32 %v13505_v44, %v6124_v56 }
 0x7be   : > { %v6165_v37 = vmul.f32 0.5, %v13837_v24  ;;  %v6089_v38 = vmul.f32 %v13499_v20, %v6042_v25  ;;  %v11569_v58 = vpop.f32.mrb[229].mxu1  ;;  %11625 = vmatprep.subr.bf16.mxu1 %v14873_v35 }
 0x7bf   : > { %v6045_v4 = vpop.f32.mrb[230].mxu1  ;;  %v6167_v20 = vmul.f32 0.5, %v13850_v14 }
 0x7c0   : > { %v6166_v29 = vadd.f32 %v6165_v37, %v6164_v54  ;;  %v6105_v33 = vadd.f32 %v6089_v38, %v6069_v59  ;;  %v11570_v43 = vpop.f32.mrb[231].mxu1 }
 0x7c2   : > { %v6178_v26 = vpack.c.bf16 %v6166_v29, %v6166_v29  ;;  %v6125_v15 = vmul.f32 %v13507_v53, %v6105_v33 }
 0x7c4   : > { %v13854_v10 = vadd.f32 %v13505_v44, %v6125_v15  ;;  %11610 = vmatmul.mubr.msk.bf16.vlgmr.msra.gmra.mrb[244].mxu0 %vm1475_vm5, %v6178_v26  ;;  %v10398_v44 = vld [vmem:[%s14821_s5 + $0x18] sm:$0xf] }
 0x7c5   : > { %11621 = vmatprep.mubr.msk.bf16.mxu0 %vm12134_vm0, %v14873_v35  ;;  %v6629_v53 = vsel %vm1116_vm3, %v10398_v44, 0 }
 0x7c6   : > { %v6168_v48 = vmul.f32 0.5, %v13854_v10  ;;  %11620 = vmatpush3.bf16.msra.mxu0 %v6629_v53 }
 0x7c7   : > { %11631 = vmatprep.subr.bf16.mxu0 %v14873_v35 }
 0x7c8   : > { %v6169_v32 = vadd.f32 %v6168_v48, %v6167_v20 }
 0x7ca   : > { %v6179_v3 = vpack.c.bf16 %v6169_v32, %v6169_v32 }
 0x7cc   : > { %11616 = vmatmul.mubr.msk.bf16.vlgmr.msra.gmra.mrb[244].mxu1 %vm1475_vm5, %v6179_v3 }
 0x7cd   : > { %11627 = vmatprep.mubr.msk.bf16.mxu1 %vm12134_vm0, %v14873_v35  ;;  %11626 = vmatpush3.bf16.msra.mxu1 %v6629_v53 }
 0x7ce   : > { %11637 = vmatprep.subr.bf16.mxu1 %v14873_v35 }
 0x867   : > { %v6223_v17 = vpop.f32.mrb[232].mxu0 }
 0x868   : > { %v6568_v6 = vmul.f32 %v13870_v5, %v6223_v17  ;;  %v11575_v41 = vpop.f32.mrb[233].mxu0 }
 0x869   : > { %v6226_v30 = vpop.f32.mrb[234].mxu0 }
 0x86a   : > { %v6576_v23 = vadd.f32 %v6568_v6, %v13520_v57  ;;  %v11576_v16 = vpop.f32.mrb[235].mxu0 }
 0x86c   : > { %v6588_v62 = vmul.f32 %v13874_v1, %v6576_v23 }
 0x86e   : > { %v13883_v54 = vadd.f32 %v13878_v28, %v6588_v62 }
 0x86f   : > { %v6266_v61 = vpop.f32.mrb[232].mxu1 }
 0x870   : > { %v6569_v50 = vmul.f32 %v13870_v5, %v6266_v61  ;;  %v11581_v47 = vpop.f32.mrb[233].mxu1  ;;  %v6608_v56 = vmul.f32 0.5, %v13883_v54 }
 0x871   : > { %v6269_v45 = vpop.f32.mrb[234].mxu1 }
 0x872   : > { %v6577_v31 = vadd.f32 %v6569_v50, %v13544_v11  ;;  %v11582_v59 = vpop.f32.mrb[235].mxu1 }
 0x874   : > { %v6589_v25 = vmul.f32 %v13874_v1, %v6577_v31 }
 0x876   : > { %v13886_v57 = vadd.f32 %v13878_v28, %v6589_v25 }
 0x877   : > { %v6309_v37 = vpop.f32.mrb[236].mxu0 }
 0x878   : > { %v6609_v38 = vmul.f32 0.5, %v13886_v57  ;;  %v6570_v58 = vmul.f32 %v13870_v5, %v6309_v37  ;;  %v11587_v4 = vpop.f32.mrb[237].mxu0 }
 0x879   : > { %v6312_v29 = vpop.f32.mrb[238].mxu0 }
 0x87a   : > { %v6610_v33 = vadd.f32 %v6609_v38, %v6608_v56  ;;  %v6578_v11 = vadd.f32 %v6570_v58, %v13546_v8  ;;  %v11588_v43 = vpop.f32.mrb[239].mxu0 }
 0x87c   : > { %v6621_v26 = vpack.c.bf16 %v6610_v33, %v6610_v33  ;;  %v6590_v20 = vmul.f32 %v13874_v1, %v6578_v11 }
 0x87e   : > { %11622 = vmatmul.mubr.msk.bf16.vlgmr.msra.gmra.mrb[248].mxu0 %vm1112_vm4, %v6621_v26  ;;  %v13900_v17 = vadd.f32 %v13878_v28, %v6590_v20 }
 0x87f   : > { %v6352_v15 = vpop.f32.mrb[236].mxu1  ;;  %11632 = vmatpush3.bf16.msra.mxu0 %v6629_v53  ;;  %11633 = vmatprep.mubr.msk.bf16.mxu0 %vm12134_vm0, %v14873_v35 }
 0x880   : > { %v6571_v48 = vmul.f32 %v13870_v5, %v6352_v15  ;;  %v11593_v32 = vpop.f32.mrb[237].mxu1  ;;  %11643 = vmatprep.subr.bf16.mxu0 %v14873_v35  ;;  %v6611_v23 = vmul.f32 0.5, %v13900_v17 }
 0x881   : > { %v6355_v3 = vpop.f32.mrb[238].mxu1 }
 0x882   : > { %v6579_v44 = vadd.f32 %v6571_v48, %v13590_v46  ;;  %v11594_v8 = vpop.f32.mrb[239].mxu1  ;;  %v6840_v3 = vpack.c.bf16 %v13702_v60, %v13702_v60 }
 0x884   : > { %v6591_v6 = vmul.f32 %v13874_v1, %v6579_v44  ;;  %v6867_v8 = vsel %vm1116_vm3, %v6840_v3, 0  ;;  %v14898_v3 = vmov 0  }
 0x886   : > { %v13904_v41 = vadd.f32 %v13878_v28, %v6591_v6 }
 0x887   : > { %v6395_v30 = vpop.f32.mrb[240].mxu0 }
 0x888   : > { %v6612_v16 = vmul.f32 0.5, %v13904_v41  ;;  %v6572_v61 = vmul.f32 %v13870_v5, %v6395_v30  ;;  %v11599_v62 = vpop.f32.mrb[241].mxu0 }
 0x889   : > { %v6398_v50 = vpop.f32.mrb[242].mxu0  ;;  %v6842_v62 = vpack.c.bf16 %v13720_v0, %v13720_v0 }
 0x88a   : > { %v6613_v47 = vadd.f32 %v6612_v16, %v6611_v23  ;;  %v6580_v46 = vadd.f32 %v6572_v61, %v13592_v9  ;;  %v11600_v45 = vpop.f32.mrb[243].mxu0  ;;  %v13943_v50 = vld [vmem:[%s14819_s3 + $0x18] sm:$0xf] }
 0x88c   : > { %v6622_v31 = vpack.c.bf16 %v6613_v47, %v6613_v47  ;;  %v6592_v25 = vmul.f32 %v13874_v1, %v6580_v46 }
 0x88e   : > { %11628 = vmatmul.mubr.msk.bf16.vlgmr.msra.gmra.mrb[248].mxu1 %vm1112_vm4, %v6622_v31  ;;  %v13918_v4 = vadd.f32 %v13878_v28, %v6592_v25 }
 0x88f   : > { %v6438_v59 = vpop.f32.mrb[240].mxu1  ;;  %11638 = vmatpush3.bf16.msra.mxu1 %v6629_v53  ;;  %11639 = vmatprep.mubr.msk.bf16.mxu1 %vm12134_vm0, %v14873_v35 }
 0x890   : > { %v6573_v37 = vmul.f32 %v13870_v5, %v6438_v59  ;;  %v11605_v56 = vpop.f32.mrb[241].mxu1  ;;  %11649 = vmatprep.subr.bf16.mxu1 %v14873_v35  ;;  %v6614_v11 = vmul.f32 0.5, %v13918_v4 }
 0x891   : > { %v6441_v38 = vpop.f32.mrb[242].mxu1 }
 0x892   : > { %v6581_v58 = vadd.f32 %v6573_v37, %v13634_v52  ;;  %v11606_v9 = vpop.f32.mrb[243].mxu1 }
 0x894   : > { %v6593_v29 = vmul.f32 %v13874_v1, %v6581_v58 }
 0x896   : > { %v13922_v53 = vadd.f32 %v13878_v28, %v6593_v29 }
 0x897   : > { %v6481_v33 = vpop.f32.mrb[244].mxu0 }
 0x898   : > { %v6615_v43 = vmul.f32 0.5, %v13922_v53  ;;  %v6574_v26 = vmul.f32 %v13870_v5, %v6481_v33  ;;  %v11611_v15 = vpop.f32.mrb[245].mxu0 }
 0x899   : > { %v6484_v20 = vpop.f32.mrb[246].mxu0 }
 0x89a   : > { %v6616_v48 = vadd.f32 %v6615_v43, %v6614_v11  ;;  %v6582_v52 = vadd.f32 %v6574_v26, %v13636_v18  ;;  %v11612_v32 = vpop.f32.mrb[247].mxu0  ;;  %v6854_v26 = vpack.c.bf16 %v13850_v14, %v13850_v14  ;;  %v7556_v14 = vpack.c.bf16 %v13883_v54, %v13883_v54  ;;  %v14091_v54 = vld [vmem:[%s14819_s3 + $0x1c] sm:$0xf] }
 0x89c   : > { %v6623_v44 = vpack.c.bf16 %v6616_v48, %v6616_v48  ;;  %v6594_v30 = vmul.f32 %v13874_v1, %v6582_v52  ;;  %v7469_v20 = vsel %vm1116_vm3, %v6854_v26, 0  ;;  %v14897_v52 = vmov 6  }
 0x89e   : > { %11634 = vmatmul.mubr.msk.bf16.vlgmr.msra.gmra.mrb[252].mxu0 %vm1112_vm4, %v6623_v44  ;;  %v13946_v47 = vadd.f32 %v13878_v28, %v6594_v30  ;;  %v14899_v44 = vmov 17   ;;  %v14900_v30 = vmov 14  }
 0x89f   : > { %11644 = vmatpush3.bf16.msra.mxu0 %v6867_v8  ;;  %v6524_v6 = vpop.f32.mrb[244].mxu1  ;;  %11645 = vmatprep.mubr.msk.bf16.mxu0 %vm12134_vm0, %v14873_v35 }
 0x8a0   : > { %v6575_v23 = vmul.f32 %v13870_v5, %v6524_v6  ;;  %v11617_v16 = vpop.f32.mrb[245].mxu1  ;;  %11655 = vmatprep.subr.bf16.mxu0 %v14873_v35  ;;  %v6617_v0 = vmul.f32 0.5, %v13946_v47  ;;  %v7561_v6 = vpack.c.bf16 %v13922_v53, %v13922_v53  ;;  %v14902_v53 = vmov 5  }
 0x8a1   : > { %v6527_v18 = vpop.f32.mrb[246].mxu1 }
 0x8a2   : > { %v6583_v60 = vadd.f32 %v6575_v23, %v13652_v42  ;;  %v11618_v61 = vpop.f32.mrb[247].mxu1  ;;  %v6953_v42 = vsel %vm1116_vm3, %v6842_v62, 0  ;;  %v14901_v23 = vmov 18   ;;  %v7789_v16 = vsel %vm1116_vm3, %v7561_v6, 0 }
 0x8a3   : > { %v14903_v18 = vmov 10   ;;  %v14904_v62 = vmov 15  }
 0x8a4   : > { %v6595_v5 = vmul.f32 %v13874_v1, %v6583_v60  ;;  %v6841_v1 = vpack.c.bf16 %v13706_v55, %v13706_v55  ;;  %v6843_v55 = vpack.c.bf16 %v13724_v21, %v13724_v21  ;;  %v6845_v21 = vpack.c.bf16 %v13747_v49, %v13747_v49 }
 0x8a5   : > { %v6847_v49 = vpack.c.bf16 %v13770_v2, %v13770_v2  ;;  %v6849_v2 = vpack.c.bf16 %v13793_v12, %v13793_v12  ;;  %v14039_v12 = vld [vmem:[%s14820_s4 + $0x10] sm:$0xff] }
 0x8a6   : > { %v13950_v46 = vadd.f32 %v13878_v28, %v6595_v5  ;;  %11646 = vmatmul.mubr.msk.bf16.vlgmr.msra.gmra.mrb[0].mxu0 %vm1112_vm4, %v13943_v50  ;;  %v6844_v28 = vpack.c.bf16 %v13743_v51, %v13743_v51  ;;  %v6910_v25 = vsel %vm1116_vm3, %v6841_v1, 0  ;;  %v6846_v51 = vpack.c.bf16 %v13766_v7, %v13766_v7  ;;  %7926 = vperm.xlu1 %12097, %v14039_v12   ;;  %v14910_v1 = vld [vmem:[#allocation2_spill] sm:$0xff] }
 0x8a7   : > { %11656 = vmatpush3.bf16.msra.mxu0 %v6953_v42  ;;  %11657 = vmatprep.mubr.msk.bf16.mxu0 %vm12134_vm0, %v14873_v35  ;;  %v6996_v56 = vsel %vm1116_vm3, %v6843_v55, 0  ;;  %v6848_v7 = vpack.c.bf16 %v13789_v36, %v13789_v36  ;;  %v7082_v58 = vsel %vm1116_vm3, %v6845_v21, 0  ;;  %v6850_v36 = vpack.c.bf16 %v13812_v34, %v13812_v34  ;;  %v6824_v55 = vpop.permute.xlu0 %6823 }
 0x8a8   : > { %v6618_v45 = vmul.f32 0.5, %v13950_v46  ;;  %11667 = vmatprep.subr.bf16.mxu0 %v14873_v35  ;;  %v7039_v37 = vsel %vm1116_vm3, %v6844_v28, 0  ;;  %v7125_v38 = vsel %vm1116_vm3, %v6846_v51, 0  ;;  %v7168_v29 = vsel %vm1116_vm3, %v6847_v49, 0  ;;  %7567 = vperm.xlu0 %12098, %v14039_v12   ;;  %v14196_v49 = vld [vmem:[%s14819_s3 + $0x20] sm:$0xf] }
 0x8a9   : > { %v7211_v9 = vsel %vm1116_vm3, %v6848_v7, 0  ;;  %v7297_v33 = vsel %vm1116_vm3, %v6850_v36, 0  ;;  %v6852_v34 = vpack.c.bf16 %v13833_v22, %v13833_v22  ;;  %v7254_v11 = vsel %vm1116_vm3, %v6849_v2, 0 }
 0x8aa   : > { %v6619_v31 = vadd.f32 %v6618_v45, %v6617_v0  ;;  %v6851_v22 = vpack.c.bf16 %v13816_v19, %v13816_v19  ;;  %v6853_v19 = vpack.c.bf16 %v13837_v24, %v13837_v24  ;;  %12099 = vset.pattern.permute.xlu1 %v14876_v39  ;;  %v7574_v24 = vsel %vm1116_vm3, %v7556_v14, 0  ;;  %v6804_v0 = vpop.permute.xlu1 %6803  ;;  %v14912_v14 = vld [vmem:[#allocation4_spill] sm:$0xff] }
 0x8ab   : > { %v7383_v43 = vsel %vm1116_vm3, %v6852_v34, 0  ;;  %8477 = vperm.xlu1 %12099, %v14039_v12   ;;  %v6855_v39 = vpack.c.bf16 %v13854_v10, %v13854_v10  ;;  %v7563_v60 = vpack.c.bf16 %v13950_v46, %v13950_v46  ;;  %v14907_v5 = vmov 8  }
 0x8ac   : > { %v6624_v59 = vpack.c.bf16 %v6619_v31, %v6619_v31  ;;  %v7340_v15 = vsel %vm1116_vm3, %v6851_v22, 0  ;;  %12101 = vset.pattern.permute.xlu0 %v14878_v27  ;;  %v7426_v48 = vsel %vm1116_vm3, %v6853_v19, 0  ;;  %v7558_v27 = vpack.c.bf16 %v13900_v17, %v13900_v17 }
 0x8ad   : > { %8509 = vperm.xlu0 %12101, %v14039_v12   ;;  %v7512_v10 = vsel %vm1116_vm3, %v6855_v39, 0  ;;  %v7560_v17 = vpack.c.bf16 %v13918_v4, %v13918_v4  ;;  %v7562_v4 = vpack.c.bf16 %v13946_v47, %v13946_v47  ;;  %v7875_v61 = vsel %vm1116_vm3, %v7563_v60, 0 }
 0x8ae   : > { %11640 = vmatmul.mubr.msk.bf16.vlgmr.msra.gmra.mrb[252].mxu1 %vm1112_vm4, %v6624_v59  ;;  %11658 = vmatmul.mubr.msk.bf16.vlgmr.msra.gmra.mrb[4].mxu0 %vm1112_vm4, %v13943_v50  ;;  %v14906_v47 = vmov 7   ;;  %v14908_v46 = vmov 19   ;;  %v14909_v42 = vmov 9   ;;  %v6812_v45 = vpop.permute.xlu1 %6811  ;;  %v6806_v28 = vmul.f32 %v6804_v0, %v14910_v1 }
 0x8af   : > { %11650 = vmatpush3.bf16.msra.mxu1 %v6910_v25  ;;  %11668 = vmatpush3.bf16.msra.mxu0 %v7039_v37 }
 0x8b0   : > { %11651 = vmatprep.mubr.msk.bf16.mxu1 %vm12134_vm0, %v14873_v35  ;;  %11661 = vmatprep.subr.bf16.mxu1 %v14873_v35 }
 0x8b1   : > { %11669 = vmatprep.mubr.msk.bf16.mxu0 %vm12134_vm0, %v14873_v35  ;;  %11679 = vmatprep.subr.bf16.mxu0 %v14873_v35 }
 0x8b2   : > { %12100 = vset.pattern.permute.xlu1 %v14877_v40  ;;  %12104 = vset.pattern.permute.xlu0 %v14882_v13  ;;  %v7660_v40 = vsel %vm1116_vm3, %v7558_v27, 0  ;;  %v7557_v13 = vpack.c.bf16 %v13886_v57, %v13886_v57  ;;  %v7746_v57 = vsel %vm1116_vm3, %v7560_v17, 0 }
 0x8b3   : > { %8489 = vperm.xlu1 %12100, %v14039_v12   ;;  %9273 = vperm.xlu0 %12104, %v14039_v12  }
 0x8b4   : > { %v7617_v32 = vsel %vm1116_vm3, %v7557_v13, 0 }
 0x8b6   : > { %11652 = vmatmul.mubr.msk.bf16.vlgmr.msra.gmra.mrb[0].mxu1 %vm1112_vm4, %v13943_v50  ;;  %11670 = vmatmul.mubr.msk.bf16.vlgmr.msra.gmra.mrb[8].mxu0 %vm1112_vm4, %v13943_v50 }
 0x8b7   : > { %11662 = vmatpush3.bf16.msra.mxu1 %v6996_v56  ;;  %11680 = vmatpush3.bf16.msra.mxu0 %v7125_v38  ;;  %v6832_v38 = vpop.permute.xlu1 %6831 }
 0x8b8   : > { %11663 = vmatprep.mubr.msk.bf16.mxu1 %vm12134_vm0, %v14873_v35  ;;  %11673 = vmatprep.subr.bf16.mxu1 %v14873_v35 }
 0x8b9   : > { %11681 = vmatprep.mubr.msk.bf16.mxu0 %vm12134_vm0, %v14873_v35  ;;  %11691 = vmatprep.subr.bf16.mxu0 %v14873_v35 }
 0x8ba   : > { %12102 = vset.pattern.permute.xlu1 %v14880_v63  ;;  %12107 = vset.pattern.permute.xlu0 %v14897_v52  ;;  %v7559_v63 = vpack.c.bf16 %v13904_v41, %v13904_v41  ;;  %v7832_v41 = vsel %vm1116_vm3, %v7562_v4, 0 }
 0x8bb   : > { %8521 = vperm.xlu1 %12102, %v14039_v12   ;;  %9349 = vperm.xlu0 %12107, %v14039_v12  }
 0x8bc   : > { %v7703_v8 = vsel %vm1116_vm3, %v7559_v63, 0 }
 0x8be   : > { %11664 = vmatmul.mubr.msk.bf16.vlgmr.msra.gmra.mrb[4].mxu1 %vm1112_vm4, %v13943_v50  ;;  %11682 = vmatmul.mubr.msk.bf16.vlgmr.msra.gmra.mrb[12].mxu0 %vm1112_vm4, %v13943_v50 }
 0x8bf   : > { %11674 = vmatpush3.bf16.msra.mxu1 %v7082_v58  ;;  %11692 = vmatpush3.bf16.msra.mxu0 %v7211_v9 }
 0x8c0   : > { %11675 = vmatprep.mubr.msk.bf16.mxu1 %vm12134_vm0, %v14873_v35  ;;  %11685 = vmatprep.subr.bf16.mxu1 %v14873_v35 }
 0x8c1   : > { %11693 = vmatprep.mubr.msk.bf16.mxu0 %vm12134_vm0, %v14873_v35  ;;  %11703 = vmatprep.subr.bf16.mxu0 %v14873_v35 }
 0x8c2   : > { %12103 = vset.pattern.permute.xlu1 %v14898_v3  ;;  %12110 = vset.pattern.permute.xlu0 %v14899_v44 }
 0x8c3   : > { %6860 = vperm.xlu1 %12103, %v14039_v12   ;;  %9787 = vperm.xlu0 %12110, %v14039_v12  }
 0x8c6   : > { %11676 = vmatmul.mubr.msk.bf16.vlgmr.msra.gmra.mrb[8].mxu1 %vm1112_vm4, %v13943_v50  ;;  %11694 = vmatmul.mubr.msk.bf16.vlgmr.msra.gmra.mrb[16].mxu0 %vm1112_vm4, %v13943_v50 }
 0x8c7   : > { %11686 = vmatpush3.bf16.msra.mxu1 %v7168_v29  ;;  %11704 = vmatpush3.bf16.msra.mxu0 %v7297_v33  ;;  %v14911_v29 = vld [vmem:[#allocation3_spill] sm:$0xff] }
 0x8c8   : > { %11687 = vmatprep.mubr.msk.bf16.mxu1 %vm12134_vm0, %v14873_v35  ;;  %11697 = vmatprep.subr.bf16.mxu1 %v14873_v35  ;;  %v6807_v33 = vmul.f32 %v6804_v0, %v14911_v29 }
 0x8c9   : > { %11705 = vmatprep.mubr.msk.bf16.mxu0 %vm12134_vm0, %v14873_v35  ;;  %11715 = vmatprep.subr.bf16.mxu0 %v14873_v35 }
 0x8ca   : > { %12105 = vset.pattern.permute.xlu1 %v14900_v30  ;;  %12113 = vset.pattern.permute.xlu0 %v14901_v23 }
 0x8cb   : > { %9293 = vperm.xlu1 %12105, %v14039_v12   ;;  %10025 = vperm.xlu0 %12113, %v14039_v12  }
 0x8ce   : > { %11688 = vmatmul.mubr.msk.bf16.vlgmr.msra.gmra.mrb[12].mxu1 %vm1112_vm4, %v13943_v50  ;;  %11706 = vmatmul.mubr.msk.bf16.vlgmr.msra.gmra.mrb[20].mxu0 %vm1112_vm4, %v13943_v50 }
 0x8cf   : > { %11698 = vmatpush3.bf16.msra.mxu1 %v7254_v11  ;;  %11716 = vmatpush3.bf16.msra.mxu0 %v7383_v43 }
 0x8d0   : > { %11699 = vmatprep.mubr.msk.bf16.mxu1 %vm12134_vm0, %v14873_v35  ;;  %11709 = vmatprep.subr.bf16.mxu1 %v14873_v35 }
 0x8d1   : > { %11717 = vmatprep.mubr.msk.bf16.mxu0 %vm12134_vm0, %v14873_v35  ;;  %11727 = vmatprep.subr.bf16.mxu0 %v14873_v35 }
 0x8d2   : > { %12106 = vset.pattern.permute.xlu1 %v14902_v53  ;;  %12116 = vset.pattern.permute.xlu0 %v14903_v18 }
 0x8d3   : > { %9329 = vperm.xlu1 %12106, %v14039_v12   ;;  %10053 = vperm.xlu0 %12116, %v14039_v12  }
 0x8d6   : > { %11700 = vmatmul.mubr.msk.bf16.vlgmr.msra.gmra.mrb[16].mxu1 %vm1112_vm4, %v13943_v50  ;;  %11718 = vmatmul.mubr.msk.bf16.vlgmr.msra.gmra.mrb[24].mxu0 %vm1112_vm4, %v13943_v50 }
 0x8d7   : > { %11710 = vmatpush3.bf16.msra.mxu1 %v7340_v15  ;;  %11728 = vmatpush3.bf16.msra.mxu0 %v7469_v20 }
 0x8d8   : > { %11711 = vmatprep.mubr.msk.bf16.mxu1 %vm12134_vm0, %v14873_v35  ;;  %11721 = vmatprep.subr.bf16.mxu1 %v14873_v35 }
 0x8d9   : > { %11729 = vmatprep.mubr.msk.bf16.mxu0 %vm12134_vm0, %v14873_v35  ;;  %11739 = vmatprep.subr.bf16.mxu0 %v14873_v35 }
 0x8da   : > { %12108 = vset.pattern.permute.xlu1 %v14904_v62 }
 0x8db   : > { %9755 = vperm.xlu1 %12108, %v14039_v12  }
 0x8de   : > { %11712 = vmatmul.mubr.msk.bf16.vlgmr.msra.gmra.mrb[20].mxu1 %vm1112_vm4, %v13943_v50  ;;  %11730 = vmatmul.mubr.msk.bf16.vlgmr.msra.gmra.mrb[28].mxu0 %vm1112_vm4, %v13943_v50 }
 0x8df   : > { %11722 = vmatpush3.bf16.msra.mxu1 %v7426_v48  ;;  %11740 = vmatpush3.bf16.msra.mxu0 %v7574_v24  ;;  %v6808_v48 = vmul.f32 %v6804_v0, %v14912_v14 }
 0x8e0   : > { %11723 = vmatprep.mubr.msk.bf16.mxu1 %vm12134_vm0, %v14873_v35  ;;  %11733 = vmatprep.subr.bf16.mxu1 %v14873_v35 }
 0x8e1   : > { %11741 = vmatprep.mubr.msk.bf16.mxu0 %vm12134_vm0, %v14873_v35  ;;  %11751 = vmatprep.subr.bf16.mxu0 %v14873_v35 }
 0x8e6   : > { %11724 = vmatmul.mubr.msk.bf16.vlgmr.msra.gmra.mrb[24].mxu1 %vm1112_vm4, %v13943_v50  ;;  %11742 = vmatmul.mubr.msk.bf16.vlgmr.msra.gmra.mrb[32].mxu0 %vm1112_vm4, %v14091_v54 }
 0x8e7   : > { %11734 = vmatpush3.bf16.msra.mxu1 %v7512_v10  ;;  %11752 = vmatpush3.bf16.msra.mxu0 %v7660_v40 }
 0x8e8   : > { %11735 = vmatprep.mubr.msk.bf16.mxu1 %vm12134_vm0, %v14873_v35  ;;  %11745 = vmatprep.subr.bf16.mxu1 %v14873_v35 }
 0x8e9   : > { %11753 = vmatprep.mubr.msk.bf16.mxu0 %vm12134_vm0, %v14873_v35  ;;  %11763 = vmatprep.subr.bf16.mxu0 %v14873_v35 }
 0x8ee   : > { %11736 = vmatmul.mubr.msk.bf16.vlgmr.msra.gmra.mrb[28].mxu1 %vm1112_vm4, %v13943_v50  ;;  %11754 = vmatmul.mubr.msk.bf16.vlgmr.msra.gmra.mrb[36].mxu0 %vm1112_vm4, %v14091_v54  ;;  %v14905_v50 = vmov 16  }
 0x8ef   : > { %11746 = vmatpush3.bf16.msra.mxu1 %v7617_v32  ;;  %11764 = vmatpush3.bf16.msra.mxu0 %v7746_v57 }
 0x8f0   : > { %11747 = vmatprep.mubr.msk.bf16.mxu1 %vm12134_vm0, %v14873_v35  ;;  %11757 = vmatprep.subr.bf16.mxu1 %v14873_v35 }
 0x8f1   : > { %11765 = vmatprep.mubr.msk.bf16.mxu0 %vm12134_vm0, %v14873_v35  ;;  %11775 = vmatprep.subr.bf16.mxu0 %v14873_v35 }
 0x8f2   : > { %12109 = vset.pattern.permute.xlu1 %v14905_v50 }
 0x8f3   : > { %9767 = vperm.xlu1 %12109, %v14039_v12  }
 0x8f6   : > { %11748 = vmatmul.mubr.msk.bf16.vlgmr.msra.gmra.mrb[32].mxu1 %vm1112_vm4, %v14091_v54  ;;  %11766 = vmatmul.mubr.msk.bf16.vlgmr.msra.gmra.mrb[40].mxu0 %vm1112_vm4, %v14091_v54 }
 0x8f7   : > { %11758 = vmatpush3.bf16.msra.mxu1 %v7703_v8  ;;  %11776 = vmatpush3.bf16.msra.mxu0 %v7832_v41  ;;  %v14913_v8 = vld [vmem:[#allocation5_spill] sm:$0xff] }
 0x8f8   : > { %11759 = vmatprep.mubr.msk.bf16.mxu1 %vm12134_vm0, %v14873_v35  ;;  %11769 = vmatprep.subr.bf16.mxu1 %v14873_v35  ;;  %v6809_v41 = vmul.f32 %v6804_v0, %v14913_v8 }
 0x8f9   : > { %11777 = vmatprep.mubr.msk.bf16.mxu0 %vm12134_vm0, %v14873_v35  ;;  %11787 = vmatprep.subr.bf16.mxu0 %v14873_v35 }
 0x8fa   : > { %12111 = vset.pattern.permute.xlu1 %v14906_v47 }
 0x8fb   : > { %9807 = vperm.xlu1 %12111, %v14039_v12  }
 0x8fe   : > { %11760 = vmatmul.mubr.msk.bf16.vlgmr.msra.gmra.mrb[36].mxu1 %vm1112_vm4, %v14091_v54  ;;  %11778 = vmatmul.mubr.msk.bf16.vlgmr.msra.gmra.mrb[44].mxu0 %vm1112_vm4, %v14091_v54 }
 0x8ff   : > { %11770 = vmatpush3.bf16.msra.mxu1 %v7789_v16  ;;  %11771 = vmatprep.mubr.msk.bf16.mxu1 %vm12134_vm0, %v14873_v35 }
 0x900   : > { %11781 = vmatprep.subr.bf16.mxu1 %v14873_v35  ;;  %11789 = vmatprep.mubr.msk.bf16.mxu0 %vm12134_vm0, %v14873_v35 }
 0x901   : > { %12112 = vset.pattern.permute.xlu1 %v14907_v5 }
 0x902   : > { %9819 = vperm.xlu1 %12112, %v14039_v12  }
 0x906   : > { %11772 = vmatmul.mubr.msk.bf16.vlgmr.msra.gmra.mrb[40].mxu1 %vm1112_vm4, %v14091_v54  ;;  %12114 = vset.pattern.permute.xlu1 %v14908_v46 }
 0x907   : > { %11782 = vmatpush3.bf16.msra.mxu1 %v7875_v61  ;;  %11783 = vmatprep.mubr.msk.bf16.mxu1 %vm12134_vm0, %v14873_v35 }
 0x908   : > { %11793 = vmatprep.subr.bf16.mxu1 %v14873_v35  ;;  %10033 = vperm.xlu1 %12114, %v14039_v12  }
 0x90c   : > { %12115 = vset.pattern.permute.xlu1 %v14909_v42 }
 0x90d   : > { %10045 = vperm.xlu1 %12115, %v14039_v12  }
 0x90e   : > { %11784 = vmatmul.mubr.msk.bf16.vlgmr.msra.gmra.mrb[44].mxu1 %vm1112_vm4, %v14091_v54 }
 0x90f   : > { %11795 = vmatprep.mubr.msk.bf16.mxu1 %vm12134_vm0, %v14873_v35 }
 0x951   : > { %v6665_v31 = vpop.f32.mrb[248].mxu0 }
 0x952   : > { %v6814_v59 = vmul.f32 %v6812_v45, %v6665_v31  ;;  %v11623_v25 = vpop.f32.mrb[249].mxu0 }
 0x953   : > { %v6668_v37 = vpop.f32.mrb[250].mxu0 }
 0x954   : > { %v6818_v51 = vadd.f32 %v6814_v59, %v6806_v28  ;;  %v11624_v56 = vpop.f32.mrb[251].mxu0 }
 0x956   : > { %v6826_v21 = vmul.f32 %v6824_v55, %v6818_v51 }
 0x958   : > { %v6834_v7 = vadd.f32 %v6832_v38, %v6826_v21 }
 0x95a   : > { %v7919_v58 = vpack.c.bf16 %v6834_v7, %v6834_v7 }
 0x95c   : > { %v7933_v9 = vsel %vm1116_vm3, %v7919_v58, 0 }
 0x95d   : > { %11788 = vmatpush3.bf16.msra.mxu0 %v7933_v9 }
 0x95e   : > { %11799 = vmatprep.subr.bf16.mxu0 %v14873_v35 }
 0x960   : > { %11790 = vmatmul.mubr.msk.bf16.vlgmr.msra.gmra.mrb[48].mxu0 %vm1112_vm4, %v14196_v49 }
 0x961   : > { %v6708_v36 = vpop.f32.mrb[248].mxu1  ;;  %11801 = vmatprep.mubr.msk.bf16.mxu0 %vm12134_vm0, %v14873_v35 }
 0x962   : > { %v6815_v2 = vmul.f32 %v6812_v45, %v6708_v36  ;;  %v11629_v34 = vpop.f32.mrb[249].mxu1 }
 0x963   : > { %v6711_v11 = vpop.f32.mrb[250].mxu1 }
 0x964   : > { %v6819_v43 = vadd.f32 %v6815_v2, %v6807_v33  ;;  %v11630_v12 = vpop.f32.mrb[251].mxu1 }
 0x966   : > { %v6827_v22 = vmul.f32 %v6824_v55, %v6819_v43 }
 0x968   : > { %v6835_v26 = vadd.f32 %v6832_v38, %v6827_v22 }
 0x96a   : > { %v7920_v15 = vpack.c.bf16 %v6835_v26, %v6835_v26 }
 0x96c   : > { %v7976_v20 = vsel %vm1116_vm3, %v7920_v15, 0 }
 0x96d   : > { %11794 = vmatpush3.bf16.msra.mxu1 %v7976_v20 }
 0x96e   : > { %11805 = vmatprep.subr.bf16.mxu1 %v14873_v35 }
 0x970   : > { %11796 = vmatmul.mubr.msk.bf16.vlgmr.msra.gmra.mrb[48].mxu1 %vm1112_vm4, %v14196_v49 }
 0x971   : > { %v6751_v19 = vpop.f32.mrb[252].mxu0  ;;  %11807 = vmatprep.mubr.msk.bf16.mxu1 %vm12134_vm0, %v14873_v35 }
 0x972   : > { %v6816_v24 = vmul.f32 %v6812_v45, %v6751_v19  ;;  %v11635_v39 = vpop.f32.mrb[253].mxu0 }
 0x973   : > { %v6754_v27 = vpop.f32.mrb[254].mxu0 }
 0x974   : > { %v6820_v54 = vadd.f32 %v6816_v24, %v6808_v48  ;;  %v11636_v10 = vpop.f32.mrb[255].mxu0 }
 0x976   : > { %v6828_v40 = vmul.f32 %v6824_v55, %v6820_v54 }
 0x978   : > { %v6836_v13 = vadd.f32 %v6832_v38, %v6828_v40 }
 0x979   : > { %v14211_v17 = vpop.f32.mrb[0].mxu0 }
 0x97a   : > { %v7921_v52 = vpack.c.bf16 %v6836_v13, %v6836_v13  ;;  %v11647_v32 = vpop.f32.mrb[1].mxu0 }
 0x97b   : > { %v6906_v57 = vpop.f32.mrb[2].mxu0 }
 0x97c   : > { %v8019_v63 = vsel %vm1116_vm3, %v7921_v52, 0  ;;  %v11648_v4 = vpop.f32.mrb[3].mxu0 }
 0x97d   : > { %11800 = vmatpush3.bf16.msra.mxu0 %v8019_v63 }
 0x97e   : > { %11811 = vmatprep.subr.bf16.mxu0 %v14873_v35 }
 0x980   : > { %11802 = vmatmul.mubr.msk.bf16.vlgmr.msra.gmra.mrb[52].mxu0 %vm1112_vm4, %v14196_v49 }
 0x981   : > { %v6794_v3 = vpop.f32.mrb[252].mxu1  ;;  %v14217_v44 = vpop.f32.mrb[4].mxu0  ;;  %11813 = vmatprep.mubr.msk.bf16.mxu0 %vm12134_vm0, %v14873_v35 }
 0x982   : > { %v6817_v6 = vmul.f32 %v6812_v45, %v6794_v3  ;;  %v11641_v30 = vpop.f32.mrb[253].mxu1  ;;  %v11659_v23 = vpop.f32.mrb[5].mxu0 }
 0x983   : > { %v6797_v16 = vpop.f32.mrb[254].mxu1  ;;  %v6992_v53 = vpop.f32.mrb[6].mxu0 }
 0x984   : > { %v6821_v18 = vadd.f32 %v6817_v6, %v6809_v41  ;;  %v11642_v60 = vpop.f32.mrb[255].mxu1  ;;  %v11660_v61 = vpop.f32.mrb[7].mxu0  ;;  %v8118_v41 = vld [vmem:[%s14821_s5] sm:$0x3] }
 0x985   : > { %v14256_v6 = vsel %vm415_vm1, %v8118_v41, 0 }
 0x986   : > { %v6829_v62 = vmul.f32 %v6824_v55, %v6821_v18  ;;  %11812 = vmatpush3.bf16.msra.mxu0 %v14256_v6 }
 0x987   : > { %11823 = vmatprep.subr.bf16.mxu0 %v14873_v35 }
 0x988   : > { %v6837_v50 = vadd.f32 %v6832_v38, %v6829_v62 }
 0x989   : > { %v14222_v47 = vpop.f32.mrb[0].mxu1  ;;  %v14224_v5 = vpop.f32.mrb[8].mxu0 }
 0x98a   : > { %v7922_v46 = vpack.c.bf16 %v6837_v50, %v6837_v50  ;;  %v11653_v42 = vpop.f32.mrb[1].mxu1  ;;  %v11671_v31 = vpop.f32.mrb[9].mxu0 }
 0x98b   : > { %v6949_v1 = vpop.f32.mrb[2].mxu1  ;;  %v7078_v28 = vpop.f32.mrb[10].mxu0 }
 0x98c   : > { %v8062_v0 = vsel %vm1116_vm3, %v7922_v46, 0  ;;  %v11654_v45 = vpop.f32.mrb[3].mxu1  ;;  %v11672_v59 = vpop.f32.mrb[11].mxu0 }
 0x98d   : > { %11806 = vmatpush3.bf16.msra.mxu1 %v8062_v0 }
 0x98e   : > { %11817 = vmatprep.subr.bf16.mxu1 %v14873_v35 }
 0x990   : > { %11808 = vmatmul.mubr.msk.bf16.vlgmr.msra.gmra.mrb[52].mxu1 %vm1112_vm4, %v14196_v49 }
 0x991   : > { %v14230_v25 = vpop.f32.mrb[4].mxu1  ;;  %v14232_v37 = vpop.f32.mrb[12].mxu0  ;;  %11819 = vmatprep.mubr.msk.bf16.mxu1 %vm12134_vm0, %v14873_v35  ;;  %11818 = vmatpush3.bf16.msra.mxu1 %v14256_v6 }
 0x992   : > { %v11665_v55 = vpop.f32.mrb[5].mxu1  ;;  %v11683_v51 = vpop.f32.mrb[13].mxu0  ;;  %11829 = vmatprep.subr.bf16.mxu1 %v14873_v35 }
 0x993   : > { %v7035_v56 = vpop.f32.mrb[6].mxu1  ;;  %v7164_v38 = vpop.f32.mrb[14].mxu0 }
 0x994   : > { %v11666_v21 = vpop.f32.mrb[7].mxu1  ;;  %v11684_v7 = vpop.f32.mrb[15].mxu0 }
 0x999   : > { %v14236_v58 = vpop.f32.mrb[8].mxu1  ;;  %v14238_v9 = vpop.f32.mrb[16].mxu0 }
 0x99a   : > { %v11677_v36 = vpop.f32.mrb[9].mxu1  ;;  %v11695_v29 = vpop.f32.mrb[17].mxu0 }
 0x99b   : > { %v7121_v49 = vpop.f32.mrb[10].mxu1  ;;  %v7250_v33 = vpop.f32.mrb[18].mxu0 }
 0x99c   : > { %v11678_v2 = vpop.f32.mrb[11].mxu1  ;;  %v11696_v34 = vpop.f32.mrb[19].mxu0 }
 0x9a1   : > { %v14240_v11 = vpop.f32.mrb[12].mxu1  ;;  %v14242_v43 = vpop.f32.mrb[20].mxu0 }
 0x9a2   : > { %v11689_v12 = vpop.f32.mrb[13].mxu1  ;;  %v11707_v22 = vpop.f32.mrb[21].mxu0 }
 0x9a3   : > { %v7207_v26 = vpop.f32.mrb[14].mxu1  ;;  %v7336_v15 = vpop.f32.mrb[22].mxu0 }
 0x9a4   : > { %v11690_v20 = vpop.f32.mrb[15].mxu1  ;;  %v11708_v19 = vpop.f32.mrb[23].mxu0 }
 0x9a9   : > { %v14244_v14 = vpop.f32.mrb[16].mxu1  ;;  %v14246_v48 = vpop.f32.mrb[24].mxu0 }
 0x9aa   : > { %v11701_v24 = vpop.f32.mrb[17].mxu1  ;;  %v11719_v39 = vpop.f32.mrb[25].mxu0 }
 0x9ab   : > { %v7293_v27 = vpop.f32.mrb[18].mxu1  ;;  %v7422_v54 = vpop.f32.mrb[26].mxu0 }
 0x9ac   : > { %v11702_v10 = vpop.f32.mrb[19].mxu1  ;;  %v11720_v40 = vpop.f32.mrb[27].mxu0 }
 0x9ad   : > { %v7927_v40 = vpop.permute.xlu1 %7926 }
 0x9b1   : > { %v14248_v13 = vpop.f32.mrb[20].mxu1  ;;  %v14250_v52 = vpop.f32.mrb[28].mxu0 }
 0x9b2   : > { %v11713_v32 = vpop.f32.mrb[21].mxu1  ;;  %v11731_v57 = vpop.f32.mrb[29].mxu0 }
 0x9b3   : > { %v7379_v63 = vpop.f32.mrb[22].mxu1  ;;  %v7508_v4 = vpop.f32.mrb[30].mxu0 }
 0x9b4   : > { %v11714_v3 = vpop.f32.mrb[23].mxu1  ;;  %v11732_v8 = vpop.f32.mrb[31].mxu0 }
 0x9b9   : > { %v14262_v30 = vpop.f32.mrb[24].mxu1  ;;  %v14264_v23 = vpop.f32.mrb[32].mxu0 }
 0x9ba   : > { %v11725_v16 = vpop.f32.mrb[25].mxu1  ;;  %v11743_v53 = vpop.f32.mrb[33].mxu0 }
 0x9bb   : > { %v7465_v18 = vpop.f32.mrb[26].mxu1  ;;  %v7613_v60 = vpop.f32.mrb[34].mxu0 }
 0x9bc   : > { %v11726_v61 = vpop.f32.mrb[27].mxu1  ;;  %v11744_v62 = vpop.f32.mrb[35].mxu0 }
 0x9c1   : > { %v14266_v50 = vpop.f32.mrb[28].mxu1  ;;  %v14268_v46 = vpop.f32.mrb[36].mxu0 }
 0x9c2   : > { %v11737_v42 = vpop.f32.mrb[29].mxu1  ;;  %v11755_v31 = vpop.f32.mrb[37].mxu0 }
 0x9c3   : > { %v7551_v1 = vpop.f32.mrb[30].mxu1  ;;  %v7699_v28 = vpop.f32.mrb[38].mxu0 }
 0x9c4   : > { %v11738_v0 = vpop.f32.mrb[31].mxu1  ;;  %v11756_v45 = vpop.f32.mrb[39].mxu0 }
 0x9c9   : > { %v14270_v59 = vpop.f32.mrb[32].mxu1  ;;  %v14272_v55 = vpop.f32.mrb[40].mxu0 }
 0x9ca   : > { %v11749_v51 = vpop.f32.mrb[33].mxu1  ;;  %v11767_v56 = vpop.f32.mrb[41].mxu0 }
 0x9cb   : > { %v7656_v38 = vpop.f32.mrb[34].mxu1  ;;  %v7785_v21 = vpop.f32.mrb[42].mxu0 }
 0x9cc   : > { %v11750_v7 = vpop.f32.mrb[35].mxu1  ;;  %v11768_v36 = vpop.f32.mrb[43].mxu0 }
 0x9d1   : > { %v14274_v29 = vpop.f32.mrb[36].mxu1  ;;  %v14276_v49 = vpop.f32.mrb[44].mxu0 }
 0x9d2   : > { %v11761_v33 = vpop.f32.mrb[37].mxu1  ;;  %v11779_v2 = vpop.f32.mrb[45].mxu0 }
 0x9d3   : > { %v7742_v34 = vpop.f32.mrb[38].mxu1  ;;  %v7871_v12 = vpop.f32.mrb[46].mxu0 }
 0x9d4   : > { %v11762_v22 = vpop.f32.mrb[39].mxu1  ;;  %v11780_v26 = vpop.f32.mrb[47].mxu0 }
 0x9d9   : > { %v14278_v15 = vpop.f32.mrb[40].mxu1 }
 0x9da   : > { %v11773_v20 = vpop.f32.mrb[41].mxu1 }
 0x9db   : > { %v7828_v19 = vpop.f32.mrb[42].mxu1 }
 0x9dc   : > { %v11774_v24 = vpop.f32.mrb[43].mxu1 }
 0x9e1   : > { %v14280_v39 = vpop.f32.mrb[44].mxu1 }
 0x9e2   : > { %v11785_v27 = vpop.f32.mrb[45].mxu1 }
 0x9e3   : > { %v7914_v54 = vpop.f32.mrb[46].mxu1 }
 0x9e4   : > { %v11786_v10 = vpop.f32.mrb[47].mxu1 }
 0xa33   : > { %v7969_v32 = vpop.f32.mrb[48].mxu0 }
 0xa34   : > { %v14282_v57 = vadd.f32 %v7969_v32, %v7927_v40  ;;  %v11791_v63 = vpop.f32.mrb[49].mxu0 }
 0xa35   : > { %v7972_v4 = vpop.f32.mrb[50].mxu0 }
 0xa36   : > { %v8119_v3 = vpack.c.bf16 %v14282_v57, %v14282_v57  ;;  %v11792_v8 = vpop.f32.mrb[51].mxu0  ;;  %v8104_v16 = vmul.f32 0.75, %v14282_v57  ;;  %v8107_v53 = vmul.f32 0.25, %v14282_v57 }
 0xa38   : > { %11814 = vmatmul.mubr.msk.bf16.vlgmr.msra.gmra.mrb[56].mxu0 %vm411_vm2, %v8119_v3 }
 0xa39   : > { %11824 = vmatpush3.bf16.msra.mxu0 %v14256_v6  ;;  %11825 = vmatprep.mubr.msk.bf16.mxu0 %vm12134_vm0, %v14873_v35 }
 0xa3a   : > { %11835 = vmatprep.subr.bf16.mxu0 %v14873_v35 }
 0xa43   : > { %v8012_v41 = vpop.f32.mrb[48].mxu1 }
 0xa44   : > { %v14293_v18 = vadd.f32 %v8012_v41, %v7927_v40  ;;  %v11797_v60 = vpop.f32.mrb[49].mxu1  ;;  %v14348_v41 = vpop.permute.xlu1 %8477 }
 0xa45   : > { %v8015_v61 = vpop.f32.mrb[50].mxu1 }
 0xa46   : > { %v8105_v62 = vmul.f32 0.25, %v14293_v18  ;;  %v8108_v42 = vmul.f32 0.75, %v14293_v18  ;;  %v11798_v31 = vpop.f32.mrb[51].mxu1 }
 0xa48   : > { %v8106_v1 = vadd.f32 %v8105_v62, %v8104_v16  ;;  %v8109_v28 = vadd.f32 %v8108_v42, %v8107_v53  ;;  %v14350_v16 = vpop.permute.xlu1 %8489 }
 0xa4a   : > { %v8120_v0 = vpack.c.bf16 %v8106_v1, %v8106_v1  ;;  %v8121_v45 = vpack.c.bf16 %v8109_v28, %v8109_v28 }
 0xa4c   : > { %11820 = vmatmul.mubr.msk.bf16.vlgmr.msra.gmra.mrb[56].mxu1 %vm411_vm2, %v8120_v0  ;;  %11826 = vmatmul.mubr.msk.bf16.vlgmr.msra.gmra.mrb[60].mxu0 %vm411_vm2, %v8121_v45  ;;  %v14352_v53 = vpop.permute.xlu1 %8521 }
 0xa4d   : > { %11830 = vmatpush3.bf16.msra.mxu1 %v14256_v6  ;;  %11836 = vmatpush3.bf16.msra.mxu0 %v14256_v6 }
 0xa4e   : > { %11831 = vmatprep.mubr.msk.bf16.mxu1 %vm12134_vm0, %v14873_v35  ;;  %11837 = vmatprep.mubr.msk.bf16.mxu0 %vm12134_vm0, %v14873_v35 }
 0xa4f   : > { %11841 = vmatprep.subr.bf16.mxu1 %v14873_v35  ;;  %11847 = vmatprep.subr.bf16.mxu0 %v14873_v35 }
 0xa50   : > { %v14354_v60 = vpop.permute.xlu1 %6860 }
 0xa53   : > { %v8055_v51 = vpop.f32.mrb[52].mxu0 }
 0xa54   : > { %v14307_v56 = vadd.f32 %v8055_v51, %v7927_v40  ;;  %v11803_v38 = vpop.f32.mrb[53].mxu0  ;;  %v14356_v61 = vpop.permute.xlu1 %9293 }
 0xa55   : > { %v8058_v21 = vpop.f32.mrb[54].mxu0 }
 0xa56   : > { %v8110_v7 = vmul.f32 0.25, %v14307_v56  ;;  %v8112_v36 = vmul.f32 0.75, %v14307_v56  ;;  %v11804_v33 = vpop.f32.mrb[55].mxu0 }
 0xa58   : > { %v8111_v2 = vadd.f32 %v8110_v7, %v8108_v42  ;;  %v8113_v34 = vadd.f32 %v8112_v36, %v8105_v62  ;;  %v14358_v62 = vpop.permute.xlu0 %7567  ;;  %v14360_v42 = vpop.permute.xlu1 %9329 }
 0xa59   : > { %v7611_v31 = vadd.f32 %v14264_v23, %v14358_v62 }
 0xa5a   : > { %v8122_v12 = vpack.c.bf16 %v8111_v2, %v8111_v2  ;;  %v8123_v22 = vpack.c.bf16 %v8113_v34, %v8113_v34 }
 0xa5b   : > { %v8480_v28 = vmul.f32 %v14348_v41, %v7611_v31 }
 0xa5c   : > { %11832 = vmatmul.mubr.msk.bf16.vlgmr.msra.gmra.mrb[60].mxu1 %vm411_vm2, %v8122_v12  ;;  %11838 = vmatmul.mubr.msk.bf16.vlgmr.msra.gmra.mrb[64].mxu0 %vm411_vm2, %v8123_v22  ;;  %v14366_v51 = vpop.permute.xlu1 %9755 }
 0xa5d   : > { %11842 = vmatpush3.bf16.msra.mxu1 %v14256_v6  ;;  %11848 = vmatpush3.bf16.msra.mxu0 %v14256_v6  ;;  %v9758_v12 = vmul.f32 %v14366_v51, %v7611_v31 }
 0xa5e   : > { %11843 = vmatprep.mubr.msk.bf16.mxu1 %vm12134_vm0, %v14873_v35  ;;  %11849 = vmatprep.mubr.msk.bf16.mxu0 %vm12134_vm0, %v14873_v35 }
 0xa5f   : > { %11853 = vmatprep.subr.bf16.mxu1 %v14873_v35  ;;  %11859 = vmatprep.subr.bf16.mxu0 %v14873_v35 }
 0xa60   : > { %v14371_v2 = vpop.permute.xlu1 %9767 }
 0xa63   : > { %v8098_v26 = vpop.f32.mrb[52].mxu1 }
 0xa64   : > { %v14321_v20 = vadd.f32 %v8098_v26, %v7927_v40  ;;  %v11809_v19 = vpop.f32.mrb[53].mxu1 }
 0xa65   : > { %v8101_v24 = vpop.f32.mrb[54].mxu1  ;;  %v7654_v19 = vadd.f32 %v14270_v59, %v14358_v62 }
 0xa66   : > { %v8114_v27 = vmul.f32 0.25, %v14321_v20  ;;  %v8116_v54 = vmul.f32 0.75, %v14321_v20  ;;  %v11810_v10 = vpop.f32.mrb[55].mxu1  ;;  %v8126_v40 = vpack.c.bf16 %v14321_v20, %v14321_v20  ;;  %v7697_v24 = vadd.f32 %v14268_v46, %v14358_v62 }
 0xa67   : > { %v8481_v10 = vmul.f32 %v14348_v41, %v7654_v19 }
 0xa68   : > { %v8115_v32 = vadd.f32 %v8114_v27, %v8112_v36  ;;  %v8117_v63 = vadd.f32 %v8116_v54, %v8110_v7  ;;  %v14368_v36 = vpop.permute.xlu0 %8509 }
 0xa6a   : > { %v8124_v4 = vpack.c.bf16 %v8115_v32, %v8115_v32  ;;  %v8125_v3 = vpack.c.bf16 %v8117_v63, %v8117_v63  ;;  %v8482_v32 = vmul.f32 %v14348_v41, %v7697_v24 }
 0xa6c   : > { %11844 = vmatmul.mubr.msk.bf16.vlgmr.msra.gmra.mrb[64].mxu1 %vm411_vm2, %v8124_v4  ;;  %11850 = vmatmul.mubr.msk.bf16.vlgmr.msra.gmra.mrb[68].mxu0 %vm411_vm2, %v8125_v3 }
 0xa6d   : > { %11854 = vmatpush3.bf16.msra.mxu1 %v14256_v6  ;;  %11855 = vmatprep.mubr.msk.bf16.mxu1 %vm12134_vm0, %v14873_v35  ;;  %v10447_v6 = vld [vmem:[%s14821_s5 + $0x8] sm:$0xf] }
 0xa6e   : > { %11861 = vmatprep.mubr.msk.bf16.mxu0 %vm12134_vm0, %v14873_v35  ;;  %11865 = vmatprep.subr.bf16.mxu1 %v14873_v35  ;;  %v14342_v8 = vsel %vm1116_vm3, %v10447_v6, 0 }
 0xa6f   : > { %11860 = vmatpush3.bf16.msra.mxu0 %v14342_v8 }
 0xa70   : > { %11871 = vmatprep.subr.bf16.mxu0 %v14873_v35 }
 0xa74   : > { %11856 = vmatmul.mubr.msk.bf16.vlgmr.msra.gmra.mrb[68].mxu1 %vm411_vm2, %v8126_v40 }
 0xa75   : > { %11867 = vmatprep.mubr.msk.bf16.mxu1 %vm12134_vm0, %v14873_v35  ;;  %11866 = vmatpush3.bf16.msra.mxu1 %v14342_v8 }
 0xa76   : > { %11877 = vmatprep.subr.bf16.mxu1 %v14873_v35 }
 0xb0b   : > { %v8167_v1 = vpop.f32.mrb[56].mxu0 }
 0xb0c   : > { %v8492_v0 = vmul.f32 %v14350_v16, %v8167_v1  ;;  %v11815_v45 = vpop.f32.mrb[57].mxu0 }
 0xb0d   : > { %v8170_v38 = vpop.f32.mrb[58].mxu0 }
 0xb0e   : > { %v8500_v21 = vadd.f32 %v8492_v0, %v8480_v28  ;;  %v11816_v7 = vpop.f32.mrb[59].mxu0 }
 0xb10   : > { %v8512_v33 = vmul.f32 %v14368_v36, %v8500_v21 }
 0xb12   : > { %v8524_v34 = vadd.f32 %v14352_v53, %v8512_v33 }
 0xb14   : > { %v8563_v23 = vpack.c.bf16 %v8524_v34, %v8524_v34  ;;  %v9770_v22 = vmul.f32 %v14371_v2, %v8524_v34  ;;  %v8532_v7 = vmul.f32 0.75, %v8524_v34  ;;  %v8535_v33 = vmul.f32 0.25, %v8524_v34 }
 0xb16   : > { %11862 = vmatmul.mubr.msk.bf16.vlgmr.msra.gmra.mrb[72].mxu0 %vm1112_vm4, %v8563_v23  ;;  %v14377_v26 = vadd.f32 %v9770_v22, %v9758_v12 }
 0xb17   : > { %11872 = vmatpush3.bf16.msra.mxu0 %v14342_v8  ;;  %11873 = vmatprep.mubr.msk.bf16.mxu0 %vm12134_vm0, %v14873_v35 }
 0xb18   : > { %11883 = vmatprep.subr.bf16.mxu0 %v14873_v35 }
 0xb1f   : > { %v8210_v27 = vpop.f32.mrb[56].mxu1  ;;  %v8253_v54 = vpop.f32.mrb[60].mxu0 }
 0xb20   : > { %v8493_v63 = vmul.f32 %v14350_v16, %v8210_v27  ;;  %v8494_v4 = vmul.f32 %v14350_v16, %v8253_v54  ;;  %v11821_v3 = vpop.f32.mrb[57].mxu1  ;;  %v11827_v40 = vpop.f32.mrb[61].mxu0  ;;  %v9759_v54 = vmul.f32 %v14366_v51, %v7654_v19  ;;  %v7740_v19 = vadd.f32 %v14274_v29, %v14358_v62 }
 0xb21   : > { %v8213_v6 = vpop.f32.mrb[58].mxu1  ;;  %v8256_v31 = vpop.f32.mrb[62].mxu0 }
 0xb22   : > { %v8501_v1 = vadd.f32 %v8493_v63, %v8481_v10  ;;  %v8502_v28 = vadd.f32 %v8494_v4, %v8482_v32  ;;  %v11822_v59 = vpop.f32.mrb[59].mxu1  ;;  %v11828_v0 = vpop.f32.mrb[63].mxu0  ;;  %v9760_v32 = vmul.f32 %v14366_v51, %v7697_v24  ;;  %v7783_v31 = vadd.f32 %v14272_v55, %v14358_v62 }
 0xb23   : > { %v8483_v55 = vmul.f32 %v14348_v41, %v7740_v19 }
 0xb24   : > { %v8513_v46 = vmul.f32 %v14368_v36, %v8501_v1  ;;  %v8514_v45 = vmul.f32 %v14368_v36, %v8502_v28  ;;  %v8484_v24 = vmul.f32 %v14348_v41, %v7783_v31 }
 0xb26   : > { %v8525_v38 = vadd.f32 %v14352_v53, %v8513_v46  ;;  %v8526_v21 = vadd.f32 %v14352_v53, %v8514_v45 }
 0xb28   : > { %v8533_v23 = vmul.f32 0.25, %v8525_v38  ;;  %v8536_v12 = vmul.f32 0.75, %v8525_v38  ;;  %v8538_v22 = vmul.f32 0.25, %v8526_v21  ;;  %v8540_v27 = vmul.f32 0.75, %v8526_v21 }
 0xb29   : > { %v9771_v10 = vmul.f32 %v14371_v2, %v8525_v38  ;;  %v9772_v63 = vmul.f32 %v14371_v2, %v8526_v21 }
 0xb2a   : > { %v8534_v4 = vadd.f32 %v8533_v23, %v8532_v7  ;;  %v8537_v3 = vadd.f32 %v8536_v12, %v8535_v33  ;;  %v8539_v40 = vadd.f32 %v8538_v22, %v8536_v12  ;;  %v8541_v6 = vadd.f32 %v8540_v27, %v8533_v23 }
 0xb2b   : > { %v14401_v34 = vadd.f32 %v9771_v10, %v9759_v54  ;;  %v14403_v1 = vadd.f32 %v9772_v63, %v9760_v32 }
 0xb2c   : > { %v8564_v28 = vpack.c.bf16 %v8534_v4, %v8534_v4  ;;  %v8565_v59 = vpack.c.bf16 %v8537_v3, %v8537_v3  ;;  %v8566_v32 = vpack.c.bf16 %v8539_v40, %v8539_v40  ;;  %v8567_v63 = vpack.c.bf16 %v8541_v6, %v8541_v6 }
 0xb2e   : > { %11868 = vmatmul.mubr.msk.bf16.vlgmr.msra.gmra.mrb[72].mxu1 %vm1112_vm4, %v8564_v28  ;;  %11874 = vmatmul.mubr.msk.bf16.vlgmr.msra.gmra.mrb[76].mxu0 %vm1112_vm4, %v8565_v59 }
 0xb2f   : > { %v8296_v0 = vpop.f32.mrb[60].mxu1  ;;  %v8339_v46 = vpop.f32.mrb[64].mxu0  ;;  %11878 = vmatpush3.bf16.msra.mxu1 %v14342_v8  ;;  %11884 = vmatpush3.bf16.msra.mxu0 %v14342_v8 }
 0xb30   : > { %v8495_v45 = vmul.f32 %v14350_v16, %v8296_v0  ;;  %v8496_v29 = vmul.f32 %v14350_v16, %v8339_v46  ;;  %v11833_v38 = vpop.f32.mrb[61].mxu1  ;;  %v11839_v21 = vpop.f32.mrb[65].mxu0  ;;  %11879 = vmatprep.mubr.msk.bf16.mxu1 %vm12134_vm0, %v14873_v35  ;;  %11885 = vmatprep.mubr.msk.bf16.mxu0 %vm12134_vm0, %v14873_v35  ;;  %v9762_v0 = vmul.f32 %v14366_v51, %v7783_v31 }
 0xb31   : > { %v8299_v7 = vpop.f32.mrb[62].mxu1  ;;  %v8342_v33 = vpop.f32.mrb[66].mxu0  ;;  %11889 = vmatprep.subr.bf16.mxu1 %v14873_v35  ;;  %11895 = vmatprep.subr.bf16.mxu0 %v14873_v35 }
 0xb32   : > { %v8503_v23 = vadd.f32 %v8495_v45, %v8483_v55  ;;  %v8504_v12 = vadd.f32 %v8496_v29, %v8484_v24  ;;  %v11834_v54 = vpop.f32.mrb[63].mxu1  ;;  %v11840_v10 = vpop.f32.mrb[67].mxu0  ;;  %v9761_v55 = vmul.f32 %v14366_v51, %v7740_v19  ;;  %v7869_v33 = vadd.f32 %v14276_v49, %v14358_v62 }
 0xb34   : > { %v8515_v4 = vmul.f32 %v14368_v36, %v8503_v23  ;;  %v8516_v3 = vmul.f32 %v14368_v36, %v8504_v12  ;;  %v7826_v12 = vadd.f32 %v14278_v15, %v14358_v62 }
 0xb36   : > { %v8527_v28 = vadd.f32 %v14352_v53, %v8515_v4  ;;  %v8528_v59 = vadd.f32 %v14352_v53, %v8516_v3  ;;  %11880 = vmatmul.mubr.msk.bf16.vlgmr.msra.gmra.mrb[76].mxu1 %vm1112_vm4, %v8566_v32  ;;  %11886 = vmatmul.mubr.msk.bf16.vlgmr.msra.gmra.mrb[80].mxu0 %vm1112_vm4, %v8567_v63  ;;  %v8485_v49 = vmul.f32 %v14348_v41, %v7826_v12 }
 0xb37   : > { %11890 = vmatpush3.bf16.msra.mxu1 %v14342_v8  ;;  %11896 = vmatpush3.bf16.msra.mxu0 %v14342_v8 }
 0xb38   : > { %v8542_v40 = vmul.f32 0.25, %v8527_v28  ;;  %v8544_v6 = vmul.f32 0.75, %v8527_v28  ;;  %v14430_v24 = vmul.f32 0.25, %v8528_v59  ;;  %v14432_v46 = vmul.f32 0.75, %v8528_v59  ;;  %11891 = vmatprep.mubr.msk.bf16.mxu1 %vm12134_vm0, %v14873_v35  ;;  %11897 = vmatprep.mubr.msk.bf16.mxu0 %vm12134_vm0, %v14873_v35 }
 0xb39   : > { %11901 = vmatprep.subr.bf16.mxu1 %v14873_v35  ;;  %11907 = vmatprep.subr.bf16.mxu0 %v14873_v35  ;;  %v9773_v31 = vmul.f32 %v14371_v2, %v8527_v28  ;;  %v9774_v45 = vmul.f32 %v14371_v2, %v8528_v59 }
 0xb3a   : > { %v8543_v29 = vadd.f32 %v8542_v40, %v8540_v27  ;;  %v8545_v38 = vadd.f32 %v8544_v6, %v8538_v22  ;;  %v8547_v21 = vadd.f32 %v14430_v24, %v8544_v6  ;;  %v8549_v7 = vadd.f32 %v14432_v46, %v8542_v40 }
 0xb3b   : > { %v14447_v23 = vadd.f32 %v9773_v31, %v9761_v55  ;;  %v14449_v19 = vadd.f32 %v9774_v45, %v9762_v0  ;;  %v8486_v22 = vmul.f32 %v14348_v41, %v7869_v33  ;;  %v7912_v31 = vadd.f32 %v14280_v39, %v14358_v62 }
 0xb3c   : > { %v8568_v54 = vpack.c.bf16 %v8543_v29, %v8543_v29  ;;  %v8569_v10 = vpack.c.bf16 %v8545_v38, %v8545_v38  ;;  %v8570_v45 = vpack.c.bf16 %v8547_v21, %v8547_v21  ;;  %v8571_v29 = vpack.c.bf16 %v8549_v7, %v8549_v7 }
 0xb3d   : > { %v8487_v39 = vmul.f32 %v14348_v41, %v7912_v31 }
 0xb3e   : > { %11892 = vmatmul.mubr.msk.bf16.vlgmr.msra.gmra.mrb[80].mxu1 %vm1112_vm4, %v8568_v54  ;;  %11898 = vmatmul.mubr.msk.bf16.vlgmr.msra.gmra.mrb[84].mxu0 %vm1112_vm4, %v8569_v10 }
 0xb3f   : > { %v8382_v27 = vpop.f32.mrb[64].mxu1  ;;  %v8425_v32 = vpop.f32.mrb[68].mxu0  ;;  %11902 = vmatpush3.bf16.msra.mxu1 %v14342_v8  ;;  %11908 = vmatpush3.bf16.msra.mxu0 %v14342_v8 }
 0xb40   : > { %v8497_v63 = vmul.f32 %v14350_v16, %v8382_v27  ;;  %v8498_v15 = vmul.f32 %v14350_v16, %v8425_v32  ;;  %v11845_v4 = vpop.f32.mrb[65].mxu1  ;;  %v11851_v3 = vpop.f32.mrb[69].mxu0  ;;  %11903 = vmatprep.mubr.msk.bf16.mxu1 %vm12134_vm0, %v14873_v35  ;;  %11909 = vmatprep.mubr.msk.bf16.mxu0 %vm12134_vm0, %v14873_v35  ;;  %v9763_v32 = vmul.f32 %v14366_v51, %v7826_v12 }
 0xb41   : > { %v8385_v28 = vpop.f32.mrb[66].mxu1  ;;  %v8428_v59 = vpop.f32.mrb[70].mxu0  ;;  %11913 = vmatprep.subr.bf16.mxu1 %v14873_v35  ;;  %11919 = vmatprep.subr.bf16.mxu0 %v14873_v35 }
 0xb42   : > { %v8505_v0 = vadd.f32 %v8497_v63, %v8485_v49  ;;  %v8506_v40 = vadd.f32 %v8498_v15, %v8486_v22  ;;  %v11846_v6 = vpop.f32.mrb[67].mxu1  ;;  %v11852_v55 = vpop.f32.mrb[71].mxu0  ;;  %v9764_v22 = vmul.f32 %v14366_v51, %v7869_v33 }
 0xb44   : > { %v8517_v38 = vmul.f32 %v14368_v36, %v8505_v0  ;;  %v8518_v54 = vmul.f32 %v14368_v36, %v8506_v40 }
 0xb46   : > { %v8529_v10 = vadd.f32 %v14352_v53, %v8517_v38  ;;  %v8530_v27 = vadd.f32 %v14352_v53, %v8518_v54  ;;  %11904 = vmatmul.mubr.msk.bf16.vlgmr.msra.gmra.mrb[84].mxu1 %vm1112_vm4, %v8570_v45  ;;  %11910 = vmatmul.mubr.msk.bf16.vlgmr.msra.gmra.mrb[88].mxu0 %vm1112_vm4, %v8571_v29 }
 0xb47   : > { %v8468_v62 = vpop.f32.mrb[68].mxu1  ;;  %11914 = vmatpush3.bf16.msra.mxu1 %v14342_v8  ;;  %11920 = vmatpush3.bf16.msra.mxu0 %v14342_v8 }
 0xb48   : > { %v8550_v21 = vmul.f32 0.25, %v8529_v10  ;;  %v8552_v7 = vmul.f32 0.75, %v8529_v10  ;;  %v8554_v49 = vmul.f32 0.25, %v8530_v27  ;;  %v8556_v63 = vmul.f32 0.75, %v8530_v27  ;;  %v11857_v15 = vpop.f32.mrb[69].mxu1  ;;  %11915 = vmatprep.mubr.msk.bf16.mxu1 %vm12134_vm0, %v14873_v35  ;;  %11921 = vmatprep.mubr.msk.bf16.mxu0 %vm12134_vm0, %v14873_v35 }
 0xb49   : > { %v8499_v33 = vmul.f32 %v14350_v16, %v8468_v62  ;;  %v8471_v12 = vpop.f32.mrb[70].mxu1  ;;  %11925 = vmatprep.subr.bf16.mxu1 %v14873_v35  ;;  %11931 = vmatprep.subr.bf16.mxu0 %v14873_v35  ;;  %v9775_v41 = vmul.f32 %v14371_v2, %v8529_v10  ;;  %v9776_v4 = vmul.f32 %v14371_v2, %v8530_v27  ;;  %v14535_v62 = vld [vmem:[%s14821_s5 + $0x10] sm:$0xff]  }
 0xb4a   : > { %v8551_v3 = vadd.f32 %v8550_v21, %v14432_v46  ;;  %v8553_v28 = vadd.f32 %v8552_v7, %v14430_v24  ;;  %v8555_v59 = vadd.f32 %v8554_v49, %v8552_v7  ;;  %v8557_v0 = vadd.f32 %v8556_v63, %v8550_v21  ;;  %v11858_v40 = vpop.f32.mrb[71].mxu1  ;;  %v14543_v21 = vpop.permute.xlu0 %9273 }
 0xb4b   : > { %v8507_v6 = vadd.f32 %v8499_v33, %v8487_v39  ;;  %v14491_v55 = vadd.f32 %v9775_v41, %v9763_v32  ;;  %v14493_v16 = vadd.f32 %v9776_v4, %v9764_v22  ;;  %v9765_v24 = vmul.f32 %v14366_v51, %v7912_v31 }
 0xb4c   : > { %v8572_v45 = vpack.c.bf16 %v8551_v3, %v8551_v3  ;;  %v8573_v29 = vpack.c.bf16 %v8553_v28, %v8553_v28  ;;  %v8574_v32 = vpack.c.bf16 %v8555_v59, %v8555_v59  ;;  %v8575_v39 = vpack.c.bf16 %v8557_v0, %v8557_v0 }
 0xb4d   : > { %v8519_v38 = vmul.f32 %v14368_v36, %v8507_v6  ;;  %v6990_v28 = vadd.f32 %v14217_v44, %v14354_v60  ;;  %v6947_v59 = vadd.f32 %v14222_v47, %v14354_v60 }
 0xb4e   : > { %11916 = vmatmul.mubr.msk.bf16.vlgmr.msra.gmra.mrb[88].mxu1 %vm1112_vm4, %v8572_v45  ;;  %11922 = vmatmul.mubr.msk.bf16.vlgmr.msra.gmra.mrb[92].mxu0 %vm1112_vm4, %v8573_v29  ;;  %v14549_v3 = vpop.permute.xlu0 %9349 }
 0xb4f   : > { %v8531_v46 = vadd.f32 %v14352_v53, %v8519_v38  ;;  %11926 = vmatpush3.bf16.msra.mxu1 %v14342_v8  ;;  %11932 = vmatpush3.bf16.msra.mxu0 %v14342_v8  ;;  %v9278_v6 = vmul.f32 %v14543_v21, %v6990_v28  ;;  %v9277_v45 = vmul.f32 %v14543_v21, %v6947_v59 }
 0xb50   : > { %11927 = vmatprep.mubr.msk.bf16.mxu1 %vm12134_vm0, %v14873_v35  ;;  %11933 = vmatprep.mubr.msk.bf16.mxu0 %vm12134_vm0, %v14873_v35 }
 0xb51   : > { %v8558_v54 = vmul.f32 0.25, %v8531_v46  ;;  %v8560_v36 = vmul.f32 0.75, %v8531_v46  ;;  %11937 = vmatprep.subr.bf16.mxu1 %v14873_v35  ;;  %11943 = vmatprep.subr.bf16.mxu0 %v14873_v35  ;;  %v9777_v53 = vmul.f32 %v14371_v2, %v8531_v46  ;;  %v8578_v31 = vpack.c.bf16 %v8531_v46, %v8531_v46 }
 0xb53   : > { %v8559_v10 = vadd.f32 %v8558_v54, %v8556_v63  ;;  %v8561_v27 = vadd.f32 %v8560_v36, %v8554_v49  ;;  %v14509_v22 = vadd.f32 %v9777_v53, %v9765_v24 }
 0xb55   : > { %v8576_v51 = vpack.c.bf16 %v8559_v10, %v8559_v10  ;;  %v8577_v2 = vpack.c.bf16 %v8561_v27, %v8561_v27  ;;  %v7033_v27 = vadd.f32 %v14230_v25, %v14354_v60 }
 0xb56   : > { %11928 = vmatmul.mubr.msk.bf16.vlgmr.msra.gmra.mrb[92].mxu1 %vm1112_vm4, %v8574_v32  ;;  %11934 = vmatmul.mubr.msk.bf16.vlgmr.msra.gmra.mrb[96].mxu0 %vm1112_vm4, %v8575_v39  ;;  %v7076_v32 = vadd.f32 %v14224_v5, %v14354_v60 }
 0xb57   : > { %11938 = vmatpush3.bf16.msra.mxu1 %v14342_v8  ;;  %11944 = vmatpush3.bf16.msra.mxu0 %v14342_v8 }
 0xb58   : > { %11939 = vmatprep.mubr.msk.bf16.mxu1 %vm12134_vm0, %v14873_v35  ;;  %11945 = vmatprep.mubr.msk.bf16.mxu0 %vm12134_vm0, %v14873_v35 }
 0xb59   : > { %11949 = vmatprep.subr.bf16.mxu1 %v14873_v35  ;;  %11955 = vmatprep.subr.bf16.mxu0 %v14873_v35 }
 0xb5e   : > { %11940 = vmatmul.mubr.msk.bf16.vlgmr.msra.gmra.mrb[96].mxu1 %vm1112_vm4, %v8576_v51  ;;  %11946 = vmatmul.mubr.msk.bf16.vlgmr.msra.gmra.mrb[100].mxu0 %vm1112_vm4, %v8577_v2 }
 0xb5f   : > { %11950 = vmatpush3.bf16.msra.mxu1 %v14342_v8  ;;  %11951 = vmatprep.mubr.msk.bf16.mxu1 %vm12134_vm0, %v14873_v35  ;;  %v6904_v8 = vadd.f32 %v14211_v17, %v14354_v60 }
 0xb60   : > { %11957 = vmatprep.mubr.msk.bf16.mxu0 %vm12134_vm0, %v14873_v35  ;;  %11961 = vmatprep.subr.bf16.mxu1 %v14873_v35 }
 0xb61   : > { %11956 = vmatpush3.bf16.msra.mxu0 %v14535_v62  ;;  %v9276_v49 = vmul.f32 %v14543_v21, %v6904_v8  ;;  %v9279_v8 = vmul.f32 %v14543_v21, %v7033_v27 }
 0xb62   : > { %11967 = vmatprep.subr.bf16.mxu0 %v14873_v35 }
 0xb66   : > { %11952 = vmatmul.mubr.msk.bf16.vlgmr.msra.gmra.mrb[100].mxu1 %vm1112_vm4, %v8578_v31 }
 0xb67   : > { %11963 = vmatprep.mubr.msk.bf16.mxu1 %vm12134_vm0, %v14873_v35  ;;  %11962 = vmatpush3.bf16.msra.mxu1 %v14535_v62 }
 0xb68   : > { %11973 = vmatprep.subr.bf16.mxu1 %v14873_v35 }
 0xbe9   : > { %v8619_v7 = vpop.f32.mrb[72].mxu0 }
 0xbea   : > { %v9296_v63 = vmul.f32 %v14356_v61, %v8619_v7  ;;  %v11863_v15 = vpop.f32.mrb[73].mxu0  ;;  %v9280_v7 = vmul.f32 %v14543_v21, %v7076_v32 }
 0xbeb   : > { %v8622_v33 = vpop.f32.mrb[74].mxu0 }
 0xbec   : > { %v9312_v12 = vadd.f32 %v9296_v63, %v9276_v49  ;;  %v11864_v41 = vpop.f32.mrb[75].mxu0 }
 0xbee   : > { %v9332_v4 = vmul.f32 %v14360_v42, %v9312_v12 }
 0xbf0   : > { %v9352_v17 = vadd.f32 %v14549_v3, %v9332_v4 }
 0xbf2   : > { %10060 = vst.msk [vmem:[%s14554_s11] sm:$0xff] %vm1475_vm5, %v9352_v17  ;;  %v9368_v15 = vmul.f32 0.5, %v9352_v17  ;;  %v7119_v17 = vadd.f32 %v14236_v58, %v14354_v60 }
 0xc01   : > { %v8662_v0 = vpop.f32.mrb[72].mxu1  ;;  %v8705_v40 = vpop.f32.mrb[76].mxu0 }
 0xc02   : > { %v9297_v29 = vmul.f32 %v14356_v61, %v8662_v0  ;;  %v9298_v38 = vmul.f32 %v14356_v61, %v8705_v40  ;;  %v11869_v46 = vpop.f32.mrb[73].mxu1  ;;  %v11875_v24 = vpop.f32.mrb[77].mxu0 }
 0xc03   : > { %v8665_v54 = vpop.f32.mrb[74].mxu1  ;;  %v8708_v36 = vpop.f32.mrb[78].mxu0 }
 0xc04   : > { %v9313_v53 = vadd.f32 %v9297_v29, %v9277_v45  ;;  %v9314_v44 = vadd.f32 %v9298_v38, %v9278_v6  ;;  %v11870_v10 = vpop.f32.mrb[75].mxu1  ;;  %v11876_v47 = vpop.f32.mrb[79].mxu0  ;;  %v7162_v29 = vadd.f32 %v14232_v37, %v14354_v60 }
 0xc06   : > { %v9333_v39 = vmul.f32 %v14360_v42, %v9313_v53  ;;  %v9334_v51 = vmul.f32 %v14360_v42, %v9314_v44  ;;  %v9281_v53 = vmul.f32 %v14543_v21, %v7119_v17  ;;  %v9282_v58 = vmul.f32 %v14543_v21, %v7162_v29 }
 0xc08   : > { %v9353_v2 = vadd.f32 %v14549_v3, %v9333_v39  ;;  %v9354_v31 = vadd.f32 %v14549_v3, %v9334_v51 }
 0xc09   : > { %v8748_v49 = vpop.f32.mrb[76].mxu1  ;;  %v8791_v63 = vpop.f32.mrb[80].mxu0 }
 0xc0a   : > { %v9369_v33 = vmul.f32 0.5, %v9353_v2  ;;  %10061 = vst.msk [vmem:[%s14554_s11 + $0x8] sm:$0xff] %vm1475_vm5, %v9353_v2  ;;  %10062 = vst.msk [vmem:[%s14554_s11 + $0x10] sm:$0xff] %vm1475_vm5, %v9354_v31  ;;  %v9299_v5 = vmul.f32 %v14356_v61, %v8748_v49  ;;  %v9300_v25 = vmul.f32 %v14356_v61, %v8791_v63  ;;  %v11881_v12 = vpop.f32.mrb[77].mxu1  ;;  %v11887_v41 = vpop.f32.mrb[81].mxu0  ;;  %v9371_v37 = vmul.f32 0.5, %v9354_v31 }
 0xc0b   : > { %v8751_v4 = vpop.f32.mrb[78].mxu1  ;;  %v8794_v28 = vpop.f32.mrb[82].mxu0 }
 0xc0c   : > { %v9370_v59 = vadd.f32 %v9369_v33, %v9368_v15  ;;  %v9315_v0 = vadd.f32 %v9299_v5, %v9279_v8  ;;  %v9316_v40 = vadd.f32 %v9300_v25, %v9280_v7  ;;  %v11882_v6 = vpop.f32.mrb[79].mxu1  ;;  %v11888_v45 = vpop.f32.mrb[83].mxu0  ;;  %v7205_v33 = vadd.f32 %v14240_v11, %v14354_v60 }
 0xc0d   : > { %v7248_v5 = vadd.f32 %v14238_v9, %v14354_v60 }
 0xc0e   : > { %v9394_v38 = vpack.c.bf16 %v9370_v59, %v9370_v59  ;;  %v9335_v46 = vmul.f32 %v14360_v42, %v9315_v0  ;;  %v9336_v24 = vmul.f32 %v14360_v42, %v9316_v40  ;;  %v9283_v59 = vmul.f32 %v14543_v21, %v7205_v33 }
 0xc0f   : > { %v9284_v11 = vmul.f32 %v14543_v21, %v7248_v5 }
 0xc10   : > { %v9355_v54 = vadd.f32 %v14549_v3, %v9335_v46  ;;  %v9356_v36 = vadd.f32 %v14549_v3, %v9336_v24  ;;  %11958 = vmatmul.mubr.msk.bf16.vlgmr.msra.gmra.mrb[104].mxu0 %vm1475_vm5, %v9394_v38 }
 0xc11   : > { %v8834_v44 = vpop.f32.mrb[80].mxu1  ;;  %v8877_v10 = vpop.f32.mrb[84].mxu0  ;;  %11968 = vmatpush3.bf16.msra.mxu0 %v14535_v62  ;;  %11969 = vmatprep.mubr.msk.bf16.mxu0 %vm12134_vm0, %v14873_v35 }
 0xc12   : > { %v9372_v47 = vmul.f32 0.5, %v9355_v54  ;;  %10063 = vst.msk [vmem:[%s14554_s11 + $0x18] sm:$0xff] %vm1475_vm5, %v9355_v54  ;;  %10064 = vst.msk [vmem:[%s14554_s11 + $0x20] sm:$0xff] %vm1475_vm5, %v9356_v36  ;;  %v9301_v27 = vmul.f32 %v14356_v61, %v8834_v44  ;;  %v9302_v32 = vmul.f32 %v14356_v61, %v8877_v10  ;;  %v11893_v39 = vpop.f32.mrb[81].mxu1  ;;  %v11899_v51 = vpop.f32.mrb[85].mxu0  ;;  %11979 = vmatprep.subr.bf16.mxu0 %v14873_v35  ;;  %v9374_v9 = vmul.f32 0.5, %v9356_v36 }
 0xc13   : > { %v8837_v2 = vpop.f32.mrb[82].mxu1  ;;  %v8880_v8 = vpop.f32.mrb[86].mxu0  ;;  %v7291_v10 = vadd.f32 %v14244_v14, %v14354_v60 }
 0xc14   : > { %v9373_v7 = vadd.f32 %v9372_v47, %v9371_v37  ;;  %v9317_v49 = vadd.f32 %v9301_v27, %v9281_v53  ;;  %v9318_v63 = vadd.f32 %v9302_v32, %v9282_v58  ;;  %v11894_v15 = vpop.f32.mrb[83].mxu1  ;;  %v11900_v31 = vpop.f32.mrb[87].mxu0  ;;  %v7334_v37 = vadd.f32 %v14242_v43, %v14354_v60 }
 0xc15   : > { %v9285_v2 = vmul.f32 %v14543_v21, %v7291_v10 }
 0xc16   : > { %v9395_v25 = vpack.c.bf16 %v9373_v7, %v9373_v7  ;;  %v9337_v12 = vmul.f32 %v14360_v42, %v9317_v49  ;;  %v9338_v41 = vmul.f32 %v14360_v42, %v9318_v63  ;;  %v9286_v14 = vmul.f32 %v14543_v21, %v7334_v37 }
 0xc18   : > { %v9357_v4 = vadd.f32 %v14549_v3, %v9337_v12  ;;  %v9358_v28 = vadd.f32 %v14549_v3, %v9338_v41  ;;  %11964 = vmatmul.mubr.msk.bf16.vlgmr.msra.gmra.mrb[104].mxu1 %vm1475_vm5, %v9395_v25 }
 0xc19   : > { %v8920_v0 = vpop.f32.mrb[84].mxu1  ;;  %v8963_v40 = vpop.f32.mrb[88].mxu0  ;;  %11974 = vmatpush3.bf16.msra.mxu1 %v14535_v62  ;;  %11975 = vmatprep.mubr.msk.bf16.mxu1 %vm12134_vm0, %v14873_v35 }
 0xc1a   : > { %v9375_v6 = vmul.f32 0.5, %v9357_v4  ;;  %10065 = vst.msk [vmem:[%s14554_s11 + $0x28] sm:$0xff] %vm1475_vm5, %v9357_v4  ;;  %10066 = vst.msk [vmem:[%s14554_s11 + $0x30] sm:$0xff] %vm1475_vm5, %v9358_v28  ;;  %v9303_v45 = vmul.f32 %v14356_v61, %v8920_v0  ;;  %v9304_v17 = vmul.f32 %v14356_v61, %v8963_v40  ;;  %v11905_v29 = vpop.f32.mrb[85].mxu1  ;;  %v11911_v38 = vpop.f32.mrb[89].mxu0  ;;  %11985 = vmatprep.subr.bf16.mxu1 %v14873_v35  ;;  %v9377_v43 = vmul.f32 0.5, %v9358_v28 }
 0xc1b   : > { %v8923_v46 = vpop.f32.mrb[86].mxu1  ;;  %v8966_v24 = vpop.f32.mrb[90].mxu0  ;;  %v7420_v0 = vadd.f32 %v14246_v48, %v14354_v60 }
 0xc1c   : > { %v9376_v54 = vadd.f32 %v9375_v6, %v9374_v9  ;;  %v9319_v53 = vadd.f32 %v9303_v45, %v9283_v59  ;;  %v9320_v58 = vadd.f32 %v9304_v17, %v9284_v11  ;;  %v11906_v44 = vpop.f32.mrb[87].mxu1  ;;  %v11912_v36 = vpop.f32.mrb[91].mxu0  ;;  %v7377_v11 = vadd.f32 %v14248_v13, %v14354_v60 }
 0xc1d   : > { %v9288_v13 = vmul.f32 %v14543_v21, %v7420_v0 }
 0xc1e   : > { %v9396_v47 = vpack.c.bf16 %v9376_v54, %v9376_v54  ;;  %v9339_v27 = vmul.f32 %v14360_v42, %v9319_v53  ;;  %v9340_v32 = vmul.f32 %v14360_v42, %v9320_v58  ;;  %v9287_v29 = vmul.f32 %v14543_v21, %v7377_v11 }
 0xc20   : > { %v9359_v39 = vadd.f32 %v14549_v3, %v9339_v27  ;;  %v9360_v51 = vadd.f32 %v14549_v3, %v9340_v32  ;;  %11970 = vmatmul.mubr.msk.bf16.vlgmr.msra.gmra.mrb[108].mxu0 %vm1475_vm5, %v9396_v47 }
 0xc21   : > { %v9006_v8 = vpop.f32.mrb[88].mxu1  ;;  %v9049_v7 = vpop.f32.mrb[92].mxu0  ;;  %11980 = vmatpush3.bf16.msra.mxu0 %v14535_v62  ;;  %11981 = vmatprep.mubr.msk.bf16.mxu0 %vm12134_vm0, %v14873_v35 }
 0xc22   : > { %v9378_v49 = vmul.f32 0.5, %v9359_v39  ;;  %10067 = vst.msk [vmem:[%s14554_s11 + $0x38] sm:$0xff] %vm1475_vm5, %v9359_v39  ;;  %10068 = vst.msk [vmem:[%s14554_s11 + $0x40] sm:$0xff] %vm1475_vm5, %v9360_v51  ;;  %v9305_v63 = vmul.f32 %v14356_v61, %v9006_v8  ;;  %v9306_v15 = vmul.f32 %v14356_v61, %v9049_v7  ;;  %v11917_v31 = vpop.f32.mrb[89].mxu1  ;;  %v11923_v33 = vpop.f32.mrb[93].mxu0  ;;  %11991 = vmatprep.subr.bf16.mxu0 %v14873_v35  ;;  %v9380_v48 = vmul.f32 0.5, %v9360_v51 }
 0xc23   : > { %v9009_v5 = vpop.f32.mrb[90].mxu1  ;;  %v9052_v25 = vpop.f32.mrb[94].mxu0  ;;  %v7463_v51 = vadd.f32 %v14262_v30, %v14354_v60 }
 0xc24   : > { %v9379_v12 = vadd.f32 %v9378_v49, %v9377_v43  ;;  %v9321_v41 = vadd.f32 %v9305_v63, %v9285_v2  ;;  %v9322_v4 = vadd.f32 %v9306_v15, %v9286_v14  ;;  %v11918_v59 = vpop.f32.mrb[91].mxu1  ;;  %v11924_v28 = vpop.f32.mrb[95].mxu0  ;;  %v7506_v2 = vadd.f32 %v14250_v52, %v14354_v60 }
 0xc25   : > { %v9289_v63 = vmul.f32 %v14543_v21, %v7463_v51 }
 0xc26   : > { %v9397_v40 = vpack.c.bf16 %v9379_v12, %v9379_v12  ;;  %v9341_v9 = vmul.f32 %v14360_v42, %v9321_v41  ;;  %v9342_v6 = vmul.f32 %v14360_v42, %v9322_v4  ;;  %v9290_v30 = vmul.f32 %v14543_v21, %v7506_v2 }
 0xc28   : > { %v9361_v45 = vadd.f32 %v14549_v3, %v9341_v9  ;;  %v9362_v17 = vadd.f32 %v14549_v3, %v9342_v6  ;;  %11976 = vmatmul.mubr.msk.bf16.vlgmr.msra.gmra.mrb[108].mxu1 %vm1475_vm5, %v9397_v40  ;;  %v7549_v6 = vadd.f32 %v14266_v50, %v14354_v60 }
 0xc29   : > { %v9092_v38 = vpop.f32.mrb[92].mxu1  ;;  %v9135_v46 = vpop.f32.mrb[96].mxu0  ;;  %11986 = vmatpush3.bf16.msra.mxu1 %v14535_v62  ;;  %11987 = vmatprep.mubr.msk.bf16.mxu1 %vm12134_vm0, %v14873_v35 }
 0xc2a   : > { %v9381_v24 = vmul.f32 0.5, %v9361_v45  ;;  %10069 = vst.msk [vmem:[%s14554_s11 + $0x48] sm:$0xff] %vm1475_vm5, %v9361_v45  ;;  %10070 = vst.msk [vmem:[%s14554_s11 + $0x50] sm:$0xff] %vm1475_vm5, %v9362_v17  ;;  %v9307_v54 = vmul.f32 %v14356_v61, %v9092_v38  ;;  %v9308_v53 = vmul.f32 %v14356_v61, %v9135_v46  ;;  %v11929_v58 = vpop.f32.mrb[93].mxu1  ;;  %v11935_v44 = vpop.f32.mrb[97].mxu0  ;;  %11997 = vmatprep.subr.bf16.mxu1 %v14873_v35  ;;  %v9383_v52 = vmul.f32 0.5, %v9362_v17 }
 0xc2b   : > { %v9095_v36 = vpop.f32.mrb[94].mxu1  ;;  %v9138_v10 = vpop.f32.mrb[98].mxu0 }
 0xc2c   : > { %v9382_v37 = vadd.f32 %v9381_v24, %v9380_v48  ;;  %v9323_v47 = vadd.f32 %v9307_v54, %v9287_v29  ;;  %v9324_v27 = vadd.f32 %v9308_v53, %v9288_v13  ;;  %v11930_v32 = vpop.f32.mrb[95].mxu1  ;;  %v11936_v39 = vpop.f32.mrb[99].mxu0  ;;  %v9291_v48 = vmul.f32 %v14543_v21, %v7549_v6 }
 0xc2d   : > { %v14725_v32 = vpop.permute.xlu1 %9807  ;;  %v14727_v39 = vpop.permute.xlu0 %9787 }
 0xc2e   : > { %v9398_v14 = vpack.c.bf16 %v9382_v37, %v9382_v37  ;;  %v9343_v8 = vmul.f32 %v14360_v42, %v9323_v47  ;;  %v9344_v7 = vmul.f32 %v14360_v42, %v9324_v27 }
 0xc30   : > { %v9363_v43 = vadd.f32 %v14549_v3, %v9343_v8  ;;  %v9364_v49 = vadd.f32 %v14549_v3, %v9344_v7  ;;  %11982 = vmatmul.mubr.msk.bf16.vlgmr.msra.gmra.mrb[112].mxu0 %vm1475_vm5, %v9398_v14 }
 0xc31   : > { %v9178_v15 = vpop.f32.mrb[96].mxu1  ;;  %v9221_v31 = vpop.f32.mrb[100].mxu0  ;;  %11992 = vmatpush3.bf16.msra.mxu0 %v14535_v62  ;;  %11993 = vmatprep.mubr.msk.bf16.mxu0 %vm12134_vm0, %v14873_v35 }
 0xc32   : > { %v9384_v33 = vmul.f32 0.5, %v9363_v43  ;;  %10071 = vst.msk [vmem:[%s14554_s11 + $0x58] sm:$0xff] %vm1475_vm5, %v9363_v43  ;;  %10072 = vst.msk [vmem:[%s14554_s11 + $0x60] sm:$0xff] %vm1475_vm5, %v9364_v49  ;;  %v9309_v5 = vmul.f32 %v14356_v61, %v9178_v15  ;;  %v9310_v25 = vmul.f32 %v14356_v61, %v9221_v31  ;;  %v11941_v12 = vpop.f32.mrb[97].mxu1  ;;  %v11947_v41 = vpop.f32.mrb[101].mxu0  ;;  %12003 = vmatprep.subr.bf16.mxu0 %v14873_v35  ;;  %v9386_v50 = vmul.f32 0.5, %v9364_v49 }
 0xc33   : > { %v9181_v4 = vpop.f32.mrb[98].mxu1  ;;  %v9224_v59 = vpop.f32.mrb[102].mxu0 }
 0xc34   : > { %v9385_v28 = vadd.f32 %v9384_v33, %v9383_v52  ;;  %v9325_v11 = vadd.f32 %v9309_v5, %v9289_v63  ;;  %v9326_v0 = vadd.f32 %v9310_v25, %v9290_v30  ;;  %v11942_v40 = vpop.f32.mrb[99].mxu1  ;;  %v11948_v9 = vpop.f32.mrb[103].mxu0 }
 0xc35   : > { %v14732_v49 = vpop.permute.xlu1 %9819 }
 0xc36   : > { %v9399_v45 = vpack.c.bf16 %v9385_v28, %v9385_v28  ;;  %v9345_v17 = vmul.f32 %v14360_v42, %v9325_v11  ;;  %v9346_v29 = vmul.f32 %v14360_v42, %v9326_v0 }
 0xc38   : > { %v9365_v13 = vadd.f32 %v14549_v3, %v9345_v17  ;;  %v9366_v38 = vadd.f32 %v14549_v3, %v9346_v29  ;;  %11988 = vmatmul.mubr.msk.bf16.vlgmr.msra.gmra.mrb[112].mxu1 %vm1475_vm5, %v9399_v45 }
 0xc39   : > { %v9264_v46 = vpop.f32.mrb[100].mxu1  ;;  %11998 = vmatpush3.bf16.msra.mxu1 %v14535_v62  ;;  %11999 = vmatprep.mubr.msk.bf16.mxu1 %vm12134_vm0, %v14873_v35 }
 0xc3a   : > { %v9387_v60 = vmul.f32 0.5, %v9365_v13  ;;  %10073 = vst.msk [vmem:[%s14554_s11 + $0x68] sm:$0xff] %vm1475_vm5, %v9365_v13  ;;  %10074 = vst.msk [vmem:[%s14554_s11 + $0x70] sm:$0xff] %vm1475_vm5, %v9366_v38  ;;  %v9311_v24 = vmul.f32 %v14356_v61, %v9264_v46  ;;  %v11953_v54 = vpop.f32.mrb[101].mxu1  ;;  %12009 = vmatprep.subr.bf16.mxu1 %v14873_v35  ;;  %v9389_v37 = vmul.f32 0.5, %v9366_v38 }
 0xc3b   : > { %v9267_v53 = vpop.f32.mrb[102].mxu1 }
 0xc3c   : > { %v9388_v58 = vadd.f32 %v9387_v60, %v9386_v50  ;;  %v9327_v62 = vadd.f32 %v9311_v24, %v9291_v48  ;;  %v11954_v44 = vpop.f32.mrb[103].mxu1 }
 0xc3e   : > { %v9400_v36 = vpack.c.bf16 %v9388_v58, %v9388_v58  ;;  %v9347_v10 = vmul.f32 %v14360_v42, %v9327_v62  ;;  %v10477_v42 = vld [vmem:[%s14821_s5 + $0x18] sm:$0xf] }
 0xc40   : > { %v9367_v21 = vadd.f32 %v14549_v3, %v9347_v10  ;;  %11994 = vmatmul.mubr.msk.bf16.vlgmr.msra.gmra.mrb[116].mxu0 %vm1475_vm5, %v9400_v36  ;;  %v14719_v3 = vsel %vm1116_vm3, %v10477_v42, 0 }
 0xc41   : > { %12005 = vmatprep.mubr.msk.bf16.mxu0 %vm12134_vm0, %v14873_v35  ;;  %12004 = vmatpush3.bf16.msra.mxu0 %v14719_v3 }
 0xc42   : > { %v9390_v47 = vmul.f32 0.5, %v9367_v21  ;;  %10075 = vst.msk [vmem:[%s14554_s11 + $0x78] sm:$0xff] %vm1475_vm5, %v9367_v21  ;;  %12015 = vmatprep.subr.bf16.mxu0 %v14873_v35 }
 0xc44   : > { %v9391_v61 = vadd.f32 %v9390_v47, %v9389_v37 }
 0xc46   : > { %v9401_v27 = vpack.c.bf16 %v9391_v61, %v9391_v61 }
 0xc48   : > { %12000 = vmatmul.mubr.msk.bf16.vlgmr.msra.gmra.mrb[116].mxu1 %vm1475_vm5, %v9401_v27 }
 0xc49   : > { %12011 = vmatprep.mubr.msk.bf16.mxu1 %vm12134_vm0, %v14873_v35  ;;  %12010 = vmatpush3.bf16.msra.mxu1 %v14719_v3 }
 0xc4a   : > { %12021 = vmatprep.subr.bf16.mxu1 %v14873_v35 }
 0xce3   : > { %v9445_v51 = vpop.f32.mrb[104].mxu0 }
 0xce4   : > { %v9790_v2 = vmul.f32 %v14727_v39, %v9445_v51  ;;  %v11959_v14 = vpop.f32.mrb[105].mxu0 }
 0xce5   : > { %v9448_v8 = vpop.f32.mrb[106].mxu0 }
 0xce6   : > { %v9798_v7 = vadd.f32 %v9790_v2, %v14377_v26  ;;  %v11960_v43 = vpop.f32.mrb[107].mxu0 }
 0xce8   : > { %v9810_v63 = vmul.f32 %v14725_v32, %v9798_v7 }
 0xcea   : > { %v9822_v30 = vadd.f32 %v14732_v49, %v9810_v63 }
 0xceb   : > { %v9488_v15 = vpop.f32.mrb[104].mxu1 }
 0xcec   : > { %v9791_v31 = vmul.f32 %v14727_v39, %v9488_v15  ;;  %10076 = vst.msk [vmem:[%s14738_s17] sm:$0xff] %vm1112_vm4, %v9822_v30  ;;  %v11965_v26 = vpop.f32.mrb[105].mxu1  ;;  %v9830_v4 = vmul.f32 0.5, %v9822_v30 }
 0xced   : > { %v9491_v52 = vpop.f32.mrb[106].mxu1 }
 0xcee   : > { %v9799_v33 = vadd.f32 %v9791_v31, %v14401_v34  ;;  %v11966_v5 = vpop.f32.mrb[107].mxu1 }
 0xcf0   : > { %v9811_v25 = vmul.f32 %v14725_v32, %v9799_v33 }
 0xcf2   : > { %v9823_v12 = vadd.f32 %v14732_v49, %v9811_v25 }
 0xcf3   : > { %v9531_v41 = vpop.f32.mrb[108].mxu0 }
 0xcf4   : > { %v9831_v59 = vmul.f32 0.5, %v9823_v12  ;;  %10077 = vst.msk [vmem:[%s14738_s17 + $0x8] sm:$0xff] %vm1112_vm4, %v9823_v12  ;;  %v9792_v28 = vmul.f32 %v14727_v39, %v9531_v41  ;;  %v11971_v11 = vpop.f32.mrb[109].mxu0 }
 0xcf5   : > { %v9534_v0 = vpop.f32.mrb[110].mxu0 }
 0xcf6   : > { %v9832_v40 = vadd.f32 %v9831_v59, %v9830_v4  ;;  %v9800_v9 = vadd.f32 %v9792_v28, %v14403_v1  ;;  %v11972_v6 = vpop.f32.mrb[111].mxu0 }
 0xcf7   : > { %v10034_v6 = vpop.permute.xlu1 %10033 }
 0xcf8   : > { %v9843_v34 = vpack.c.bf16 %v9832_v40, %v9832_v40  ;;  %v9812_v45 = vmul.f32 %v14725_v32, %v9800_v9 }
 0xcfa   : > { %v9824_v17 = vadd.f32 %v14732_v49, %v9812_v45  ;;  %12006 = vmatmul.mubr.msk.bf16.vlgmr.msra.gmra.mrb[120].mxu0 %vm1112_vm4, %v9843_v34 }
 0xcfb   : > { %v9574_v29 = vpop.f32.mrb[108].mxu1  ;;  %12016 = vmatpush3.bf16.msra.mxu0 %v14719_v3  ;;  %12017 = vmatprep.mubr.msk.bf16.mxu0 %vm12134_vm0, %v14873_v35 }
 0xcfc   : > { %10078 = vst.msk [vmem:[%s14738_s17 + $0x10] sm:$0xff] %vm1112_vm4, %v9824_v17  ;;  %v9793_v13 = vmul.f32 %v14727_v39, %v9574_v29  ;;  %v11977_v1 = vpop.f32.mrb[109].mxu1  ;;  %v9833_v54 = vmul.f32 0.5, %v9824_v17 }
 0xcfd   : > { %v9577_v38 = vpop.f32.mrb[110].mxu1 }
 0xcfe   : > { %v9801_v46 = vadd.f32 %v9793_v13, %v14447_v23  ;;  %v11978_v48 = vpop.f32.mrb[111].mxu1 }
 0xd00   : > { %v9813_v50 = vmul.f32 %v14725_v32, %v9801_v46 }
 0xd02   : > { %v9825_v60 = vadd.f32 %v14732_v49, %v9813_v50 }
 0xd03   : > { %v9617_v24 = vpop.f32.mrb[112].mxu0 }
 0xd04   : > { %v9834_v53 = vmul.f32 0.5, %v9825_v60  ;;  %10079 = vst.msk [vmem:[%s14738_s17 + $0x18] sm:$0xff] %vm1112_vm4, %v9825_v60  ;;  %v9794_v58 = vmul.f32 %v14727_v39, %v9617_v24  ;;  %v11983_v62 = vpop.f32.mrb[113].mxu0 }
 0xd05   : > { %v9620_v44 = vpop.f32.mrb[114].mxu0 }
 0xd06   : > { %v9835_v36 = vadd.f32 %v9834_v53, %v9833_v54  ;;  %v9802_v10 = vadd.f32 %v9794_v58, %v14449_v19  ;;  %v11984_v21 = vpop.f32.mrb[115].mxu0 }
 0xd08   : > { %v9844_v23 = vpack.c.bf16 %v9835_v36, %v9835_v36  ;;  %v9814_v37 = vmul.f32 %v14725_v32, %v9802_v10 }
 0xd0a   : > { %v9826_v47 = vadd.f32 %v14732_v49, %v9814_v37  ;;  %12012 = vmatmul.mubr.msk.bf16.vlgmr.msra.gmra.mrb[120].mxu1 %vm1112_vm4, %v9844_v23 }
 0xd0b   : > { %v9660_v61 = vpop.f32.mrb[112].mxu1  ;;  %12022 = vmatpush3.bf16.msra.mxu1 %v14719_v3  ;;  %12023 = vmatprep.mubr.msk.bf16.mxu1 %vm12134_vm0, %v14873_v35 }
 0xd0c   : > { %10080 = vst.msk [vmem:[%s14738_s17 + $0x20] sm:$0xff] %vm1112_vm4, %v9826_v47  ;;  %v9795_v27 = vmul.f32 %v14727_v39, %v9660_v61  ;;  %v11989_v19 = vpop.f32.mrb[113].mxu1  ;;  %v9836_v43 = vmul.f32 0.5, %v9826_v47 }
 0xd0d   : > { %v9663_v42 = vpop.f32.mrb[114].mxu1 }
 0xd0e   : > { %v9803_v51 = vadd.f32 %v9795_v27, %v14491_v55  ;;  %v11990_v2 = vpop.f32.mrb[115].mxu1 }
 0xd10   : > { %v9815_v14 = vmul.f32 %v14725_v32, %v9803_v51 }
 0xd12   : > { %v9827_v8 = vadd.f32 %v14732_v49, %v9815_v14 }
 0xd13   : > { %v9703_v7 = vpop.f32.mrb[116].mxu0 }
 0xd14   : > { %v9837_v3 = vmul.f32 0.5, %v9827_v8  ;;  %10081 = vst.msk [vmem:[%s14738_s17 + $0x28] sm:$0xff] %vm1112_vm4, %v9827_v8  ;;  %v9796_v35 = vmul.f32 %v14727_v39, %v9703_v7  ;;  %v11995_v63 = vpop.f32.mrb[117].mxu0 }
 0xd15   : > { %v9706_v30 = vpop.f32.mrb[118].mxu0 }
 0xd16   : > { %v9838_v15 = vadd.f32 %v9837_v3, %v9836_v43  ;;  %v9804_v31 = vadd.f32 %v9796_v35, %v14493_v16  ;;  %v11996_v26 = vpop.f32.mrb[119].mxu0 }
 0xd18   : > { %v9845_v55 = vpack.c.bf16 %v9838_v15, %v9838_v15  ;;  %v9816_v52 = vmul.f32 %v14725_v32, %v9804_v31 }
 0xd1a   : > { %v9828_v33 = vadd.f32 %v14732_v49, %v9816_v52  ;;  %12018 = vmatmul.mubr.msk.bf16.vlgmr.msra.gmra.mrb[124].mxu0 %vm1112_vm4, %v9845_v55 }
 0xd1b   : > { %v9746_v5 = vpop.f32.mrb[116].mxu1 }
 0xd1c   : > { %10082 = vst.msk [vmem:[%s14738_s17 + $0x30] sm:$0xff] %vm1112_vm4, %v9828_v33  ;;  %v9797_v25 = vmul.f32 %v14727_v39, %v9746_v5  ;;  %v12001_v12 = vpop.f32.mrb[117].mxu1  ;;  %v9839_v11 = vmul.f32 0.5, %v9828_v33  ;;  %v10026_v39 = vpop.permute.xlu0 %10025 }
 0xd1d   : > { %v9749_v41 = vpop.f32.mrb[118].mxu1  ;;  %v10028_v45 = vmul.f32 %v10026_v39, %v14282_v57  ;;  %v10029_v57 = vmul.f32 %v10026_v39, %v14293_v18  ;;  %v10030_v36 = vmul.f32 %v10026_v39, %v14307_v56  ;;  %v10031_v19 = vmul.f32 %v10026_v39, %v14321_v20 }
 0xd1e   : > { %v9805_v4 = vadd.f32 %v9797_v25, %v14509_v22  ;;  %v12002_v59 = vpop.f32.mrb[119].mxu1 }
 0xd20   : > { %v9817_v16 = vmul.f32 %v14725_v32, %v9805_v4  ;;  %v10046_v32 = vpop.permute.xlu1 %10045  ;;  %v10054_v1 = vpop.permute.xlu0 %10053 }
 0xd22   : > { %v9829_v28 = vadd.f32 %v14732_v49, %v9817_v16 }
 0xd24   : > { %v9840_v0 = vmul.f32 0.5, %v9829_v28  ;;  %10083 = vst.msk [vmem:[%s14738_s17 + $0x38] sm:$0xff] %vm1112_vm4, %v9829_v28 }
 0xd26   : > { %v9841_v40 = vadd.f32 %v9840_v0, %v9839_v11 }
 0xd28   : > { %v9846_v9 = vpack.c.bf16 %v9841_v40, %v9841_v40 }
 0xd2a   : > { %12024 = vmatmul.mubr.msk.bf16.vlgmr.msra.gmra.mrb[124].mxu1 %vm1112_vm4, %v9846_v9 }
 0xdcd   : > { %v9887_v34 = vpop.f32.mrb[120].mxu0 }
 0xdce   : > { %v10036_v22 = vmul.f32 %v10034_v6, %v9887_v34  ;;  %v12007_v17 = vpop.f32.mrb[121].mxu0 }
 0xdcf   : > { %v9890_v29 = vpop.f32.mrb[122].mxu0 }
 0xdd0   : > { %v10040_v13 = vadd.f32 %v10036_v22, %v10028_v45  ;;  %v12008_v49 = vpop.f32.mrb[123].mxu0 }
 0xdd2   : > { %v10048_v38 = vmul.f32 %v10046_v32, %v10040_v13 }
 0xdd4   : > { %v10056_v46 = vadd.f32 %v10054_v1, %v10048_v38 }
 0xdd6   : > { %10084 = vst.msk [vmem:[%s14800_s19] sm:$0xff] %vm411_vm2, %v10056_v46 }
 0xddd   : > { %v9930_v48 = vpop.f32.mrb[120].mxu1 }
 0xdde   : > { %v10037_v50 = vmul.f32 %v10034_v6, %v9930_v48  ;;  %v12013_v60 = vpop.f32.mrb[121].mxu1 }
 0xddf   : > { %v9933_v24 = vpop.f32.mrb[122].mxu1 }
 0xde0   : > { %v10041_v54 = vadd.f32 %v10037_v50, %v10029_v57  ;;  %v12014_v53 = vpop.f32.mrb[123].mxu1 }
 0xde2   : > { %v10049_v58 = vmul.f32 %v10046_v32, %v10041_v54 }
 0xde4   : > { %v10057_v62 = vadd.f32 %v10054_v1, %v10049_v58 }
 0xde6   : > { %10085 = vst.msk [vmem:[%s14800_s19 + $0x8] sm:$0xff] %vm411_vm2, %v10057_v62 }
 0xded   : > { %v9973_v44 = vpop.f32.mrb[124].mxu0 }
 0xdee   : > { %v10038_v10 = vmul.f32 %v10034_v6, %v9973_v44  ;;  %v12019_v21 = vpop.f32.mrb[125].mxu0 }
 0xdef   : > { %v9976_v23 = vpop.f32.mrb[126].mxu0 }
 0xdf0   : > { %v10042_v37 = vadd.f32 %v10038_v10, %v10030_v36  ;;  %v12020_v47 = vpop.f32.mrb[127].mxu0 }
 0xdf2   : > { %v10050_v18 = vmul.f32 %v10046_v32, %v10042_v37 }
 0xdf4   : > { %v10058_v61 = vadd.f32 %v10054_v1, %v10050_v18 }
 0xdf6   : > { %10086 = vst.msk [vmem:[%s14800_s19 + $0x10] sm:$0xff] %vm411_vm2, %v10058_v61 }
 0xdfd   : > { %v10016_v27 = vpop.f32.mrb[124].mxu1 }
 0xdfe   : > { %v10039_v42 = vmul.f32 %v10034_v6, %v10016_v27  ;;  %v12025_v51 = vpop.f32.mrb[125].mxu1 }
 0xdff   : > { %v10019_v2 = vpop.f32.mrb[126].mxu1 }
 0xe00   : > { %v10043_v14 = vadd.f32 %v10039_v42, %v10031_v19  ;;  %v12026_v8 = vpop.f32.mrb[127].mxu1 }
 0xe02   : > { %v10051_v7 = vmul.f32 %v10046_v32, %v10043_v14 }
 0xe04   : > { %v10059_v56 = vadd.f32 %v10054_v1, %v10051_v7 }
 0xe06   : > { %10087 = vst.msk [vmem:[%s14800_s19 + $0x18] sm:$0xff] %vm411_vm2, %v10059_v56 }
 0xe07 PF: > { %s19_s27 = sadd.s32 1, %s12131_s27  }
 0xe08   : > { %p16_p4 = scmp.ge.s32.totalorder %s19_s27, 4  }
 0xe0a   :  { %18 = sbr.rel (!%p16_p4) target bundleno = 1 (0x1), region = 117 }

</bundles_post_ra>
